<compile_context>
chip_gen: v7x
topology: tpu7x:2x2x1
jax: 0.10.0
libtpu: 0.0.40
codegen_flags: <defaults>
</compile_context>

<pallas_src>
import functools

import jax
import jax.numpy as jnp
import numpy as np
from jax.experimental import pallas as pl
from jax.experimental.pallas import tpu as pltpu

C_HID = 512          # hidden channels hard-coded in the PyTorch module
KSIZE = 3            # conv kernel size
_LANE = 128
_MAX_BLOCK_B = 256


def _round_up(x, m):
    return ((x + m - 1) // m) * m


def _emergency_kernel(ceco_ref, w1_ref, b1_ref, w2_ref, b2_ref,
                      w3_ref, b3_ref, sel_ref, fcw_ref, fcb_ref, out_ref,
                      *, inv_l3):
    R1 = ceco_ref.shape[0] // 2

    # ---- conv1 at both MaxPool taps in a single matmul (M = 2*R1 rows) ----
    h_all = jnp.dot(ceco_ref[...], w1_ref[...],
                    preferred_element_type=jnp.float32)             # (2*R1, 512)
    # conv -> maxpool -> ReLU; bias is shared so max(a+b, c+b) == max(a,c)+b.
    h = jnp.maximum(jnp.maximum(h_all[:R1], h_all[R1:]) + b1_ref[...], 0.0)
    hb = h.astype(jnp.bfloat16)                                      # (R1, 512)

    R2 = R1 - (KSIZE - 1)
    # ---- conv2 + ReLU: three per-tap matmuls on the UNSHIFTED bf16 activation;
    # row shifts happen on the f32 partial sums (cheap sublane rolls) instead of
    # on packed bf16 operands (sub-sublane repack + 3x-wide concat buffer). ----
    y = [jnp.dot(hb, w2_ref[k * C_HID:(k + 1) * C_HID, :],
                 preferred_element_type=jnp.float32) for k in range(KSIZE)]
    h2 = jnp.maximum(
        y[0][0:R2] + y[1][1:R2 + 1] + y[2][2:R2 + 2] + b2_ref[...], 0.0)
    h2b = h2.astype(jnp.bfloat16)                                    # (R2, 512)

    R3 = R2 - (KSIZE - 1)
    # ---- conv3 (no activation), same per-tap structure ----
    z = [jnp.dot(h2b, w3_ref[k * C_HID:(k + 1) * C_HID, :],
                 preferred_element_type=jnp.float32) for k in range(KSIZE)]
    h3 = z[0][0:R3] + z[1][1:R3 + 1] + z[2][2:R3 + 2] + b3_ref[...]  # (R3, 512) f32

    # ---- per-sample mean over the L3 valid conv3 rows: bf16 0/1 selection
    # matmul (exact), f32 accumulation, exact 1/L3 scale in f32.  The selection
    # also masks rows whose flat conv window crossed a sample boundary. ----
    m = jnp.dot(sel_ref[...], h3.astype(jnp.bfloat16),
                preferred_element_type=jnp.float32) * inv_l3         # (B, 512)
    out_ref[...] = jnp.dot(m.astype(jnp.bfloat16), fcw_ref[...],
                           preferred_element_type=jnp.float32) + fcb_ref[...]


def _chip_budget():
    """(max_rows_per_step, vmem_limit_bytes, multi_core) by TPU generation."""
    try:
        vmem = int(pltpu.get_tpu_info().vmem_capacity_bytes)
    except Exception:
        vmem = 64 << 20                      # conservative fallback
    if vmem <= (64 << 20):
        # v7x-class: 64 MiB VMEM per TensorCore, 2 TensorCores per chip.
        return 1024, 40 << 20, True
    # v5e / v6e: 128 MiB VMEM, single TensorCore -> one big block, no split.
    return 2048, 100 << 20, False


def _choose_block_b(N, Lp, max_rows, multi_core):
    b = max(1, min(_MAX_BLOCK_B, N, max(1, max_rows // Lp)))
    if multi_core and N > 1:
        # keep >= 2 grid steps so both v7x TensorCores get work
        b = min(b, max(1, pl.cdiv(N, 2)))
    return b


def emergency_forward(x_ncl, params, *, block_b=None):
    """x_ncl: (N, C_in, L) float32, like the PyTorch NCL conv input."""
    N, C_in, L = x_ncl.shape
    if L < 12:
        raise ValueError("EmergencyRecognizer forward needs L >= 12 "
                         "(conv/pool stages shrink the sequence).")
    n_classes = params["fc_w"].shape[0]
    NCP = _round_up(n_classes, _LANE)        # lane-dense output width

    L1 = L - (KSIZE - 1)
    Lp = L1 // 2                             # MaxPool1d(2,2) output length (floor)
    L2 = Lp - (KSIZE - 1)
    L3 = L2 - (KSIZE - 1)

    max_rows, vmem_limit, multi_core = _chip_budget()
    if block_b is None:
        block_b = _choose_block_b(N, Lp, max_rows, multi_core)
    G = pl.cdiv(N, block_b)
    Np = G * block_b

    x_nlc = jnp.transpose(x_ncl, (0, 2, 1)).astype(jnp.float32)      # (N, L, C_in)
    if Np != N:
        x_nlc = jnp.pad(x_nlc, ((0, Np - N), (0, 0), (0, 0)))

    KC = KSIZE * C_in
    KCp = _round_up(KC, _LANE)               # no ragged final K tile for conv1
    R1 = block_b * Lp
    R1p = _round_up(R1, 8)                   # sublane-aligned row-half split
    R3p = R1p - 2 * (KSIZE - 1)

    # conv1 im2col at even / odd conv-output positions (the two maxpool taps).
    def taps(start):
        slabs = [x_nlc[:, start + k:start + k + 2 * Lp:2, :] for k in range(KSIZE)]
        return jnp.concatenate(slabs, axis=-1)                       # (Np, Lp, KC)

    def blockify(t):                         # -> (G, R1p, KCp) bf16, zero-padded
        t = t.reshape(G, R1, KC)
        t = jnp.pad(t, ((0, 0), (0, R1p - R1), (0, KCp - KC)))
        return t.astype(jnp.bfloat16)

    # even / odd maxpool taps stacked along rows -> ONE conv1 matmul per step.
    ceco = jnp.concatenate([blockify(taps(0)), blockify(taps(1))], axis=1)

    # Conv weights as (K*C_in, C_out) im2col matrices, bf16 for the MXU.
    def conv_w(w, k_pad):
        c_out, c_in, k = w.shape
        m = jnp.transpose(w, (2, 1, 0)).reshape(k * c_in, c_out)
        if k_pad > k * c_in:
            m = jnp.pad(m, ((0, k_pad - k * c_in), (0, 0)))
        return m.astype(jnp.bfloat16)

    w1 = conv_w(params["conv1_w"], KCp)                              # (KCp, 512)
    w2 = conv_w(params["conv2_w"], KSIZE * C_HID)                    # (1536, 512)
    w3 = conv_w(params["conv3_w"], KSIZE * C_HID)                    # (1536, 512)
    b1 = params["conv1_b"].reshape(1, C_HID).astype(jnp.float32)
    b2 = params["conv2_b"].reshape(1, C_HID).astype(jnp.float32)
    b3 = params["conv3_b"].reshape(1, C_HID).astype(jnp.float32)

    fcw = jnp.zeros((C_HID, NCP), jnp.bfloat16).at[:, :n_classes].set(
        params["fc_w"].T.astype(jnp.bfloat16))
    fcb = jnp.zeros((1, NCP), jnp.float32).at[:, :n_classes].set(
        params["fc_b"].reshape(1, n_classes).astype(jnp.float32))

    # Segmented-mean selection matrix: exact bf16 0/1 entries; row b picks the
    # L3 valid conv3 rows of local sample b (zeros mask cross-sample/pad rows).
    r = jnp.arange(R3p)
    sel = jnp.where((r[None, :] // Lp == jnp.arange(block_b)[:, None])
                    & (r[None, :] % Lp < L3), 1.0, 0.0).astype(jnp.bfloat16)

    flops = 2 * G * (2 * R1p * KCp * C_HID                    # conv1 (both taps)
                     + 2 * KSIZE * R1p * C_HID * C_HID        # conv2 + conv3
                     + block_b * R3p * C_HID                  # segmented mean
                     + block_b * C_HID * NCP)                 # fc
    bytes_accessed = int(
        ceco.size * 2
        + (w1.size + w2.size + w3.size + fcw.size + sel.size) * 2
        + (b1.size + b2.size + b3.size + fcb.size) * 4
        + G * block_b * NCP * 4)

    args = (ceco, w1, b1, w2, b2, w3, b3, sel, fcw, fcb)

    def call(single_buffer):
        def const_spec(shape):
            idx = lambda n, _s=shape: (0,) * len(_s)
            if single_buffer:
                return pl.BlockSpec(shape, idx, pipeline_mode=pl.Buffered(1))
            return pl.BlockSpec(shape, idx)

        return pl.pallas_call(
            functools.partial(_emergency_kernel, inv_l3=float(1.0 / L3)),
            out_shape=jax.ShapeDtypeStruct((G, block_b, NCP), jnp.float32),
            grid_spec=pltpu.PrefetchScalarGridSpec(
                num_scalar_prefetch=0,
                grid=(G,),
                in_specs=[
                    pl.BlockSpec((pl.Squeezed(), 2 * R1p, KCp),
                                 lambda n: (n, 0, 0)),               # ceco
                    const_spec((KCp, C_HID)),                        # w1
                    const_spec((1, C_HID)),                          # b1
                    const_spec((KSIZE * C_HID, C_HID)),              # w2
                    const_spec((1, C_HID)),                          # b2
                    const_spec((KSIZE * C_HID, C_HID)),              # w3
                    const_spec((1, C_HID)),                          # b3
                    const_spec((block_b, R3p)),                      # sel
                    const_spec((C_HID, NCP)),                        # fcw
                    const_spec((1, NCP)),                            # fcb
                ],
                out_specs=pl.BlockSpec((pl.Squeezed(), block_b, NCP),
                                       lambda n: (n, 0, 0)),
            ),
            compiler_params=pltpu.CompilerParams(
                dimension_semantics=("parallel",),
                vmem_limit_bytes=vmem_limit),
            cost_estimate=pl.CostEstimate(flops=flops, transcendentals=0,
                                          bytes_accessed=bytes_accessed),
        )(*args)

    try:
        # Grid-invariant operands single-buffered (constant index_maps).
        out = call(single_buffer=True)
    except Exception:
        # Fallback for Pallas versions without pipeline_mode=pl.Buffered(1).
        out = call(single_buffer=False)

    return out.reshape(Np, NCP)[:N, :n_classes]


# ----------------- plain-JAX f32 reference (for correctness check) -----------------
def _ref_conv1d(h_nlc, w, bias):
    K = w.shape[2]
    Lo = h_nlc.shape[1] - K + 1
    wk = jnp.transpose(w, (2, 1, 0))  # (K, C_in, C_out)
    acc = jnp.zeros((h_nlc.shape[0], Lo, w.shape[0]), jnp.float32)
    for k in range(K):
        acc = acc + jnp.einsum("nlc,cd->nld", h_nlc[:, k:k + Lo, :], wk[k])
    return acc + bias[None, None, :]


def reference_forward(x_ncl, params):
    h = jnp.transpose(x_ncl, (0, 2, 1)).astype(jnp.float32)
    h = _ref_conv1d(h, params["conv1_w"], params["conv1_b"])
    Lp = h.shape[1] // 2
    h = jnp.maximum(h[:, 0:2 * Lp:2, :], h[:, 1:2 * Lp:2, :])
    h = jnp.maximum(h, 0.0)
    h = jnp.maximum(_ref_conv1d(h, params["conv2_w"], params["conv2_b"]), 0.0)
    h = _ref_conv1d(h, params["conv3_w"], params["conv3_b"])
    m = jnp.mean(h, axis=1)
    return m @ params["fc_w"].T + params["fc_b"]


def init_params(key, input_size=120, n_classes=2):
    ks = jax.random.split(key, 8)

    def u(k, shape, fan_in):
        bound = 1.0 / np.sqrt(fan_in)
        return jax.random.uniform(k, shape, jnp.float32, -bound, bound)

    return {
        "conv1_w": u(ks[0], (C_HID, input_size, KSIZE), input_size * KSIZE),
        "conv1_b": u(ks[1], (C_HID,), input_size * KSIZE),
        "conv2_w": u(ks[2], (C_HID, C_HID, KSIZE), C_HID * KSIZE),
        "conv2_b": u(ks[3], (C_HID,), C_HID * KSIZE),
        "conv3_w": u(ks[4], (C_HID, C_HID, KSIZE), C_HID * KSIZE),
        "conv3_b": u(ks[5], (C_HID,), C_HID * KSIZE),
        "fc_w": u(ks[6], (n_classes, C_HID), C_HID),
        "fc_b": u(ks[7], (n_classes,), C_HID),
    }


if __name__ == "__main__":
    key = jax.random.PRNGKey(0)
    k_x, k_p = jax.random.split(key)

    N, C_IN, L = 4, 120, 16          # small MFCC-like input: (batch, n_mfcc, frames)
    x = jax.random.normal(k_x, (N, C_IN, L), jnp.float32)
    params = init_params(k_p, input_size=C_IN, n_classes=2)

    out = jax.block_until_ready(emergency_forward(x, params))
    ref = jax.block_until_ready(reference_forward(x, params))

    # bf16 matmul operands -> compare against the f32 reference loosely.
    np.testing.assert_allclose(np.asarray(out), np.asarray(ref),
                               rtol=5e-2, atol=5e-2)
    assert out.shape == (N, 2)
    print("KERNEL_OK")
</pallas_src>

<mosaic_0001>
module attributes {stable_mosaic.version = 11 : i64} {
  func.func @_emergency_kernel(%arg0: i32, %arg1: memref<1x32x384xbf16, #tpu.memory_space<vmem>>, %arg2: memref<384x512xbf16, #tpu.memory_space<vmem>>, %arg3: memref<1x512xf32, #tpu.memory_space<vmem>>, %arg4: memref<1536x512xbf16, #tpu.memory_space<vmem>>, %arg5: memref<1x512xf32, #tpu.memory_space<vmem>>, %arg6: memref<1536x512xbf16, #tpu.memory_space<vmem>>, %arg7: memref<1x512xf32, #tpu.memory_space<vmem>>, %arg8: memref<2x12xbf16, #tpu.memory_space<vmem>>, %arg9: memref<512x128xbf16, #tpu.memory_space<vmem>>, %arg10: memref<1x128xf32, #tpu.memory_space<vmem>>, %arg11: memref<1x2x128xf32, #tpu.memory_space<vmem>>) attributes {dimension_semantics = [#tpu.dimension_semantics<parallel>], iteration_bounds = array<i64: 2>, scalar_prefetch = 0 : i64, scratch_operands = 0 : i64, tpu.core_type = #tpu.core_type<tc>, window_params = [{transform_indices = @transform_0, window_bounds = array<i64: 1, 32, 384>}, {pipeline_mode = #tpu.pipeline_mode<synchronous>, transform_indices = @transform_1, window_bounds = array<i64: 384, 512>}, {pipeline_mode = #tpu.pipeline_mode<synchronous>, transform_indices = @transform_2, window_bounds = array<i64: 1, 512>}, {pipeline_mode = #tpu.pipeline_mode<synchronous>, transform_indices = @transform_3, window_bounds = array<i64: 1536, 512>}, {pipeline_mode = #tpu.pipeline_mode<synchronous>, transform_indices = @transform_4, window_bounds = array<i64: 1, 512>}, {pipeline_mode = #tpu.pipeline_mode<synchronous>, transform_indices = @transform_5, window_bounds = array<i64: 1536, 512>}, {pipeline_mode = #tpu.pipeline_mode<synchronous>, transform_indices = @transform_6, window_bounds = array<i64: 1, 512>}, {pipeline_mode = #tpu.pipeline_mode<synchronous>, transform_indices = @transform_7, window_bounds = array<i64: 2, 12>}, {pipeline_mode = #tpu.pipeline_mode<synchronous>, transform_indices = @transform_8, window_bounds = array<i64: 512, 128>}, {pipeline_mode = #tpu.pipeline_mode<synchronous>, transform_indices = @transform_9, window_bounds = array<i64: 1, 128>}, {transform_indices = @transform_10, window_bounds = array<i64: 1, 2, 128>}]} {
    %c0 = arith.constant 0 : index
    %c0_0 = arith.constant 0 : index
    %c0_1 = arith.constant 0 : index
    %0 = vector.load %arg1[%c0, %c0_0, %c0_1] : memref<1x32x384xbf16, #tpu.memory_space<vmem>>, vector<1x32x384xbf16>
    %1 = vector.shape_cast %0 : vector<1x32x384xbf16> to vector<32x384xbf16>
    %c0_2 = arith.constant 0 : index
    %c0_3 = arith.constant 0 : index
    %2 = vector.load %arg2[%c0_2, %c0_3] : memref<384x512xbf16, #tpu.memory_space<vmem>>, vector<384x512xbf16>
    %cst = arith.constant dense<0.000000e+00> : vector<32x512xf32>
    %3 = tpu.matmul %1, %2, %cst {dimension_numbers = #tpu.dot_dimension_numbers<[1], [0], [0], [1], [0, 0, 1, 1], [], []>} : vector<32x384xbf16>, vector<384x512xbf16>, vector<32x512xf32> -> vector<32x512xf32>
    %4 = vector.extract_strided_slice %3 {offsets = [0, 0], sizes = [16, 512], strides = [1, 1]} : vector<32x512xf32> to vector<16x512xf32>
    %5 = vector.extract_strided_slice %3 {offsets = [16, 0], sizes = [16, 512], strides = [1, 1]} : vector<32x512xf32> to vector<16x512xf32>
    %6 = arith.maximumf %4, %5 : vector<16x512xf32>
    %c0_4 = arith.constant 0 : index
    %c0_5 = arith.constant 0 : index
    %7 = vector.load %arg3[%c0_4, %c0_5] : memref<1x512xf32, #tpu.memory_space<vmem>>, vector<1x512xf32>
    %8 = vector.broadcast %7 : vector<1x512xf32> to vector<16x512xf32>
    %9 = arith.addf %6, %8 : vector<16x512xf32>
    %cst_6 = arith.constant 0.000000e+00 : f32
    %10 = vector.broadcast %cst_6 : f32 to vector<16x512xf32>
    %11 = arith.maximumf %9, %10 : vector<16x512xf32>
    %12 = arith.truncf %11 : vector<16x512xf32> to vector<16x512xbf16>
    %c0_7 = arith.constant 0 : index
    %c0_8 = arith.constant 0 : index
    %13 = vector.load %arg4[%c0_7, %c0_8] : memref<1536x512xbf16, #tpu.memory_space<vmem>>, vector<512x512xbf16>
    %cst_9 = arith.constant dense<0.000000e+00> : vector<16x512xf32>
    %14 = tpu.matmul %12, %13, %cst_9 {dimension_numbers = #tpu.dot_dimension_numbers<[1], [0], [0], [1], [0, 0, 1, 1], [], []>} : vector<16x512xbf16>, vector<512x512xbf16>, vector<16x512xf32> -> vector<16x512xf32>
    %c512 = arith.constant 512 : index
    %c0_10 = arith.constant 0 : index
    %15 = vector.load %arg4[%c512, %c0_10] : memref<1536x512xbf16, #tpu.memory_space<vmem>>, vector<512x512xbf16>
    %cst_11 = arith.constant dense<0.000000e+00> : vector<16x512xf32>
    %16 = tpu.matmul %12, %15, %cst_11 {dimension_numbers = #tpu.dot_dimension_numbers<[1], [0], [0], [1], [0, 0, 1, 1], [], []>} : vector<16x512xbf16>, vector<512x512xbf16>, vector<16x512xf32> -> vector<16x512xf32>
    %c1024 = arith.constant 1024 : index
    %c0_12 = arith.constant 0 : index
    %17 = vector.load %arg4[%c1024, %c0_12] : memref<1536x512xbf16, #tpu.memory_space<vmem>>, vector<512x512xbf16>
    %cst_13 = arith.constant dense<0.000000e+00> : vector<16x512xf32>
    %18 = tpu.matmul %12, %17, %cst_13 {dimension_numbers = #tpu.dot_dimension_numbers<[1], [0], [0], [1], [0, 0, 1, 1], [], []>} : vector<16x512xbf16>, vector<512x512xbf16>, vector<16x512xf32> -> vector<16x512xf32>
    %19 = vector.extract_strided_slice %14 {offsets = [0, 0], sizes = [14, 512], strides = [1, 1]} : vector<16x512xf32> to vector<14x512xf32>
    %20 = vector.extract_strided_slice %16 {offsets = [1, 0], sizes = [14, 512], strides = [1, 1]} : vector<16x512xf32> to vector<14x512xf32>
    %21 = arith.addf %19, %20 : vector<14x512xf32>
    %22 = vector.extract_strided_slice %18 {offsets = [2, 0], sizes = [14, 512], strides = [1, 1]} : vector<16x512xf32> to vector<14x512xf32>
    %23 = arith.addf %21, %22 : vector<14x512xf32>
    %c0_14 = arith.constant 0 : index
    %c0_15 = arith.constant 0 : index
    %24 = vector.load %arg5[%c0_14, %c0_15] : memref<1x512xf32, #tpu.memory_space<vmem>>, vector<1x512xf32>
    %25 = vector.broadcast %24 : vector<1x512xf32> to vector<14x512xf32>
    %26 = arith.addf %23, %25 : vector<14x512xf32>
    %cst_16 = arith.constant 0.000000e+00 : f32
    %27 = vector.broadcast %cst_16 : f32 to vector<14x512xf32>
    %28 = arith.maximumf %26, %27 : vector<14x512xf32>
    %29 = arith.truncf %28 : vector<14x512xf32> to vector<14x512xbf16>
    %c0_17 = arith.constant 0 : index
    %c0_18 = arith.constant 0 : index
    %30 = vector.load %arg6[%c0_17, %c0_18] : memref<1536x512xbf16, #tpu.memory_space<vmem>>, vector<512x512xbf16>
    %cst_19 = arith.constant dense<0.000000e+00> : vector<14x512xf32>
    %31 = tpu.matmul %29, %30, %cst_19 {dimension_numbers = #tpu.dot_dimension_numbers<[1], [0], [0], [1], [0, 0, 1, 1], [], []>} : vector<14x512xbf16>, vector<512x512xbf16>, vector<14x512xf32> -> vector<14x512xf32>
    %c512_20 = arith.constant 512 : index
    %c0_21 = arith.constant 0 : index
    %32 = vector.load %arg6[%c512_20, %c0_21] : memref<1536x512xbf16, #tpu.memory_space<vmem>>, vector<512x512xbf16>
    %cst_22 = arith.constant dense<0.000000e+00> : vector<14x512xf32>
    %33 = tpu.matmul %29, %32, %cst_22 {dimension_numbers = #tpu.dot_dimension_numbers<[1], [0], [0], [1], [0, 0, 1, 1], [], []>} : vector<14x512xbf16>, vector<512x512xbf16>, vector<14x512xf32> -> vector<14x512xf32>
    %c1024_23 = arith.constant 1024 : index
    %c0_24 = arith.constant 0 : index
    %34 = vector.load %arg6[%c1024_23, %c0_24] : memref<1536x512xbf16, #tpu.memory_space<vmem>>, vector<512x512xbf16>
    %cst_25 = arith.constant dense<0.000000e+00> : vector<14x512xf32>
    %35 = tpu.matmul %29, %34, %cst_25 {dimension_numbers = #tpu.dot_dimension_numbers<[1], [0], [0], [1], [0, 0, 1, 1], [], []>} : vector<14x512xbf16>, vector<512x512xbf16>, vector<14x512xf32> -> vector<14x512xf32>
    %36 = vector.extract_strided_slice %31 {offsets = [0, 0], sizes = [12, 512], strides = [1, 1]} : vector<14x512xf32> to vector<12x512xf32>
    %37 = vector.extract_strided_slice %33 {offsets = [1, 0], sizes = [12, 512], strides = [1, 1]} : vector<14x512xf32> to vector<12x512xf32>
    %38 = arith.addf %36, %37 : vector<12x512xf32>
    %39 = vector.extract_strided_slice %35 {offsets = [2, 0], sizes = [12, 512], strides = [1, 1]} : vector<14x512xf32> to vector<12x512xf32>
    %40 = arith.addf %38, %39 : vector<12x512xf32>
    %c0_26 = arith.constant 0 : index
    %c0_27 = arith.constant 0 : index
    %41 = vector.load %arg7[%c0_26, %c0_27] : memref<1x512xf32, #tpu.memory_space<vmem>>, vector<1x512xf32>
    %42 = vector.broadcast %41 : vector<1x512xf32> to vector<12x512xf32>
    %43 = arith.addf %40, %42 : vector<12x512xf32>
    %c0_28 = arith.constant 0 : index
    %c0_29 = arith.constant 0 : index
    %44 = vector.load %arg8[%c0_28, %c0_29] : memref<2x12xbf16, #tpu.memory_space<vmem>>, vector<2x12xbf16>
    %45 = arith.truncf %43 : vector<12x512xf32> to vector<12x512xbf16>
    %cst_30 = arith.constant dense<0.000000e+00> : vector<2x512xf32>
    %46 = tpu.matmul %44, %45, %cst_30 {dimension_numbers = #tpu.dot_dimension_numbers<[1], [0], [0], [1], [0, 0, 1, 1], [], []>} : vector<2x12xbf16>, vector<12x512xbf16>, vector<2x512xf32> -> vector<2x512xf32>
    %cst_31 = arith.constant 0.333333343 : f32
    %47 = vector.broadcast %cst_31 : f32 to vector<2x512xf32>
    %48 = arith.mulf %46, %47 : vector<2x512xf32>
    %49 = arith.truncf %48 : vector<2x512xf32> to vector<2x512xbf16>
    %c0_32 = arith.constant 0 : index
    %c0_33 = arith.constant 0 : index
    %50 = vector.load %arg9[%c0_32, %c0_33] : memref<512x128xbf16, #tpu.memory_space<vmem>>, vector<512x128xbf16>
    %cst_34 = arith.constant dense<0.000000e+00> : vector<2x128xf32>
    %51 = tpu.matmul %49, %50, %cst_34 {dimension_numbers = #tpu.dot_dimension_numbers<[1], [0], [0], [1], [0, 0, 1, 1], [], []>} : vector<2x512xbf16>, vector<512x128xbf16>, vector<2x128xf32> -> vector<2x128xf32>
    %c0_35 = arith.constant 0 : index
    %c0_36 = arith.constant 0 : index
    %52 = vector.load %arg10[%c0_35, %c0_36] : memref<1x128xf32, #tpu.memory_space<vmem>>, vector<1x128xf32>
    %53 = vector.broadcast %52 : vector<1x128xf32> to vector<2x128xf32>
    %54 = arith.addf %51, %53 : vector<2x128xf32>
    %c0_37 = arith.constant 0 : index
    %c0_38 = arith.constant 0 : index
    %c0_39 = arith.constant 0 : index
    %55 = vector.load %arg11[%c0_37, %c0_38, %c0_39] : memref<1x2x128xf32, #tpu.memory_space<vmem>>, vector<1x2x128xf32>
    %56 = vector.shape_cast %55 : vector<1x2x128xf32> to vector<2x128xf32>
    %57 = vector.shape_cast %54 : vector<2x128xf32> to vector<1x2x128xf32>
    tpu.vector_store %arg11[%c0_37, %c0_38, %c0_39], %57 {strides = array<i32>} : memref<1x2x128xf32, #tpu.memory_space<vmem>>, vector<1x2x128xf32>,
    return
  }
  func.func @transform_0(%arg0: i32) -> (i32, i32, i32) {
    %c0_i32 = arith.constant 0 : i32
    %c0_i32_0 = arith.constant 0 : i32
    %c0_i32_1 = arith.constant 0 : i32
    return %arg0, %c0_i32, %c0_i32_0 : i32, i32, i32
  }
  func.func @transform_1(%arg0: i32) -> (i32, i32) {
    %c0_i32 = arith.constant 0 : i32
    %c0_i32_0 = arith.constant 0 : i32
    %c0_i32_1 = arith.constant 0 : i32
    return %c0_i32, %c0_i32_0 : i32, i32
  }
  func.func @transform_2(%arg0: i32) -> (i32, i32) {
    %c0_i32 = arith.constant 0 : i32
    %c0_i32_0 = arith.constant 0 : i32
    %c0_i32_1 = arith.constant 0 : i32
    return %c0_i32, %c0_i32_0 : i32, i32
  }
  func.func @transform_3(%arg0: i32) -> (i32, i32) {
    %c0_i32 = arith.constant 0 : i32
    %c0_i32_0 = arith.constant 0 : i32
    %c0_i32_1 = arith.constant 0 : i32
    return %c0_i32, %c0_i32_0 : i32, i32
  }
  func.func @transform_4(%arg0: i32) -> (i32, i32) {
    %c0_i32 = arith.constant 0 : i32
    %c0_i32_0 = arith.constant 0 : i32
    %c0_i32_1 = arith.constant 0 : i32
    return %c0_i32, %c0_i32_0 : i32, i32
  }
  func.func @transform_5(%arg0: i32) -> (i32, i32) {
    %c0_i32 = arith.constant 0 : i32
    %c0_i32_0 = arith.constant 0 : i32
    %c0_i32_1 = arith.constant 0 : i32
    return %c0_i32, %c0_i32_0 : i32, i32
  }
  func.func @transform_6(%arg0: i32) -> (i32, i32) {
    %c0_i32 = arith.constant 0 : i32
    %c0_i32_0 = arith.constant 0 : i32
    %c0_i32_1 = arith.constant 0 : i32
    return %c0_i32, %c0_i32_0 : i32, i32
  }
  func.func @transform_7(%arg0: i32) -> (i32, i32) {
    %c0_i32 = arith.constant 0 : i32
    %c0_i32_0 = arith.constant 0 : i32
    %c0_i32_1 = arith.constant 0 : i32
    return %c0_i32, %c0_i32_0 : i32, i32
  }
  func.func @transform_8(%arg0: i32) -> (i32, i32) {
    %c0_i32 = arith.constant 0 : i32
    %c0_i32_0 = arith.constant 0 : i32
    %c0_i32_1 = arith.constant 0 : i32
    return %c0_i32, %c0_i32_0 : i32, i32
  }
  func.func @transform_9(%arg0: i32) -> (i32, i32) {
    %c0_i32 = arith.constant 0 : i32
    %c0_i32_0 = arith.constant 0 : i32
    %c0_i32_1 = arith.constant 0 : i32
    return %c0_i32, %c0_i32_0 : i32, i32
  }
  func.func @transform_10(%arg0: i32) -> (i32, i32, i32) {
    %c0_i32 = arith.constant 0 : i32
    %c0_i32_0 = arith.constant 0 : i32
    %c0_i32_1 = arith.constant 0 : i32
    return %arg0, %c0_i32, %c0_i32_0 : i32, i32, i32
  }
}

module attributes {stable_mosaic.version = 11 : i64} {
  func.func @_emergency_kernel(%arg0: i32, %arg1: memref<1x32x384xbf16, #tpu.memory_space<vmem>>, %arg2: memref<384x512xbf16, #tpu.memory_space<vmem>>, %arg3: memref<1x512xf32, #tpu.memory_space<vmem>>, %arg4: memref<1536x512xbf16, #tpu.memory_space<vmem>>, %arg5: memref<1x512xf32, #tpu.memory_space<vmem>>, %arg6: memref<1536x512xbf16, #tpu.memory_space<vmem>>, %arg7: memref<1x512xf32, #tpu.memory_space<vmem>>, %arg8: memref<2x12xbf16, #tpu.memory_space<vmem>>, %arg9: memref<512x128xbf16, #tpu.memory_space<vmem>>, %arg10: memref<1x128xf32, #tpu.memory_space<vmem>>, %arg11: memref<1x2x128xf32, #tpu.memory_space<vmem>>) attributes {dimension_semantics = [#tpu.dimension_semantics<parallel>], iteration_bounds = array<i64: 2>, scalar_prefetch = 0 : i64, scratch_operands = 0 : i64, tpu.core_type = #tpu.core_type<tc>, window_params = [{transform_indices = @transform_0, window_bounds = array<i64: 1, 32, 384>}, {pipeline_mode = #tpu.pipeline_mode<synchronous>, transform_indices = @transform_1, window_bounds = array<i64: 384, 512>}, {pipeline_mode = #tpu.pipeline_mode<synchronous>, transform_indices = @transform_2, window_bounds = array<i64: 1, 512>}, {pipeline_mode = #tpu.pipeline_mode<synchronous>, transform_indices = @transform_3, window_bounds = array<i64: 1536, 512>}, {pipeline_mode = #tpu.pipeline_mode<synchronous>, transform_indices = @transform_4, window_bounds = array<i64: 1, 512>}, {pipeline_mode = #tpu.pipeline_mode<synchronous>, transform_indices = @transform_5, window_bounds = array<i64: 1536, 512>}, {pipeline_mode = #tpu.pipeline_mode<synchronous>, transform_indices = @transform_6, window_bounds = array<i64: 1, 512>}, {pipeline_mode = #tpu.pipeline_mode<synchronous>, transform_indices = @transform_7, window_bounds = array<i64: 2, 12>}, {pipeline_mode = #tpu.pipeline_mode<synchronous>, transform_indices = @transform_8, window_bounds = array<i64: 512, 128>}, {pipeline_mode = #tpu.pipeline_mode<synchronous>, transform_indices = @transform_9, window_bounds = array<i64: 1, 128>}, {transform_indices = @transform_10, window_bounds = array<i64: 1, 2, 128>}]} {
    %c0 = arith.constant 0 : index
    %c0_0 = arith.constant 0 : index
    %c0_1 = arith.constant 0 : index
    %0 = vector.load %arg1[%c0, %c0_0, %c0_1] : memref<1x32x384xbf16, #tpu.memory_space<vmem>>, vector<1x32x384xbf16>
    %1 = vector.shape_cast %0 : vector<1x32x384xbf16> to vector<32x384xbf16>
    %c0_2 = arith.constant 0 : index
    %c0_3 = arith.constant 0 : index
    %2 = vector.load %arg2[%c0_2, %c0_3] : memref<384x512xbf16, #tpu.memory_space<vmem>>, vector<384x512xbf16>
    %cst = arith.constant dense<0.000000e+00> : vector<32x512xf32>
    %3 = tpu.matmul %1, %2, %cst {dimension_numbers = #tpu.dot_dimension_numbers<[1], [0], [0], [1], [0, 0, 1, 1], [], []>} : vector<32x384xbf16>, vector<384x512xbf16>, vector<32x512xf32> -> vector<32x512xf32>
    %4 = vector.extract_strided_slice %3 {offsets = [0, 0], sizes = [16, 512], strides = [1, 1]} : vector<32x512xf32> to vector<16x512xf32>
    %5 = vector.extract_strided_slice %3 {offsets = [16, 0], sizes = [16, 512], strides = [1, 1]} : vector<32x512xf32> to vector<16x512xf32>
    %6 = arith.maximumf %4, %5 : vector<16x512xf32>
    %c0_4 = arith.constant 0 : index
    %c0_5 = arith.constant 0 : index
    %7 = vector.load %arg3[%c0_4, %c0_5] : memref<1x512xf32, #tpu.memory_space<vmem>>, vector<1x512xf32>
    %8 = vector.broadcast %7 : vector<1x512xf32> to vector<16x512xf32>
    %9 = arith.addf %6, %8 : vector<16x512xf32>
    %cst_6 = arith.constant 0.000000e+00 : f32
    %10 = vector.broadcast %cst_6 : f32 to vector<16x512xf32>
    %11 = arith.maximumf %9, %10 : vector<16x512xf32>
    %12 = arith.truncf %11 : vector<16x512xf32> to vector<16x512xbf16>
    %c0_7 = arith.constant 0 : index
    %c0_8 = arith.constant 0 : index
    %13 = vector.load %arg4[%c0_7, %c0_8] : memref<1536x512xbf16, #tpu.memory_space<vmem>>, vector<512x512xbf16>
    %cst_9 = arith.constant dense<0.000000e+00> : vector<16x512xf32>
    %14 = tpu.matmul %12, %13, %cst_9 {dimension_numbers = #tpu.dot_dimension_numbers<[1], [0], [0], [1], [0, 0, 1, 1], [], []>} : vector<16x512xbf16>, vector<512x512xbf16>, vector<16x512xf32> -> vector<16x512xf32>
    %c512 = arith.constant 512 : index
    %c0_10 = arith.constant 0 : index
    %15 = vector.load %arg4[%c512, %c0_10] : memref<1536x512xbf16, #tpu.memory_space<vmem>>, vector<512x512xbf16>
    %cst_11 = arith.constant dense<0.000000e+00> : vector<16x512xf32>
    %16 = tpu.matmul %12, %15, %cst_11 {dimension_numbers = #tpu.dot_dimension_numbers<[1], [0], [0], [1], [0, 0, 1, 1], [], []>} : vector<16x512xbf16>, vector<512x512xbf16>, vector<16x512xf32> -> vector<16x512xf32>
    %c1024 = arith.constant 1024 : index
    %c0_12 = arith.constant 0 : index
    %17 = vector.load %arg4[%c1024, %c0_12] : memref<1536x512xbf16, #tpu.memory_space<vmem>>, vector<512x512xbf16>
    %cst_13 = arith.constant dense<0.000000e+00> : vector<16x512xf32>
    %18 = tpu.matmul %12, %17, %cst_13 {dimension_numbers = #tpu.dot_dimension_numbers<[1], [0], [0], [1], [0, 0, 1, 1], [], []>} : vector<16x512xbf16>, vector<512x512xbf16>, vector<16x512xf32> -> vector<16x512xf32>
    %19 = vector.extract_strided_slice %14 {offsets = [0, 0], sizes = [14, 512], strides = [1, 1]} : vector<16x512xf32> to vector<14x512xf32>
    %20 = vector.extract_strided_slice %16 {offsets = [1, 0], sizes = [14, 512], strides = [1, 1]} : vector<16x512xf32> to vector<14x512xf32>
    %21 = arith.addf %19, %20 : vector<14x512xf32>
    %22 = vector.extract_strided_slice %18 {offsets = [2, 0], sizes = [14, 512], strides = [1, 1]} : vector<16x512xf32> to vector<14x512xf32>
    %23 = arith.addf %21, %22 : vector<14x512xf32>
    %c0_14 = arith.constant 0 : index
    %c0_15 = arith.constant 0 : index
    %24 = vector.load %arg5[%c0_14, %c0_15] : memref<1x512xf32, #tpu.memory_space<vmem>>, vector<1x512xf32>
    %25 = vector.broadcast %24 : vector<1x512xf32> to vector<14x512xf32>
    %26 = arith.addf %23, %25 : vector<14x512xf32>
    %cst_16 = arith.constant 0.000000e+00 : f32
    %27 = vector.broadcast %cst_16 : f32 to vector<14x512xf32>
    %28 = arith.maximumf %26, %27 : vector<14x512xf32>
    %29 = arith.truncf %28 : vector<14x512xf32> to vector<14x512xbf16>
    %c0_17 = arith.constant 0 : index
    %c0_18 = arith.constant 0 : index
    %30 = vector.load %arg6[%c0_17, %c0_18] : memref<1536x512xbf16, #tpu.memory_space<vmem>>, vector<512x512xbf16>
    %cst_19 = arith.constant dense<0.000000e+00> : vector<14x512xf32>
    %31 = tpu.matmul %29, %30, %cst_19 {dimension_numbers = #tpu.dot_dimension_numbers<[1], [0], [0], [1], [0, 0, 1, 1], [], []>} : vector<14x512xbf16>, vector<512x512xbf16>, vector<14x512xf32> -> vector<14x512xf32>
    %c512_20 = arith.constant 512 : index
    %c0_21 = arith.constant 0 : index
    %32 = vector.load %arg6[%c512_20, %c0_21] : memref<1536x512xbf16, #tpu.memory_space<vmem>>, vector<512x512xbf16>
    %cst_22 = arith.constant dense<0.000000e+00> : vector<14x512xf32>
    %33 = tpu.matmul %29, %32, %cst_22 {dimension_numbers = #tpu.dot_dimension_numbers<[1], [0], [0], [1], [0, 0, 1, 1], [], []>} : vector<14x512xbf16>, vector<512x512xbf16>, vector<14x512xf32> -> vector<14x512xf32>
    %c1024_23 = arith.constant 1024 : index
    %c0_24 = arith.constant 0 : index
    %34 = vector.load %arg6[%c1024_23, %c0_24] : memref<1536x512xbf16, #tpu.memory_space<vmem>>, vector<512x512xbf16>
    %cst_25 = arith.constant dense<0.000000e+00> : vector<14x512xf32>
    %35 = tpu.matmul %29, %34, %cst_25 {dimension_numbers = #tpu.dot_dimension_numbers<[1], [0], [0], [1], [0, 0, 1, 1], [], []>} : vector<14x512xbf16>, vector<512x512xbf16>, vector<14x512xf32> -> vector<14x512xf32>
    %36 = vector.extract_strided_slice %31 {offsets = [0, 0], sizes = [12, 512], strides = [1, 1]} : vector<14x512xf32> to vector<12x512xf32>
    %37 = vector.extract_strided_slice %33 {offsets = [1, 0], sizes = [12, 512], strides = [1, 1]} : vector<14x512xf32> to vector<12x512xf32>
    %38 = arith.addf %36, %37 : vector<12x512xf32>
    %39 = vector.extract_strided_slice %35 {offsets = [2, 0], sizes = [12, 512], strides = [1, 1]} : vector<14x512xf32> to vector<12x512xf32>
    %40 = arith.addf %38, %39 : vector<12x512xf32>
    %c0_26 = arith.constant 0 : index
    %c0_27 = arith.constant 0 : index
    %41 = vector.load %arg7[%c0_26, %c0_27] : memref<1x512xf32, #tpu.memory_space<vmem>>, vector<1x512xf32>
    %42 = vector.broadcast %41 : vector<1x512xf32> to vector<12x512xf32>
    %43 = arith.addf %40, %42 : vector<12x512xf32>
    %c0_28 = arith.constant 0 : index
    %c0_29 = arith.constant 0 : index
    %44 = vector.load %arg8[%c0_28, %c0_29] : memref<2x12xbf16, #tpu.memory_space<vmem>>, vector<2x12xbf16>
    %45 = arith.truncf %43 : vector<12x512xf32> to vector<12x512xbf16>
    %cst_30 = arith.constant dense<0.000000e+00> : vector<2x512xf32>
    %46 = tpu.matmul %44, %45, %cst_30 {dimension_numbers = #tpu.dot_dimension_numbers<[1], [0], [0], [1], [0, 0, 1, 1], [], []>} : vector<2x12xbf16>, vector<12x512xbf16>, vector<2x512xf32> -> vector<2x512xf32>
    %cst_31 = arith.constant 0.333333343 : f32
    %47 = vector.broadcast %cst_31 : f32 to vector<2x512xf32>
    %48 = arith.mulf %46, %47 : vector<2x512xf32>
    %49 = arith.truncf %48 : vector<2x512xf32> to vector<2x512xbf16>
    %c0_32 = arith.constant 0 : index
    %c0_33 = arith.constant 0 : index
    %50 = vector.load %arg9[%c0_32, %c0_33] : memref<512x128xbf16, #tpu.memory_space<vmem>>, vector<512x128xbf16>
    %cst_34 = arith.constant dense<0.000000e+00> : vector<2x128xf32>
    %51 = tpu.matmul %49, %50, %cst_34 {dimension_numbers = #tpu.dot_dimension_numbers<[1], [0], [0], [1], [0, 0, 1, 1], [], []>} : vector<2x512xbf16>, vector<512x128xbf16>, vector<2x128xf32> -> vector<2x128xf32>
    %c0_35 = arith.constant 0 : index
    %c0_36 = arith.constant 0 : index
    %52 = vector.load %arg10[%c0_35, %c0_36] : memref<1x128xf32, #tpu.memory_space<vmem>>, vector<1x128xf32>
    %53 = vector.broadcast %52 : vector<1x128xf32> to vector<2x128xf32>
    %54 = arith.addf %51, %53 : vector<2x128xf32>
    %c0_37 = arith.constant 0 : index
    %c0_38 = arith.constant 0 : index
    %c0_39 = arith.constant 0 : index
    %55 = vector.load %arg11[%c0_37, %c0_38, %c0_39] : memref<1x2x128xf32, #tpu.memory_space<vmem>>, vector<1x2x128xf32>
    %56 = vector.shape_cast %55 : vector<1x2x128xf32> to vector<2x128xf32>
    %57 = vector.shape_cast %54 : vector<2x128xf32> to vector<1x2x128xf32>
    tpu.vector_store %arg11[%c0_37, %c0_38, %c0_39], %57 {strides = array<i32>} : memref<1x2x128xf32, #tpu.memory_space<vmem>>, vector<1x2x128xf32>,
    return
  }
  func.func @transform_0(%arg0: i32) -> (i32, i32, i32) {
    %c0_i32 = arith.constant 0 : i32
    %c0_i32_0 = arith.constant 0 : i32
    %c0_i32_1 = arith.constant 0 : i32
    return %arg0, %c0_i32, %c0_i32_0 : i32, i32, i32
  }
  func.func @transform_1(%arg0: i32) -> (i32, i32) {
    %c0_i32 = arith.constant 0 : i32
    %c0_i32_0 = arith.constant 0 : i32
    %c0_i32_1 = arith.constant 0 : i32
    return %c0_i32, %c0_i32_0 : i32, i32
  }
  func.func @transform_2(%arg0: i32) -> (i32, i32) {
    %c0_i32 = arith.constant 0 : i32
    %c0_i32_0 = arith.constant 0 : i32
    %c0_i32_1 = arith.constant 0 : i32
    return %c0_i32, %c0_i32_0 : i32, i32
  }
  func.func @transform_3(%arg0: i32) -> (i32, i32) {
    %c0_i32 = arith.constant 0 : i32
    %c0_i32_0 = arith.constant 0 : i32
    %c0_i32_1 = arith.constant 0 : i32
    return %c0_i32, %c0_i32_0 : i32, i32
  }
  func.func @transform_4(%arg0: i32) -> (i32, i32) {
    %c0_i32 = arith.constant 0 : i32
    %c0_i32_0 = arith.constant 0 : i32
    %c0_i32_1 = arith.constant 0 : i32
    return %c0_i32, %c0_i32_0 : i32, i32
  }
  func.func @transform_5(%arg0: i32) -> (i32, i32) {
    %c0_i32 = arith.constant 0 : i32
    %c0_i32_0 = arith.constant 0 : i32
    %c0_i32_1 = arith.constant 0 : i32
    return %c0_i32, %c0_i32_0 : i32, i32
  }
  func.func @transform_6(%arg0: i32) -> (i32, i32) {
    %c0_i32 = arith.constant 0 : i32
    %c0_i32_0 = arith.constant 0 : i32
    %c0_i32_1 = arith.constant 0 : i32
    return %c0_i32, %c0_i32_0 : i32, i32
  }
  func.func @transform_7(%arg0: i32) -> (i32, i32) {
    %c0_i32 = arith.constant 0 : i32
    %c0_i32_0 = arith.constant 0 : i32
    %c0_i32_1 = arith.constant 0 : i32
    return %c0_i32, %c0_i32_0 : i32, i32
  }
  func.func @transform_8(%arg0: i32) -> (i32, i32) {
    %c0_i32 = arith.constant 0 : i32
    %c0_i32_0 = arith.constant 0 : i32
    %c0_i32_1 = arith.constant 0 : i32
    return %c0_i32, %c0_i32_0 : i32, i32
  }
  func.func @transform_9(%arg0: i32) -> (i32, i32) {
    %c0_i32 = arith.constant 0 : i32
    %c0_i32_0 = arith.constant 0 : i32
    %c0_i32_1 = arith.constant 0 : i32
    return %c0_i32, %c0_i32_0 : i32, i32
  }
  func.func @transform_10(%arg0: i32) -> (i32, i32, i32) {
    %c0_i32 = arith.constant 0 : i32
    %c0_i32_0 = arith.constant 0 : i32
    %c0_i32_1 = arith.constant 0 : i32
    return %arg0, %c0_i32, %c0_i32_0 : i32, i32, i32
  }
}

</mosaic_0001>

<bundles_post_ra>
// kernel: tpu_custom_call.1
= control target key start
LH: loop header
LB: loop body
LE: loop exit
PB: predicated region body
PF: predicated region fallthrough
CT: control target
= control target key end

     0   :  { %s11388_s0 = inlined_call_operand.hbm [shape: bf16[2,32,384], index: 0, kind: input, shape index: {}]   ;;  %s11389_s1 = inlined_call_operand.hbm [shape: bf16[384,512], index: 1, kind: input, shape index: {}]   ;;  %s11390_s2 = inlined_call_operand.hbm [shape: f32[1,512], index: 2, kind: input, shape index: {}]   ;;  %s11391_s3 = inlined_call_operand.hbm [shape: bf16[1536,512], index: 3, kind: input, shape index: {}]   ;;  %s11392_s4 = inlined_call_operand.hbm [shape: f32[1,512], index: 4, kind: input, shape index: {}]   ;;  %s11393_s5 = inlined_call_operand.hbm [shape: bf16[1536,512], index: 5, kind: input, shape index: {}]   ;;  %s11394_s6 = inlined_call_operand.hbm [shape: f32[1,512], index: 6, kind: input, shape index: {}]   ;;  %s11395_s7 = inlined_call_operand.hbm [shape: bf16[2,12], index: 7, kind: input, shape index: {}]   ;;  %s11396_s8 = inlined_call_operand.hbm [shape: bf16[512,128], index: 8, kind: input, shape index: {}]   ;;  %s11397_s9 = inlined_call_operand.hbm [shape: f32[1,128], index: 9, kind: input, shape index: {}]   ;;  %s11398_s10 = inlined_call_operand.hbm [shape: f32[2,2,128], index: 10, kind: output, shape index: {}]  }
   0x1   :  { %11404 = sst [smem:[#allocation28_spill]] %s11389_s1 }
   0x2   :  { %11405 = sst [smem:[#allocation29_spill]] %s11390_s2 }
   0x3   :  { %11406 = sst [smem:[#allocation30_spill]] %s11398_s10 }
   0x4   :  { %15 = vsyncpa [#allocation3], 0 }
   0x5   :  { %17 = vsyncpa [#allocation3 + $0x1], 0 }
   0x6   :  { %18 = vsyncpa [#allocation6], 0 }
   0x7   :  { %19 = vsyncpa [#allocation9], 0 }
   0x8   :  { %20 = vsyncpa [#allocation12], 0 }
   0x9   :  { %21 = vsyncpa [#allocation15], 0 }
   0xa   :  { %22 = vsyncpa [#allocation18], 0 }
   0xb   :  { %23 = vsyncpa [#allocation4], 0 }
   0xc   :  { %25 = vsyncpa [#allocation4 + $0x1], 0  ;;  %s10830_s13 = smov 0   ;;  %s10832_s14 = smov 0  }
   0xd   :  { %s10834_s15 = smov 0   ;;  %s10836_s16 = smov 0  }
   0xe LB: > { %s10757_s17 = smov [#allocation5]   ;;  %s10851_s19 = sadd.s32 4294967295, %s10755_s16   ;;  %s10755_s16 = sphi %s10836_s16, %s11437_s16   ;;  %s10751_s15 = sphi %s10834_s15, %s11436_s15   ;;  %s10747_s14 = sphi %s10832_s14, %s11435_s14   ;;  %s10743_s13 = sphi %s10830_s13, %s11434_s13  }
   0xf   : > { %s289_s18 = sshll.u32 %s10757_s17, 4  ;;  %p7862_p0 = scmp.ge.s32.totalorder %s10755_s16, 1  ;;  %s10856_s18 = int_to_ptr.vmem [resolvable:$true] %s289_s18 }
  0x10   : > { %p11401_p1 = scmp.eq.s32.totalorder %s10851_s19, 0  ;;  %p277_p2 = scmp.lt.s32.totalorder %s10755_s16, 3 }
  0x11   : > { %s10758_s21 = smov [#allocation8]   ;;  %s10759_s24 = smov [#allocation11]  }
  0x12   : > { %p10858_p3 = pnand %p7862_p0, %p277_p2  ;;  %s313_s22 = sshll.u32 %s10758_s21, 4  ;;  %s10871_s22 = int_to_ptr.vmem [resolvable:$true] %s313_s22 }
  0x13   : > { %s337_s25 = sshll.u32 %s10759_s24, 4  ;;  %s11410_s1 = sld [smem:[#allocation28_spill]]  ;;  %s10873_s25 = int_to_ptr.vmem [resolvable:$true] %s337_s25 }
  0x14   : > { %s11407_s20 = scalar_select %p10858_p3, 1, 0 }
  0x15   : > { %p8947_p5 = pneg %p10858_p3 }
  0x16   : > { %11408 = sst [smem:[#allocation27_spill]] %s11407_s20 }
  0x17   : > { %p10867_p6 = pnand %p8947_p5, %p11401_p1 }
  0x19   : > { %s10387_s28 = scalar_lea.hbm %s11410_s1, 12288  ;;  %p10883_p8 = pneg %p10867_p6 }
  0x1a   : > { %p10388_p7 = scmp.ne.s32.totalorder %s11410_s1, %s10387_s28  ;;  %p10394_p11 = scmp.lt.u32.totalorder %s10387_s28, %s11410_s1 }
  0x1c   : > { %p10390_p9 = pnand %p10883_p8, %p10388_p7 }
  0x1e   : > { %p10391_p10 = pneg %p10390_p9 }
  0x20   : > { %p10396_p12 = pnand %p10394_p11, %p10391_p10 }
  0x22   : > { %10399 = shalt.err (!%p10396_p12)
}
  0x23   : > { %s10400_s21 = scalar_lea.vmem %s10856_s18, 12288  ;;  %p10408_p5 = scmp.lt.s32.totalorder %s10856_s18, %s10856_s18 }
  0x24   : > { %p10401_p13 = scmp.ne.s32.totalorder %s10856_s18, %s10400_s21  ;;  %p10409_p4 = scmp.lt.s32.totalorder %s10400_s21, %s10400_s21 }
  0x26   : > { %p10403_p0 = pnand %p10401_p13, %p10883_p8  ;;  %p10410_p7 = por %p10409_p4, %p10408_p5 }
  0x28   : > { %p10404_p2 = pneg %p10403_p0 }
  0x2a   : > { %p10411_p9 = pnand %p10410_p7, %p10404_p2 }
  0x2c   : > { %10414 = shalt.err (!%p10411_p9)
}
  0x2d   : > { %s10760_s24 = smov 256   ;;  %s10761_s26 = smov 16  }
  0x2e   : > { %8950 = dma.hbm_to_vmem [thread:$0]  (!%p10867_p6), %s11410_s1, 12288, %s10856_s18, [#allocation6], %s10760_s24, %s10760_s24, %s10761_s26  }
  0x2f   : > { %s10415_s12 = scalar_lea.hbm %s11391_s3, 49152 }
  0x30   : > { %p10416_p4 = scmp.ne.s32.totalorder %s11391_s3, %s10415_s12  ;;  %p10422_p12 = scmp.lt.u32.totalorder %s10415_s12, %s11391_s3 }
  0x32   : > { %p10418_p10 = pnand %p10416_p4, %p10883_p8 }
  0x34   : > { %p10419_p11 = pneg %p10418_p10 }
  0x36   : > { %p10424_p13 = pnand %p10422_p12, %p10419_p11 }
  0x38   : > { %10427 = shalt.err (!%p10424_p13)
}
  0x39   : > { %s10428_s18 = scalar_lea.vmem %s10871_s22, 49152  ;;  %p10436_p7 = scmp.lt.s32.totalorder %s10871_s22, %s10871_s22 }
  0x3a   : > { %p10429_p0 = scmp.ne.s32.totalorder %s10871_s22, %s10428_s18  ;;  %p10437_p9 = scmp.lt.s32.totalorder %s10428_s18, %s10428_s18 }
  0x3c   : > { %p10431_p2 = pnand %p10429_p0, %p10883_p8  ;;  %p10438_p4 = por %p10437_p9, %p10436_p7 }
  0x3e   : > { %p10432_p5 = pneg %p10431_p2 }
  0x40   : > { %p10439_p10 = pnand %p10438_p4, %p10432_p5 }
  0x42   : > { %10442 = shalt.err (!%p10439_p10)
}
  0x43   : > { %8956 = dma.hbm_to_vmem [thread:$0]  (!%p10867_p6), %s11391_s3, 49152, %s10871_s22, [#allocation9], %s10760_s24, %s10760_s24, %s10761_s26  }
  0x44   : > { %s10443_s29 = scalar_lea.hbm %s11393_s5, 49152 }
  0x45   : > { %p10444_p11 = scmp.ne.s32.totalorder %s11393_s5, %s10443_s29  ;;  %p10450_p0 = scmp.lt.u32.totalorder %s10443_s29, %s11393_s5 }
  0x47   : > { %p10446_p12 = pnand %p10444_p11, %p10883_p8 }
  0x49   : > { %p10447_p13 = pneg %p10446_p12 }
  0x4b   : > { %p10452_p2 = pnand %p10450_p0, %p10447_p13 }
  0x4d   : > { %10455 = shalt.err (!%p10452_p2)
}
  0x4e   : > { %s10456_s22 = scalar_lea.vmem %s10873_s25, 49152  ;;  %p10464_p4 = scmp.lt.s32.totalorder %s10873_s25, %s10873_s25 }
  0x4f   : > { %p10457_p5 = scmp.ne.s32.totalorder %s10873_s25, %s10456_s22  ;;  %p10465_p10 = scmp.lt.s32.totalorder %s10456_s22, %s10456_s22 }
  0x51   : > { %p10459_p7 = pnand %p10457_p5, %p10883_p8  ;;  %p10466_p11 = por %p10465_p10, %p10464_p4 }
  0x53   : > { %p10460_p9 = pneg %p10459_p7 }
  0x55   : > { %p10467_p12 = pnand %p10466_p11, %p10460_p9 }
  0x57   : > { %10470 = shalt.err (!%p10467_p12)
}
  0x58   : > { %8962 = dma.hbm_to_vmem [thread:$0]  (!%p10867_p6), %s11393_s5, 49152, %s10873_s25, [#allocation12], %s10760_s24, %s10760_s24, %s10761_s26  }
  0x59   : > { %s10762_s20 = smov [#allocation14]   ;;  %s10763_s28 = smov [#allocation7]  }
  0x5a   : > { %s362_s27 = sshll.u32 %s10762_s20, 4  ;;  %s303_s29 = sshll.u32 %s10763_s28, 4  ;;  %s363_s27 = int_to_ptr.vmem [resolvable:$true] %s362_s27  ;;  %s304_s29 = int_to_ptr.vmem [resolvable:$true] %s303_s29 }
  0x5b   : > { %s10471_s17 = scalar_lea.hbm %s11395_s7, 16 }
  0x5c   : > { %p10472_p13 = scmp.ne.s32.totalorder %s11395_s7, %s10471_s17  ;;  %p10478_p5 = scmp.lt.u32.totalorder %s10471_s17, %s11395_s7 }
  0x5e   : > { %p10474_p0 = pnand %p10472_p13, %p10883_p8 }
  0x60   : > { %p10475_p2 = pneg %p10474_p0 }
  0x62   : > { %p10480_p7 = pnand %p10478_p5, %p10475_p2 }
  0x64   : > { %10483 = shalt.err (!%p10480_p7)
}
  0x65   : > { %s10484_s25 = scalar_lea.vmem %s363_s27, 16  ;;  %s10491_s24 = scalar_lea.vmem %s363_s27, 32 }
  0x66   : > { %p10485_p9 = scmp.ne.s32.totalorder %s363_s27, %s10484_s25  ;;  %p10492_p11 = scmp.lt.s32.totalorder %s363_s27, %s363_s27 }
  0x67   : > { %p10493_p12 = scmp.lt.s32.totalorder %s10491_s24, %s10484_s25 }
  0x68   : > { %p10487_p4 = pnand %p10485_p9, %p10883_p8 }
  0x69   : > { %p10494_p1 = por %p10493_p12, %p10492_p11 }
  0x6a   : > { %p10488_p10 = pneg %p10487_p4 }
  0x6c   : > { %p10495_p3 = pnand %p10494_p1, %p10488_p10 }
  0x6e   : > { %10498 = shalt.err (!%p10495_p3)
}
  0x6f   : > { %8968 = dma.hbm_to_vmem [thread:$0]  (!%p10867_p6), %s11395_s7, 16, %s363_s27, [#allocation15]  }
  0x70   : > { %s11412_s2 = sld [smem:[#allocation29_spill]] }
  0x76   : > { %s10499_s28 = scalar_lea.hbm %s11412_s2, 64 }
  0x77   : > { %p10500_p13 = scmp.ne.s32.totalorder %s11412_s2, %s10499_s28  ;;  %p10506_p3 = scmp.lt.u32.totalorder %s10499_s28, %s11412_s2 }
  0x79   : > { %p10502_p0 = pnand %p10500_p13, %p10883_p8 }
  0x7b   : > { %p10503_p1 = pneg %p10502_p0 }
  0x7d   : > { %p10508_p2 = pnand %p10506_p3, %p10503_p1 }
  0x7f   : > { %10511 = shalt.err (!%p10508_p2)
}
  0x80   : > { %s10512_s22 = scalar_lea.vmem %s304_s29, 64  ;;  %p10520_p4 = scmp.lt.s32.totalorder %s304_s29, %s304_s29 }
  0x81   : > { %p10513_p5 = scmp.ne.s32.totalorder %s304_s29, %s10512_s22  ;;  %p10521_p10 = scmp.lt.s32.totalorder %s10512_s22, %s10512_s22 }
  0x83   : > { %p10515_p7 = pnand %p10513_p5, %p10883_p8  ;;  %p10522_p11 = por %p10521_p10, %p10520_p4 }
  0x85   : > { %p10516_p9 = pneg %p10515_p7 }
  0x87   : > { %p10523_p12 = pnand %p10522_p11, %p10516_p9 }
  0x89   : > { %10526 = shalt.err (!%p10523_p12)
}
  0x8a   : > { %8953 = dma.hbm_to_vmem [thread:$0]  (!%p10867_p6), %s11412_s2, 64, %s304_s29, [#allocation6]  }
  0x8b   : > { %s10764_s25 = smov [#allocation10]   ;;  %s10765_s26 = smov [#allocation13]  }
  0x8c   : > { %s327_s24 = sshll.u32 %s10764_s25, 4  ;;  %s351_s10 = sshll.u32 %s10765_s26, 4  ;;  %s328_s24 = int_to_ptr.vmem [resolvable:$true] %s327_s24  ;;  %s352_s10 = int_to_ptr.vmem [resolvable:$true] %s351_s10 }
  0x8d   : > { %s10527_s28 = scalar_lea.hbm %s11392_s4, 64 }
  0x8e   : > { %p10528_p13 = scmp.ne.s32.totalorder %s11392_s4, %s10527_s28  ;;  %p10534_p3 = scmp.lt.u32.totalorder %s10527_s28, %s11392_s4 }
  0x90   : > { %p10530_p0 = pnand %p10528_p13, %p10883_p8 }
  0x92   : > { %p10531_p1 = pneg %p10530_p0 }
  0x94   : > { %p10536_p2 = pnand %p10534_p3, %p10531_p1 }
  0x96   : > { %10539 = shalt.err (!%p10536_p2)
}
  0x97   : > { %s10540_s29 = scalar_lea.vmem %s328_s24, 64  ;;  %p10548_p4 = scmp.lt.s32.totalorder %s328_s24, %s328_s24 }
  0x98   : > { %p10541_p5 = scmp.ne.s32.totalorder %s328_s24, %s10540_s29  ;;  %p10549_p10 = scmp.lt.s32.totalorder %s10540_s29, %s10540_s29 }
  0x9a   : > { %p10543_p7 = pnand %p10541_p5, %p10883_p8  ;;  %p10550_p11 = por %p10549_p10, %p10548_p4 }
  0x9c   : > { %p10544_p9 = pneg %p10543_p7 }
  0x9e   : > { %p10551_p12 = pnand %p10550_p11, %p10544_p9 }
  0xa0   : > { %10554 = shalt.err (!%p10551_p12)
}
  0xa1   : > { %8959 = dma.hbm_to_vmem [thread:$0]  (!%p10867_p6), %s11392_s4, 64, %s328_s24, [#allocation9]  }
  0xa2   : > { %s10555_s26 = scalar_lea.hbm %s11394_s6, 64 }
  0xa3   : > { %p10556_p13 = scmp.ne.s32.totalorder %s11394_s6, %s10555_s26  ;;  %p10562_p3 = scmp.lt.u32.totalorder %s10555_s26, %s11394_s6 }
  0xa5   : > { %p10558_p0 = pnand %p10556_p13, %p10883_p8 }
  0xa7   : > { %p10559_p1 = pneg %p10558_p0 }
  0xa9   : > { %p10564_p2 = pnand %p10562_p3, %p10559_p1 }
  0xab   : > { %10567 = shalt.err (!%p10564_p2)
}
  0xac   : > { %s10568_s12 = scalar_lea.vmem %s352_s10, 64  ;;  %p10576_p4 = scmp.lt.s32.totalorder %s352_s10, %s352_s10 }
  0xad   : > { %p10569_p5 = scmp.ne.s32.totalorder %s352_s10, %s10568_s12  ;;  %p10577_p10 = scmp.lt.s32.totalorder %s10568_s12, %s10568_s12 }
  0xaf   : > { %p10571_p7 = pnand %p10569_p5, %p10883_p8  ;;  %p10578_p11 = por %p10577_p10, %p10576_p4 }
  0xb1   : > { %p10572_p9 = pneg %p10571_p7 }
  0xb3   : > { %p10579_p12 = pnand %p10578_p11, %p10572_p9 }
  0xb5   : > { %10582 = shalt.err (!%p10579_p12)
}
  0xb6   : > { %8965 = dma.hbm_to_vmem [thread:$0]  (!%p10867_p6), %s11394_s6, 64, %s352_s10, [#allocation12]  }
  0xb7   : > { %s10766_s21 = smov [#allocation16]   ;;  %s10583_s18 = scalar_lea.hbm %s11396_s8, 4096 }
  0xb8   : > { %s372_s29 = sshll.u32 %s10766_s21, 4  ;;  %p10584_p13 = scmp.ne.s32.totalorder %s11396_s8, %s10583_s18  ;;  %s373_s29 = int_to_ptr.vmem [resolvable:$true] %s372_s29 }
  0xb9   : > { %p10590_p3 = scmp.lt.u32.totalorder %s10583_s18, %s11396_s8 }
  0xba   : > { %p10586_p0 = pnand %p10584_p13, %p10883_p8 }
  0xbc   : > { %p10587_p1 = pneg %p10586_p0 }
  0xbe   : > { %p10592_p2 = pnand %p10590_p3, %p10587_p1 }
  0xc0   : > { %10595 = shalt.err (!%p10592_p2)
}
  0xc1   : > { %s10596_s10 = scalar_lea.vmem %s373_s29, 4096  ;;  %p10604_p4 = scmp.lt.s32.totalorder %s373_s29, %s373_s29 }
  0xc2   : > { %p10597_p5 = scmp.ne.s32.totalorder %s373_s29, %s10596_s10  ;;  %p10605_p10 = scmp.lt.s32.totalorder %s10596_s10, %s10596_s10 }
  0xc4   : > { %p10599_p7 = pnand %p10597_p5, %p10883_p8  ;;  %p10606_p11 = por %p10605_p10, %p10604_p4 }
  0xc6   : > { %p10600_p9 = pneg %p10599_p7 }
  0xc8   : > { %p10607_p12 = pnand %p10606_p11, %p10600_p9 }
  0xca   : > { %10610 = shalt.err (!%p10607_p12)
}
  0xcb   : > { %s10767_s28 = smov 64   ;;  %s10768_s30 = smov 4  }
  0xcc   : > { %8971 = dma.hbm_to_vmem [thread:$0]  (!%p10867_p6), %s11396_s8, 4096, %s373_s29, [#allocation15], %s10767_s28, %s10767_s28, %s10768_s30  }
  0xcd   : > { %s10769_s17 = smov [#allocation17]   ;;  %s10611_s18 = scalar_lea.hbm %s11397_s9, 16 }
  0xce   : > { %s386_s21 = sshll.u32 %s10769_s17, 4  ;;  %p10612_p13 = scmp.ne.s32.totalorder %s11397_s9, %s10611_s18  ;;  %s387_s21 = int_to_ptr.vmem [resolvable:$true] %s386_s21 }
  0xcf   : > { %p10618_p3 = scmp.lt.u32.totalorder %s10611_s18, %s11397_s9 }
  0xd0   : > { %p10614_p0 = pnand %p10612_p13, %p10883_p8 }
  0xd2   : > { %p10615_p1 = pneg %p10614_p0 }
  0xd4   : > { %p10620_p2 = pnand %p10618_p3, %p10615_p1 }
  0xd6   : > { %10623 = shalt.err (!%p10620_p2)
}
  0xd7   : > { %s10624_s29 = scalar_lea.vmem %s387_s21, 16  ;;  %s10631_s10 = scalar_lea.vmem %s387_s21, 32 }
  0xd8   : > { %p10625_p5 = scmp.ne.s32.totalorder %s387_s21, %s10624_s29  ;;  %p10632_p4 = scmp.lt.s32.totalorder %s387_s21, %s387_s21 }
  0xd9   : > { %p10633_p10 = scmp.lt.s32.totalorder %s10631_s10, %s10624_s29 }
  0xda   : > { %p10627_p7 = pnand %p10625_p5, %p10883_p8 }
  0xdb   : > { %p10634_p11 = por %p10633_p10, %p10632_p4 }
  0xdc   : > { %p10628_p9 = pneg %p10627_p7 }
  0xde   : > { %p10635_p12 = pnand %p10634_p11, %p10628_p9 }
  0xe0   : > { %10638 = shalt.err (!%p10635_p12)
}
  0xe1   : > { %8974 = dma.hbm_to_vmem [thread:$0]  (!%p10867_p6), %s11397_s9, 16, %s387_s21, [#allocation18]  }
  0xe2   : > { %s7861_s11 = sadd.s32 4294967294, %s10755_s16   ;;  %s11069_s23 = sadd.s32 1, %s10755_s16  }
  0xe3   : > { %s38_s12 = sadd.s32 1, %s10751_s15  ;;  %s35_s24 = ssub.s32 %s10755_s16, %s11069_s23 }
  0xe4   : > { %p45_p8 = scmp.ne.s32.totalorder %s10751_s15, %s10747_s14  ;;  %p36_p13 = scmp.eq.s32.totalorder %s35_s24, 0 }
  0xe5   : > { %p46_p0 = scmp.eq.s32.totalorder %s10755_s16, 0  ;;  %p51_p1 = scmp.ne.s32.totalorder %s10747_s14, %s10743_s13 }
  0xe6   : > { %p264_p3 = scmp.eq.s32.totalorder %s10851_s19, 1  ;;  %p11413_p5 = scmp.eq.s32.totalorder %s10851_s19, 0 }
  0xe7   : > { %s11081_s17 = scalar_select %p36_p13, %s10751_s15, %s38_s12  }
  0xe8   : > { %p47_p2 = por %p46_p0, %p45_p8  ;;  %p11085_p7 = por %p11413_p5, %p51_p1 }
  0xe9   : > { %p11089_p6 = por %p264_p3, %p45_p8  ;;  %p270_p9 = scmp.eq.s32.totalorder %s7861_s11, 1 }
  0xea   : > { %p8992_p4 = scmp.lt.s32.totalorder %s10755_s16, 2  ;;  %s397_s27 = sand.u32 1, %s10751_s15  }
  0xeb   : > { %s11415_s21 = scalar_select %p11089_p6, 1, 0 }
  0xec   : > { %p11095_p10 = por %p270_p9, %p51_p1  ;;  %s8904_s25 = smul.u32 48, %s397_s27 }
  0xed   : > { %p11099_p11 = pnand %p8992_p4, %p47_p2  ;;  %s8905_s1 = smul.u32 768, %s10755_s16 }
  0xee   : > { %s11416_s18 = scalar_select %p11095_p10, 1, 0 }
  0xef   : > { %s11107_s10 = scalar_lea.hbm %s11388_s0, %s8905_s1  ;;  %s401_s28 = scalar_lea.vmem [#allocation2], %s8904_s25 }
  0xf0   : > { %s408_s30 = sshll.u32 %s401_s28, 4  ;;  %s11111_s11 = scalar_lea.sflag [#allocation3], %s397_s27  ;;  %s11109_s30 = int_to_ptr.vmem [resolvable:$true] %s408_s30 }
  0xf1   : > { %s10639_s12 = scalar_lea.hbm %s11107_s10, 768  ;;  %p10641_p8 = pneg %p11099_p11 }
  0xf2   : > { %p10640_p12 = scmp.ne.s32.totalorder %s11107_s10, %s10639_s12  ;;  %s10644_s20 = scalar_lea.hbm %s11388_s0, 1536 }
  0xf3   : > { %p10645_p1 = scmp.lt.u32.totalorder %s11107_s10, %s11388_s0  ;;  %p10646_p3 = scmp.lt.u32.totalorder %s10644_s20, %s10639_s12 }
  0xf4   : > { %p10642_p13 = pnand %p10641_p8, %p10640_p12  ;;  %p10648_p5 = scmp.lt.u32.totalorder %s10639_s12, %s11107_s10 }
  0xf5   : > { %p10647_p2 = por %p10646_p3, %p10645_p1 }
  0xf6   : > { %p10643_p0 = pneg %p10642_p13 }
  0xf7   : > { %p10649_p9 = por %p10648_p5, %p10647_p2 }
  0xf9   : > { %p10650_p4 = pnand %p10649_p9, %p10643_p0 }
  0xfb   : > { %10653 = shalt.err (!%p10650_p4)
}
  0xfc   : > { %s10654_s27 = scalar_lea.vmem %s11109_s30, 768  ;;  %s10770_s25 = smov [#allocation2]  }
  0xfd   : > { %p10655_p12 = scmp.ne.s32.totalorder %s11109_s30, %s10654_s27  ;;  %s10659_s28 = sshll.u32 %s10770_s25, 4  ;;  %s10660_s28 = int_to_ptr.vmem [resolvable:$false] %s10659_s28 }
  0xfe   : > { %s10661_s2 = scalar_lea.vmem %s10660_s28, 1536  ;;  %p10662_p6 = scmp.lt.s32.totalorder %s11109_s30, %s10660_s28 }
  0xff   : > { %p10657_p13 = pnand %p10655_p12, %p10641_p8  ;;  %p10663_p1 = scmp.lt.s32.totalorder %s10661_s2, %s10654_s27 }
 0x101   : > { %p10658_p10 = pneg %p10657_p13  ;;  %p10664_p3 = por %p10663_p1, %p10662_p6 }
 0x103   : > { %p10665_p2 = pnand %p10664_p3, %p10658_p10 }
 0x105   : > { %10668 = shalt.err (!%p10665_p2)
}
 0x106   : > { %s10771_s12 = smov 192   ;;  %s10772_s24 = smov 12  }
 0x107   : > { %8978 = dma.hbm_to_vmem [thread:$0]  (!%p11099_p11), %s11107_s10, 768, %s11109_s30, %s11111_s11, %s10771_s12, %s10771_s12, %s10772_s24  }
 0x108   : > { %s11418_s1 = sld [smem:[#allocation27_spill]] }
 0x10e   : > { %p11419_p8 = scmp.ne.s32.totalorder %s11418_s1, 0 }
 0x10f   : > { %s11142_s20 = sand.u32 (!%p11419_p8), 1, %s10747_s14  }
 0x110   : > { %420 = sbr.rel (%p11419_p8) target bundleno = 2171 (0x87b), region = 60  ;;  %s423_s27 = scalar_lea.sflag (!%p11419_p8), [#allocation3], %s11142_s20 }
 0x111   : > { %s8906_s29 = smul.u32 (!%p11419_p8), 48, %s11142_s20 }
 0x113   : > { %s11146_s25 = scalar_lea.vmem (!%p11419_p8), [#allocation2], %s8906_s29 }
 0x117   : > { %10714 = dma.done.wait (%p11085_p7), %s423_s27, 768  }
 0x118   : > { %10716 = vsyncadd (%p11085_p7), %s423_s27, 4294966528  ;;  %p11420_p6 = scmp.eq.s32.totalorder %s10851_s19, 0 }
 0x11a   : > { %10718 = dma.done.wait (%p11420_p6), [#allocation6], 12352   ;;  %p11421_p10 = pmov %p11420_p6 }
 0x11b   : > { %p11422_p11 = pmov %p11420_p6 }
 0x11c   : > { %10720 = vsyncadd (%p11421_p10), [#allocation6], 4294954944 }
 0x11d   : > { %10722 = dma.done.wait (%p11422_p11), [#allocation9], 49216   ;;  %p11423_p0 = pmov %p11420_p6 }
 0x11f   : > { %10724 = vsyncadd (%p11423_p0), [#allocation9], 4294918080  ;;  %p11424_p5 = pmov %p11423_p0 }
 0x120   : > { %p11425_p9 = pmov %p11423_p0 }
 0x121   : > { %10726 = dma.done.wait (%p11424_p5), [#allocation12], 49216  }
 0x122   : > { %10728 = vsyncadd (%p11425_p9), [#allocation12], 4294918080  ;;  %p11426_p7 = pmov %p11423_p0 }
 0x123   : > { %p11427_p4 = pmov %p11423_p0 }
 0x124   : > { %10730 = dma.done.wait (%p11426_p7), [#allocation15], 4112  }
 0x125   : > { %10732 = vsyncadd (%p11427_p4), [#allocation15], 4294963184  ;;  %p11428_p12 = pmov %p11423_p0 }
 0x126   : > { %p11429_p13 = pmov %p11423_p0 }
 0x127   : > { %10734 = dma.done.wait (%p11428_p12), [#allocation18], 16  }
 0x128   : > { %10736 = vsyncadd (%p11429_p13), [#allocation18], 4294967280  ;;  %v9051_v0 = vld [vmem:[#allocation5 + $0x4] ss:$16 sps:$4 sm:$0xff]   ;;  %v9053_v1 = vld [vmem:[#allocation5] ss:$16 sps:$4 sm:$0xff]  }
 0x129   : > { %1116 = vmatprep.subr.bf16.mxu0 %v9051_v0  ;;  %v9054_v2 = vld [vmem:[#allocation5 + $0x24] ss:$16 sps:$4 sm:$0xff]   ;;  %v9056_v3 = vld [vmem:[#allocation5 + $0x20] ss:$16 sps:$4 sm:$0xff]   ;;  %v9069_v7 = vld [vmem:[#allocation5 + $0xc] ss:$16 sps:$4 sm:$0xff]  }
 0x12a   : > { %1117 = vmatpush1.bf16.msra.mxu0 %v9053_v1  ;;  %v9057_v4 = vld [vmem:[#allocation5 + $0x44] ss:$16 sps:$4 sm:$0xff]   ;;  %v9059_v5 = vld [vmem:[#allocation5 + $0x40] ss:$16 sps:$4 sm:$0xff]   ;;  %v9071_v8 = vld [vmem:[#allocation5 + $0x8] ss:$16 sps:$4 sm:$0xff]   ;;  %1222 = vmatprep.subr.bf16.mxu1 %v9069_v7 }
 0x12b   : > { %1118 = vmatprep.subr.bf16.mxu0 %v9054_v2  ;;  %v9060_v6 = vld [vmem:[#allocation5 + $0x64] ss:$16 sps:$4 sm:$0xff]   ;;  %v9062_v9 = vld [vmem:[#allocation5 + $0x60] ss:$16 sps:$4 sm:$0xff]   ;;  %1223 = vmatpush1.bf16.msra.mxu1 %v9071_v8  ;;  %v9075_v10 = vld [vmem:[#allocation5 + $0x2c] ss:$16 sps:$4 sm:$0xff]  }
 0x12c   : > { %v9077_v11 = vld [vmem:[#allocation5 + $0x28] ss:$16 sps:$4 sm:$0xff]   ;;  %v9063_v12 = vld [vmem:[#allocation5 + $0x84] ss:$16 sps:$4 sm:$0xff]   ;;  %1224 = vmatprep.subr.bf16.mxu1 %v9075_v10  ;;  %v9065_v13 = vld [vmem:[#allocation5 + $0x80] ss:$16 sps:$4 sm:$0xff]  }
 0x12d   : > { %v9081_v14 = vld [vmem:[#allocation5 + $0x4c] ss:$16 sps:$4 sm:$0xff]   ;;  %v9066_v15 = vld [vmem:[#allocation5 + $0xa4] ss:$16 sps:$4 sm:$0xff]   ;;  %v9083_v16 = vld [vmem:[#allocation5 + $0x48] ss:$16 sps:$4 sm:$0xff]  }
 0x12e   : > { %1119 = vmatpush1.bf16.msra.mxu0 %v9056_v3  ;;  %v9087_v17 = vld [vmem:[#allocation5 + $0x6c] ss:$16 sps:$4 sm:$0xff]   ;;  %v9068_v18 = vld [vmem:[#allocation5 + $0xa0] ss:$16 sps:$4 sm:$0xff]   ;;  %v9072_v19 = vld [vmem:[#allocation5 + $0xc4] ss:$16 sps:$4 sm:$0xff]  }
 0x12f   : > { %1120 = vmatprep.subr.bf16.mxu0 %v9057_v4  ;;  %1225 = vmatpush1.bf16.msra.mxu1 %v9077_v11  ;;  %v9089_v20 = vld [vmem:[#allocation5 + $0x68] ss:$16 sps:$4 sm:$0xff]   ;;  %v9093_v21 = vld [vmem:[#allocation5 + $0x8c] ss:$16 sps:$4 sm:$0xff]   ;;  %v9074_v22 = vld [vmem:[#allocation5 + $0xc0] ss:$16 sps:$4 sm:$0xff]  }
 0x130   : > { %1226 = vmatprep.subr.bf16.mxu1 %v9081_v14  ;;  %v9078_v23 = vld [vmem:[#allocation5 + $0xe4] ss:$16 sps:$4 sm:$0xff]   ;;  %v9095_v24 = vld [vmem:[#allocation5 + $0x88] ss:$16 sps:$4 sm:$0xff]   ;;  %v9099_v25 = vld [vmem:[#allocation5 + $0xac] ss:$16 sps:$4 sm:$0xff]  }
 0x131   : > { %v9080_v26 = vld [vmem:[#allocation5 + $0xe0] ss:$16 sps:$4 sm:$0xff]   ;;  %v9084_v27 = vld [vmem:[#allocation5 + $0x104] ss:$16 sps:$4 sm:$0xff]   ;;  %v9101_v28 = vld [vmem:[#allocation5 + $0xa8] ss:$16 sps:$4 sm:$0xff]  }
 0x132   : > { %1121 = vmatpush1.bf16.msra.mxu0 %v9059_v5  ;;  %v9105_v29 = vld [vmem:[#allocation5 + $0xcc] ss:$16 sps:$4 sm:$0xff]   ;;  %v9086_v30 = vld [vmem:[#allocation5 + $0x100] ss:$16 sps:$4 sm:$0xff]   ;;  %v9090_v31 = vld [vmem:[#allocation5 + $0x124] ss:$16 sps:$4 sm:$0xff]  }
 0x133   : > { %1122 = vmatprep.subr.bf16.mxu0 %v9060_v6  ;;  %1227 = vmatpush1.bf16.msra.mxu1 %v9083_v16  ;;  %v9107_v32 = vld [vmem:[#allocation5 + $0xc8] ss:$16 sps:$4 sm:$0xff]   ;;  %v9111_v33 = vld [vmem:[#allocation5 + $0xec] ss:$16 sps:$4 sm:$0xff]   ;;  %v9092_v34 = vld [vmem:[#allocation5 + $0x120] ss:$16 sps:$4 sm:$0xff]  }
 0x134   : > { %1228 = vmatprep.subr.bf16.mxu1 %v9087_v17  ;;  %v9096_v35 = vld [vmem:[#allocation5 + $0x144] ss:$16 sps:$4 sm:$0xff]   ;;  %v9113_v36 = vld [vmem:[#allocation5 + $0xe8] ss:$16 sps:$4 sm:$0xff]   ;;  %v9117_v37 = vld [vmem:[#allocation5 + $0x10c] ss:$16 sps:$4 sm:$0xff]  }
 0x135   : > { %v9134_v38 = vld [vmem:[%s11146_s25 + $0x4] ss:$12 sps:$4 sm:$0xff]   ;;  %v9119_v41 = vld [vmem:[#allocation5 + $0x108] ss:$16 sps:$4 sm:$0xff]   ;;  %v9123_v42 = vld [vmem:[#allocation5 + $0x12c] ss:$16 sps:$4 sm:$0xff]  }
 0x136   : > { %1123 = vmatpush1.bf16.msra.mxu0 %v9062_v9  ;;  %v9098_v39 = vld [vmem:[#allocation5 + $0x140] ss:$16 sps:$4 sm:$0xff]   ;;  %v9102_v40 = vld [vmem:[#allocation5 + $0x164] ss:$16 sps:$4 sm:$0xff]   ;;  %1148 = vmatprep.mubr.bf16.mxu0 %v9134_v38  ;;  %v9125_v45 = vld [vmem:[#allocation5 + $0x128] ss:$16 sps:$4 sm:$0xff]  }
 0x137   : > { %1124 = vmatprep.subr.bf16.mxu0 %v9063_v12  ;;  %1229 = vmatpush1.bf16.msra.mxu1 %v9089_v20  ;;  %v9104_v43 = vld [vmem:[#allocation5 + $0x160] ss:$16 sps:$4 sm:$0xff]   ;;  %v9108_v44 = vld [vmem:[#allocation5 + $0x184] ss:$16 sps:$4 sm:$0xff]   ;;  %v9129_v46 = vld [vmem:[#allocation5 + $0x14c] ss:$16 sps:$4 sm:$0xff]  }
 0x138   : > { %1230 = vmatprep.subr.bf16.mxu1 %v9093_v21  ;;  %1254 = vmatprep.mubr.bf16.mxu1 %v9134_v38  ;;  %v9110_v47 = vld [vmem:[#allocation5 + $0x180] ss:$16 sps:$4 sm:$0xff]   ;;  %v9114_v48 = vld [vmem:[#allocation5 + $0x1a4] ss:$16 sps:$4 sm:$0xff]   ;;  %v9131_v49 = vld [vmem:[#allocation5 + $0x148] ss:$16 sps:$4 sm:$0xff]  }
 0x139   : > { %v9138_v50 = vld [vmem:[#allocation5 + $0x16c] ss:$16 sps:$4 sm:$0xff]   ;;  %v9116_v51 = vld [vmem:[#allocation5 + $0x1a0] ss:$16 sps:$4 sm:$0xff]   ;;  %v9120_v52 = vld [vmem:[#allocation5 + $0x1c4] ss:$16 sps:$4 sm:$0xff]  }
 0x13a   : > { %1125 = vmatpush1.bf16.msra.mxu0 %v9065_v13  ;;  %v9140_v53 = vld [vmem:[#allocation5 + $0x168] ss:$16 sps:$4 sm:$0xff]   ;;  %v9144_v54 = vld [vmem:[#allocation5 + $0x18c] ss:$16 sps:$4 sm:$0xff]   ;;  %v9122_v55 = vld [vmem:[#allocation5 + $0x1c0] ss:$16 sps:$4 sm:$0xff]  }
 0x13b   : > { %1126 = vmatprep.subr.bf16.mxu0 %v9066_v15  ;;  %1231 = vmatpush1.bf16.msra.mxu1 %v9095_v24  ;;  %v9126_v56 = vld [vmem:[#allocation5 + $0x1e4] ss:$16 sps:$4 sm:$0xff]   ;;  %v9146_v57 = vld [vmem:[#allocation5 + $0x188] ss:$16 sps:$4 sm:$0xff]   ;;  %v9150_v58 = vld [vmem:[#allocation5 + $0x1ac] ss:$16 sps:$4 sm:$0xff]  }
 0x13c   : > { %1232 = vmatprep.subr.bf16.mxu1 %v9099_v25  ;;  %v9128_v59 = vld [vmem:[#allocation5 + $0x1e0] ss:$16 sps:$4 sm:$0xff]   ;;  %v9137_v60 = vld [vmem:[#allocation5 + $0x204] ss:$16 sps:$4 sm:$0xff]   ;;  %v9152_v61 = vld [vmem:[#allocation5 + $0x1a8] ss:$16 sps:$4 sm:$0xff]  }
 0x13d   : > { %v9156_v62 = vld [vmem:[#allocation5 + $0x1cc] ss:$16 sps:$4 sm:$0xff]   ;;  %v9135_v0 = vld [vmem:[#allocation5 + $0x200] ss:$16 sps:$4 sm:$0xff]   ;;  %v9143_v1 = vld [vmem:[#allocation5 + $0x224] ss:$16 sps:$4 sm:$0xff]  }
 0x13e   : > { %1127 = vmatpush1.bf16.msra.mxu0 %v9068_v18  ;;  %v9132_v63 = vld [vmem:[%s11146_s25] ss:$12 sps:$4 sm:$0xff]   ;;  %v9158_v2 = vld [vmem:[#allocation5 + $0x1c8] ss:$16 sps:$4 sm:$0xff]   ;;  %v9149_v7 = vld [vmem:[#allocation5 + $0x244] ss:$16 sps:$4 sm:$0xff]  }
 0x13f   : > { %1128 = vmatprep.subr.bf16.mxu0 %v9072_v19  ;;  %1233 = vmatpush1.bf16.msra.mxu1 %v9101_v28  ;;  %v9162_v3 = vld [vmem:[#allocation5 + $0x1ec] ss:$16 sps:$4 sm:$0xff]   ;;  %v9141_v5 = vld [vmem:[#allocation5 + $0x220] ss:$16 sps:$4 sm:$0xff]   ;;  %v9164_v6 = vld [vmem:[#allocation5 + $0x1e8] ss:$16 sps:$4 sm:$0xff]  }
 0x140   : > { %1234 = vmatprep.subr.bf16.mxu1 %v9105_v29  ;;  %v9171_v4 = vld [vmem:[%s11146_s25 + $0x1c] ss:$12 sps:$4 sm:$0xff]   ;;  %v9147_v9 = vld [vmem:[#allocation5 + $0x240] ss:$16 sps:$4 sm:$0xff]   ;;  %v9173_v10 = vld [vmem:[%s11146_s25 + $0x18] ss:$12 sps:$4 sm:$0xff]  }
 0x141   : > { %v9170_v8 = vld [vmem:[#allocation5 + $0x20c] ss:$16 sps:$4 sm:$0xff]   ;;  %v9168_v11 = vld [vmem:[#allocation5 + $0x208] ss:$16 sps:$4 sm:$0xff]   ;;  %v9155_v12 = vld [vmem:[#allocation5 + $0x264] ss:$16 sps:$4 sm:$0xff]  }
 0x142   : > { %1129 = vmatpush1.bf16.msra.mxu0 %v9074_v22  ;;  %v9179_v13 = vld [vmem:[#allocation5 + $0x22c] ss:$16 sps:$4 sm:$0xff]   ;;  %v9153_v14 = vld [vmem:[#allocation5 + $0x260] ss:$16 sps:$4 sm:$0xff]   ;;  %v9177_v15 = vld [vmem:[#allocation5 + $0x228] ss:$16 sps:$4 sm:$0xff]  }
 0x143   : > { %1130 = vmatprep.subr.bf16.mxu0 %v9078_v23  ;;  %1235 = vmatpush1.bf16.msra.mxu1 %v9107_v32  ;;  %v9161_v16 = vld [vmem:[#allocation5 + $0x284] ss:$16 sps:$4 sm:$0xff]   ;;  %v9185_v17 = vld [vmem:[#allocation5 + $0x24c] ss:$16 sps:$4 sm:$0xff]   ;;  %v10773_v18 = vmov 0   ;;  %vm4206_vm0 = vcmask 1046528  }
 0x144   : > { %1236 = vmatprep.subr.bf16.mxu1 %v9111_v33  ;;  %v9159_v19 = vld [vmem:[#allocation5 + $0x280] ss:$16 sps:$4 sm:$0xff]   ;;  %v9183_v20 = vld [vmem:[#allocation5 + $0x248] ss:$16 sps:$4 sm:$0xff]   ;;  %v9167_v21 = vld [vmem:[#allocation5 + $0x2a4] ss:$16 sps:$4 sm:$0xff]  }
 0x145   : > { %v9189_v22 = vld [vmem:[#allocation5 + $0x26c] ss:$16 sps:$4 sm:$0xff]   ;;  %v9165_v23 = vld [vmem:[#allocation5 + $0x2a0] ss:$16 sps:$4 sm:$0xff]   ;;  %v9187_v24 = vld [vmem:[#allocation5 + $0x268] ss:$16 sps:$4 sm:$0xff]  }
 0x146   : > { %1131 = vmatpush1.bf16.msra.mxu0 %v9080_v26  ;;  %v9176_v25 = vld [vmem:[#allocation5 + $0x2c4] ss:$16 sps:$4 sm:$0xff]   ;;  %v9192_v26 = vld [vmem:[#allocation5 + $0x28c] ss:$16 sps:$4 sm:$0xff]   ;;  %v9190_v28 = vld [vmem:[#allocation5 + $0x288] ss:$16 sps:$4 sm:$0xff]  }
 0x147   : > { %1132 = vmatprep.subr.bf16.mxu0 %v9084_v27  ;;  %1237 = vmatpush1.bf16.msra.mxu1 %v9113_v36  ;;  %v9174_v27 = vld [vmem:[#allocation5 + $0x2c0] ss:$16 sps:$4 sm:$0xff]   ;;  %v9182_v29 = vld [vmem:[#allocation5 + $0x2e4] ss:$16 sps:$4 sm:$0xff]   ;;  %v9194_v32 = vld [vmem:[#allocation5 + $0x2a8] ss:$16 sps:$4 sm:$0xff]  }
 0x148   : > { %1238 = vmatprep.subr.bf16.mxu1 %v9117_v37  ;;  %v9199_v33 = vld [vmem:[#allocation5 + $0x2cc] ss:$16 sps:$4 sm:$0xff]   ;;  %v9197_v36 = vld [vmem:[#allocation5 + $0x2c8] ss:$16 sps:$4 sm:$0xff]   ;;  %v9203_v38 = vld [vmem:[#allocation8] ss:$16 sps:$4 sm:$0xff]  }
 0x149   : > { %v9202_v37 = vld [vmem:[#allocation5 + $0x2ec] ss:$16 sps:$4 sm:$0xff]   ;;  %vm4243_vm1 = vcmask 1045504   ;;  %vm7241_vm2 = vcmask 97280   ;;  %s7884_s22 = sshll.u32 %s11142_s20, 1  ;;  %s8793_s26 = sshll.u32 %s10851_s19, 5 }
 0x14a   : > { %1133 = vmatpush1.bf16.msra.mxu0 %v9086_v30  ;;  %v9196_v30 = vld [vmem:[#allocation5 + $0x2ac] ss:$16 sps:$4 sm:$0xff]   ;;  %s498_s10 = scalar_lea.vmem [#allocation19], %s7884_s22  ;;  %s11430_s2 = sld [smem:[#allocation30_spill]] }
 0x14b   : > { %1134 = vmatprep.subr.bf16.mxu0 %v9090_v31  ;;  %1239 = vmatpush1.bf16.msra.mxu1 %v9119_v41  ;;  %v9180_v31 = vld [vmem:[#allocation5 + $0x2e0] ss:$16 sps:$4 sm:$0xff]   ;;  %s7705_s30 = sshll.u32 %s498_s10, 4  ;;  %s7692_s24 = scalar_lea.sflag [#allocation4], %s11142_s20  ;;  %s11346_s30 = int_to_ptr.vmem [resolvable:$true] %s7705_s30 }
 0x14c   : > { %1240 = vmatprep.subr.bf16.mxu1 %v9123_v42  ;;  %v9208_v41 = vld [vmem:[#allocation8 + $0xc] ss:$16 sps:$4 sm:$0xff]   ;;  %v9209_v42 = vld [vmem:[#allocation8 + $0x20] ss:$16 sps:$4 sm:$0xff]   ;;  %s10669_s19 = scalar_lea.vmem %s11346_s30, 32  ;;  %p11431_p3 = scmp.ne.s32.totalorder %s11415_s21, 0 }
 0x14d   : > { %p10670_p1 = scmp.ne.s32.totalorder %s11346_s30, %s10669_s19  ;;  %s10774_s1 = smov [#allocation19]  }
 0x14e   : > { %1135 = vmatpush1.bf16.msra.mxu0 %v9092_v34  ;;  %v9205_v34 = vld [vmem:[#allocation8 + $0x4] ss:$16 sps:$4 sm:$0xff]   ;;  %s10673_s29 = sshll.u32 %s10774_s1, 4  ;;  %s10674_s29 = int_to_ptr.vmem [resolvable:$false] %s10673_s29 }
 0x14f   : > { %1136 = vmatprep.subr.bf16.mxu0 %v9096_v35  ;;  %1241 = vmatpush1.bf16.msra.mxu1 %v9125_v45  ;;  %v9186_v35 = vld [vmem:[%s11146_s25 + $0x8] ss:$12 sps:$4 sm:$0xff]   ;;  %v9206_v45 = vld [vmem:[#allocation8 + $0x8] ss:$16 sps:$4 sm:$0xff]   ;;  %p10671_p2 = pnand %p10670_p1, %p11431_p3  ;;  %s10675_s27 = scalar_lea.vmem %s10674_s29, 64 }
 0x150   : > { %1242 = vmatprep.subr.bf16.mxu1 %v9129_v46  ;;  %v9214_v46 = vld [vmem:[#allocation8 + $0x2c] ss:$16 sps:$4 sm:$0xff]   ;;  %s11344_s12 = scalar_lea.hbm %s11430_s2, %s8793_s26  ;;  %p10676_p6 = scmp.lt.s32.totalorder %s11346_s30, %s10674_s29 }
 0x151   : > { %p10672_p8 = pneg %p10671_p2  ;;  %p10677_p10 = scmp.lt.s32.totalorder %s10675_s27, %s10669_s19 }
 0x152   : > { %1137 = vmatpush1.bf16.msra.mxu0 %v9098_v39  ;;  %v9200_v39 = vld [vmem:[#allocation5 + $0x2e8] ss:$16 sps:$4 sm:$0xff]  }
 0x153   : > { %1138 = vmatprep.subr.bf16.mxu0 %v9102_v40  ;;  %1243 = vmatpush1.bf16.msra.mxu1 %v9131_v49  ;;  %v9211_v40 = vld [vmem:[#allocation8 + $0x24] ss:$16 sps:$4 sm:$0xff]   ;;  %v9212_v49 = vld [vmem:[#allocation8 + $0x28] ss:$16 sps:$4 sm:$0xff]   ;;  %p10678_p11 = por %p10677_p10, %p10676_p6 }
 0x154   : > { %1244 = vmatprep.subr.bf16.mxu1 %v9138_v50  ;;  %v9220_v50 = vld [vmem:[#allocation8 + $0x4c] ss:$16 sps:$4 sm:$0xff]  }
 0x155   : > { %p10679_p0 = pnand %p10678_p11, %p10672_p8 }
 0x156   : > { %1139 = vmatpush1.bf16.msra.mxu0 %v9104_v43  ;;  %v9217_v43 = vld [vmem:[#allocation8 + $0x44] ss:$16 sps:$4 sm:$0xff]  }
 0x157   : > { %1140 = vmatprep.subr.bf16.mxu0 %v9108_v44  ;;  %1245 = vmatpush1.bf16.msra.mxu1 %v9140_v53  ;;  %v9193_v44 = vld [vmem:[%s11146_s25 + $0x20] ss:$12 sps:$4 sm:$0xff]  }
 0x158   : > { %1246 = vmatprep.subr.bf16.mxu1 %v9144_v54  ;;  %v9218_v53 = vld [vmem:[#allocation8 + $0x48] ss:$16 sps:$4 sm:$0xff]   ;;  %v9226_v54 = vld [vmem:[#allocation8 + $0x6c] ss:$16 sps:$4 sm:$0xff]  }
 0x15a   : > { %1141 = vmatpush1.bf16.msra.mxu0 %v9110_v47  ;;  %v9215_v47 = vld [vmem:[#allocation8 + $0x40] ss:$16 sps:$4 sm:$0xff]  }
 0x15b   : > { %1142 = vmatprep.subr.bf16.mxu0 %v9114_v48  ;;  %1247 = vmatpush1.bf16.msra.mxu1 %v9146_v57  ;;  %v9223_v48 = vld [vmem:[#allocation8 + $0x64] ss:$16 sps:$4 sm:$0xff]   ;;  %v9224_v57 = vld [vmem:[#allocation8 + $0x68] ss:$16 sps:$4 sm:$0xff]  }
 0x15c   : > { %1248 = vmatprep.subr.bf16.mxu1 %v9150_v58  ;;  %v9232_v58 = vld [vmem:[#allocation8 + $0x8c] ss:$16 sps:$4 sm:$0xff]  }
 0x15e   : > { %1143 = vmatpush1.bf16.msra.mxu0 %v9116_v51  ;;  %v9221_v51 = vld [vmem:[#allocation8 + $0x60] ss:$16 sps:$4 sm:$0xff]  }
 0x15f   : > { %1144 = vmatprep.subr.bf16.mxu0 %v9120_v52  ;;  %1249 = vmatpush1.bf16.msra.mxu1 %v9152_v61  ;;  %v9229_v52 = vld [vmem:[#allocation8 + $0x84] ss:$16 sps:$4 sm:$0xff]   ;;  %v9230_v61 = vld [vmem:[#allocation8 + $0x88] ss:$16 sps:$4 sm:$0xff]  }
 0x160   : > { %1250 = vmatprep.subr.bf16.mxu1 %v9156_v62  ;;  %v9238_v62 = vld [vmem:[#allocation8 + $0xac] ss:$16 sps:$4 sm:$0xff]  }
 0x162   : > { %1145 = vmatpush1.bf16.msra.mxu0 %v9122_v55  ;;  %v9227_v55 = vld [vmem:[#allocation8 + $0x80] ss:$16 sps:$4 sm:$0xff]  }
 0x163   : > { %1146 = vmatprep.subr.bf16.mxu0 %v9126_v56  ;;  %1251 = vmatpush1.bf16.msra.mxu1 %v9158_v2  ;;  %v9235_v56 = vld [vmem:[#allocation8 + $0xa4] ss:$16 sps:$4 sm:$0xff]   ;;  %v9244_v2 = vld [vmem:[#allocation8 + $0xcc] ss:$16 sps:$4 sm:$0xff]  }
 0x164   : > { %1252 = vmatprep.subr.bf16.mxu1 %v9162_v3  ;;  %v9245_v3 = vld [vmem:[#allocation8 + $0xe0] ss:$16 sps:$4 sm:$0xff]  }
 0x166   : > { %1147 = vmatpush1.bf16.msra.mxu0 %v9128_v59  ;;  %v9233_v59 = vld [vmem:[#allocation8 + $0xa0] ss:$16 sps:$4 sm:$0xff]  }
 0x167   : > { %1169 = vmatprep.subr.bf16.mxu0 %v9137_v60  ;;  %1253 = vmatpush1.bf16.msra.mxu1 %v9164_v6  ;;  %v9241_v60 = vld [vmem:[#allocation8 + $0xc4] ss:$16 sps:$4 sm:$0xff]   ;;  %v9250_v6 = vld [vmem:[#allocation8 + $0xec] ss:$16 sps:$4 sm:$0xff]  }
 0x168   : > { %1275 = vmatprep.subr.bf16.mxu1 %v9170_v8  ;;  %v9259_v8 = vld [vmem:[#allocation8 + $0x124] ss:$16 sps:$4 sm:$0xff]  }
 0x169   : > { %1149 = vmatmul.mubr.bf16.vlgmr.msra.gmra.mrb[0].mxu0 %v9132_v63 }
 0x16a   : > { %1170 = vmatpush1.bf16.msra.mxu0 %v9135_v0  ;;  %1158 = vmatprep.mubr.bf16.mxu0 %v9171_v4  ;;  %v9247_v0 = vld [vmem:[#allocation8 + $0xe4] ss:$16 sps:$4 sm:$0xff]  }
 0x16b   : > { %1171 = vmatprep.subr.bf16.mxu0 %v9143_v1  ;;  %1255 = vmatmul.mubr.bf16.vlgmr.msra.gmra.mrb[0].mxu1 %v9132_v63  ;;  %v9239_v63 = vld [vmem:[#allocation8 + $0xc0] ss:$16 sps:$4 sm:$0xff]   ;;  %v9236_v1 = vld [vmem:[#allocation8 + $0xa8] ss:$16 sps:$4 sm:$0xff]  }
 0x16c   : > { %1276 = vmatpush1.bf16.msra.mxu1 %v9168_v11  ;;  %1264 = vmatprep.mubr.bf16.mxu1 %v9171_v4  ;;  %v9253_v4 = vld [vmem:[#allocation8 + $0x104] ss:$16 sps:$4 sm:$0xff]   ;;  %v9257_v11 = vld [vmem:[#allocation8 + $0x120] ss:$16 sps:$4 sm:$0xff]  }
 0x16d   : > { %1277 = vmatprep.subr.bf16.mxu1 %v9179_v13  ;;  %v9254_v13 = vld [vmem:[#allocation8 + $0x108] ss:$16 sps:$4 sm:$0xff]  }
 0x16e   : > { %1172 = vmatpush1.bf16.msra.mxu0 %v9141_v5  ;;  %v9242_v5 = vld [vmem:[#allocation8 + $0xc8] ss:$16 sps:$4 sm:$0xff]  }
 0x16f   : > { %1173 = vmatprep.subr.bf16.mxu0 %v9149_v7  ;;  %v9251_v7 = vld [vmem:[#allocation8 + $0x100] ss:$16 sps:$4 sm:$0xff]  }
 0x170   : > { %1278 = vmatpush1.bf16.msra.mxu1 %v9177_v15  ;;  %v9263_v15 = vld [vmem:[#allocation8 + $0x140] ss:$16 sps:$4 sm:$0xff]  }
 0x171   : > { %1159 = vmatmul.mubr.bf16.gmra.mrb[4].mxu0 %v9173_v10  ;;  %1279 = vmatprep.subr.bf16.mxu1 %v9185_v17  ;;  %v9268_v17 = vld [vmem:[#allocation8 + $0x14c] ss:$16 sps:$4 sm:$0xff]  }
 0x172   : > { %1174 = vmatpush1.bf16.msra.mxu0 %v9147_v9  ;;  %1201 = vmatprep.mubr.bf16.mxu0 %v10773_v18  ;;  %v9248_v9 = vld [vmem:[#allocation8 + $0xe8] ss:$16 sps:$4 sm:$0xff]  }
 0x173   : > { %1175 = vmatprep.subr.bf16.mxu0 %v9155_v12  ;;  %1265 = vmatmul.mubr.bf16.gmra.mrb[4].mxu1 %v9173_v10  ;;  %v9256_v10 = vld [vmem:[#allocation8 + $0x10c] ss:$16 sps:$4 sm:$0xff]   ;;  %v9265_v12 = vld [vmem:[#allocation8 + $0x144] ss:$16 sps:$4 sm:$0xff]  }
 0x174   : > { %1280 = vmatpush1.bf16.msra.mxu1 %v9183_v20  ;;  %1307 = vmatprep.mubr.bf16.mxu1 %v10773_v18  ;;  %v9271_v20 = vld [vmem:[#allocation8 + $0x164] ss:$16 sps:$4 sm:$0xff]  }
 0x175   : > { %1281 = vmatprep.subr.bf16.mxu1 %v9189_v22  ;;  %v9269_v22 = vld [vmem:[#allocation8 + $0x160] ss:$16 sps:$4 sm:$0xff]  }
 0x176   : > { %1176 = vmatpush1.bf16.msra.mxu0 %v9153_v14  ;;  %v9262_v14 = vld [vmem:[#allocation8 + $0x12c] ss:$16 sps:$4 sm:$0xff]  }
 0x177   : > { %1177 = vmatprep.subr.bf16.mxu0 %v9161_v16  ;;  %v9260_v16 = vld [vmem:[#allocation8 + $0x128] ss:$16 sps:$4 sm:$0xff]  }
 0x178   : > { %1282 = vmatpush1.bf16.msra.mxu1 %v9187_v24  ;;  %v9277_v24 = vld [vmem:[#allocation8 + $0x184] ss:$16 sps:$4 sm:$0xff]  }
 0x179   : > { %1283 = vmatprep.subr.bf16.mxu1 %v9192_v26  ;;  %v9275_v26 = vld [vmem:[#allocation8 + $0x180] ss:$16 sps:$4 sm:$0xff]  }
 0x17a   : > { %1178 = vmatpush1.bf16.msra.mxu0 %v9159_v19  ;;  %v9266_v19 = vld [vmem:[#allocation8 + $0x148] ss:$16 sps:$4 sm:$0xff]  }
 0x17b   : > { %1179 = vmatprep.subr.bf16.mxu0 %v9167_v21  ;;  %v9274_v21 = vld [vmem:[#allocation8 + $0x16c] ss:$16 sps:$4 sm:$0xff]  }
 0x17c   : > { %1284 = vmatpush1.bf16.msra.mxu1 %v9190_v28  ;;  %v9283_v28 = vld [vmem:[#allocation8 + $0x1a4] ss:$16 sps:$4 sm:$0xff]  }
 0x17d   : > { %1285 = vmatprep.subr.bf16.mxu1 %v9196_v30  ;;  %v9281_v30 = vld [vmem:[#allocation8 + $0x1a0] ss:$16 sps:$4 sm:$0xff]  }
 0x17e   : > { %1180 = vmatpush1.bf16.msra.mxu0 %v9165_v23  ;;  %v9272_v23 = vld [vmem:[#allocation8 + $0x168] ss:$16 sps:$4 sm:$0xff]  }
 0x17f   : > { %1181 = vmatprep.subr.bf16.mxu0 %v9176_v25  ;;  %v9280_v25 = vld [vmem:[#allocation8 + $0x18c] ss:$16 sps:$4 sm:$0xff]  }
 0x180   : > { %1286 = vmatpush1.bf16.msra.mxu1 %v9194_v32  ;;  %v9289_v32 = vld [vmem:[#allocation8 + $0x1c4] ss:$16 sps:$4 sm:$0xff]  }
 0x181   : > { %1287 = vmatprep.subr.bf16.mxu1 %v9199_v33  ;;  %v9292_v33 = vld [vmem:[#allocation8 + $0x1cc] ss:$16 sps:$4 sm:$0xff]  }
 0x182   : > { %1182 = vmatpush1.bf16.msra.mxu0 %v9174_v27  ;;  %v9278_v27 = vld [vmem:[#allocation8 + $0x188] ss:$16 sps:$4 sm:$0xff]  }
 0x183   : > { %1183 = vmatprep.subr.bf16.mxu0 %v9182_v29  ;;  %v9286_v29 = vld [vmem:[#allocation8 + $0x1ac] ss:$16 sps:$4 sm:$0xff]  }
 0x184   : > { %1288 = vmatpush1.bf16.msra.mxu1 %v9197_v36  ;;  %v9295_v36 = vld [vmem:[#allocation8 + $0x1e4] ss:$16 sps:$4 sm:$0xff]  }
 0x185   : > { %1289 = vmatprep.subr.bf16.mxu1 %v9202_v37  ;;  %v9298_v37 = vld [vmem:[#allocation8 + $0x1ec] ss:$16 sps:$4 sm:$0xff]  }
 0x186   : > { %1184 = vmatpush1.bf16.msra.mxu0 %v9180_v31  ;;  %v9284_v31 = vld [vmem:[#allocation8 + $0x1a8] ss:$16 sps:$4 sm:$0xff]  }
 0x187   : > { %2146 = vmatprep.subr.bf16.mxu0 %v9205_v34  ;;  %v9287_v34 = vld [vmem:[#allocation8 + $0x1c0] ss:$16 sps:$4 sm:$0xff]  }
 0x188   : > { %1290 = vmatpush1.bf16.msra.mxu1 %v9200_v39  ;;  %v9296_v39 = vld [vmem:[#allocation8 + $0x1e8] ss:$16 sps:$4 sm:$0xff]  }
 0x189   : > { %1202 = vmatmul.mubr.bf16.vlgmr.msra.gmra.mrb[0].mxu0 %v9186_v35  ;;  %2232 = vmatprep.subr.bf16.mxu1 %v9208_v41  ;;  %v9304_v41 = vld [vmem:[#allocation8 + $0x20c] ss:$16 sps:$4 sm:$0xff]  }
 0x18a   : > { %1211 = vmatprep.mubr.bf16.mxu0 %v10773_v18  ;;  %2147 = vmatpush1.bf16.msra.mxu0 %v9203_v38  ;;  %v9293_v38 = vld [vmem:[#allocation8 + $0x1e0] ss:$16 sps:$4 sm:$0xff]  }
 0x18b   : > { %2148 = vmatprep.subr.bf16.mxu0 %v9211_v40  ;;  %1308 = vmatmul.mubr.bf16.vlgmr.msra.gmra.mrb[0].mxu1 %v9186_v35  ;;  %v9290_v35 = vld [vmem:[#allocation8 + $0x1c8] ss:$16 sps:$4 sm:$0xff]   ;;  %v9301_v40 = vld [vmem:[#allocation8 + $0x204] ss:$16 sps:$4 sm:$0xff]  }
 0x18c   : > { %1317 = vmatprep.mubr.bf16.mxu1 %v10773_v18  ;;  %2233 = vmatpush1.bf16.msra.mxu1 %v9206_v45 }
 0x18d   : > { %2234 = vmatprep.subr.bf16.mxu1 %v9214_v46 }
 0x18e   : > { %2149 = vmatpush1.bf16.msra.mxu0 %v9209_v42  ;;  %v1338_v42 = vlaneseq }
 0x18f   : > { %2150 = vmatprep.subr.bf16.mxu0 %v9217_v43 }
 0x190   : > { %2235 = vmatpush1.bf16.msra.mxu1 %v9212_v49  ;;  %v1339_v43 = vshrl.u32 %v1338_v42, 7  ;;  %v1336_v49 = vld [vmem:[#allocation7] sm:$0xf] }
 0x191   : > { %1212 = vmatmul.mubr.bf16.gmra.mrb[4].mxu0 %v9193_v44  ;;  %2236 = vmatprep.subr.bf16.mxu1 %v9220_v50 }
 0x192   : > { %2151 = vmatpush1.bf16.msra.mxu0 %v9215_v47  ;;  %v11184_v50 = vsub.s32 1, %v1339_v43 }
 0x193   : > { %2152 = vmatprep.subr.bf16.mxu0 %v9223_v48  ;;  %1318 = vmatmul.mubr.bf16.gmra.mrb[4].mxu1 %v9193_v44  ;;  %v11182_v48 = vsub.s32 0, %v1339_v43 }
 0x194   : > { %2237 = vmatpush1.bf16.msra.mxu1 %v9218_v53  ;;  %v1345_v53 = vrot.slane %v1336_v49, %v11184_v50 }
 0x195   : > { %2238 = vmatprep.subr.bf16.mxu1 %v9226_v54 }
 0x196   : > { %2153 = vmatpush1.bf16.msra.mxu0 %v9221_v51  ;;  %v1341_v51 = vrot.slane %v1336_v49, %v11182_v48 }
 0x197   : > { %2154 = vmatprep.subr.bf16.mxu0 %v9229_v52 }
 0x198   : > { %2239 = vmatpush1.bf16.msra.mxu1 %v9224_v57 }
 0x199   : > { %2240 = vmatprep.subr.bf16.mxu1 %v9232_v58 }
 0x19a   : > { %2155 = vmatpush1.bf16.msra.mxu0 %v9227_v55 }
 0x19b   : > { %2156 = vmatprep.subr.bf16.mxu0 %v9235_v56 }
 0x19c   : > { %2241 = vmatpush1.bf16.msra.mxu1 %v9230_v61 }
 0x19d   : > { %2242 = vmatprep.subr.bf16.mxu1 %v9238_v62 }
 0x19e   : > { %2157 = vmatpush1.bf16.msra.mxu0 %v9233_v59 }
 0x19f   : > { %2158 = vmatprep.subr.bf16.mxu0 %v9241_v60 }
 0x1a0   : > { %2243 = vmatpush1.bf16.msra.mxu1 %v9236_v1  ;;  %v11188_v1 = vsub.s32 2, %v1339_v43 }
 0x1a1   : > { %2244 = vmatprep.subr.bf16.mxu1 %v9244_v2 }
 0x1a2   : > { %2159 = vmatpush1.bf16.msra.mxu0 %v9239_v63 }
 0x1a3   : > { %2160 = vmatprep.subr.bf16.mxu0 %v9247_v0 }
 0x1a4   : > { %2245 = vmatpush1.bf16.msra.mxu1 %v9242_v5 }
 0x1a5   : > { %2246 = vmatprep.subr.bf16.mxu1 %v9250_v6 }
 0x1a6   : > { %2161 = vmatpush1.bf16.msra.mxu0 %v9245_v3 }
 0x1a7   : > { %2162 = vmatprep.subr.bf16.mxu0 %v9253_v4  ;;  %v11190_v4 = vsub.s32 3, %v1339_v43 }
 0x1a8   : > { %2247 = vmatpush1.bf16.msra.mxu1 %v9248_v9  ;;  %v1349_v9 = vrot.slane %v1336_v49, %v11188_v1 }
 0x1a9   : > { %2248 = vmatprep.subr.bf16.mxu1 %v9256_v10 }
 0x1aa   : > { %2163 = vmatpush1.bf16.msra.mxu0 %v9251_v7 }
 0x1ab   : > { %2164 = vmatprep.subr.bf16.mxu0 %v9259_v8 }
 0x1ac   : > { %2249 = vmatpush1.bf16.msra.mxu1 %v9254_v13  ;;  %v9302_v13 = vld [vmem:[#allocation8 + $0x208] ss:$16 sps:$4 sm:$0xff]  }
 0x1ad   : > { %2250 = vmatprep.subr.bf16.mxu1 %v9262_v14 }
 0x1ae   : > { %2165 = vmatpush1.bf16.msra.mxu0 %v9257_v11 }
 0x1af   : > { %2166 = vmatprep.subr.bf16.mxu0 %v9265_v12  ;;  %v9299_v12 = vld [vmem:[#allocation8 + $0x200] ss:$16 sps:$4 sm:$0xff]  }
 0x1b0   : > { %2251 = vmatpush1.bf16.msra.mxu1 %v9260_v16 }
 0x1b1   : > { %2252 = vmatprep.subr.bf16.mxu1 %v9268_v17  ;;  %v9307_v17 = vld [vmem:[#allocation8 + $0x224] ss:$16 sps:$4 sm:$0xff]  }
 0x1b2   : > { %2167 = vmatpush1.bf16.msra.mxu0 %v9263_v15  ;;  %v1353_v15 = vrot.slane %v1336_v49, %v11190_v4  ;;  %v9325_v49 = vld [vmem:[#allocation8 + $0x284] ss:$16 sps:$4 sm:$0xff]  }
 0x1b3   : > { %2168 = vmatprep.subr.bf16.mxu0 %v9271_v20 }
 0x1b4   : > { %2253 = vmatpush1.bf16.msra.mxu1 %v9266_v19  ;;  %v9310_v19 = vld [vmem:[#allocation8 + $0x22c] ss:$16 sps:$4 sm:$0xff]  }
 0x1b5   : > { %2254 = vmatprep.subr.bf16.mxu1 %v9274_v21 }
 0x1b6   : > { %2169 = vmatpush1.bf16.msra.mxu0 %v9269_v22 }
 0x1b7   : > { %2170 = vmatprep.subr.bf16.mxu0 %v9277_v24 }
 0x1b8   : > { %2255 = vmatpush1.bf16.msra.mxu1 %v9272_v23 }
 0x1b9   : > { %2256 = vmatprep.subr.bf16.mxu1 %v9280_v25 }
 0x1ba   : > { %2171 = vmatpush1.bf16.msra.mxu0 %v9275_v26 }
 0x1bb   : > { %2172 = vmatprep.subr.bf16.mxu0 %v9283_v28  ;;  %v9305_v28 = vld [vmem:[#allocation8 + $0x220] ss:$16 sps:$4 sm:$0xff]  }
 0x1bc   : > { %2257 = vmatpush1.bf16.msra.mxu1 %v9278_v27 }
 0x1bd   : > { %2258 = vmatprep.subr.bf16.mxu1 %v9286_v29  ;;  %v9308_v29 = vld [vmem:[#allocation8 + $0x228] ss:$16 sps:$4 sm:$0xff]  }
 0x1be   : > { %2173 = vmatpush1.bf16.msra.mxu0 %v9281_v30 }
 0x1bf   : > { %2174 = vmatprep.subr.bf16.mxu0 %v9289_v32  ;;  %v9313_v32 = vld [vmem:[#allocation8 + $0x244] ss:$16 sps:$4 sm:$0xff]  }
 0x1c0   : > { %2259 = vmatpush1.bf16.msra.mxu1 %v9284_v31 }
 0x1c1   : > { %2260 = vmatprep.subr.bf16.mxu1 %v9292_v33  ;;  %v9316_v33 = vld [vmem:[#allocation8 + $0x24c] ss:$16 sps:$4 sm:$0xff]  }
 0x1c2   : > { %2175 = vmatpush1.bf16.msra.mxu0 %v9287_v34 }
 0x1c3   : > { %2176 = vmatprep.subr.bf16.mxu0 %v9295_v36 }
 0x1c4   : > { %2261 = vmatpush1.bf16.msra.mxu1 %v9290_v35 }
 0x1c5   : > { %2262 = vmatprep.subr.bf16.mxu1 %v9298_v37 }
 0x1c6   : > { %2177 = vmatpush1.bf16.msra.mxu0 %v9293_v38 }
 0x1c7   : > { %2189 = vmatprep.subr.bf16.mxu0 %v9301_v40  ;;  %v9311_v40 = vld [vmem:[#allocation8 + $0x240] ss:$16 sps:$4 sm:$0xff]  }
 0x1c8   : > { %2263 = vmatpush1.bf16.msra.mxu1 %v9296_v39 }
 0x1c9   : > { %2275 = vmatprep.subr.bf16.mxu1 %v9304_v41  ;;  %v9314_v41 = vld [vmem:[#allocation8 + $0x248] ss:$16 sps:$4 sm:$0xff]  }
 0x25c   : > { %v1203_v44 = vpop.f32.mrb[0].mxu0 }
 0x25d   : > { %v1205_v45 = vpop.f32.mrb[1].mxu0 }
 0x25e   : > { %v1207_v46 = vpop.f32.mrb[2].mxu0  ;;  %v1309_v54 = vpop.f32.mrb[0].mxu1 }
 0x25f   : > { %v1209_v47 = vpop.f32.mrb[3].mxu0  ;;  %v1311_v57 = vpop.f32.mrb[1].mxu1 }
 0x260   : > { %v1313_v60 = vpop.f32.mrb[2].mxu1 }
 0x261   : > { %v1315_v0 = vpop.f32.mrb[3].mxu1 }
 0x264   : > { %v1213_v52 = vpop.f32.mrb[4].mxu0 }
 0x265   : > { %v1328_v55 = vmax.f32 %v1203_v44, %v1213_v52  ;;  %v1215_v56 = vpop.f32.mrb[5].mxu0  ;;  %v9319_v44 = vld [vmem:[#allocation8 + $0x264] ss:$16 sps:$4 sm:$0xff]   ;;  %v9323_v52 = vld [vmem:[#allocation8 + $0x280] ss:$16 sps:$4 sm:$0xff]  }
 0x266   : > { %v1329_v58 = vmax.f32 %v1205_v45, %v1215_v56  ;;  %v1217_v59 = vpop.f32.mrb[6].mxu0  ;;  %v1319_v14 = vpop.f32.mrb[4].mxu1  ;;  %v9322_v45 = vld [vmem:[#allocation8 + $0x26c] ss:$16 sps:$4 sm:$0xff]   ;;  %v9329_v56 = vld [vmem:[#allocation8 + $0x2a0] ss:$16 sps:$4 sm:$0xff]  }
 0x267   : > { %v1358_v61 = vadd.f32 %v1341_v51, %v1328_v55  ;;  %v1332_v62 = vmax.f32 %v1207_v46, %v1217_v59  ;;  %v1219_v63 = vpop.f32.mrb[7].mxu0  ;;  %v1330_v20 = vmax.f32 %v1309_v54, %v1319_v14  ;;  %v1321_v21 = vpop.f32.mrb[5].mxu1  ;;  %v9317_v46 = vld [vmem:[#allocation8 + $0x260] ss:$16 sps:$4 sm:$0xff]   ;;  %v9331_v54 = vld [vmem:[#allocation8 + $0x2a4] ss:$16 sps:$4 sm:$0xff]  }
 0x268   : > { %v1359_v2 = vadd.f32 %v1345_v53, %v1329_v58  ;;  %v1333_v3 = vmax.f32 %v1209_v47, %v1219_v63  ;;  %v1331_v23 = vmax.f32 %v1311_v57, %v1321_v21  ;;  %v1323_v24 = vpop.f32.mrb[6].mxu1  ;;  %v9320_v47 = vld [vmem:[#allocation8 + $0x268] ss:$16 sps:$4 sm:$0xff]   ;;  %v9334_v55 = vld [vmem:[#allocation8 + $0x2ac] ss:$16 sps:$4 sm:$0xff]  }
 0x269   : > { %v1362_v5 = vadd.f32 %v1341_v51, %v1332_v62  ;;  %v1366_v7 = vmax.f32 %v1358_v61, 0.0  ;;  %v1360_v25 = vadd.f32 %v1349_v9, %v1330_v20  ;;  %v1334_v26 = vmax.f32 %v1313_v60, %v1323_v24  ;;  %v1325_v27 = vpop.f32.mrb[7].mxu1  ;;  %v9328_v51 = vld [vmem:[#allocation8 + $0x28c] ss:$16 sps:$4 sm:$0xff]   ;;  %v9332_v57 = vld [vmem:[#allocation8 + $0x2a8] ss:$16 sps:$4 sm:$0xff]  }
 0x26a   : > { %v1363_v6 = vadd.f32 %v1345_v53, %v1333_v3  ;;  %v1367_v10 = vmax.f32 %v1359_v2, 0.0  ;;  %v1361_v30 = vadd.f32 %v1353_v15, %v1331_v23  ;;  %v1335_v31 = vmax.f32 %v1315_v0, %v1325_v27  ;;  %v9326_v53 = vld [vmem:[#allocation8 + $0x288] ss:$16 sps:$4 sm:$0xff]   ;;  %v9337_v58 = vld [vmem:[#allocation8 + $0x2c4] ss:$16 sps:$4 sm:$0xff]  }
 0x26b   : > { %v1370_v8 = vmax.f32 %v1362_v5, 0.0  ;;  %v1368_v34 = vmax.f32 %v1360_v25, 0.0  ;;  %v1364_v35 = vadd.f32 %v1349_v9, %v1334_v26  ;;  %v9340_v59 = vld [vmem:[#allocation8 + $0x2cc] ss:$16 sps:$4 sm:$0xff]   ;;  %v9335_v60 = vld [vmem:[#allocation8 + $0x2c0] ss:$16 sps:$4 sm:$0xff]  }
 0x26c   : > { %v1371_v11 = vmax.f32 %v1363_v6, 0.0  ;;  %v1369_v36 = vmax.f32 %v1361_v30, 0.0  ;;  %v1365_v37 = vadd.f32 %v1353_v15, %v1335_v31  ;;  %v9338_v61 = vld [vmem:[#allocation8 + $0x2c8] ss:$16 sps:$4 sm:$0xff]   ;;  %v9343_v62 = vld [vmem:[#allocation8 + $0x2e4] ss:$16 sps:$4 sm:$0xff]  }
 0x26d   : > { %v11194_v16 = vpack.c.bf16 %v1370_v8, %v1366_v7  ;;  %v1372_v38 = vmax.f32 %v1364_v35, 0.0  ;;  %v9346_v63 = vld [vmem:[#allocation8 + $0x2ec] ss:$16 sps:$4 sm:$0xff]   ;;  %v9341_v0 = vld [vmem:[#allocation8 + $0x2e0] ss:$16 sps:$4 sm:$0xff]  }
 0x26e   : > { %v11196_v22 = vpack.c.bf16 %v1371_v11, %v1367_v10  ;;  %v1373_v39 = vmax.f32 %v1365_v37, 0.0  ;;  %v9344_v2 = vld [vmem:[#allocation8 + $0x2e8] ss:$16 sps:$4 sm:$0xff]   ;;  %v9349_v3 = vld [vmem:[#allocation8 + $0x304] ss:$16 sps:$4 sm:$0xff]  }
 0x26f   : > { %v11202_v42 = vpack.c.bf16 %v1372_v38, %v1368_v34  ;;  %v9352_v5 = vld [vmem:[#allocation8 + $0x30c] ss:$16 sps:$4 sm:$0xff]   ;;  %v9347_v6 = vld [vmem:[#allocation8 + $0x300] ss:$16 sps:$4 sm:$0xff]   ;;  %v9350_v7 = vld [vmem:[#allocation8 + $0x308] ss:$16 sps:$4 sm:$0xff]  }
 0x270   : > { %2178 = vmatprep.mubr.bf16.mxu0 %v11196_v22  ;;  %2264 = vmatprep.mubr.bf16.mxu1 %v11196_v22  ;;  %v11204_v43 = vpack.c.bf16 %v1373_v39, %v1369_v36  ;;  %v9355_v8 = vld [vmem:[#allocation8 + $0x324] ss:$16 sps:$4 sm:$0xff]   ;;  %v9358_v9 = vld [vmem:[#allocation8 + $0x32c] ss:$16 sps:$4 sm:$0xff]   ;;  %v9353_v10 = vld [vmem:[#allocation8 + $0x320] ss:$16 sps:$4 sm:$0xff]  }
 0x271   : > { %2179 = vmatmul.mubr.bf16.vlgmr.msra.gmra.mrb[8].mxu0 %v11194_v16  ;;  %2265 = vmatmul.mubr.bf16.vlgmr.msra.gmra.mrb[8].mxu1 %v11194_v16  ;;  %v9356_v11 = vld [vmem:[#allocation8 + $0x328] ss:$16 sps:$4 sm:$0xff]   ;;  %v9359_v14 = vld [vmem:[#allocation8 + $0x340] ss:$16 sps:$4 sm:$0xff]   ;;  %v9373_v23 = vld [vmem:[#allocation8 + $0x384] ss:$16 sps:$4 sm:$0xff]  }
 0x272   : > { %2190 = vmatpush1.bf16.msra.mxu0 %v9299_v12  ;;  %2276 = vmatpush1.bf16.msra.mxu1 %v9302_v13  ;;  %v9361_v12 = vld [vmem:[#allocation8 + $0x344] ss:$16 sps:$4 sm:$0xff]   ;;  %v9364_v13 = vld [vmem:[#allocation8 + $0x34c] ss:$16 sps:$4 sm:$0xff]   ;;  %v9362_v15 = vld [vmem:[#allocation8 + $0x348] ss:$16 sps:$4 sm:$0xff]  }
 0x273   : > { %2191 = vmatprep.subr.bf16.mxu0 %v9307_v17  ;;  %2277 = vmatprep.subr.bf16.mxu1 %v9310_v19  ;;  %v9367_v17 = vld [vmem:[#allocation8 + $0x364] ss:$16 sps:$4 sm:$0xff]   ;;  %v9370_v19 = vld [vmem:[#allocation8 + $0x36c] ss:$16 sps:$4 sm:$0xff]   ;;  %v9365_v20 = vld [vmem:[#allocation8 + $0x360] ss:$16 sps:$4 sm:$0xff]  }
 0x274   : > { %2221 = vmatprep.mubr.bf16.mxu0 %v11204_v43  ;;  %2307 = vmatprep.mubr.bf16.mxu1 %v11204_v43  ;;  %v9368_v21 = vld [vmem:[#allocation8 + $0x368] ss:$16 sps:$4 sm:$0xff]   ;;  %v9376_v24 = vld [vmem:[#allocation8 + $0x38c] ss:$16 sps:$4 sm:$0xff]   ;;  %v9371_v25 = vld [vmem:[#allocation8 + $0x380] ss:$16 sps:$4 sm:$0xff]  }
 0x275   : > { %v9374_v26 = vld [vmem:[#allocation8 + $0x388] ss:$16 sps:$4 sm:$0xff]   ;;  %v9379_v27 = vld [vmem:[#allocation8 + $0x3a4] ss:$16 sps:$4 sm:$0xff]   ;;  %v9394_v36 = vld [vmem:[#allocation8 + $0x3ec] ss:$16 sps:$4 sm:$0xff]  }
 0x276   : > { %2192 = vmatpush1.bf16.msra.mxu0 %v9305_v28  ;;  %2278 = vmatpush1.bf16.msra.mxu1 %v9308_v29  ;;  %v9382_v28 = vld [vmem:[#allocation8 + $0x3ac] ss:$16 sps:$4 sm:$0xff]   ;;  %v9377_v29 = vld [vmem:[#allocation8 + $0x3a0] ss:$16 sps:$4 sm:$0xff]   ;;  %v9380_v30 = vld [vmem:[#allocation8 + $0x3a8] ss:$16 sps:$4 sm:$0xff]  }
 0x277   : > { %2193 = vmatprep.subr.bf16.mxu0 %v9313_v32  ;;  %2279 = vmatprep.subr.bf16.mxu1 %v9316_v33  ;;  %v9385_v31 = vld [vmem:[#allocation8 + $0x3c4] ss:$16 sps:$4 sm:$0xff]   ;;  %v9388_v32 = vld [vmem:[#allocation8 + $0x3cc] ss:$16 sps:$4 sm:$0xff]   ;;  %v9383_v33 = vld [vmem:[#allocation8 + $0x3c0] ss:$16 sps:$4 sm:$0xff]  }
 0x278   : > { %v9386_v34 = vld [vmem:[#allocation8 + $0x3c8] ss:$16 sps:$4 sm:$0xff]   ;;  %v9391_v35 = vld [vmem:[#allocation8 + $0x3e4] ss:$16 sps:$4 sm:$0xff]   ;;  %v9389_v37 = vld [vmem:[#allocation8 + $0x3e0] ss:$16 sps:$4 sm:$0xff]  }
 0x279   : > { %v9392_v38 = vld [vmem:[#allocation8 + $0x3e8] ss:$16 sps:$4 sm:$0xff]   ;;  %v9397_v39 = vld [vmem:[#allocation8 + $0x404] ss:$16 sps:$4 sm:$0xff]  }
 0x27a   : > { %2194 = vmatpush1.bf16.msra.mxu0 %v9311_v40  ;;  %2280 = vmatpush1.bf16.msra.mxu1 %v9314_v41  ;;  %v9400_v40 = vld [vmem:[#allocation8 + $0x40c] ss:$16 sps:$4 sm:$0xff]   ;;  %v9395_v41 = vld [vmem:[#allocation8 + $0x400] ss:$16 sps:$4 sm:$0xff]  }
 0x27b   : > { %2195 = vmatprep.subr.bf16.mxu0 %v9319_v44  ;;  %2281 = vmatprep.subr.bf16.mxu1 %v9322_v45  ;;  %v9398_v44 = vld [vmem:[#allocation8 + $0x408] ss:$16 sps:$4 sm:$0xff]   ;;  %v9403_v45 = vld [vmem:[#allocation8 + $0x424] ss:$16 sps:$4 sm:$0xff]  }
 0x27e   : > { %2196 = vmatpush1.bf16.msra.mxu0 %v9317_v46  ;;  %2282 = vmatpush1.bf16.msra.mxu1 %v9320_v47  ;;  %v9406_v46 = vld [vmem:[#allocation8 + $0x42c] ss:$16 sps:$4 sm:$0xff]   ;;  %v9401_v47 = vld [vmem:[#allocation8 + $0x420] ss:$16 sps:$4 sm:$0xff]  }
 0x27f   : > { %2197 = vmatprep.subr.bf16.mxu0 %v9325_v49  ;;  %2283 = vmatprep.subr.bf16.mxu1 %v9328_v51  ;;  %v9404_v49 = vld [vmem:[#allocation8 + $0x428] ss:$16 sps:$4 sm:$0xff]   ;;  %v9409_v51 = vld [vmem:[#allocation8 + $0x444] ss:$16 sps:$4 sm:$0xff]  }
 0x282   : > { %2198 = vmatpush1.bf16.msra.mxu0 %v9323_v52  ;;  %2284 = vmatpush1.bf16.msra.mxu1 %v9326_v53  ;;  %v9412_v52 = vld [vmem:[#allocation8 + $0x44c] ss:$16 sps:$4 sm:$0xff]   ;;  %v9407_v53 = vld [vmem:[#allocation8 + $0x440] ss:$16 sps:$4 sm:$0xff]  }
 0x283   : > { %2199 = vmatprep.subr.bf16.mxu0 %v9331_v54  ;;  %2285 = vmatprep.subr.bf16.mxu1 %v9334_v55  ;;  %v9410_v54 = vld [vmem:[#allocation8 + $0x448] ss:$16 sps:$4 sm:$0xff]   ;;  %v9415_v55 = vld [vmem:[#allocation8 + $0x464] ss:$16 sps:$4 sm:$0xff]  }
 0x286   : > { %2200 = vmatpush1.bf16.msra.mxu0 %v9329_v56  ;;  %2286 = vmatpush1.bf16.msra.mxu1 %v9332_v57  ;;  %v9413_v56 = vld [vmem:[#allocation8 + $0x460] ss:$16 sps:$4 sm:$0xff]   ;;  %v9418_v57 = vld [vmem:[#allocation8 + $0x46c] ss:$16 sps:$4 sm:$0xff]  }
 0x287   : > { %2201 = vmatprep.subr.bf16.mxu0 %v9337_v58  ;;  %2287 = vmatprep.subr.bf16.mxu1 %v9340_v59  ;;  %v9416_v58 = vld [vmem:[#allocation8 + $0x468] ss:$16 sps:$4 sm:$0xff]   ;;  %v9421_v59 = vld [vmem:[#allocation8 + $0x484] ss:$16 sps:$4 sm:$0xff]  }
 0x28a   : > { %2202 = vmatpush1.bf16.msra.mxu0 %v9335_v60  ;;  %2288 = vmatpush1.bf16.msra.mxu1 %v9338_v61  ;;  %v9419_v60 = vld [vmem:[#allocation8 + $0x480] ss:$16 sps:$4 sm:$0xff]   ;;  %v9424_v61 = vld [vmem:[#allocation8 + $0x48c] ss:$16 sps:$4 sm:$0xff]  }
 0x28b   : > { %2203 = vmatprep.subr.bf16.mxu0 %v9343_v62  ;;  %2289 = vmatprep.subr.bf16.mxu1 %v9346_v63  ;;  %v9422_v62 = vld [vmem:[#allocation8 + $0x488] ss:$16 sps:$4 sm:$0xff]   ;;  %v9427_v63 = vld [vmem:[#allocation8 + $0x4a4] ss:$16 sps:$4 sm:$0xff]  }
 0x28e   : > { %2204 = vmatpush1.bf16.msra.mxu0 %v9341_v0  ;;  %2290 = vmatpush1.bf16.msra.mxu1 %v9344_v2  ;;  %v9425_v0 = vld [vmem:[#allocation8 + $0x4a0] ss:$16 sps:$4 sm:$0xff]   ;;  %v9430_v2 = vld [vmem:[#allocation8 + $0x4ac] ss:$16 sps:$4 sm:$0xff]  }
 0x28f   : > { %2205 = vmatprep.subr.bf16.mxu0 %v9349_v3  ;;  %2291 = vmatprep.subr.bf16.mxu1 %v9352_v5  ;;  %v9428_v3 = vld [vmem:[#allocation8 + $0x4a8] ss:$16 sps:$4 sm:$0xff]   ;;  %v9433_v5 = vld [vmem:[#allocation8 + $0x4c4] ss:$16 sps:$4 sm:$0xff]  }
 0x292   : > { %2206 = vmatpush1.bf16.msra.mxu0 %v9347_v6  ;;  %2292 = vmatpush1.bf16.msra.mxu1 %v9350_v7  ;;  %v9431_v6 = vld [vmem:[#allocation8 + $0x4c0] ss:$16 sps:$4 sm:$0xff]   ;;  %v9436_v7 = vld [vmem:[#allocation8 + $0x4cc] ss:$16 sps:$4 sm:$0xff]  }
 0x293   : > { %2207 = vmatprep.subr.bf16.mxu0 %v9355_v8  ;;  %2293 = vmatprep.subr.bf16.mxu1 %v9358_v9  ;;  %v9434_v8 = vld [vmem:[#allocation8 + $0x4c8] ss:$16 sps:$4 sm:$0xff]   ;;  %v9439_v9 = vld [vmem:[#allocation8 + $0x4e4] ss:$16 sps:$4 sm:$0xff]  }
 0x296   : > { %2208 = vmatpush1.bf16.msra.mxu0 %v9353_v10  ;;  %2294 = vmatpush1.bf16.msra.mxu1 %v9356_v11  ;;  %v9437_v10 = vld [vmem:[#allocation8 + $0x4e0] ss:$16 sps:$4 sm:$0xff]   ;;  %v9442_v11 = vld [vmem:[#allocation8 + $0x4ec] ss:$16 sps:$4 sm:$0xff]  }
 0x297   : > { %2209 = vmatprep.subr.bf16.mxu0 %v9361_v12  ;;  %2295 = vmatprep.subr.bf16.mxu1 %v9364_v13  ;;  %v9440_v12 = vld [vmem:[#allocation8 + $0x4e8] ss:$16 sps:$4 sm:$0xff]   ;;  %v9445_v13 = vld [vmem:[#allocation8 + $0x504] ss:$16 sps:$4 sm:$0xff]  }
 0x29a   : > { %2210 = vmatpush1.bf16.msra.mxu0 %v9359_v14  ;;  %2296 = vmatpush1.bf16.msra.mxu1 %v9362_v15  ;;  %v9443_v14 = vld [vmem:[#allocation8 + $0x500] ss:$16 sps:$4 sm:$0xff]   ;;  %v9448_v15 = vld [vmem:[#allocation8 + $0x50c] ss:$16 sps:$4 sm:$0xff]  }
 0x29b   : > { %2211 = vmatprep.subr.bf16.mxu0 %v9367_v17  ;;  %2297 = vmatprep.subr.bf16.mxu1 %v9370_v19  ;;  %v9446_v17 = vld [vmem:[#allocation8 + $0x508] ss:$16 sps:$4 sm:$0xff]   ;;  %v9451_v19 = vld [vmem:[#allocation8 + $0x524] ss:$16 sps:$4 sm:$0xff]  }
 0x29e   : > { %2212 = vmatpush1.bf16.msra.mxu0 %v9365_v20  ;;  %2298 = vmatpush1.bf16.msra.mxu1 %v9368_v21  ;;  %v9449_v20 = vld [vmem:[#allocation8 + $0x520] ss:$16 sps:$4 sm:$0xff]   ;;  %v9454_v21 = vld [vmem:[#allocation8 + $0x52c] ss:$16 sps:$4 sm:$0xff]  }
 0x29f   : > { %2213 = vmatprep.subr.bf16.mxu0 %v9373_v23  ;;  %2299 = vmatprep.subr.bf16.mxu1 %v9376_v24  ;;  %v9452_v23 = vld [vmem:[#allocation8 + $0x528] ss:$16 sps:$4 sm:$0xff]   ;;  %v9457_v24 = vld [vmem:[#allocation8 + $0x544] ss:$16 sps:$4 sm:$0xff]  }
 0x2a2   : > { %2214 = vmatpush1.bf16.msra.mxu0 %v9371_v25  ;;  %2300 = vmatpush1.bf16.msra.mxu1 %v9374_v26  ;;  %v9455_v25 = vld [vmem:[#allocation8 + $0x540] ss:$16 sps:$4 sm:$0xff]   ;;  %v9460_v26 = vld [vmem:[#allocation8 + $0x54c] ss:$16 sps:$4 sm:$0xff]  }
 0x2a3   : > { %2215 = vmatprep.subr.bf16.mxu0 %v9379_v27  ;;  %2301 = vmatprep.subr.bf16.mxu1 %v9382_v28  ;;  %v9458_v27 = vld [vmem:[#allocation8 + $0x548] ss:$16 sps:$4 sm:$0xff]   ;;  %v9463_v28 = vld [vmem:[#allocation8 + $0x564] ss:$16 sps:$4 sm:$0xff]  }
 0x2a6   : > { %2216 = vmatpush1.bf16.msra.mxu0 %v9377_v29  ;;  %2302 = vmatpush1.bf16.msra.mxu1 %v9380_v30  ;;  %v9461_v29 = vld [vmem:[#allocation8 + $0x560] ss:$16 sps:$4 sm:$0xff]   ;;  %v9466_v30 = vld [vmem:[#allocation8 + $0x56c] ss:$16 sps:$4 sm:$0xff]  }
 0x2a7   : > { %2217 = vmatprep.subr.bf16.mxu0 %v9385_v31  ;;  %2303 = vmatprep.subr.bf16.mxu1 %v9388_v32  ;;  %v9464_v31 = vld [vmem:[#allocation8 + $0x568] ss:$16 sps:$4 sm:$0xff]   ;;  %v9469_v32 = vld [vmem:[#allocation8 + $0x584] ss:$16 sps:$4 sm:$0xff]  }
 0x2aa   : > { %2218 = vmatpush1.bf16.msra.mxu0 %v9383_v33  ;;  %2304 = vmatpush1.bf16.msra.mxu1 %v9386_v34  ;;  %v9467_v33 = vld [vmem:[#allocation8 + $0x580] ss:$16 sps:$4 sm:$0xff]   ;;  %v9472_v34 = vld [vmem:[#allocation8 + $0x58c] ss:$16 sps:$4 sm:$0xff]  }
 0x2ab   : > { %2219 = vmatprep.subr.bf16.mxu0 %v9391_v35  ;;  %2305 = vmatprep.subr.bf16.mxu1 %v9394_v36  ;;  %v9470_v35 = vld [vmem:[#allocation8 + $0x588] ss:$16 sps:$4 sm:$0xff]   ;;  %v9475_v36 = vld [vmem:[#allocation8 + $0x5a4] ss:$16 sps:$4 sm:$0xff]  }
 0x2ae   : > { %2220 = vmatpush1.bf16.msra.mxu0 %v9389_v37  ;;  %2306 = vmatpush1.bf16.msra.mxu1 %v9392_v38  ;;  %v9473_v37 = vld [vmem:[#allocation8 + $0x5a0] ss:$16 sps:$4 sm:$0xff]   ;;  %v9478_v38 = vld [vmem:[#allocation8 + $0x5ac] ss:$16 sps:$4 sm:$0xff]  }
 0x2af   : > { %3086 = vmatprep.subr.bf16.mxu0 %v9397_v39  ;;  %3172 = vmatprep.subr.bf16.mxu1 %v9400_v40  ;;  %v9476_v39 = vld [vmem:[#allocation8 + $0x5a8] ss:$16 sps:$4 sm:$0xff]   ;;  %v9481_v40 = vld [vmem:[#allocation8 + $0x5c4] ss:$16 sps:$4 sm:$0xff]  }
 0x2b1   : > { %2222 = vmatmul.mubr.bf16.vlgmr.msra.gmra.mrb[8].mxu0 %v11202_v42  ;;  %2308 = vmatmul.mubr.bf16.vlgmr.msra.gmra.mrb[8].mxu1 %v11202_v42 }
 0x2b2   : > { %3087 = vmatpush1.bf16.msra.mxu0 %v9395_v41  ;;  %3118 = vmatprep.mubr.bf16.mxu0 %v11196_v22  ;;  %v9479_v41 = vld [vmem:[#allocation8 + $0x5c0] ss:$16 sps:$4 sm:$0xff]  }
 0x2b3   : > { %3173 = vmatpush1.bf16.msra.mxu1 %v9398_v44  ;;  %3204 = vmatprep.mubr.bf16.mxu1 %v11196_v22  ;;  %v9484_v44 = vld [vmem:[#allocation8 + $0x5cc] ss:$16 sps:$4 sm:$0xff]  }
 0x2b4   : > { %3088 = vmatprep.subr.bf16.mxu0 %v9403_v45  ;;  %3174 = vmatprep.subr.bf16.mxu1 %v9406_v46  ;;  %v9482_v45 = vld [vmem:[#allocation8 + $0x5c8] ss:$16 sps:$4 sm:$0xff]   ;;  %v9487_v46 = vld [vmem:[#allocation8 + $0x5e4] ss:$16 sps:$4 sm:$0xff]  }
 0x2b6   : > { %3089 = vmatpush1.bf16.msra.mxu0 %v9401_v47  ;;  %v9485_v47 = vld [vmem:[#allocation8 + $0x5e0] ss:$16 sps:$4 sm:$0xff]  }
 0x2b7   : > { %3175 = vmatpush1.bf16.msra.mxu1 %v9404_v49  ;;  %3090 = vmatprep.subr.bf16.mxu0 %v9409_v51  ;;  %v9490_v49 = vld [vmem:[#allocation8 + $0x5ec] ss:$16 sps:$4 sm:$0xff]   ;;  %v9488_v51 = vld [vmem:[#allocation8 + $0x5e8] ss:$16 sps:$4 sm:$0xff]  }
 0x2b8   : > { %3176 = vmatprep.subr.bf16.mxu1 %v9412_v52  ;;  %v9493_v52 = vld [vmem:[#allocation8 + $0x604] ss:$16 sps:$4 sm:$0xff]  }
 0x2ba   : > { %3091 = vmatpush1.bf16.msra.mxu0 %v9407_v53  ;;  %v9496_v53 = vld [vmem:[#allocation8 + $0x60c] ss:$16 sps:$4 sm:$0xff]  }
 0x2bb   : > { %3177 = vmatpush1.bf16.msra.mxu1 %v9410_v54  ;;  %3092 = vmatprep.subr.bf16.mxu0 %v9415_v55  ;;  %v9491_v54 = vld [vmem:[#allocation8 + $0x600] ss:$16 sps:$4 sm:$0xff]   ;;  %v9494_v55 = vld [vmem:[#allocation8 + $0x608] ss:$16 sps:$4 sm:$0xff]  }
 0x2bc   : > { %3178 = vmatprep.subr.bf16.mxu1 %v9418_v57  ;;  %v9502_v57 = vld [vmem:[#allocation8 + $0x62c] ss:$16 sps:$4 sm:$0xff]  }
 0x2be   : > { %3093 = vmatpush1.bf16.msra.mxu0 %v9413_v56  ;;  %v9499_v56 = vld [vmem:[#allocation8 + $0x624] ss:$16 sps:$4 sm:$0xff]  }
 0x2bf   : > { %3179 = vmatpush1.bf16.msra.mxu1 %v9416_v58  ;;  %3094 = vmatprep.subr.bf16.mxu0 %v9421_v59  ;;  %v9497_v58 = vld [vmem:[#allocation8 + $0x620] ss:$16 sps:$4 sm:$0xff]   ;;  %v9500_v59 = vld [vmem:[#allocation8 + $0x628] ss:$16 sps:$4 sm:$0xff]  }
 0x2c0   : > { %3180 = vmatprep.subr.bf16.mxu1 %v9424_v61  ;;  %v9508_v61 = vld [vmem:[#allocation8 + $0x64c] ss:$16 sps:$4 sm:$0xff]  }
 0x2c2   : > { %3095 = vmatpush1.bf16.msra.mxu0 %v9419_v60  ;;  %v9505_v60 = vld [vmem:[#allocation8 + $0x644] ss:$16 sps:$4 sm:$0xff]  }
 0x2c3   : > { %3181 = vmatpush1.bf16.msra.mxu1 %v9422_v62  ;;  %3096 = vmatprep.subr.bf16.mxu0 %v9427_v63  ;;  %v9503_v62 = vld [vmem:[#allocation8 + $0x640] ss:$16 sps:$4 sm:$0xff]   ;;  %v9506_v63 = vld [vmem:[#allocation8 + $0x648] ss:$16 sps:$4 sm:$0xff]  }
 0x2c4   : > { %3182 = vmatprep.subr.bf16.mxu1 %v9430_v2  ;;  %v9514_v2 = vld [vmem:[#allocation8 + $0x66c] ss:$16 sps:$4 sm:$0xff]  }
 0x2c6   : > { %3097 = vmatpush1.bf16.msra.mxu0 %v9425_v0  ;;  %v9511_v0 = vld [vmem:[#allocation8 + $0x664] ss:$16 sps:$4 sm:$0xff]  }
 0x2c7   : > { %3183 = vmatpush1.bf16.msra.mxu1 %v9428_v3  ;;  %3098 = vmatprep.subr.bf16.mxu0 %v9433_v5  ;;  %v9509_v3 = vld [vmem:[#allocation8 + $0x660] ss:$16 sps:$4 sm:$0xff]   ;;  %v9512_v5 = vld [vmem:[#allocation8 + $0x668] ss:$16 sps:$4 sm:$0xff]  }
 0x2c8   : > { %3184 = vmatprep.subr.bf16.mxu1 %v9436_v7  ;;  %v9520_v7 = vld [vmem:[#allocation8 + $0x68c] ss:$16 sps:$4 sm:$0xff]  }
 0x2ca   : > { %3099 = vmatpush1.bf16.msra.mxu0 %v9431_v6  ;;  %v9517_v6 = vld [vmem:[#allocation8 + $0x684] ss:$16 sps:$4 sm:$0xff]  }
 0x2cb   : > { %3185 = vmatpush1.bf16.msra.mxu1 %v9434_v8  ;;  %3100 = vmatprep.subr.bf16.mxu0 %v9439_v9  ;;  %v9515_v8 = vld [vmem:[#allocation8 + $0x680] ss:$16 sps:$4 sm:$0xff]   ;;  %v9518_v9 = vld [vmem:[#allocation8 + $0x688] ss:$16 sps:$4 sm:$0xff]  }
 0x2cc   : > { %3186 = vmatprep.subr.bf16.mxu1 %v9442_v11  ;;  %v9526_v11 = vld [vmem:[#allocation8 + $0x6ac] ss:$16 sps:$4 sm:$0xff]  }
 0x2ce   : > { %3101 = vmatpush1.bf16.msra.mxu0 %v9437_v10  ;;  %v9523_v10 = vld [vmem:[#allocation8 + $0x6a4] ss:$16 sps:$4 sm:$0xff]  }
 0x2cf   : > { %3187 = vmatpush1.bf16.msra.mxu1 %v9440_v12  ;;  %3102 = vmatprep.subr.bf16.mxu0 %v9445_v13  ;;  %v9521_v12 = vld [vmem:[#allocation8 + $0x6a0] ss:$16 sps:$4 sm:$0xff]   ;;  %v9524_v13 = vld [vmem:[#allocation8 + $0x6a8] ss:$16 sps:$4 sm:$0xff]  }
 0x2d0   : > { %3188 = vmatprep.subr.bf16.mxu1 %v9448_v15  ;;  %v9532_v15 = vld [vmem:[#allocation8 + $0x6cc] ss:$16 sps:$4 sm:$0xff]  }
 0x2d2   : > { %3103 = vmatpush1.bf16.msra.mxu0 %v9443_v14  ;;  %v9529_v14 = vld [vmem:[#allocation8 + $0x6c4] ss:$16 sps:$4 sm:$0xff]  }
 0x2d3   : > { %3189 = vmatpush1.bf16.msra.mxu1 %v9446_v17  ;;  %3104 = vmatprep.subr.bf16.mxu0 %v9451_v19  ;;  %v9527_v17 = vld [vmem:[#allocation8 + $0x6c0] ss:$16 sps:$4 sm:$0xff]   ;;  %v9530_v19 = vld [vmem:[#allocation8 + $0x6c8] ss:$16 sps:$4 sm:$0xff]  }
 0x2d4   : > { %3190 = vmatprep.subr.bf16.mxu1 %v9454_v21  ;;  %v9538_v21 = vld [vmem:[#allocation8 + $0x6ec] ss:$16 sps:$4 sm:$0xff]  }
 0x2d6   : > { %3105 = vmatpush1.bf16.msra.mxu0 %v9449_v20  ;;  %v9535_v20 = vld [vmem:[#allocation8 + $0x6e4] ss:$16 sps:$4 sm:$0xff]  }
 0x2d7   : > { %3191 = vmatpush1.bf16.msra.mxu1 %v9452_v23  ;;  %3106 = vmatprep.subr.bf16.mxu0 %v9457_v24  ;;  %v9533_v23 = vld [vmem:[#allocation8 + $0x6e0] ss:$16 sps:$4 sm:$0xff]   ;;  %v9536_v24 = vld [vmem:[#allocation8 + $0x6e8] ss:$16 sps:$4 sm:$0xff]  }
 0x2d8   : > { %3192 = vmatprep.subr.bf16.mxu1 %v9460_v26  ;;  %v9544_v26 = vld [vmem:[#allocation8 + $0x70c] ss:$16 sps:$4 sm:$0xff]  }
 0x2da   : > { %3107 = vmatpush1.bf16.msra.mxu0 %v9455_v25  ;;  %v9541_v25 = vld [vmem:[#allocation8 + $0x704] ss:$16 sps:$4 sm:$0xff]  }
 0x2db   : > { %3193 = vmatpush1.bf16.msra.mxu1 %v9458_v27  ;;  %3108 = vmatprep.subr.bf16.mxu0 %v9463_v28  ;;  %v9539_v27 = vld [vmem:[#allocation8 + $0x700] ss:$16 sps:$4 sm:$0xff]   ;;  %v9542_v28 = vld [vmem:[#allocation8 + $0x708] ss:$16 sps:$4 sm:$0xff]  }
 0x2dc   : > { %3194 = vmatprep.subr.bf16.mxu1 %v9466_v30  ;;  %v9550_v30 = vld [vmem:[#allocation8 + $0x72c] ss:$16 sps:$4 sm:$0xff]  }
 0x2de   : > { %3109 = vmatpush1.bf16.msra.mxu0 %v9461_v29  ;;  %v9547_v29 = vld [vmem:[#allocation8 + $0x724] ss:$16 sps:$4 sm:$0xff]  }
 0x2df   : > { %3195 = vmatpush1.bf16.msra.mxu1 %v9464_v31  ;;  %3110 = vmatprep.subr.bf16.mxu0 %v9469_v32  ;;  %v9545_v31 = vld [vmem:[#allocation8 + $0x720] ss:$16 sps:$4 sm:$0xff]   ;;  %v9548_v32 = vld [vmem:[#allocation8 + $0x728] ss:$16 sps:$4 sm:$0xff]  }
 0x2e0   : > { %3196 = vmatprep.subr.bf16.mxu1 %v9472_v34  ;;  %v9556_v34 = vld [vmem:[#allocation8 + $0x74c] ss:$16 sps:$4 sm:$0xff]  }
 0x2e2   : > { %3111 = vmatpush1.bf16.msra.mxu0 %v9467_v33  ;;  %v9553_v33 = vld [vmem:[#allocation8 + $0x744] ss:$16 sps:$4 sm:$0xff]  }
 0x2e3   : > { %3197 = vmatpush1.bf16.msra.mxu1 %v9470_v35  ;;  %3112 = vmatprep.subr.bf16.mxu0 %v9475_v36  ;;  %v9551_v35 = vld [vmem:[#allocation8 + $0x740] ss:$16 sps:$4 sm:$0xff]   ;;  %v9554_v36 = vld [vmem:[#allocation8 + $0x748] ss:$16 sps:$4 sm:$0xff]  }
 0x2e4   : > { %3198 = vmatprep.subr.bf16.mxu1 %v9478_v38  ;;  %v9562_v38 = vld [vmem:[#allocation8 + $0x76c] ss:$16 sps:$4 sm:$0xff]  }
 0x2e6   : > { %3113 = vmatpush1.bf16.msra.mxu0 %v9473_v37  ;;  %v9559_v37 = vld [vmem:[#allocation8 + $0x764] ss:$16 sps:$4 sm:$0xff]  }
 0x2e7   : > { %3199 = vmatpush1.bf16.msra.mxu1 %v9476_v39  ;;  %3114 = vmatprep.subr.bf16.mxu0 %v9481_v40  ;;  %v9557_v39 = vld [vmem:[#allocation8 + $0x760] ss:$16 sps:$4 sm:$0xff]   ;;  %v9560_v40 = vld [vmem:[#allocation8 + $0x768] ss:$16 sps:$4 sm:$0xff]  }
 0x2e8   : > { %3200 = vmatprep.subr.bf16.mxu1 %v9484_v44  ;;  %v9568_v44 = vld [vmem:[#allocation8 + $0x78c] ss:$16 sps:$4 sm:$0xff]  }
 0x2ea   : > { %3115 = vmatpush1.bf16.msra.mxu0 %v9479_v41  ;;  %v9565_v41 = vld [vmem:[#allocation8 + $0x784] ss:$16 sps:$4 sm:$0xff]  }
 0x2eb   : > { %3201 = vmatpush1.bf16.msra.mxu1 %v9482_v45  ;;  %3116 = vmatprep.subr.bf16.mxu0 %v9487_v46  ;;  %v9563_v45 = vld [vmem:[#allocation8 + $0x780] ss:$16 sps:$4 sm:$0xff]   ;;  %v9566_v46 = vld [vmem:[#allocation8 + $0x788] ss:$16 sps:$4 sm:$0xff]  }
 0x2ec   : > { %3202 = vmatprep.subr.bf16.mxu1 %v9490_v49  ;;  %v9574_v49 = vld [vmem:[#allocation8 + $0x7ac] ss:$16 sps:$4 sm:$0xff]  }
 0x2ee   : > { %3117 = vmatpush1.bf16.msra.mxu0 %v9485_v47  ;;  %v9571_v47 = vld [vmem:[#allocation8 + $0x7a4] ss:$16 sps:$4 sm:$0xff]  }
 0x2ef   : > { %3203 = vmatpush1.bf16.msra.mxu1 %v9488_v51  ;;  %3129 = vmatprep.subr.bf16.mxu0 %v9493_v52  ;;  %v9569_v51 = vld [vmem:[#allocation8 + $0x7a0] ss:$16 sps:$4 sm:$0xff]   ;;  %v9572_v52 = vld [vmem:[#allocation8 + $0x7a8] ss:$16 sps:$4 sm:$0xff]  }
 0x2f0   : > { %3215 = vmatprep.subr.bf16.mxu1 %v9496_v53  ;;  %v9577_v53 = vld [vmem:[#allocation8 + $0x7c4] ss:$16 sps:$4 sm:$0xff]  }
 0x2f1   : > { %3119 = vmatmul.mubr.bf16.vlgmr.msra.gmra.mrb[12].mxu0 %v11194_v16 }
 0x2f2   : > { %3205 = vmatmul.mubr.bf16.vlgmr.msra.gmra.mrb[12].mxu1 %v11194_v16  ;;  %3130 = vmatpush1.bf16.msra.mxu0 %v9491_v54  ;;  %v9580_v54 = vld [vmem:[#allocation8 + $0x7cc] ss:$16 sps:$4 sm:$0xff]  }
 0x2f3   : > { %3161 = vmatprep.mubr.bf16.mxu0 %v11204_v43  ;;  %3216 = vmatpush1.bf16.msra.mxu1 %v9494_v55  ;;  %v9575_v55 = vld [vmem:[#allocation8 + $0x7c0] ss:$16 sps:$4 sm:$0xff]  }
 0x2f4   : > { %3247 = vmatprep.mubr.bf16.mxu1 %v11204_v43  ;;  %3131 = vmatprep.subr.bf16.mxu0 %v9499_v56  ;;  %v9578_v56 = vld [vmem:[#allocation8 + $0x7c8] ss:$16 sps:$4 sm:$0xff]  }
 0x2f5   : > { %3217 = vmatprep.subr.bf16.mxu1 %v9502_v57  ;;  %v9583_v57 = vld [vmem:[#allocation8 + $0x7e4] ss:$16 sps:$4 sm:$0xff]  }
 0x2f6   : > { %3132 = vmatpush1.bf16.msra.mxu0 %v9497_v58  ;;  %v9586_v58 = vld [vmem:[#allocation8 + $0x7ec] ss:$16 sps:$4 sm:$0xff]  }
 0x2f7   : > { %3218 = vmatpush1.bf16.msra.mxu1 %v9500_v59  ;;  %3133 = vmatprep.subr.bf16.mxu0 %v9505_v60  ;;  %v9581_v59 = vld [vmem:[#allocation8 + $0x7e0] ss:$16 sps:$4 sm:$0xff]   ;;  %v9584_v60 = vld [vmem:[#allocation8 + $0x7e8] ss:$16 sps:$4 sm:$0xff]  }
 0x2f8   : > { %3219 = vmatprep.subr.bf16.mxu1 %v9508_v61  ;;  %v9589_v61 = vld [vmem:[#allocation8 + $0x804] ss:$16 sps:$4 sm:$0xff]  }
 0x2fa   : > { %3134 = vmatpush1.bf16.msra.mxu0 %v9503_v62  ;;  %v9592_v62 = vld [vmem:[#allocation8 + $0x80c] ss:$16 sps:$4 sm:$0xff]  }
 0x2fb   : > { %3220 = vmatpush1.bf16.msra.mxu1 %v9506_v63  ;;  %3135 = vmatprep.subr.bf16.mxu0 %v9511_v0  ;;  %v9587_v63 = vld [vmem:[#allocation8 + $0x800] ss:$16 sps:$4 sm:$0xff]   ;;  %v9590_v0 = vld [vmem:[#allocation8 + $0x808] ss:$16 sps:$4 sm:$0xff]  }
 0x2fc   : > { %3221 = vmatprep.subr.bf16.mxu1 %v9514_v2  ;;  %v9595_v2 = vld [vmem:[#allocation8 + $0x824] ss:$16 sps:$4 sm:$0xff]  }
 0x2fe   : > { %3136 = vmatpush1.bf16.msra.mxu0 %v9509_v3  ;;  %v9598_v3 = vld [vmem:[#allocation8 + $0x82c] ss:$16 sps:$4 sm:$0xff]  }
 0x2ff   : > { %3222 = vmatpush1.bf16.msra.mxu1 %v9512_v5  ;;  %3137 = vmatprep.subr.bf16.mxu0 %v9517_v6  ;;  %v9593_v5 = vld [vmem:[#allocation8 + $0x820] ss:$16 sps:$4 sm:$0xff]   ;;  %v9596_v6 = vld [vmem:[#allocation8 + $0x828] ss:$16 sps:$4 sm:$0xff]  }
 0x300   : > { %3223 = vmatprep.subr.bf16.mxu1 %v9520_v7  ;;  %v9601_v7 = vld [vmem:[#allocation8 + $0x844] ss:$16 sps:$4 sm:$0xff]  }
 0x302   : > { %3138 = vmatpush1.bf16.msra.mxu0 %v9515_v8  ;;  %v9604_v8 = vld [vmem:[#allocation8 + $0x84c] ss:$16 sps:$4 sm:$0xff]  }
 0x303   : > { %3224 = vmatpush1.bf16.msra.mxu1 %v9518_v9  ;;  %3139 = vmatprep.subr.bf16.mxu0 %v9523_v10  ;;  %v9599_v9 = vld [vmem:[#allocation8 + $0x840] ss:$16 sps:$4 sm:$0xff]   ;;  %v9602_v10 = vld [vmem:[#allocation8 + $0x848] ss:$16 sps:$4 sm:$0xff]  }
 0x304   : > { %3225 = vmatprep.subr.bf16.mxu1 %v9526_v11  ;;  %v9607_v11 = vld [vmem:[#allocation8 + $0x864] ss:$16 sps:$4 sm:$0xff]  }
 0x306   : > { %3140 = vmatpush1.bf16.msra.mxu0 %v9521_v12  ;;  %v9610_v12 = vld [vmem:[#allocation8 + $0x86c] ss:$16 sps:$4 sm:$0xff]  }
 0x307   : > { %3226 = vmatpush1.bf16.msra.mxu1 %v9524_v13  ;;  %3141 = vmatprep.subr.bf16.mxu0 %v9529_v14  ;;  %v9605_v13 = vld [vmem:[#allocation8 + $0x860] ss:$16 sps:$4 sm:$0xff]   ;;  %v9608_v14 = vld [vmem:[#allocation8 + $0x868] ss:$16 sps:$4 sm:$0xff]  }
 0x308   : > { %3227 = vmatprep.subr.bf16.mxu1 %v9532_v15  ;;  %v9613_v15 = vld [vmem:[#allocation8 + $0x884] ss:$16 sps:$4 sm:$0xff]  }
 0x30a   : > { %3142 = vmatpush1.bf16.msra.mxu0 %v9527_v17  ;;  %v9616_v17 = vld [vmem:[#allocation8 + $0x88c] ss:$16 sps:$4 sm:$0xff]  }
 0x30b   : > { %3228 = vmatpush1.bf16.msra.mxu1 %v9530_v19  ;;  %3143 = vmatprep.subr.bf16.mxu0 %v9535_v20  ;;  %v9614_v19 = vld [vmem:[#allocation8 + $0x888] ss:$16 sps:$4 sm:$0xff]   ;;  %v9619_v20 = vld [vmem:[#allocation8 + $0x8a4] ss:$16 sps:$4 sm:$0xff]  }
 0x30c   : > { %3229 = vmatprep.subr.bf16.mxu1 %v9538_v21  ;;  %v9622_v21 = vld [vmem:[#allocation8 + $0x8ac] ss:$16 sps:$4 sm:$0xff]  }
 0x30e   : > { %3144 = vmatpush1.bf16.msra.mxu0 %v9533_v23  ;;  %v9617_v23 = vld [vmem:[#allocation8 + $0x8a0] ss:$16 sps:$4 sm:$0xff]  }
 0x30f   : > { %3230 = vmatpush1.bf16.msra.mxu1 %v9536_v24  ;;  %3145 = vmatprep.subr.bf16.mxu0 %v9541_v25  ;;  %v9620_v24 = vld [vmem:[#allocation8 + $0x8a8] ss:$16 sps:$4 sm:$0xff]   ;;  %v9625_v25 = vld [vmem:[#allocation8 + $0x8c4] ss:$16 sps:$4 sm:$0xff]  }
 0x310   : > { %3231 = vmatprep.subr.bf16.mxu1 %v9544_v26  ;;  %v9628_v26 = vld [vmem:[#allocation8 + $0x8cc] ss:$16 sps:$4 sm:$0xff]  }
 0x312   : > { %3146 = vmatpush1.bf16.msra.mxu0 %v9539_v27  ;;  %v9623_v27 = vld [vmem:[#allocation8 + $0x8c0] ss:$16 sps:$4 sm:$0xff]  }
 0x313   : > { %3232 = vmatpush1.bf16.msra.mxu1 %v9542_v28  ;;  %3147 = vmatprep.subr.bf16.mxu0 %v9547_v29  ;;  %v9626_v28 = vld [vmem:[#allocation8 + $0x8c8] ss:$16 sps:$4 sm:$0xff]   ;;  %v9631_v29 = vld [vmem:[#allocation8 + $0x8e4] ss:$16 sps:$4 sm:$0xff]  }
 0x314   : > { %3233 = vmatprep.subr.bf16.mxu1 %v9550_v30  ;;  %v9634_v30 = vld [vmem:[#allocation8 + $0x8ec] ss:$16 sps:$4 sm:$0xff]  }
 0x316   : > { %3148 = vmatpush1.bf16.msra.mxu0 %v9545_v31  ;;  %v9629_v31 = vld [vmem:[#allocation8 + $0x8e0] ss:$16 sps:$4 sm:$0xff]  }
 0x317   : > { %3234 = vmatpush1.bf16.msra.mxu1 %v9548_v32  ;;  %3149 = vmatprep.subr.bf16.mxu0 %v9553_v33  ;;  %v9632_v32 = vld [vmem:[#allocation8 + $0x8e8] ss:$16 sps:$4 sm:$0xff]   ;;  %v9637_v33 = vld [vmem:[#allocation8 + $0x904] ss:$16 sps:$4 sm:$0xff]  }
 0x318   : > { %3235 = vmatprep.subr.bf16.mxu1 %v9556_v34  ;;  %v9640_v34 = vld [vmem:[#allocation8 + $0x90c] ss:$16 sps:$4 sm:$0xff]  }
 0x31a   : > { %3150 = vmatpush1.bf16.msra.mxu0 %v9551_v35  ;;  %v9635_v35 = vld [vmem:[#allocation8 + $0x900] ss:$16 sps:$4 sm:$0xff]  }
 0x31b   : > { %3236 = vmatpush1.bf16.msra.mxu1 %v9554_v36  ;;  %3151 = vmatprep.subr.bf16.mxu0 %v9559_v37  ;;  %v9638_v36 = vld [vmem:[#allocation8 + $0x908] ss:$16 sps:$4 sm:$0xff]   ;;  %v9643_v37 = vld [vmem:[#allocation8 + $0x924] ss:$16 sps:$4 sm:$0xff]  }
 0x31c   : > { %3237 = vmatprep.subr.bf16.mxu1 %v9562_v38  ;;  %v9646_v38 = vld [vmem:[#allocation8 + $0x92c] ss:$16 sps:$4 sm:$0xff]  }
 0x31e   : > { %3152 = vmatpush1.bf16.msra.mxu0 %v9557_v39  ;;  %v9641_v39 = vld [vmem:[#allocation8 + $0x920] ss:$16 sps:$4 sm:$0xff]  }
 0x31f   : > { %3238 = vmatpush1.bf16.msra.mxu1 %v9560_v40  ;;  %3153 = vmatprep.subr.bf16.mxu0 %v9565_v41  ;;  %v9644_v40 = vld [vmem:[#allocation8 + $0x928] ss:$16 sps:$4 sm:$0xff]   ;;  %v9649_v41 = vld [vmem:[#allocation8 + $0x944] ss:$16 sps:$4 sm:$0xff]  }
 0x320   : > { %3239 = vmatprep.subr.bf16.mxu1 %v9568_v44  ;;  %v9652_v44 = vld [vmem:[#allocation8 + $0x94c] ss:$16 sps:$4 sm:$0xff]  }
 0x322   : > { %3154 = vmatpush1.bf16.msra.mxu0 %v9563_v45  ;;  %v9647_v45 = vld [vmem:[#allocation8 + $0x940] ss:$16 sps:$4 sm:$0xff]  }
 0x323   : > { %3240 = vmatpush1.bf16.msra.mxu1 %v9566_v46  ;;  %3155 = vmatprep.subr.bf16.mxu0 %v9571_v47  ;;  %v9650_v46 = vld [vmem:[#allocation8 + $0x948] ss:$16 sps:$4 sm:$0xff]   ;;  %v9655_v47 = vld [vmem:[#allocation8 + $0x964] ss:$16 sps:$4 sm:$0xff]  }
 0x324   : > { %3241 = vmatprep.subr.bf16.mxu1 %v9574_v49  ;;  %v9658_v49 = vld [vmem:[#allocation8 + $0x96c] ss:$16 sps:$4 sm:$0xff]  }
 0x326   : > { %3156 = vmatpush1.bf16.msra.mxu0 %v9569_v51  ;;  %v9653_v51 = vld [vmem:[#allocation8 + $0x960] ss:$16 sps:$4 sm:$0xff]  }
 0x327   : > { %3242 = vmatpush1.bf16.msra.mxu1 %v9572_v52  ;;  %3157 = vmatprep.subr.bf16.mxu0 %v9577_v53  ;;  %v9656_v52 = vld [vmem:[#allocation8 + $0x968] ss:$16 sps:$4 sm:$0xff]   ;;  %v9661_v53 = vld [vmem:[#allocation8 + $0x984] ss:$16 sps:$4 sm:$0xff]  }
 0x328   : > { %3243 = vmatprep.subr.bf16.mxu1 %v9580_v54  ;;  %v9664_v54 = vld [vmem:[#allocation8 + $0x98c] ss:$16 sps:$4 sm:$0xff]  }
 0x32a   : > { %3158 = vmatpush1.bf16.msra.mxu0 %v9575_v55  ;;  %v9659_v55 = vld [vmem:[#allocation8 + $0x980] ss:$16 sps:$4 sm:$0xff]  }
 0x32b   : > { %3244 = vmatpush1.bf16.msra.mxu1 %v9578_v56  ;;  %3159 = vmatprep.subr.bf16.mxu0 %v9583_v57  ;;  %v9662_v56 = vld [vmem:[#allocation8 + $0x988] ss:$16 sps:$4 sm:$0xff]   ;;  %v9667_v57 = vld [vmem:[#allocation8 + $0x9a4] ss:$16 sps:$4 sm:$0xff]  }
 0x32c   : > { %3245 = vmatprep.subr.bf16.mxu1 %v9586_v58  ;;  %v9670_v58 = vld [vmem:[#allocation8 + $0x9ac] ss:$16 sps:$4 sm:$0xff]  }
 0x32e   : > { %3160 = vmatpush1.bf16.msra.mxu0 %v9581_v59  ;;  %v9665_v59 = vld [vmem:[#allocation8 + $0x9a0] ss:$16 sps:$4 sm:$0xff]  }
 0x32f   : > { %3246 = vmatpush1.bf16.msra.mxu1 %v9584_v60  ;;  %4026 = vmatprep.subr.bf16.mxu0 %v9589_v61  ;;  %v9668_v60 = vld [vmem:[#allocation8 + $0x9a8] ss:$16 sps:$4 sm:$0xff]   ;;  %v9673_v61 = vld [vmem:[#allocation8 + $0x9c4] ss:$16 sps:$4 sm:$0xff]  }
 0x330   : > { %4112 = vmatprep.subr.bf16.mxu1 %v9592_v62  ;;  %v9676_v62 = vld [vmem:[#allocation8 + $0x9cc] ss:$16 sps:$4 sm:$0xff]  }
 0x331   : > { %3162 = vmatmul.mubr.bf16.vlgmr.msra.gmra.mrb[12].mxu0 %v11202_v42 }
 0x332   : > { %3248 = vmatmul.mubr.bf16.vlgmr.msra.gmra.mrb[12].mxu1 %v11202_v42  ;;  %4027 = vmatpush1.bf16.msra.mxu0 %v9587_v63  ;;  %v9671_v63 = vld [vmem:[#allocation8 + $0x9c0] ss:$16 sps:$4 sm:$0xff]  }
 0x333   : > { %4058 = vmatprep.mubr.bf16.mxu0 %v11196_v22  ;;  %4113 = vmatpush1.bf16.msra.mxu1 %v9590_v0  ;;  %v9674_v0 = vld [vmem:[#allocation8 + $0x9c8] ss:$16 sps:$4 sm:$0xff]  }
 0x334   : > { %4144 = vmatprep.mubr.bf16.mxu1 %v11196_v22  ;;  %4028 = vmatprep.subr.bf16.mxu0 %v9595_v2  ;;  %v9611_v22 = vld [vmem:[#allocation8 + $0x880] ss:$16 sps:$4 sm:$0xff]   ;;  %v9679_v2 = vld [vmem:[#allocation8 + $0x9e4] ss:$16 sps:$4 sm:$0xff]  }
 0x335   : > { %4114 = vmatprep.subr.bf16.mxu1 %v9598_v3  ;;  %v9682_v3 = vld [vmem:[#allocation8 + $0x9ec] ss:$16 sps:$4 sm:$0xff]  }
 0x336   : > { %4029 = vmatpush1.bf16.msra.mxu0 %v9593_v5  ;;  %v9677_v5 = vld [vmem:[#allocation8 + $0x9e0] ss:$16 sps:$4 sm:$0xff]  }
 0x337   : > { %4115 = vmatpush1.bf16.msra.mxu1 %v9596_v6  ;;  %4030 = vmatprep.subr.bf16.mxu0 %v9601_v7  ;;  %v9680_v6 = vld [vmem:[#allocation8 + $0x9e8] ss:$16 sps:$4 sm:$0xff]   ;;  %v9685_v7 = vld [vmem:[#allocation8 + $0xa04] ss:$16 sps:$4 sm:$0xff]  }
 0x338   : > { %4116 = vmatprep.subr.bf16.mxu1 %v9604_v8  ;;  %v9688_v8 = vld [vmem:[#allocation8 + $0xa0c] ss:$16 sps:$4 sm:$0xff]  }
 0x33a   : > { %4031 = vmatpush1.bf16.msra.mxu0 %v9599_v9  ;;  %v9683_v9 = vld [vmem:[#allocation8 + $0xa00] ss:$16 sps:$4 sm:$0xff]  }
 0x33b   : > { %4117 = vmatpush1.bf16.msra.mxu1 %v9602_v10  ;;  %4032 = vmatprep.subr.bf16.mxu0 %v9607_v11  ;;  %v9686_v10 = vld [vmem:[#allocation8 + $0xa08] ss:$16 sps:$4 sm:$0xff]   ;;  %v9691_v11 = vld [vmem:[#allocation8 + $0xa24] ss:$16 sps:$4 sm:$0xff]  }
 0x33c   : > { %4118 = vmatprep.subr.bf16.mxu1 %v9610_v12  ;;  %v9694_v12 = vld [vmem:[#allocation8 + $0xa2c] ss:$16 sps:$4 sm:$0xff]  }
 0x33e   : > { %4033 = vmatpush1.bf16.msra.mxu0 %v9605_v13  ;;  %v9689_v13 = vld [vmem:[#allocation8 + $0xa20] ss:$16 sps:$4 sm:$0xff]  }
 0x33f   : > { %4119 = vmatpush1.bf16.msra.mxu1 %v9608_v14  ;;  %4034 = vmatprep.subr.bf16.mxu0 %v9613_v15  ;;  %v9692_v14 = vld [vmem:[#allocation8 + $0xa28] ss:$16 sps:$4 sm:$0xff]   ;;  %v9697_v15 = vld [vmem:[#allocation8 + $0xa44] ss:$16 sps:$4 sm:$0xff]  }
 0x340   : > { %4120 = vmatprep.subr.bf16.mxu1 %v9616_v17  ;;  %v9700_v17 = vld [vmem:[#allocation8 + $0xa4c] ss:$16 sps:$4 sm:$0xff]  }
 0x342   : > { %4035 = vmatpush1.bf16.msra.mxu0 %v9611_v22  ;;  %v9695_v22 = vld [vmem:[#allocation8 + $0xa40] ss:$16 sps:$4 sm:$0xff]  }
 0x343   : > { %4121 = vmatpush1.bf16.msra.mxu1 %v9614_v19  ;;  %4036 = vmatprep.subr.bf16.mxu0 %v9619_v20  ;;  %v9698_v19 = vld [vmem:[#allocation8 + $0xa48] ss:$16 sps:$4 sm:$0xff]   ;;  %v9703_v20 = vld [vmem:[#allocation8 + $0xa64] ss:$16 sps:$4 sm:$0xff]  }
 0x344   : > { %4122 = vmatprep.subr.bf16.mxu1 %v9622_v21  ;;  %v9701_v21 = vld [vmem:[#allocation8 + $0xa60] ss:$16 sps:$4 sm:$0xff]  }
 0x346   : > { %4037 = vmatpush1.bf16.msra.mxu0 %v9617_v23  ;;  %v9704_v23 = vld [vmem:[#allocation8 + $0xa68] ss:$16 sps:$4 sm:$0xff]  }
 0x347   : > { %4123 = vmatpush1.bf16.msra.mxu1 %v9620_v24  ;;  %4038 = vmatprep.subr.bf16.mxu0 %v9625_v25  ;;  %v9709_v24 = vld [vmem:[#allocation8 + $0xa84] ss:$16 sps:$4 sm:$0xff]   ;;  %v9712_v25 = vld [vmem:[#allocation8 + $0xa8c] ss:$16 sps:$4 sm:$0xff]  }
 0x348   : > { %4124 = vmatprep.subr.bf16.mxu1 %v9628_v26  ;;  %v9710_v26 = vld [vmem:[#allocation8 + $0xa88] ss:$16 sps:$4 sm:$0xff]  }
 0x34a   : > { %4039 = vmatpush1.bf16.msra.mxu0 %v9623_v27  ;;  %v9715_v27 = vld [vmem:[#allocation8 + $0xaa4] ss:$16 sps:$4 sm:$0xff]  }
 0x34b   : > { %4125 = vmatpush1.bf16.msra.mxu1 %v9626_v28  ;;  %4040 = vmatprep.subr.bf16.mxu0 %v9631_v29  ;;  %v9718_v28 = vld [vmem:[#allocation8 + $0xaac] ss:$16 sps:$4 sm:$0xff]   ;;  %v9713_v29 = vld [vmem:[#allocation8 + $0xaa0] ss:$16 sps:$4 sm:$0xff]  }
 0x34c   : > { %4126 = vmatprep.subr.bf16.mxu1 %v9634_v30  ;;  %v9716_v30 = vld [vmem:[#allocation8 + $0xaa8] ss:$16 sps:$4 sm:$0xff]  }
 0x34e   : > { %4041 = vmatpush1.bf16.msra.mxu0 %v9629_v31  ;;  %v9721_v31 = vld [vmem:[#allocation8 + $0xac4] ss:$16 sps:$4 sm:$0xff]  }
 0x34f   : > { %4127 = vmatpush1.bf16.msra.mxu1 %v9632_v32  ;;  %4042 = vmatprep.subr.bf16.mxu0 %v9637_v33 }
 0x350   : > { %4128 = vmatprep.subr.bf16.mxu1 %v9640_v34  ;;  %v9724_v34 = vld [vmem:[#allocation8 + $0xacc] ss:$16 sps:$4 sm:$0xff]  }
 0x352   : > { %4043 = vmatpush1.bf16.msra.mxu0 %v9635_v35 }
 0x353   : > { %4129 = vmatpush1.bf16.msra.mxu1 %v9638_v36  ;;  %4044 = vmatprep.subr.bf16.mxu0 %v9643_v37 }
 0x354   : > { %4130 = vmatprep.subr.bf16.mxu1 %v9646_v38 }
 0x356   : > { %4045 = vmatpush1.bf16.msra.mxu0 %v9641_v39  ;;  %v9719_v39 = vld [vmem:[#allocation8 + $0xac0] ss:$16 sps:$4 sm:$0xff]  }
 0x357   : > { %4131 = vmatpush1.bf16.msra.mxu1 %v9644_v40  ;;  %4046 = vmatprep.subr.bf16.mxu0 %v9649_v41 }
 0x358   : > { %4132 = vmatprep.subr.bf16.mxu1 %v9652_v44  ;;  %v9722_v44 = vld [vmem:[#allocation8 + $0xac8] ss:$16 sps:$4 sm:$0xff]  }
 0x35a   : > { %4047 = vmatpush1.bf16.msra.mxu0 %v9647_v45  ;;  %v9727_v45 = vld [vmem:[#allocation8 + $0xae4] ss:$16 sps:$4 sm:$0xff]  }
 0x35b   : > { %4133 = vmatpush1.bf16.msra.mxu1 %v9650_v46  ;;  %4048 = vmatprep.subr.bf16.mxu0 %v9655_v47  ;;  %v9730_v46 = vld [vmem:[#allocation8 + $0xaec] ss:$16 sps:$4 sm:$0xff]   ;;  %v9725_v47 = vld [vmem:[#allocation8 + $0xae0] ss:$16 sps:$4 sm:$0xff]  }
 0x35c   : > { %4134 = vmatprep.subr.bf16.mxu1 %v9658_v49  ;;  %v9728_v49 = vld [vmem:[#allocation8 + $0xae8] ss:$16 sps:$4 sm:$0xff]  }
 0x35e   : > { %4049 = vmatpush1.bf16.msra.mxu0 %v9653_v51  ;;  %v9733_v51 = vld [vmem:[#allocation8 + $0xb04] ss:$16 sps:$4 sm:$0xff]  }
 0x35f   : > { %4135 = vmatpush1.bf16.msra.mxu1 %v9656_v52  ;;  %4050 = vmatprep.subr.bf16.mxu0 %v9661_v53  ;;  %v9736_v52 = vld [vmem:[#allocation8 + $0xb0c] ss:$16 sps:$4 sm:$0xff]   ;;  %v9731_v53 = vld [vmem:[#allocation8 + $0xb00] ss:$16 sps:$4 sm:$0xff]  }
 0x360   : > { %4136 = vmatprep.subr.bf16.mxu1 %v9664_v54  ;;  %v9734_v54 = vld [vmem:[#allocation8 + $0xb08] ss:$16 sps:$4 sm:$0xff]  }
 0x362   : > { %4051 = vmatpush1.bf16.msra.mxu0 %v9659_v55  ;;  %v9739_v55 = vld [vmem:[#allocation8 + $0xb24] ss:$16 sps:$4 sm:$0xff]  }
 0x363   : > { %4137 = vmatpush1.bf16.msra.mxu1 %v9662_v56  ;;  %4052 = vmatprep.subr.bf16.mxu0 %v9667_v57  ;;  %v9742_v56 = vld [vmem:[#allocation8 + $0xb2c] ss:$16 sps:$4 sm:$0xff]   ;;  %v9737_v57 = vld [vmem:[#allocation8 + $0xb20] ss:$16 sps:$4 sm:$0xff]  }
 0x364   : > { %4138 = vmatprep.subr.bf16.mxu1 %v9670_v58  ;;  %v9740_v58 = vld [vmem:[#allocation8 + $0xb28] ss:$16 sps:$4 sm:$0xff]  }
 0x366   : > { %4053 = vmatpush1.bf16.msra.mxu0 %v9665_v59  ;;  %v9745_v59 = vld [vmem:[#allocation8 + $0xb44] ss:$16 sps:$4 sm:$0xff]  }
 0x367   : > { %4139 = vmatpush1.bf16.msra.mxu1 %v9668_v60  ;;  %4054 = vmatprep.subr.bf16.mxu0 %v9673_v61  ;;  %v9748_v60 = vld [vmem:[#allocation8 + $0xb4c] ss:$16 sps:$4 sm:$0xff]   ;;  %v9743_v61 = vld [vmem:[#allocation8 + $0xb40] ss:$16 sps:$4 sm:$0xff]  }
 0x368   : > { %4140 = vmatprep.subr.bf16.mxu1 %v9676_v62  ;;  %v9746_v62 = vld [vmem:[#allocation8 + $0xb48] ss:$16 sps:$4 sm:$0xff]  }
 0x36a   : > { %4055 = vmatpush1.bf16.msra.mxu0 %v9671_v63  ;;  %v9751_v63 = vld [vmem:[#allocation8 + $0xb64] ss:$16 sps:$4 sm:$0xff]  }
 0x36b   : > { %4141 = vmatpush1.bf16.msra.mxu1 %v9674_v0  ;;  %4056 = vmatprep.subr.bf16.mxu0 %v9679_v2  ;;  %v9754_v0 = vld [vmem:[#allocation8 + $0xb6c] ss:$16 sps:$4 sm:$0xff]   ;;  %v9749_v2 = vld [vmem:[#allocation8 + $0xb60] ss:$16 sps:$4 sm:$0xff]  }
 0x36c   : > { %4142 = vmatprep.subr.bf16.mxu1 %v9682_v3  ;;  %v9752_v3 = vld [vmem:[#allocation8 + $0xb68] ss:$16 sps:$4 sm:$0xff]  }
 0x36e   : > { %4057 = vmatpush1.bf16.msra.mxu0 %v9677_v5  ;;  %v9757_v5 = vld [vmem:[#allocation8 + $0xb84] ss:$16 sps:$4 sm:$0xff]  }
 0x36f   : > { %4143 = vmatpush1.bf16.msra.mxu1 %v9680_v6  ;;  %4069 = vmatprep.subr.bf16.mxu0 %v9685_v7  ;;  %v9760_v6 = vld [vmem:[#allocation8 + $0xb8c] ss:$16 sps:$4 sm:$0xff]   ;;  %v9755_v7 = vld [vmem:[#allocation8 + $0xb80] ss:$16 sps:$4 sm:$0xff]  }
 0x370   : > { %4155 = vmatprep.subr.bf16.mxu1 %v9688_v8  ;;  %v9758_v8 = vld [vmem:[#allocation8 + $0xb88] ss:$16 sps:$4 sm:$0xff]  }
 0x371   : > { %4059 = vmatmul.mubr.bf16.vlgmr.msra.gmra.mrb[16].mxu0 %v11194_v16 }
 0x372   : > { %4145 = vmatmul.mubr.bf16.vlgmr.msra.gmra.mrb[16].mxu1 %v11194_v16  ;;  %4070 = vmatpush1.bf16.msra.mxu0 %v9683_v9  ;;  %v9706_v16 = vld [vmem:[#allocation8 + $0xa6c] ss:$16 sps:$4 sm:$0xff]   ;;  %v9763_v9 = vld [vmem:[#allocation8 + $0xba4] ss:$16 sps:$4 sm:$0xff]  }
 0x373   : > { %4101 = vmatprep.mubr.bf16.mxu0 %v11204_v43  ;;  %4156 = vmatpush1.bf16.msra.mxu1 %v9686_v10  ;;  %v9766_v10 = vld [vmem:[#allocation8 + $0xbac] ss:$16 sps:$4 sm:$0xff]  }
 0x374   : > { %4187 = vmatprep.mubr.bf16.mxu1 %v11204_v43  ;;  %4071 = vmatprep.subr.bf16.mxu0 %v9691_v11  ;;  %v9707_v43 = vld [vmem:[#allocation8 + $0xa80] ss:$16 sps:$4 sm:$0xff]  }
 0x375   : > { %4157 = vmatprep.subr.bf16.mxu1 %v9694_v12  ;;  %v9761_v11 = vld [vmem:[#allocation8 + $0xba0] ss:$16 sps:$4 sm:$0xff]   ;;  %v9764_v12 = vld [vmem:[#allocation8 + $0xba8] ss:$16 sps:$4 sm:$0xff]  }
 0x376   : > { %4072 = vmatpush1.bf16.msra.mxu0 %v9689_v13  ;;  %v9769_v13 = vld [vmem:[#allocation8 + $0xbc4] ss:$16 sps:$4 sm:$0xff]  }
 0x377   : > { %4158 = vmatpush1.bf16.msra.mxu1 %v9692_v14  ;;  %4073 = vmatprep.subr.bf16.mxu0 %v9697_v15  ;;  %v9772_v14 = vld [vmem:[#allocation8 + $0xbcc] ss:$16 sps:$4 sm:$0xff]   ;;  %v9767_v15 = vld [vmem:[#allocation8 + $0xbc0] ss:$16 sps:$4 sm:$0xff]  }
 0x378   : > { %4159 = vmatprep.subr.bf16.mxu1 %v9700_v17  ;;  %v9770_v17 = vld [vmem:[#allocation8 + $0xbc8] ss:$16 sps:$4 sm:$0xff]  }
 0x37a   : > { %4074 = vmatpush1.bf16.msra.mxu0 %v9695_v22  ;;  %v9775_v22 = vld [vmem:[#allocation8 + $0xbe4] ss:$16 sps:$4 sm:$0xff]  }
 0x37b   : > { %4160 = vmatpush1.bf16.msra.mxu1 %v9698_v19  ;;  %4075 = vmatprep.subr.bf16.mxu0 %v9703_v20  ;;  %v9778_v19 = vld [vmem:[#allocation8 + $0xbec] ss:$16 sps:$4 sm:$0xff]   ;;  %v9773_v20 = vld [vmem:[#allocation8 + $0xbe0] ss:$16 sps:$4 sm:$0xff]  }
 0x37c   : > { %4161 = vmatprep.subr.bf16.mxu1 %v9706_v16  ;;  %v9776_v16 = vld [vmem:[#allocation8 + $0xbe8] ss:$16 sps:$4 sm:$0xff]  }
 0x37e   : > { %4076 = vmatpush1.bf16.msra.mxu0 %v9701_v21  ;;  %v9781_v21 = vld [vmem:[#allocation11 + $0x4] ss:$16 sps:$4 sm:$0xff]  }
 0x37f   : > { %4162 = vmatpush1.bf16.msra.mxu1 %v9704_v23  ;;  %4077 = vmatprep.subr.bf16.mxu0 %v9709_v24  ;;  %v9784_v23 = vld [vmem:[#allocation11 + $0xc] ss:$16 sps:$4 sm:$0xff]   ;;  %v9779_v24 = vld [vmem:[#allocation11] ss:$16 sps:$4 sm:$0xff]  }
 0x380   : > { %4163 = vmatprep.subr.bf16.mxu1 %v9712_v25  ;;  %v9782_v25 = vld [vmem:[#allocation11 + $0x8] ss:$16 sps:$4 sm:$0xff]  }
 0x382   : > { %4078 = vmatpush1.bf16.msra.mxu0 %v9707_v43  ;;  %v9787_v43 = vld [vmem:[#allocation11 + $0x24] ss:$16 sps:$4 sm:$0xff]  }
 0x383   : > { %4164 = vmatpush1.bf16.msra.mxu1 %v9710_v26  ;;  %4079 = vmatprep.subr.bf16.mxu0 %v9715_v27  ;;  %v9790_v26 = vld [vmem:[#allocation11 + $0x2c] ss:$16 sps:$4 sm:$0xff]   ;;  %v9785_v27 = vld [vmem:[#allocation11 + $0x20] ss:$16 sps:$4 sm:$0xff]  }
 0x384   : > { %v11224_v32 = vpop.f32.mrb[8].mxu0  ;;  %v11226_v33 = vpop.f32.mrb[8].mxu1  ;;  %4165 = vmatprep.subr.bf16.mxu1 %v9718_v28  ;;  %v9788_v28 = vld [vmem:[#allocation11 + $0x28] ss:$16 sps:$4 sm:$0xff]  }
 0x385   : > { %v11228_v35 = vpop.f32.mrb[9].mxu0  ;;  %v11230_v36 = vpop.f32.mrb[9].mxu1 }
 0x386   : > { %v11232_v37 = vpop.f32.mrb[10].mxu0  ;;  %v11234_v38 = vpop.f32.mrb[10].mxu1  ;;  %4080 = vmatpush1.bf16.msra.mxu0 %v9713_v29  ;;  %v9793_v29 = vld [vmem:[#allocation11 + $0x44] ss:$16 sps:$4 sm:$0xff]  }
 0x387   : > { %4166 = vmatpush1.bf16.msra.mxu1 %v9716_v30  ;;  %v11236_v40 = vpop.f32.mrb[11].mxu0  ;;  %v11238_v41 = vpop.f32.mrb[11].mxu1  ;;  %4081 = vmatprep.subr.bf16.mxu0 %v9721_v31  ;;  %v9796_v30 = vld [vmem:[#allocation11 + $0x4c] ss:$16 sps:$4 sm:$0xff]   ;;  %v9791_v31 = vld [vmem:[#allocation11 + $0x40] ss:$16 sps:$4 sm:$0xff]  }
 0x388   : > { %4167 = vmatprep.subr.bf16.mxu1 %v9724_v34  ;;  %v9794_v34 = vld [vmem:[#allocation11 + $0x48] ss:$16 sps:$4 sm:$0xff]  }
 0x38a   : > { %4082 = vmatpush1.bf16.msra.mxu0 %v9719_v39  ;;  %v9799_v39 = vld [vmem:[#allocation11 + $0x64] ss:$16 sps:$4 sm:$0xff]  }
 0x38b   : > { %4168 = vmatpush1.bf16.msra.mxu1 %v9722_v44  ;;  %4083 = vmatprep.subr.bf16.mxu0 %v9727_v45  ;;  %v9802_v44 = vld [vmem:[#allocation11 + $0x6c] ss:$16 sps:$4 sm:$0xff]   ;;  %v9797_v45 = vld [vmem:[#allocation11 + $0x60] ss:$16 sps:$4 sm:$0xff]  }
 0x38c   : > { %4169 = vmatprep.subr.bf16.mxu1 %v9730_v46  ;;  %v9805_v46 = vld [vmem:[#allocation11 + $0x84] ss:$16 sps:$4 sm:$0xff]  }
 0x38e   : > { %4084 = vmatpush1.bf16.msra.mxu0 %v9725_v47  ;;  %v9808_v47 = vld [vmem:[#allocation11 + $0x8c] ss:$16 sps:$4 sm:$0xff]  }
 0x38f   : > { %4170 = vmatpush1.bf16.msra.mxu1 %v9728_v49  ;;  %4085 = vmatprep.subr.bf16.mxu0 %v9733_v51  ;;  %v9803_v49 = vld [vmem:[#allocation11 + $0x80] ss:$16 sps:$4 sm:$0xff]   ;;  %v9806_v51 = vld [vmem:[#allocation11 + $0x88] ss:$16 sps:$4 sm:$0xff]  }
 0x390   : > { %4171 = vmatprep.subr.bf16.mxu1 %v9736_v52  ;;  %v9811_v52 = vld [vmem:[#allocation11 + $0xa4] ss:$16 sps:$4 sm:$0xff]  }
 0x392   : > { %4086 = vmatpush1.bf16.msra.mxu0 %v9731_v53  ;;  %v9814_v53 = vld [vmem:[#allocation11 + $0xac] ss:$16 sps:$4 sm:$0xff]  }
 0x393   : > { %4172 = vmatpush1.bf16.msra.mxu1 %v9734_v54  ;;  %4087 = vmatprep.subr.bf16.mxu0 %v9739_v55  ;;  %v9809_v54 = vld [vmem:[#allocation11 + $0xa0] ss:$16 sps:$4 sm:$0xff]   ;;  %v9812_v55 = vld [vmem:[#allocation11 + $0xa8] ss:$16 sps:$4 sm:$0xff]  }
 0x394   : > { %4173 = vmatprep.subr.bf16.mxu1 %v9742_v56  ;;  %v9817_v56 = vld [vmem:[#allocation11 + $0xc4] ss:$16 sps:$4 sm:$0xff]  }
 0x396   : > { %4088 = vmatpush1.bf16.msra.mxu0 %v9737_v57  ;;  %v9820_v57 = vld [vmem:[#allocation11 + $0xcc] ss:$16 sps:$4 sm:$0xff]  }
 0x397   : > { %4174 = vmatpush1.bf16.msra.mxu1 %v9740_v58  ;;  %4089 = vmatprep.subr.bf16.mxu0 %v9745_v59  ;;  %v9815_v58 = vld [vmem:[#allocation11 + $0xc0] ss:$16 sps:$4 sm:$0xff]   ;;  %v9818_v59 = vld [vmem:[#allocation11 + $0xc8] ss:$16 sps:$4 sm:$0xff]  }
 0x398   : > { %4175 = vmatprep.subr.bf16.mxu1 %v9748_v60  ;;  %v9823_v60 = vld [vmem:[#allocation11 + $0xe4] ss:$16 sps:$4 sm:$0xff]  }
 0x39a   : > { %4090 = vmatpush1.bf16.msra.mxu0 %v9743_v61  ;;  %v9826_v61 = vld [vmem:[#allocation11 + $0xec] ss:$16 sps:$4 sm:$0xff]  }
 0x39b   : > { %4176 = vmatpush1.bf16.msra.mxu1 %v9746_v62  ;;  %4091 = vmatprep.subr.bf16.mxu0 %v9751_v63  ;;  %v9821_v62 = vld [vmem:[#allocation11 + $0xe0] ss:$16 sps:$4 sm:$0xff]   ;;  %v9824_v63 = vld [vmem:[#allocation11 + $0xe8] ss:$16 sps:$4 sm:$0xff]  }
 0x39c   : > { %4177 = vmatprep.subr.bf16.mxu1 %v9754_v0  ;;  %v9829_v0 = vld [vmem:[#allocation11 + $0x104] ss:$16 sps:$4 sm:$0xff]  }
 0x39e   : > { %4092 = vmatpush1.bf16.msra.mxu0 %v9749_v2  ;;  %v9832_v2 = vld [vmem:[#allocation11 + $0x10c] ss:$16 sps:$4 sm:$0xff]  }
 0x39f   : > { %4178 = vmatpush1.bf16.msra.mxu1 %v9752_v3  ;;  %4093 = vmatprep.subr.bf16.mxu0 %v9757_v5  ;;  %v9827_v3 = vld [vmem:[#allocation11 + $0x100] ss:$16 sps:$4 sm:$0xff]   ;;  %v9830_v5 = vld [vmem:[#allocation11 + $0x108] ss:$16 sps:$4 sm:$0xff]  }
 0x3a0   : > { %4179 = vmatprep.subr.bf16.mxu1 %v9760_v6  ;;  %v9835_v6 = vld [vmem:[#allocation11 + $0x124] ss:$16 sps:$4 sm:$0xff]  }
 0x3a2   : > { %4094 = vmatpush1.bf16.msra.mxu0 %v9755_v7  ;;  %v9838_v7 = vld [vmem:[#allocation11 + $0x12c] ss:$16 sps:$4 sm:$0xff]  }
 0x3a3   : > { %4180 = vmatpush1.bf16.msra.mxu1 %v9758_v8  ;;  %4095 = vmatprep.subr.bf16.mxu0 %v9763_v9  ;;  %v9833_v8 = vld [vmem:[#allocation11 + $0x120] ss:$16 sps:$4 sm:$0xff]   ;;  %v9836_v9 = vld [vmem:[#allocation11 + $0x128] ss:$16 sps:$4 sm:$0xff]  }
 0x3a4   : > { %4181 = vmatprep.subr.bf16.mxu1 %v9766_v10  ;;  %v9841_v10 = vld [vmem:[#allocation11 + $0x144] ss:$16 sps:$4 sm:$0xff]  }
 0x3a6   : > { %4096 = vmatpush1.bf16.msra.mxu0 %v9761_v11  ;;  %v9844_v11 = vld [vmem:[#allocation11 + $0x14c] ss:$16 sps:$4 sm:$0xff]  }
 0x3a7   : > { %4182 = vmatpush1.bf16.msra.mxu1 %v9764_v12  ;;  %4097 = vmatprep.subr.bf16.mxu0 %v9769_v13  ;;  %v9839_v12 = vld [vmem:[#allocation11 + $0x140] ss:$16 sps:$4 sm:$0xff]   ;;  %v9842_v13 = vld [vmem:[#allocation11 + $0x148] ss:$16 sps:$4 sm:$0xff]  }
 0x3a8   : > { %4183 = vmatprep.subr.bf16.mxu1 %v9772_v14  ;;  %v9847_v14 = vld [vmem:[#allocation11 + $0x164] ss:$16 sps:$4 sm:$0xff]  }
 0x3aa   : > { %4098 = vmatpush1.bf16.msra.mxu0 %v9767_v15  ;;  %v9850_v15 = vld [vmem:[#allocation11 + $0x16c] ss:$16 sps:$4 sm:$0xff]  }
 0x3ab   : > { %4184 = vmatpush1.bf16.msra.mxu1 %v9770_v17  ;;  %4099 = vmatprep.subr.bf16.mxu0 %v9775_v22  ;;  %v9845_v17 = vld [vmem:[#allocation11 + $0x160] ss:$16 sps:$4 sm:$0xff]   ;;  %v9848_v22 = vld [vmem:[#allocation11 + $0x168] ss:$16 sps:$4 sm:$0xff]  }
 0x3ac   : > { %4185 = vmatprep.subr.bf16.mxu1 %v9778_v19  ;;  %v9853_v19 = vld [vmem:[#allocation11 + $0x184] ss:$16 sps:$4 sm:$0xff]  }
 0x3ae   : > { %4100 = vmatpush1.bf16.msra.mxu0 %v9773_v20  ;;  %v9856_v20 = vld [vmem:[#allocation11 + $0x18c] ss:$16 sps:$4 sm:$0xff]  }
 0x3af   : > { %4186 = vmatpush1.bf16.msra.mxu1 %v9776_v16  ;;  %5082 = vmatprep.subr.bf16.mxu0 %v9781_v21  ;;  %v9851_v16 = vld [vmem:[#allocation11 + $0x180] ss:$16 sps:$4 sm:$0xff]   ;;  %v9854_v21 = vld [vmem:[#allocation11 + $0x188] ss:$16 sps:$4 sm:$0xff]  }
 0x3b0   : > { %5168 = vmatprep.subr.bf16.mxu1 %v9784_v23 }
 0x3b1   : > { %4102 = vmatmul.mubr.bf16.vlgmr.msra.gmra.mrb[16].mxu0 %v11202_v42 }
 0x3b2   : > { %4188 = vmatmul.mubr.bf16.vlgmr.msra.gmra.mrb[16].mxu1 %v11202_v42  ;;  %5083 = vmatpush1.bf16.msra.mxu0 %v9779_v24  ;;  %v9800_v42 = vld [vmem:[#allocation11 + $0x68] ss:$16 sps:$4 sm:$0xff]  }
 0x3b3   : > { %5169 = vmatpush1.bf16.msra.mxu1 %v9782_v25  ;;  %5084 = vmatprep.subr.bf16.mxu0 %v9787_v43 }
 0x3b4   : > { %5170 = vmatprep.subr.bf16.mxu1 %v9790_v26 }
 0x3b6   : > { %5085 = vmatpush1.bf16.msra.mxu0 %v9785_v27 }
 0x3b7   : > { %5171 = vmatpush1.bf16.msra.mxu1 %v9788_v28  ;;  %5086 = vmatprep.subr.bf16.mxu0 %v9793_v29 }
 0x3b8   : > { %5172 = vmatprep.subr.bf16.mxu1 %v9796_v30 }
 0x3ba   : > { %5087 = vmatpush1.bf16.msra.mxu0 %v9791_v31 }
 0x3bb   : > { %5173 = vmatpush1.bf16.msra.mxu1 %v9794_v34  ;;  %5088 = vmatprep.subr.bf16.mxu0 %v9799_v39 }
 0x3bc   : > { %5174 = vmatprep.subr.bf16.mxu1 %v9802_v44 }
 0x3be   : > { %5089 = vmatpush1.bf16.msra.mxu0 %v9797_v45 }
 0x3bf   : > { %5175 = vmatpush1.bf16.msra.mxu1 %v9800_v42  ;;  %5090 = vmatprep.subr.bf16.mxu0 %v9805_v46  ;;  %v9859_v42 = vld [vmem:[#allocation11 + $0x1a4] ss:$16 sps:$4 sm:$0xff]  }
 0x3c0   : > { %5176 = vmatprep.subr.bf16.mxu1 %v9808_v47 }
 0x3c2   : > { %5091 = vmatpush1.bf16.msra.mxu0 %v9803_v49 }
 0x3c3   : > { %5177 = vmatpush1.bf16.msra.mxu1 %v9806_v51  ;;  %5092 = vmatprep.subr.bf16.mxu0 %v9811_v52  ;;  %v9857_v52 = vld [vmem:[#allocation11 + $0x1a0] ss:$16 sps:$4 sm:$0xff]  }
 0x3c4   : > { %5178 = vmatprep.subr.bf16.mxu1 %v9814_v53  ;;  %v9860_v53 = vld [vmem:[#allocation11 + $0x1a8] ss:$16 sps:$4 sm:$0xff]  }
 0x3c6   : > { %5093 = vmatpush1.bf16.msra.mxu0 %v9809_v54 }
 0x3c7   : > { %5179 = vmatpush1.bf16.msra.mxu1 %v9812_v55  ;;  %5094 = vmatprep.subr.bf16.mxu0 %v9817_v56 }
 0x3c8   : > { %5180 = vmatprep.subr.bf16.mxu1 %v9820_v57 }
 0x3ca   : > { %5095 = vmatpush1.bf16.msra.mxu0 %v9815_v58  ;;  %v9862_v58 = vld [vmem:[#allocation11 + $0x1ac] ss:$16 sps:$4 sm:$0xff]  }
 0x3cb   : > { %5181 = vmatpush1.bf16.msra.mxu1 %v9818_v59  ;;  %5096 = vmatprep.subr.bf16.mxu0 %v9823_v60 }
 0x3cc   : > { %5182 = vmatprep.subr.bf16.mxu1 %v9826_v61 }
 0x3ce   : > { %5097 = vmatpush1.bf16.msra.mxu0 %v9821_v62 }
 0x3cf   : > { %5183 = vmatpush1.bf16.msra.mxu1 %v9824_v63  ;;  %5098 = vmatprep.subr.bf16.mxu0 %v9829_v0  ;;  %v9868_v63 = vld [vmem:[#allocation11 + $0x1cc] ss:$16 sps:$4 sm:$0xff]   ;;  %v9863_v0 = vld [vmem:[#allocation11 + $0x1c0] ss:$16 sps:$4 sm:$0xff]  }
 0x3d0   : > { %5184 = vmatprep.subr.bf16.mxu1 %v9832_v2  ;;  %v9866_v2 = vld [vmem:[#allocation11 + $0x1c8] ss:$16 sps:$4 sm:$0xff]  }
 0x3d2   : > { %5099 = vmatpush1.bf16.msra.mxu0 %v9827_v3  ;;  %v9872_v3 = vld [vmem:[#allocation11 + $0x1e8] ss:$16 sps:$4 sm:$0xff]  }
 0x3d3   : > { %5185 = vmatpush1.bf16.msra.mxu1 %v9830_v5  ;;  %5100 = vmatprep.subr.bf16.mxu0 %v9835_v6  ;;  %v4272_v5 = vld [vmem:[#allocation10] sm:$0xf] }
 0x3d4   : > { %5186 = vmatprep.subr.bf16.mxu1 %v9838_v7 }
 0x3d6   : > { %5101 = vmatpush1.bf16.msra.mxu0 %v9833_v8 }
 0x3d7   : > { %5187 = vmatpush1.bf16.msra.mxu1 %v9836_v9  ;;  %5102 = vmatprep.subr.bf16.mxu0 %v9841_v10 }
 0x3d8   : > { %5188 = vmatprep.subr.bf16.mxu1 %v9844_v11  ;;  %v4277_v11 = vrot.slane %v4272_v5, %v11182_v48 }
 0x3da   : > { %5103 = vmatpush1.bf16.msra.mxu0 %v9839_v12  ;;  %v4285_v12 = vrot.slane %v4272_v5, %v11188_v1 }
 0x3db   : > { %5189 = vmatpush1.bf16.msra.mxu1 %v9842_v13  ;;  %5104 = vmatprep.subr.bf16.mxu0 %v9847_v14 }
 0x3dc   : > { %5190 = vmatprep.subr.bf16.mxu1 %v9850_v15 }
 0x3de   : > { %5105 = vmatpush1.bf16.msra.mxu0 %v9845_v17 }
 0x3df   : > { %5191 = vmatpush1.bf16.msra.mxu1 %v9848_v22  ;;  %5106 = vmatprep.subr.bf16.mxu0 %v9853_v19  ;;  %v4281_v22 = vrot.slane %v4272_v5, %v11184_v50  ;;  %v4289_v19 = vrot.slane %v4272_v5, %v11190_v4  ;;  %v9889_v5 = vld [vmem:[#allocation11 + $0x244] ss:$16 sps:$4 sm:$0xff]  }
 0x3e0   : > { %5192 = vmatprep.subr.bf16.mxu1 %v9856_v20 }
 0x3e2   : > { %5107 = vmatpush1.bf16.msra.mxu0 %v9851_v16 }
 0x3e3   : > { %5193 = vmatpush1.bf16.msra.mxu1 %v9854_v21  ;;  %5108 = vmatprep.subr.bf16.mxu0 %v9859_v42 }
 0x3e4   : > { %5194 = vmatprep.subr.bf16.mxu1 %v9862_v58 }
 0x3e6   : > { %5109 = vmatpush1.bf16.msra.mxu0 %v9857_v52 }
 0x3e7   : > { %5195 = vmatpush1.bf16.msra.mxu1 %v9860_v53 }
 0x3e8   : > { %5196 = vmatprep.subr.bf16.mxu1 %v9868_v63 }
 0x3eb   : > { %5197 = vmatpush1.bf16.msra.mxu1 %v9866_v2 }
 0x404   : > { %v3163_v23 = vpop.f32.mrb[12].mxu0 }
 0x405   : > { %v3249_v24 = vpop.f32.mrb[12].mxu1  ;;  %v3165_v25 = vpop.f32.mrb[13].mxu0  ;;  %v4207_v27 = vrot.slane %v3163_v23, 1 }
 0x406   : > { %v3251_v43 = vpop.f32.mrb[13].mxu1  ;;  %v3167_v26 = vpop.f32.mrb[14].mxu0  ;;  %v4213_v28 = vrot.slane %v3249_v24, 1  ;;  %v4210_v34 = vrot.slane %v3165_v25, 1 }
 0x407   : > { %v4208_v29 = vrot.slane %v3167_v26, 1  ;;  %v3253_v30 = vpop.f32.mrb[14].mxu1  ;;  %v3169_v31 = vpop.f32.mrb[15].mxu0  ;;  %v4216_v46 = vrot.slane %v3251_v43, 1 }
 0x408   : > { %v4214_v39 = vrot.slane %v3253_v30, 1  ;;  %v4211_v44 = vrot.slane %v3169_v31, 1  ;;  %v3255_v45 = vpop.f32.mrb[15].mxu1 }
 0x409   : > { %v4209_v47 = vsel %vm4206_vm0, %v4207_v27, %v4208_v29  ;;  %v4231_v49 = vadd.f32 %v4208_v29, %v11232_v37  ;;  %v4217_v51 = vrot.slane %v3255_v45, 1 }
 0x40a   : > { %v4227_v54 = vadd.f32 %v4209_v47, %v11224_v32  ;;  %v4215_v55 = vsel %vm4206_vm0, %v4213_v28, %v4214_v39  ;;  %v4233_v56 = vadd.f32 %v4214_v39, %v11234_v38  ;;  %v4212_v57 = vsel %vm4206_vm0, %v4210_v34, %v4211_v44  ;;  %v9865_v38 = vld [vmem:[#allocation11 + $0x1c4] ss:$16 sps:$4 sm:$0xff]  }
 0x40b   : > { %v4229_v59 = vadd.f32 %v4215_v55, %v11226_v33  ;;  %v4228_v60 = vadd.f32 %v4212_v57, %v11228_v35  ;;  %v4232_v61 = vadd.f32 %v4211_v44, %v11236_v40  ;;  %v4218_v37 = vsel %vm4206_vm0, %v4216_v46, %v4217_v51  ;;  %5110 = vmatprep.subr.bf16.mxu0 %v9865_v38  ;;  %v9871_v33 = vld [vmem:[#allocation11 + $0x1e4] ss:$16 sps:$4 sm:$0xff]   ;;  %v9874_v35 = vld [vmem:[#allocation11 + $0x1ec] ss:$16 sps:$4 sm:$0xff]   ;;  %v9869_v40 = vld [vmem:[#allocation11 + $0x1e0] ss:$16 sps:$4 sm:$0xff]  }
 0x40c   : > { %v11253_v62 = vadd.f32 %v4218_v37, %v11230_v36  ;;  %v4234_v32 = vadd.f32 %v4217_v51, %v11238_v41  ;;  %5111 = vmatpush1.bf16.msra.mxu0 %v9863_v0  ;;  %5198 = vmatprep.subr.bf16.mxu1 %v9874_v35  ;;  %v9877_v36 = vld [vmem:[#allocation11 + $0x204] ss:$16 sps:$4 sm:$0xff]   ;;  %v9880_v41 = vld [vmem:[#allocation11 + $0x20c] ss:$16 sps:$4 sm:$0xff]  }
 0x40d   : > { %5112 = vmatprep.subr.bf16.mxu0 %v9871_v33  ;;  %5199 = vmatpush1.bf16.msra.mxu1 %v9872_v3  ;;  %v9878_v33 = vld [vmem:[#allocation11 + $0x208] ss:$16 sps:$4 sm:$0xff]  }
 0x40e   : > { %5211 = vmatprep.subr.bf16.mxu1 %v9880_v41  ;;  %v9884_v41 = vld [vmem:[#allocation11 + $0x228] ss:$16 sps:$4 sm:$0xff]  }
 0x410   : > { %5113 = vmatpush1.bf16.msra.mxu0 %v9869_v40  ;;  %v9886_v40 = vld [vmem:[#allocation11 + $0x22c] ss:$16 sps:$4 sm:$0xff]  }
 0x411   : > { %5125 = vmatprep.subr.bf16.mxu0 %v9877_v36  ;;  %v9881_v36 = vld [vmem:[#allocation11 + $0x220] ss:$16 sps:$4 sm:$0xff]  }
 0x484   : > { %v4103_v6 = vpop.f32.mrb[16].mxu0 }
 0x485   : > { %v4189_v7 = vpop.f32.mrb[16].mxu1  ;;  %v4105_v8 = vpop.f32.mrb[17].mxu0  ;;  %v4244_v13 = vrot.slane %v4103_v6, 2  ;;  %v9892_v6 = vld [vmem:[#allocation11 + $0x24c] ss:$16 sps:$4 sm:$0xff]  }
 0x486   : > { %v4191_v9 = vpop.f32.mrb[17].mxu1  ;;  %v4107_v10 = vpop.f32.mrb[18].mxu0  ;;  %v4250_v20 = vrot.slane %v4189_v7, 2  ;;  %v4247_v16 = vrot.slane %v4105_v8, 2  ;;  %v9887_v7 = vld [vmem:[#allocation11 + $0x240] ss:$16 sps:$4 sm:$0xff]  }
 0x487   : > { %v4245_v14 = vrot.slane %v4107_v10, 2  ;;  %v4193_v15 = vpop.f32.mrb[18].mxu1  ;;  %v4109_v17 = vpop.f32.mrb[19].mxu0  ;;  %v4253_v25 = vrot.slane %v4191_v9, 2  ;;  %v9890_v8 = vld [vmem:[#allocation11 + $0x248] ss:$16 sps:$4 sm:$0xff]  }
 0x488   : > { %v4251_v21 = vrot.slane %v4193_v15, 2  ;;  %v4248_v23 = vrot.slane %v4109_v17, 2  ;;  %v4195_v24 = vpop.f32.mrb[19].mxu1  ;;  %v9895_v9 = vld [vmem:[#allocation11 + $0x264] ss:$16 sps:$4 sm:$0xff]  }
 0x489   : > { %v4246_v43 = vsel %vm4243_vm1, %v4244_v13, %v4245_v14  ;;  %v4268_v26 = vadd.f32 %v4245_v14, %v4231_v49  ;;  %v4254_v27 = vrot.slane %v4195_v24, 2  ;;  %v9898_v10 = vld [vmem:[#allocation11 + $0x26c] ss:$16 sps:$4 sm:$0xff]   ;;  %v9901_v13 = vld [vmem:[#allocation11 + $0x284] ss:$16 sps:$4 sm:$0xff]  }
 0x48a   : > { %v4264_v28 = vadd.f32 %v4246_v43, %v4227_v54  ;;  %v4252_v29 = vsel %vm4243_vm1, %v4250_v20, %v4251_v21  ;;  %v4270_v30 = vadd.f32 %v4251_v21, %v4233_v56  ;;  %v4249_v31 = vsel %vm4243_vm1, %v4247_v16, %v4248_v23  ;;  %v9904_v14 = vld [vmem:[#allocation11 + $0x28c] ss:$16 sps:$4 sm:$0xff]   ;;  %v9899_v15 = vld [vmem:[#allocation11 + $0x280] ss:$16 sps:$4 sm:$0xff]   ;;  %v9902_v17 = vld [vmem:[#allocation11 + $0x288] ss:$16 sps:$4 sm:$0xff]  }
 0x48b   : > { %v4298_v34 = vadd.f32 %v4277_v11, %v4268_v26  ;;  %v4266_v39 = vadd.f32 %v4252_v29, %v4229_v59  ;;  %v4265_v44 = vadd.f32 %v4249_v31, %v4228_v60  ;;  %v4269_v45 = vadd.f32 %v4248_v23, %v4232_v61  ;;  %v9905_v20 = vld [vmem:[#allocation11 + $0x2a0] ss:$16 sps:$4 sm:$0xff]   ;;  %v9908_v16 = vld [vmem:[#allocation11 + $0x2a8] ss:$16 sps:$4 sm:$0xff]   ;;  %v9913_v21 = vld [vmem:[#allocation11 + $0x2c4] ss:$16 sps:$4 sm:$0xff]  }
 0x48c   : > { %v4294_v42 = vadd.f32 %v4277_v11, %v4264_v28  ;;  %v4300_v46 = vadd.f32 %v4285_v12, %v4270_v30  ;;  %v4255_v47 = vsel %vm4243_vm1, %v4253_v25, %v4254_v27  ;;  %v4271_v51 = vadd.f32 %v4254_v27, %v4234_v32  ;;  %v9875_v32 = vld [vmem:[#allocation11 + $0x200] ss:$16 sps:$4 sm:$0xff]   ;;  %v9916_v23 = vld [vmem:[#allocation11 + $0x2cc] ss:$16 sps:$4 sm:$0xff]   ;;  %v9914_v25 = vld [vmem:[#allocation11 + $0x2c8] ss:$16 sps:$4 sm:$0xff]  }
 0x48d   : > { %v4306_v52 = vmax.f32 %v4298_v34, 0.0  ;;  %v4296_v53 = vadd.f32 %v4285_v12, %v4266_v39  ;;  %v4295_v55 = vadd.f32 %v4281_v22, %v4265_v44  ;;  %v4299_v49 = vadd.f32 %v4281_v22, %v4269_v45  ;;  %v9893_v11 = vld [vmem:[#allocation11 + $0x260] ss:$16 sps:$4 sm:$0xff]   ;;  %v9896_v12 = vld [vmem:[#allocation11 + $0x268] ss:$16 sps:$4 sm:$0xff]  }
 0x48e   : > { %v4302_v57 = vmax.f32 %v4294_v42, 0.0  ;;  %v4308_v54 = vmax.f32 %v4300_v46, 0.0  ;;  %v4267_v58 = vadd.f32 %v4255_v47, %v11253_v62  ;;  %v4301_v56 = vadd.f32 %v4289_v19, %v4271_v51  ;;  %v9883_v62 = vld [vmem:[#allocation11 + $0x224] ss:$16 sps:$4 sm:$0xff]   ;;  %v9911_v24 = vld [vmem:[#allocation11 + $0x2c0] ss:$16 sps:$4 sm:$0xff]  }
 0x48f   : > { %v4304_v37 = vmax.f32 %v4296_v53, 0.0  ;;  %v4303_v38 = vmax.f32 %v4295_v55, 0.0  ;;  %v4307_v63 = vmax.f32 %v4299_v49, 0.0  ;;  %v9907_v22 = vld [vmem:[#allocation11 + $0x2a4] ss:$16 sps:$4 sm:$0xff]  }
 0x490   : > { %v11265_v59 = vpack.c.bf16 %v4306_v52, %v4302_v57  ;;  %v4297_v60 = vadd.f32 %v4289_v19, %v4267_v58  ;;  %v4309_v61 = vmax.f32 %v4301_v56, 0.0  ;;  %v9910_v19 = vld [vmem:[#allocation11 + $0x2ac] ss:$16 sps:$4 sm:$0xff]   ;;  %v9919_v43 = vld [vmem:[#allocation11 + $0x2e4] ss:$16 sps:$4 sm:$0xff]  }
 0x491   : > { %v11267_v0 = vpack.c.bf16 %v4308_v54, %v4304_v37  ;;  %v11269_v2 = vpack.c.bf16 %v4307_v63, %v4303_v38  ;;  %v9922_v26 = vld [vmem:[#allocation11 + $0x2ec] ss:$16 sps:$4 sm:$0xff]   ;;  %v9917_v27 = vld [vmem:[#allocation11 + $0x2e0] ss:$16 sps:$4 sm:$0xff]   ;;  %v9920_v28 = vld [vmem:[#allocation11 + $0x2e8] ss:$16 sps:$4 sm:$0xff]  }
 0x492   : > { %v4305_v35 = vmax.f32 %v4297_v60, 0.0  ;;  %v9925_v29 = vld [vmem:[#allocation11 + $0x304] ss:$16 sps:$4 sm:$0xff]   ;;  %v9928_v30 = vld [vmem:[#allocation11 + $0x30c] ss:$16 sps:$4 sm:$0xff]  }
 0x493   : > { %5114 = vmatprep.mubr.bf16.mxu0 %v11269_v2  ;;  %5200 = vmatprep.mubr.bf16.mxu1 %v11269_v2  ;;  %v9923_v31 = vld [vmem:[#allocation11 + $0x300] ss:$16 sps:$4 sm:$0xff]   ;;  %v9926_v34 = vld [vmem:[#allocation11 + $0x308] ss:$16 sps:$4 sm:$0xff]   ;;  %v9931_v39 = vld [vmem:[#allocation11 + $0x324] ss:$16 sps:$4 sm:$0xff]  }
 0x494   : > { %v11273_v3 = vpack.c.bf16 %v4309_v61, %v4305_v35  ;;  %5115 = vmatmul.mubr.bf16.vlgmr.msra.gmra.mrb[20].mxu0 %v11265_v59  ;;  %5201 = vmatmul.mubr.bf16.vlgmr.msra.gmra.mrb[20].mxu1 %v11265_v59  ;;  %v9934_v44 = vld [vmem:[#allocation11 + $0x32c] ss:$16 sps:$4 sm:$0xff]   ;;  %v9929_v45 = vld [vmem:[#allocation11 + $0x320] ss:$16 sps:$4 sm:$0xff]   ;;  %v9932_v42 = vld [vmem:[#allocation11 + $0x328] ss:$16 sps:$4 sm:$0xff]  }
 0x495   : > { %5126 = vmatpush1.bf16.msra.mxu0 %v9875_v32  ;;  %5212 = vmatpush1.bf16.msra.mxu1 %v9878_v33  ;;  %v9937_v46 = vld [vmem:[#allocation11 + $0x344] ss:$16 sps:$4 sm:$0xff]   ;;  %v9940_v47 = vld [vmem:[#allocation11 + $0x34c] ss:$16 sps:$4 sm:$0xff]   ;;  %v9935_v51 = vld [vmem:[#allocation11 + $0x340] ss:$16 sps:$4 sm:$0xff]  }
 0x496   : > { %5157 = vmatprep.mubr.bf16.mxu0 %v11273_v3  ;;  %5243 = vmatprep.mubr.bf16.mxu1 %v11273_v3  ;;  %v9938_v52 = vld [vmem:[#allocation11 + $0x348] ss:$16 sps:$4 sm:$0xff]   ;;  %v9943_v53 = vld [vmem:[#allocation11 + $0x364] ss:$16 sps:$4 sm:$0xff]   ;;  %v9946_v55 = vld [vmem:[#allocation11 + $0x36c] ss:$16 sps:$4 sm:$0xff]  }
 0x497   : > { %5127 = vmatprep.subr.bf16.mxu0 %v9883_v62  ;;  %5213 = vmatprep.subr.bf16.mxu1 %v9886_v40  ;;  %v9941_v49 = vld [vmem:[#allocation11 + $0x360] ss:$16 sps:$4 sm:$0xff]   ;;  %v9944_v57 = vld [vmem:[#allocation11 + $0x368] ss:$16 sps:$4 sm:$0xff]   ;;  %v9949_v54 = vld [vmem:[#allocation11 + $0x384] ss:$16 sps:$4 sm:$0xff]  }
 0x498   : > { %v9952_v58 = vld [vmem:[#allocation11 + $0x38c] ss:$16 sps:$4 sm:$0xff]   ;;  %v9947_v56 = vld [vmem:[#allocation11 + $0x380] ss:$16 sps:$4 sm:$0xff]   ;;  %v9950_v37 = vld [vmem:[#allocation11 + $0x388] ss:$16 sps:$4 sm:$0xff]  }
 0x499   : > { %5128 = vmatpush1.bf16.msra.mxu0 %v9881_v36  ;;  %5214 = vmatpush1.bf16.msra.mxu1 %v9884_v41  ;;  %v9955_v38 = vld [vmem:[#allocation11 + $0x3a4] ss:$16 sps:$4 sm:$0xff]   ;;  %v9958_v63 = vld [vmem:[#allocation11 + $0x3ac] ss:$16 sps:$4 sm:$0xff]   ;;  %v9953_v60 = vld [vmem:[#allocation11 + $0x3a0] ss:$16 sps:$4 sm:$0xff]  }
 0x49a   : > { %5129 = vmatprep.subr.bf16.mxu0 %v9889_v5  ;;  %5215 = vmatprep.subr.bf16.mxu1 %v9892_v6  ;;  %v9956_v61 = vld [vmem:[#allocation11 + $0x3a8] ss:$16 sps:$4 sm:$0xff]   ;;  %v9961_v32 = vld [vmem:[#allocation11 + $0x3c4] ss:$16 sps:$4 sm:$0xff]   ;;  %v9964_v33 = vld [vmem:[#allocation11 + $0x3cc] ss:$16 sps:$4 sm:$0xff]  }
 0x49b   : > { %v9959_v35 = vld [vmem:[#allocation11 + $0x3c0] ss:$16 sps:$4 sm:$0xff]   ;;  %v9962_v62 = vld [vmem:[#allocation11 + $0x3c8] ss:$16 sps:$4 sm:$0xff]   ;;  %v9967_v40 = vld [vmem:[#allocation11 + $0x3e4] ss:$16 sps:$4 sm:$0xff]  }
 0x49c   : > { %v9970_v36 = vld [vmem:[#allocation11 + $0x3ec] ss:$16 sps:$4 sm:$0xff]   ;;  %v9965_v41 = vld [vmem:[#allocation11 + $0x3e0] ss:$16 sps:$4 sm:$0xff]   ;;  %v9968_v5 = vld [vmem:[#allocation11 + $0x3e8] ss:$16 sps:$4 sm:$0xff]  }
 0x49d   : > { %5130 = vmatpush1.bf16.msra.mxu0 %v9887_v7  ;;  %5216 = vmatpush1.bf16.msra.mxu1 %v9890_v8  ;;  %v9973_v6 = vld [vmem:[#allocation11 + $0x404] ss:$16 sps:$4 sm:$0xff]   ;;  %v9976_v7 = vld [vmem:[#allocation11 + $0x40c] ss:$16 sps:$4 sm:$0xff]   ;;  %v9971_v8 = vld [vmem:[#allocation11 + $0x400] ss:$16 sps:$4 sm:$0xff]  }
 0x49e   : > { %5131 = vmatprep.subr.bf16.mxu0 %v9895_v9  ;;  %5217 = vmatprep.subr.bf16.mxu1 %v9898_v10  ;;  %v9974_v9 = vld [vmem:[#allocation11 + $0x408] ss:$16 sps:$4 sm:$0xff]   ;;  %v9979_v10 = vld [vmem:[#allocation11 + $0x424] ss:$16 sps:$4 sm:$0xff]  }
 0x4a1   : > { %5132 = vmatpush1.bf16.msra.mxu0 %v9893_v11  ;;  %5218 = vmatpush1.bf16.msra.mxu1 %v9896_v12  ;;  %v9982_v11 = vld [vmem:[#allocation11 + $0x42c] ss:$16 sps:$4 sm:$0xff]   ;;  %v9977_v12 = vld [vmem:[#allocation11 + $0x420] ss:$16 sps:$4 sm:$0xff]  }
 0x4a2   : > { %5133 = vmatprep.subr.bf16.mxu0 %v9901_v13  ;;  %5219 = vmatprep.subr.bf16.mxu1 %v9904_v14  ;;  %v9980_v13 = vld [vmem:[#allocation11 + $0x428] ss:$16 sps:$4 sm:$0xff]   ;;  %v9985_v14 = vld [vmem:[#allocation11 + $0x444] ss:$16 sps:$4 sm:$0xff]  }
 0x4a5   : > { %5134 = vmatpush1.bf16.msra.mxu0 %v9899_v15  ;;  %5220 = vmatpush1.bf16.msra.mxu1 %v9902_v17  ;;  %v9988_v15 = vld [vmem:[#allocation11 + $0x44c] ss:$16 sps:$4 sm:$0xff]   ;;  %v9983_v17 = vld [vmem:[#allocation11 + $0x440] ss:$16 sps:$4 sm:$0xff]  }
 0x4a6   : > { %5135 = vmatprep.subr.bf16.mxu0 %v9907_v22  ;;  %5221 = vmatprep.subr.bf16.mxu1 %v9910_v19  ;;  %v9986_v22 = vld [vmem:[#allocation11 + $0x448] ss:$16 sps:$4 sm:$0xff]   ;;  %v9991_v19 = vld [vmem:[#allocation11 + $0x464] ss:$16 sps:$4 sm:$0xff]  }
 0x4a9   : > { %5136 = vmatpush1.bf16.msra.mxu0 %v9905_v20  ;;  %5222 = vmatpush1.bf16.msra.mxu1 %v9908_v16  ;;  %v9994_v20 = vld [vmem:[#allocation11 + $0x46c] ss:$16 sps:$4 sm:$0xff]   ;;  %v9989_v16 = vld [vmem:[#allocation11 + $0x460] ss:$16 sps:$4 sm:$0xff]  }
 0x4aa   : > { %5137 = vmatprep.subr.bf16.mxu0 %v9913_v21  ;;  %5223 = vmatprep.subr.bf16.mxu1 %v9916_v23  ;;  %v9992_v21 = vld [vmem:[#allocation11 + $0x468] ss:$16 sps:$4 sm:$0xff]   ;;  %v9997_v23 = vld [vmem:[#allocation11 + $0x484] ss:$16 sps:$4 sm:$0xff]  }
 0x4ad   : > { %5138 = vmatpush1.bf16.msra.mxu0 %v9911_v24  ;;  %5224 = vmatpush1.bf16.msra.mxu1 %v9914_v25  ;;  %v10000_v24 = vld [vmem:[#allocation11 + $0x48c] ss:$16 sps:$4 sm:$0xff]   ;;  %v9995_v25 = vld [vmem:[#allocation11 + $0x480] ss:$16 sps:$4 sm:$0xff]  }
 0x4ae   : > { %5139 = vmatprep.subr.bf16.mxu0 %v9919_v43  ;;  %5225 = vmatprep.subr.bf16.mxu1 %v9922_v26  ;;  %v9998_v43 = vld [vmem:[#allocation11 + $0x488] ss:$16 sps:$4 sm:$0xff]   ;;  %v10003_v26 = vld [vmem:[#allocation11 + $0x4a4] ss:$16 sps:$4 sm:$0xff]  }
 0x4b1   : > { %5140 = vmatpush1.bf16.msra.mxu0 %v9917_v27  ;;  %5226 = vmatpush1.bf16.msra.mxu1 %v9920_v28  ;;  %v10006_v27 = vld [vmem:[#allocation11 + $0x4ac] ss:$16 sps:$4 sm:$0xff]   ;;  %v10001_v28 = vld [vmem:[#allocation11 + $0x4a0] ss:$16 sps:$4 sm:$0xff]  }
 0x4b2   : > { %5141 = vmatprep.subr.bf16.mxu0 %v9925_v29  ;;  %5227 = vmatprep.subr.bf16.mxu1 %v9928_v30  ;;  %v10004_v29 = vld [vmem:[#allocation11 + $0x4a8] ss:$16 sps:$4 sm:$0xff]   ;;  %v10009_v30 = vld [vmem:[#allocation11 + $0x4c4] ss:$16 sps:$4 sm:$0xff]  }
 0x4b5   : > { %5142 = vmatpush1.bf16.msra.mxu0 %v9923_v31  ;;  %5228 = vmatpush1.bf16.msra.mxu1 %v9926_v34  ;;  %v10012_v31 = vld [vmem:[#allocation11 + $0x4cc] ss:$16 sps:$4 sm:$0xff]   ;;  %v10007_v34 = vld [vmem:[#allocation11 + $0x4c0] ss:$16 sps:$4 sm:$0xff]  }
 0x4b6   : > { %5143 = vmatprep.subr.bf16.mxu0 %v9931_v39  ;;  %5229 = vmatprep.subr.bf16.mxu1 %v9934_v44  ;;  %v10010_v39 = vld [vmem:[#allocation11 + $0x4c8] ss:$16 sps:$4 sm:$0xff]   ;;  %v10015_v44 = vld [vmem:[#allocation11 + $0x4e4] ss:$16 sps:$4 sm:$0xff]  }
 0x4b9   : > { %5144 = vmatpush1.bf16.msra.mxu0 %v9929_v45  ;;  %5230 = vmatpush1.bf16.msra.mxu1 %v9932_v42  ;;  %v10018_v45 = vld [vmem:[#allocation11 + $0x4ec] ss:$16 sps:$4 sm:$0xff]   ;;  %v10013_v42 = vld [vmem:[#allocation11 + $0x4e0] ss:$16 sps:$4 sm:$0xff]  }
 0x4ba   : > { %5145 = vmatprep.subr.bf16.mxu0 %v9937_v46  ;;  %5231 = vmatprep.subr.bf16.mxu1 %v9940_v47  ;;  %v10016_v46 = vld [vmem:[#allocation11 + $0x4e8] ss:$16 sps:$4 sm:$0xff]   ;;  %v10021_v47 = vld [vmem:[#allocation11 + $0x504] ss:$16 sps:$4 sm:$0xff]  }
 0x4bd   : > { %5146 = vmatpush1.bf16.msra.mxu0 %v9935_v51  ;;  %5232 = vmatpush1.bf16.msra.mxu1 %v9938_v52  ;;  %v10024_v51 = vld [vmem:[#allocation11 + $0x50c] ss:$16 sps:$4 sm:$0xff]   ;;  %v10019_v52 = vld [vmem:[#allocation11 + $0x500] ss:$16 sps:$4 sm:$0xff]  }
 0x4be   : > { %5147 = vmatprep.subr.bf16.mxu0 %v9943_v53  ;;  %5233 = vmatprep.subr.bf16.mxu1 %v9946_v55  ;;  %v10022_v53 = vld [vmem:[#allocation11 + $0x508] ss:$16 sps:$4 sm:$0xff]   ;;  %v10027_v55 = vld [vmem:[#allocation11 + $0x524] ss:$16 sps:$4 sm:$0xff]  }
 0x4c1   : > { %5148 = vmatpush1.bf16.msra.mxu0 %v9941_v49  ;;  %5234 = vmatpush1.bf16.msra.mxu1 %v9944_v57  ;;  %v10030_v49 = vld [vmem:[#allocation11 + $0x52c] ss:$16 sps:$4 sm:$0xff]   ;;  %v10025_v57 = vld [vmem:[#allocation11 + $0x520] ss:$16 sps:$4 sm:$0xff]  }
 0x4c2   : > { %5149 = vmatprep.subr.bf16.mxu0 %v9949_v54  ;;  %5235 = vmatprep.subr.bf16.mxu1 %v9952_v58  ;;  %v10028_v54 = vld [vmem:[#allocation11 + $0x528] ss:$16 sps:$4 sm:$0xff]   ;;  %v10033_v58 = vld [vmem:[#allocation11 + $0x544] ss:$16 sps:$4 sm:$0xff]  }
 0x4c5   : > { %5150 = vmatpush1.bf16.msra.mxu0 %v9947_v56  ;;  %5236 = vmatpush1.bf16.msra.mxu1 %v9950_v37  ;;  %v10036_v56 = vld [vmem:[#allocation11 + $0x54c] ss:$16 sps:$4 sm:$0xff]   ;;  %v10031_v37 = vld [vmem:[#allocation11 + $0x540] ss:$16 sps:$4 sm:$0xff]  }
 0x4c6   : > { %5151 = vmatprep.subr.bf16.mxu0 %v9955_v38  ;;  %5237 = vmatprep.subr.bf16.mxu1 %v9958_v63  ;;  %v10034_v38 = vld [vmem:[#allocation11 + $0x548] ss:$16 sps:$4 sm:$0xff]   ;;  %v10039_v63 = vld [vmem:[#allocation11 + $0x564] ss:$16 sps:$4 sm:$0xff]  }
 0x4c9   : > { %5152 = vmatpush1.bf16.msra.mxu0 %v9953_v60  ;;  %5238 = vmatpush1.bf16.msra.mxu1 %v9956_v61  ;;  %v10042_v60 = vld [vmem:[#allocation11 + $0x56c] ss:$16 sps:$4 sm:$0xff]   ;;  %v10037_v61 = vld [vmem:[#allocation11 + $0x560] ss:$16 sps:$4 sm:$0xff]  }
 0x4ca   : > { %5153 = vmatprep.subr.bf16.mxu0 %v9961_v32  ;;  %5239 = vmatprep.subr.bf16.mxu1 %v9964_v33  ;;  %v10040_v32 = vld [vmem:[#allocation11 + $0x568] ss:$16 sps:$4 sm:$0xff]   ;;  %v10045_v33 = vld [vmem:[#allocation11 + $0x584] ss:$16 sps:$4 sm:$0xff]  }
 0x4cd   : > { %5154 = vmatpush1.bf16.msra.mxu0 %v9959_v35  ;;  %5240 = vmatpush1.bf16.msra.mxu1 %v9962_v62  ;;  %v10048_v35 = vld [vmem:[#allocation11 + $0x58c] ss:$16 sps:$4 sm:$0xff]   ;;  %v10043_v62 = vld [vmem:[#allocation11 + $0x580] ss:$16 sps:$4 sm:$0xff]  }
 0x4ce   : > { %5155 = vmatprep.subr.bf16.mxu0 %v9967_v40  ;;  %5241 = vmatprep.subr.bf16.mxu1 %v9970_v36  ;;  %v10046_v40 = vld [vmem:[#allocation11 + $0x588] ss:$16 sps:$4 sm:$0xff]   ;;  %v10051_v36 = vld [vmem:[#allocation11 + $0x5a4] ss:$16 sps:$4 sm:$0xff]  }
 0x4d1   : > { %5156 = vmatpush1.bf16.msra.mxu0 %v9965_v41  ;;  %5242 = vmatpush1.bf16.msra.mxu1 %v9968_v5  ;;  %v10054_v41 = vld [vmem:[#allocation11 + $0x5ac] ss:$16 sps:$4 sm:$0xff]   ;;  %v10049_v5 = vld [vmem:[#allocation11 + $0x5a0] ss:$16 sps:$4 sm:$0xff]  }
 0x4d2   : > { %6022 = vmatprep.subr.bf16.mxu0 %v9973_v6  ;;  %6108 = vmatprep.subr.bf16.mxu1 %v9976_v7  ;;  %v10052_v6 = vld [vmem:[#allocation11 + $0x5a8] ss:$16 sps:$4 sm:$0xff]   ;;  %v10057_v7 = vld [vmem:[#allocation11 + $0x5c4] ss:$16 sps:$4 sm:$0xff]  }
 0x4d4   : > { %5158 = vmatmul.mubr.bf16.vlgmr.msra.gmra.mrb[20].mxu0 %v11267_v0  ;;  %5244 = vmatmul.mubr.bf16.vlgmr.msra.gmra.mrb[20].mxu1 %v11267_v0 }
 0x4d5   : > { %6023 = vmatpush1.bf16.msra.mxu0 %v9971_v8  ;;  %6054 = vmatprep.mubr.bf16.mxu0 %v11269_v2  ;;  %v10060_v8 = vld [vmem:[#allocation11 + $0x5cc] ss:$16 sps:$4 sm:$0xff]  }
 0x4d6   : > { %6109 = vmatpush1.bf16.msra.mxu1 %v9974_v9  ;;  %6140 = vmatprep.mubr.bf16.mxu1 %v11269_v2  ;;  %v10055_v9 = vld [vmem:[#allocation11 + $0x5c0] ss:$16 sps:$4 sm:$0xff]  }
 0x4d7   : > { %6024 = vmatprep.subr.bf16.mxu0 %v9979_v10  ;;  %6110 = vmatprep.subr.bf16.mxu1 %v9982_v11  ;;  %v10058_v10 = vld [vmem:[#allocation11 + $0x5c8] ss:$16 sps:$4 sm:$0xff]   ;;  %v10063_v11 = vld [vmem:[#allocation11 + $0x5e4] ss:$16 sps:$4 sm:$0xff]  }
 0x4d9   : > { %6025 = vmatpush1.bf16.msra.mxu0 %v9977_v12  ;;  %v10066_v12 = vld [vmem:[#allocation11 + $0x5ec] ss:$16 sps:$4 sm:$0xff]  }
 0x4da   : > { %6111 = vmatpush1.bf16.msra.mxu1 %v9980_v13  ;;  %6026 = vmatprep.subr.bf16.mxu0 %v9985_v14  ;;  %v10061_v13 = vld [vmem:[#allocation11 + $0x5e0] ss:$16 sps:$4 sm:$0xff]   ;;  %v10064_v14 = vld [vmem:[#allocation11 + $0x5e8] ss:$16 sps:$4 sm:$0xff]  }
 0x4db   : > { %6112 = vmatprep.subr.bf16.mxu1 %v9988_v15  ;;  %v10069_v15 = vld [vmem:[#allocation11 + $0x604] ss:$16 sps:$4 sm:$0xff]  }
 0x4dd   : > { %6027 = vmatpush1.bf16.msra.mxu0 %v9983_v17  ;;  %v10072_v17 = vld [vmem:[#allocation11 + $0x60c] ss:$16 sps:$4 sm:$0xff]  }
 0x4de   : > { %6113 = vmatpush1.bf16.msra.mxu1 %v9986_v22  ;;  %6028 = vmatprep.subr.bf16.mxu0 %v9991_v19  ;;  %v10067_v22 = vld [vmem:[#allocation11 + $0x600] ss:$16 sps:$4 sm:$0xff]   ;;  %v10070_v19 = vld [vmem:[#allocation11 + $0x608] ss:$16 sps:$4 sm:$0xff]  }
 0x4df   : > { %6114 = vmatprep.subr.bf16.mxu1 %v9994_v20  ;;  %v10075_v20 = vld [vmem:[#allocation11 + $0x624] ss:$16 sps:$4 sm:$0xff]  }
 0x4e1   : > { %6029 = vmatpush1.bf16.msra.mxu0 %v9989_v16  ;;  %v10078_v16 = vld [vmem:[#allocation11 + $0x62c] ss:$16 sps:$4 sm:$0xff]  }
 0x4e2   : > { %6115 = vmatpush1.bf16.msra.mxu1 %v9992_v21  ;;  %6030 = vmatprep.subr.bf16.mxu0 %v9997_v23  ;;  %v10073_v21 = vld [vmem:[#allocation11 + $0x620] ss:$16 sps:$4 sm:$0xff]   ;;  %v10076_v23 = vld [vmem:[#allocation11 + $0x628] ss:$16 sps:$4 sm:$0xff]  }
 0x4e3   : > { %6116 = vmatprep.subr.bf16.mxu1 %v10000_v24  ;;  %v10081_v24 = vld [vmem:[#allocation11 + $0x644] ss:$16 sps:$4 sm:$0xff]  }
 0x4e5   : > { %6031 = vmatpush1.bf16.msra.mxu0 %v9995_v25  ;;  %v10084_v25 = vld [vmem:[#allocation11 + $0x64c] ss:$16 sps:$4 sm:$0xff]  }
 0x4e6   : > { %6117 = vmatpush1.bf16.msra.mxu1 %v9998_v43  ;;  %6032 = vmatprep.subr.bf16.mxu0 %v10003_v26  ;;  %v10079_v43 = vld [vmem:[#allocation11 + $0x640] ss:$16 sps:$4 sm:$0xff]   ;;  %v10082_v26 = vld [vmem:[#allocation11 + $0x648] ss:$16 sps:$4 sm:$0xff]  }
 0x4e7   : > { %6118 = vmatprep.subr.bf16.mxu1 %v10006_v27  ;;  %v10087_v27 = vld [vmem:[#allocation11 + $0x664] ss:$16 sps:$4 sm:$0xff]  }
 0x4e9   : > { %6033 = vmatpush1.bf16.msra.mxu0 %v10001_v28  ;;  %v10090_v28 = vld [vmem:[#allocation11 + $0x66c] ss:$16 sps:$4 sm:$0xff]  }
 0x4ea   : > { %6119 = vmatpush1.bf16.msra.mxu1 %v10004_v29  ;;  %6034 = vmatprep.subr.bf16.mxu0 %v10009_v30  ;;  %v10085_v29 = vld [vmem:[#allocation11 + $0x660] ss:$16 sps:$4 sm:$0xff]   ;;  %v10088_v30 = vld [vmem:[#allocation11 + $0x668] ss:$16 sps:$4 sm:$0xff]  }
 0x4eb   : > { %6120 = vmatprep.subr.bf16.mxu1 %v10012_v31  ;;  %v10093_v31 = vld [vmem:[#allocation11 + $0x684] ss:$16 sps:$4 sm:$0xff]  }
 0x4ed   : > { %6035 = vmatpush1.bf16.msra.mxu0 %v10007_v34  ;;  %v10096_v34 = vld [vmem:[#allocation11 + $0x68c] ss:$16 sps:$4 sm:$0xff]  }
 0x4ee   : > { %6121 = vmatpush1.bf16.msra.mxu1 %v10010_v39  ;;  %6036 = vmatprep.subr.bf16.mxu0 %v10015_v44  ;;  %v10091_v39 = vld [vmem:[#allocation11 + $0x680] ss:$16 sps:$4 sm:$0xff]   ;;  %v10094_v44 = vld [vmem:[#allocation11 + $0x688] ss:$16 sps:$4 sm:$0xff]  }
 0x4ef   : > { %6122 = vmatprep.subr.bf16.mxu1 %v10018_v45  ;;  %v10099_v45 = vld [vmem:[#allocation11 + $0x6a4] ss:$16 sps:$4 sm:$0xff]  }
 0x4f1   : > { %6037 = vmatpush1.bf16.msra.mxu0 %v10013_v42  ;;  %v10102_v42 = vld [vmem:[#allocation11 + $0x6ac] ss:$16 sps:$4 sm:$0xff]  }
 0x4f2   : > { %6123 = vmatpush1.bf16.msra.mxu1 %v10016_v46  ;;  %6038 = vmatprep.subr.bf16.mxu0 %v10021_v47  ;;  %v10097_v46 = vld [vmem:[#allocation11 + $0x6a0] ss:$16 sps:$4 sm:$0xff]   ;;  %v10100_v47 = vld [vmem:[#allocation11 + $0x6a8] ss:$16 sps:$4 sm:$0xff]  }
 0x4f3   : > { %6124 = vmatprep.subr.bf16.mxu1 %v10024_v51  ;;  %v10105_v51 = vld [vmem:[#allocation11 + $0x6c4] ss:$16 sps:$4 sm:$0xff]  }
 0x4f5   : > { %6039 = vmatpush1.bf16.msra.mxu0 %v10019_v52  ;;  %v10108_v52 = vld [vmem:[#allocation11 + $0x6cc] ss:$16 sps:$4 sm:$0xff]  }
 0x4f6   : > { %6125 = vmatpush1.bf16.msra.mxu1 %v10022_v53  ;;  %6040 = vmatprep.subr.bf16.mxu0 %v10027_v55  ;;  %v10103_v53 = vld [vmem:[#allocation11 + $0x6c0] ss:$16 sps:$4 sm:$0xff]   ;;  %v10106_v55 = vld [vmem:[#allocation11 + $0x6c8] ss:$16 sps:$4 sm:$0xff]  }
 0x4f7   : > { %6126 = vmatprep.subr.bf16.mxu1 %v10030_v49  ;;  %v10111_v49 = vld [vmem:[#allocation11 + $0x6e4] ss:$16 sps:$4 sm:$0xff]  }
 0x4f9   : > { %6041 = vmatpush1.bf16.msra.mxu0 %v10025_v57  ;;  %v10114_v57 = vld [vmem:[#allocation11 + $0x6ec] ss:$16 sps:$4 sm:$0xff]  }
 0x4fa   : > { %6127 = vmatpush1.bf16.msra.mxu1 %v10028_v54  ;;  %6042 = vmatprep.subr.bf16.mxu0 %v10033_v58  ;;  %v10109_v54 = vld [vmem:[#allocation11 + $0x6e0] ss:$16 sps:$4 sm:$0xff]   ;;  %v10112_v58 = vld [vmem:[#allocation11 + $0x6e8] ss:$16 sps:$4 sm:$0xff]  }
 0x4fb   : > { %6128 = vmatprep.subr.bf16.mxu1 %v10036_v56  ;;  %v10117_v56 = vld [vmem:[#allocation11 + $0x704] ss:$16 sps:$4 sm:$0xff]  }
 0x4fd   : > { %6043 = vmatpush1.bf16.msra.mxu0 %v10031_v37  ;;  %v10120_v37 = vld [vmem:[#allocation11 + $0x70c] ss:$16 sps:$4 sm:$0xff]  }
 0x4fe   : > { %6129 = vmatpush1.bf16.msra.mxu1 %v10034_v38  ;;  %6044 = vmatprep.subr.bf16.mxu0 %v10039_v63  ;;  %v10115_v38 = vld [vmem:[#allocation11 + $0x700] ss:$16 sps:$4 sm:$0xff]   ;;  %v10118_v63 = vld [vmem:[#allocation11 + $0x708] ss:$16 sps:$4 sm:$0xff]  }
 0x4ff   : > { %6130 = vmatprep.subr.bf16.mxu1 %v10042_v60  ;;  %v10123_v60 = vld [vmem:[#allocation11 + $0x724] ss:$16 sps:$4 sm:$0xff]  }
 0x501   : > { %6045 = vmatpush1.bf16.msra.mxu0 %v10037_v61  ;;  %v10126_v61 = vld [vmem:[#allocation11 + $0x72c] ss:$16 sps:$4 sm:$0xff]  }
 0x502   : > { %6131 = vmatpush1.bf16.msra.mxu1 %v10040_v32  ;;  %6046 = vmatprep.subr.bf16.mxu0 %v10045_v33  ;;  %v10121_v32 = vld [vmem:[#allocation11 + $0x720] ss:$16 sps:$4 sm:$0xff]   ;;  %v10124_v33 = vld [vmem:[#allocation11 + $0x728] ss:$16 sps:$4 sm:$0xff]  }
 0x503   : > { %6132 = vmatprep.subr.bf16.mxu1 %v10048_v35  ;;  %v10129_v35 = vld [vmem:[#allocation11 + $0x744] ss:$16 sps:$4 sm:$0xff]  }
 0x505   : > { %6047 = vmatpush1.bf16.msra.mxu0 %v10043_v62  ;;  %v10132_v62 = vld [vmem:[#allocation11 + $0x74c] ss:$16 sps:$4 sm:$0xff]  }
 0x506   : > { %6133 = vmatpush1.bf16.msra.mxu1 %v10046_v40  ;;  %6048 = vmatprep.subr.bf16.mxu0 %v10051_v36  ;;  %v10127_v40 = vld [vmem:[#allocation11 + $0x740] ss:$16 sps:$4 sm:$0xff]   ;;  %v10130_v36 = vld [vmem:[#allocation11 + $0x748] ss:$16 sps:$4 sm:$0xff]  }
 0x507   : > { %6134 = vmatprep.subr.bf16.mxu1 %v10054_v41  ;;  %v10135_v41 = vld [vmem:[#allocation11 + $0x764] ss:$16 sps:$4 sm:$0xff]  }
 0x509   : > { %6049 = vmatpush1.bf16.msra.mxu0 %v10049_v5  ;;  %v10138_v5 = vld [vmem:[#allocation11 + $0x76c] ss:$16 sps:$4 sm:$0xff]  }
 0x50a   : > { %6135 = vmatpush1.bf16.msra.mxu1 %v10052_v6  ;;  %6050 = vmatprep.subr.bf16.mxu0 %v10057_v7  ;;  %v10133_v6 = vld [vmem:[#allocation11 + $0x760] ss:$16 sps:$4 sm:$0xff]   ;;  %v10136_v7 = vld [vmem:[#allocation11 + $0x768] ss:$16 sps:$4 sm:$0xff]  }
 0x50b   : > { %6136 = vmatprep.subr.bf16.mxu1 %v10060_v8  ;;  %v10141_v8 = vld [vmem:[#allocation11 + $0x784] ss:$16 sps:$4 sm:$0xff]  }
 0x50d   : > { %6051 = vmatpush1.bf16.msra.mxu0 %v10055_v9  ;;  %v10144_v9 = vld [vmem:[#allocation11 + $0x78c] ss:$16 sps:$4 sm:$0xff]  }
 0x50e   : > { %6137 = vmatpush1.bf16.msra.mxu1 %v10058_v10  ;;  %6052 = vmatprep.subr.bf16.mxu0 %v10063_v11  ;;  %v10139_v10 = vld [vmem:[#allocation11 + $0x780] ss:$16 sps:$4 sm:$0xff]   ;;  %v10142_v11 = vld [vmem:[#allocation11 + $0x788] ss:$16 sps:$4 sm:$0xff]  }
 0x50f   : > { %6138 = vmatprep.subr.bf16.mxu1 %v10066_v12  ;;  %v10147_v12 = vld [vmem:[#allocation11 + $0x7a4] ss:$16 sps:$4 sm:$0xff]  }
 0x511   : > { %6053 = vmatpush1.bf16.msra.mxu0 %v10061_v13  ;;  %v10150_v13 = vld [vmem:[#allocation11 + $0x7ac] ss:$16 sps:$4 sm:$0xff]  }
 0x512   : > { %6139 = vmatpush1.bf16.msra.mxu1 %v10064_v14  ;;  %6065 = vmatprep.subr.bf16.mxu0 %v10069_v15  ;;  %v10145_v14 = vld [vmem:[#allocation11 + $0x7a0] ss:$16 sps:$4 sm:$0xff]   ;;  %v10148_v15 = vld [vmem:[#allocation11 + $0x7a8] ss:$16 sps:$4 sm:$0xff]  }
 0x513   : > { %6151 = vmatprep.subr.bf16.mxu1 %v10072_v17  ;;  %v10153_v17 = vld [vmem:[#allocation11 + $0x7c4] ss:$16 sps:$4 sm:$0xff]  }
 0x514   : > { %6055 = vmatmul.mubr.bf16.vlgmr.msra.gmra.mrb[24].mxu0 %v11265_v59 }
 0x515   : > { %6141 = vmatmul.mubr.bf16.vlgmr.msra.gmra.mrb[24].mxu1 %v11265_v59  ;;  %6066 = vmatpush1.bf16.msra.mxu0 %v10067_v22  ;;  %v10156_v22 = vld [vmem:[#allocation11 + $0x7cc] ss:$16 sps:$4 sm:$0xff]  }
 0x516   : > { %6097 = vmatprep.mubr.bf16.mxu0 %v11273_v3  ;;  %6152 = vmatpush1.bf16.msra.mxu1 %v10070_v19  ;;  %v10151_v19 = vld [vmem:[#allocation11 + $0x7c0] ss:$16 sps:$4 sm:$0xff]  }
 0x517   : > { %6183 = vmatprep.mubr.bf16.mxu1 %v11273_v3  ;;  %6067 = vmatprep.subr.bf16.mxu0 %v10075_v20  ;;  %v10154_v20 = vld [vmem:[#allocation11 + $0x7c8] ss:$16 sps:$4 sm:$0xff]  }
 0x518   : > { %6153 = vmatprep.subr.bf16.mxu1 %v10078_v16  ;;  %v10159_v16 = vld [vmem:[#allocation11 + $0x7e4] ss:$16 sps:$4 sm:$0xff]  }
 0x519   : > { %6068 = vmatpush1.bf16.msra.mxu0 %v10073_v21  ;;  %v10162_v21 = vld [vmem:[#allocation11 + $0x7ec] ss:$16 sps:$4 sm:$0xff]  }
 0x51a   : > { %6154 = vmatpush1.bf16.msra.mxu1 %v10076_v23  ;;  %6069 = vmatprep.subr.bf16.mxu0 %v10081_v24  ;;  %v10157_v23 = vld [vmem:[#allocation11 + $0x7e0] ss:$16 sps:$4 sm:$0xff]   ;;  %v10160_v24 = vld [vmem:[#allocation11 + $0x7e8] ss:$16 sps:$4 sm:$0xff]  }
 0x51b   : > { %6155 = vmatprep.subr.bf16.mxu1 %v10084_v25  ;;  %v10165_v25 = vld [vmem:[#allocation11 + $0x804] ss:$16 sps:$4 sm:$0xff]  }
 0x51d   : > { %6070 = vmatpush1.bf16.msra.mxu0 %v10079_v43  ;;  %v10168_v43 = vld [vmem:[#allocation11 + $0x80c] ss:$16 sps:$4 sm:$0xff]  }
 0x51e   : > { %6156 = vmatpush1.bf16.msra.mxu1 %v10082_v26  ;;  %6071 = vmatprep.subr.bf16.mxu0 %v10087_v27  ;;  %v10163_v26 = vld [vmem:[#allocation11 + $0x800] ss:$16 sps:$4 sm:$0xff]   ;;  %v10166_v27 = vld [vmem:[#allocation11 + $0x808] ss:$16 sps:$4 sm:$0xff]  }
 0x51f   : > { %6157 = vmatprep.subr.bf16.mxu1 %v10090_v28  ;;  %v10171_v28 = vld [vmem:[#allocation11 + $0x824] ss:$16 sps:$4 sm:$0xff]  }
 0x521   : > { %6072 = vmatpush1.bf16.msra.mxu0 %v10085_v29  ;;  %v10174_v29 = vld [vmem:[#allocation11 + $0x82c] ss:$16 sps:$4 sm:$0xff]  }
 0x522   : > { %6158 = vmatpush1.bf16.msra.mxu1 %v10088_v30  ;;  %6073 = vmatprep.subr.bf16.mxu0 %v10093_v31  ;;  %v10169_v30 = vld [vmem:[#allocation11 + $0x820] ss:$16 sps:$4 sm:$0xff]   ;;  %v10172_v31 = vld [vmem:[#allocation11 + $0x828] ss:$16 sps:$4 sm:$0xff]  }
 0x523   : > { %6159 = vmatprep.subr.bf16.mxu1 %v10096_v34  ;;  %v10177_v34 = vld [vmem:[#allocation11 + $0x844] ss:$16 sps:$4 sm:$0xff]  }
 0x525   : > { %6074 = vmatpush1.bf16.msra.mxu0 %v10091_v39  ;;  %v10180_v39 = vld [vmem:[#allocation11 + $0x84c] ss:$16 sps:$4 sm:$0xff]  }
 0x526   : > { %6160 = vmatpush1.bf16.msra.mxu1 %v10094_v44  ;;  %6075 = vmatprep.subr.bf16.mxu0 %v10099_v45  ;;  %v10175_v44 = vld [vmem:[#allocation11 + $0x840] ss:$16 sps:$4 sm:$0xff]   ;;  %v10178_v45 = vld [vmem:[#allocation11 + $0x848] ss:$16 sps:$4 sm:$0xff]  }
 0x527   : > { %6161 = vmatprep.subr.bf16.mxu1 %v10102_v42  ;;  %v10183_v42 = vld [vmem:[#allocation11 + $0x864] ss:$16 sps:$4 sm:$0xff]  }
 0x529   : > { %6076 = vmatpush1.bf16.msra.mxu0 %v10097_v46  ;;  %v10186_v46 = vld [vmem:[#allocation11 + $0x86c] ss:$16 sps:$4 sm:$0xff]  }
 0x52a   : > { %6162 = vmatpush1.bf16.msra.mxu1 %v10100_v47  ;;  %6077 = vmatprep.subr.bf16.mxu0 %v10105_v51  ;;  %v10181_v47 = vld [vmem:[#allocation11 + $0x860] ss:$16 sps:$4 sm:$0xff]   ;;  %v10184_v51 = vld [vmem:[#allocation11 + $0x868] ss:$16 sps:$4 sm:$0xff]  }
 0x52b   : > { %6163 = vmatprep.subr.bf16.mxu1 %v10108_v52  ;;  %v10189_v52 = vld [vmem:[#allocation11 + $0x884] ss:$16 sps:$4 sm:$0xff]  }
 0x52d   : > { %6078 = vmatpush1.bf16.msra.mxu0 %v10103_v53  ;;  %v10192_v53 = vld [vmem:[#allocation11 + $0x88c] ss:$16 sps:$4 sm:$0xff]  }
 0x52e   : > { %6164 = vmatpush1.bf16.msra.mxu1 %v10106_v55  ;;  %6079 = vmatprep.subr.bf16.mxu0 %v10111_v49  ;;  %v10190_v55 = vld [vmem:[#allocation11 + $0x888] ss:$16 sps:$4 sm:$0xff]   ;;  %v10195_v49 = vld [vmem:[#allocation11 + $0x8a4] ss:$16 sps:$4 sm:$0xff]  }
 0x52f   : > { %6165 = vmatprep.subr.bf16.mxu1 %v10114_v57  ;;  %v10198_v57 = vld [vmem:[#allocation11 + $0x8ac] ss:$16 sps:$4 sm:$0xff]  }
 0x531   : > { %6080 = vmatpush1.bf16.msra.mxu0 %v10109_v54  ;;  %v10193_v54 = vld [vmem:[#allocation11 + $0x8a0] ss:$16 sps:$4 sm:$0xff]  }
 0x532   : > { %6166 = vmatpush1.bf16.msra.mxu1 %v10112_v58  ;;  %6081 = vmatprep.subr.bf16.mxu0 %v10117_v56  ;;  %v10196_v58 = vld [vmem:[#allocation11 + $0x8a8] ss:$16 sps:$4 sm:$0xff]   ;;  %v10201_v56 = vld [vmem:[#allocation11 + $0x8c4] ss:$16 sps:$4 sm:$0xff]  }
 0x533   : > { %6167 = vmatprep.subr.bf16.mxu1 %v10120_v37  ;;  %v10204_v37 = vld [vmem:[#allocation11 + $0x8cc] ss:$16 sps:$4 sm:$0xff]  }
 0x535   : > { %6082 = vmatpush1.bf16.msra.mxu0 %v10115_v38  ;;  %v10199_v38 = vld [vmem:[#allocation11 + $0x8c0] ss:$16 sps:$4 sm:$0xff]  }
 0x536   : > { %6168 = vmatpush1.bf16.msra.mxu1 %v10118_v63  ;;  %6083 = vmatprep.subr.bf16.mxu0 %v10123_v60  ;;  %v10202_v63 = vld [vmem:[#allocation11 + $0x8c8] ss:$16 sps:$4 sm:$0xff]   ;;  %v10207_v60 = vld [vmem:[#allocation11 + $0x8e4] ss:$16 sps:$4 sm:$0xff]  }
 0x537   : > { %6169 = vmatprep.subr.bf16.mxu1 %v10126_v61  ;;  %v10210_v61 = vld [vmem:[#allocation11 + $0x8ec] ss:$16 sps:$4 sm:$0xff]  }
 0x539   : > { %6084 = vmatpush1.bf16.msra.mxu0 %v10121_v32  ;;  %v10205_v32 = vld [vmem:[#allocation11 + $0x8e0] ss:$16 sps:$4 sm:$0xff]  }
 0x53a   : > { %6170 = vmatpush1.bf16.msra.mxu1 %v10124_v33  ;;  %6085 = vmatprep.subr.bf16.mxu0 %v10129_v35  ;;  %v10208_v33 = vld [vmem:[#allocation11 + $0x8e8] ss:$16 sps:$4 sm:$0xff]   ;;  %v10213_v35 = vld [vmem:[#allocation11 + $0x904] ss:$16 sps:$4 sm:$0xff]  }
 0x53b   : > { %6171 = vmatprep.subr.bf16.mxu1 %v10132_v62  ;;  %v10216_v62 = vld [vmem:[#allocation11 + $0x90c] ss:$16 sps:$4 sm:$0xff]  }
 0x53d   : > { %6086 = vmatpush1.bf16.msra.mxu0 %v10127_v40  ;;  %v10211_v40 = vld [vmem:[#allocation11 + $0x900] ss:$16 sps:$4 sm:$0xff]  }
 0x53e   : > { %6172 = vmatpush1.bf16.msra.mxu1 %v10130_v36  ;;  %6087 = vmatprep.subr.bf16.mxu0 %v10135_v41  ;;  %v10214_v36 = vld [vmem:[#allocation11 + $0x908] ss:$16 sps:$4 sm:$0xff]   ;;  %v10219_v41 = vld [vmem:[#allocation11 + $0x924] ss:$16 sps:$4 sm:$0xff]  }
 0x53f   : > { %6173 = vmatprep.subr.bf16.mxu1 %v10138_v5  ;;  %v10222_v5 = vld [vmem:[#allocation11 + $0x92c] ss:$16 sps:$4 sm:$0xff]  }
 0x541   : > { %6088 = vmatpush1.bf16.msra.mxu0 %v10133_v6  ;;  %v10217_v6 = vld [vmem:[#allocation11 + $0x920] ss:$16 sps:$4 sm:$0xff]  }
 0x542   : > { %6174 = vmatpush1.bf16.msra.mxu1 %v10136_v7  ;;  %6089 = vmatprep.subr.bf16.mxu0 %v10141_v8  ;;  %v10220_v7 = vld [vmem:[#allocation11 + $0x928] ss:$16 sps:$4 sm:$0xff]   ;;  %v10225_v8 = vld [vmem:[#allocation11 + $0x944] ss:$16 sps:$4 sm:$0xff]  }
 0x543   : > { %6175 = vmatprep.subr.bf16.mxu1 %v10144_v9  ;;  %v10228_v9 = vld [vmem:[#allocation11 + $0x94c] ss:$16 sps:$4 sm:$0xff]  }
 0x545   : > { %6090 = vmatpush1.bf16.msra.mxu0 %v10139_v10  ;;  %v10223_v10 = vld [vmem:[#allocation11 + $0x940] ss:$16 sps:$4 sm:$0xff]  }
 0x546   : > { %6176 = vmatpush1.bf16.msra.mxu1 %v10142_v11  ;;  %6091 = vmatprep.subr.bf16.mxu0 %v10147_v12  ;;  %v10226_v11 = vld [vmem:[#allocation11 + $0x948] ss:$16 sps:$4 sm:$0xff]   ;;  %v10231_v12 = vld [vmem:[#allocation11 + $0x964] ss:$16 sps:$4 sm:$0xff]  }
 0x547   : > { %6177 = vmatprep.subr.bf16.mxu1 %v10150_v13  ;;  %v10234_v13 = vld [vmem:[#allocation11 + $0x96c] ss:$16 sps:$4 sm:$0xff]  }
 0x549   : > { %6092 = vmatpush1.bf16.msra.mxu0 %v10145_v14  ;;  %v10229_v14 = vld [vmem:[#allocation11 + $0x960] ss:$16 sps:$4 sm:$0xff]  }
 0x54a   : > { %6178 = vmatpush1.bf16.msra.mxu1 %v10148_v15  ;;  %6093 = vmatprep.subr.bf16.mxu0 %v10153_v17  ;;  %v10232_v15 = vld [vmem:[#allocation11 + $0x968] ss:$16 sps:$4 sm:$0xff]   ;;  %v10237_v17 = vld [vmem:[#allocation11 + $0x984] ss:$16 sps:$4 sm:$0xff]  }
 0x54b   : > { %6179 = vmatprep.subr.bf16.mxu1 %v10156_v22  ;;  %v10240_v22 = vld [vmem:[#allocation11 + $0x98c] ss:$16 sps:$4 sm:$0xff]  }
 0x54d   : > { %6094 = vmatpush1.bf16.msra.mxu0 %v10151_v19  ;;  %v10235_v19 = vld [vmem:[#allocation11 + $0x980] ss:$16 sps:$4 sm:$0xff]  }
 0x54e   : > { %6180 = vmatpush1.bf16.msra.mxu1 %v10154_v20  ;;  %6095 = vmatprep.subr.bf16.mxu0 %v10159_v16  ;;  %v10238_v20 = vld [vmem:[#allocation11 + $0x988] ss:$16 sps:$4 sm:$0xff]   ;;  %v10243_v16 = vld [vmem:[#allocation11 + $0x9a4] ss:$16 sps:$4 sm:$0xff]  }
 0x54f   : > { %6181 = vmatprep.subr.bf16.mxu1 %v10162_v21  ;;  %v10246_v21 = vld [vmem:[#allocation11 + $0x9ac] ss:$16 sps:$4 sm:$0xff]  }
 0x551   : > { %6096 = vmatpush1.bf16.msra.mxu0 %v10157_v23  ;;  %v10241_v23 = vld [vmem:[#allocation11 + $0x9a0] ss:$16 sps:$4 sm:$0xff]  }
 0x552   : > { %6182 = vmatpush1.bf16.msra.mxu1 %v10160_v24  ;;  %6962 = vmatprep.subr.bf16.mxu0 %v10165_v25  ;;  %v10244_v24 = vld [vmem:[#allocation11 + $0x9a8] ss:$16 sps:$4 sm:$0xff]   ;;  %v10249_v25 = vld [vmem:[#allocation11 + $0x9c4] ss:$16 sps:$4 sm:$0xff]  }
 0x553   : > { %7048 = vmatprep.subr.bf16.mxu1 %v10168_v43  ;;  %v10252_v43 = vld [vmem:[#allocation11 + $0x9cc] ss:$16 sps:$4 sm:$0xff]  }
 0x554   : > { %6098 = vmatmul.mubr.bf16.vlgmr.msra.gmra.mrb[24].mxu0 %v11267_v0 }
 0x555   : > { %6184 = vmatmul.mubr.bf16.vlgmr.msra.gmra.mrb[24].mxu1 %v11267_v0  ;;  %6963 = vmatpush1.bf16.msra.mxu0 %v10163_v26  ;;  %v10247_v26 = vld [vmem:[#allocation11 + $0x9c0] ss:$16 sps:$4 sm:$0xff]  }
 0x556   : > { %6994 = vmatprep.mubr.bf16.mxu0 %v11269_v2  ;;  %7049 = vmatpush1.bf16.msra.mxu1 %v10166_v27  ;;  %v10250_v27 = vld [vmem:[#allocation11 + $0x9c8] ss:$16 sps:$4 sm:$0xff]  }
 0x557   : > { %7080 = vmatprep.mubr.bf16.mxu1 %v11269_v2  ;;  %6964 = vmatprep.subr.bf16.mxu0 %v10171_v28  ;;  %v10187_v2 = vld [vmem:[#allocation11 + $0x880] ss:$16 sps:$4 sm:$0xff]   ;;  %v10255_v28 = vld [vmem:[#allocation11 + $0x9e4] ss:$16 sps:$4 sm:$0xff]  }
 0x558   : > { %7050 = vmatprep.subr.bf16.mxu1 %v10174_v29  ;;  %v10258_v29 = vld [vmem:[#allocation11 + $0x9ec] ss:$16 sps:$4 sm:$0xff]  }
 0x559   : > { %6965 = vmatpush1.bf16.msra.mxu0 %v10169_v30  ;;  %v10253_v30 = vld [vmem:[#allocation11 + $0x9e0] ss:$16 sps:$4 sm:$0xff]  }
 0x55a   : > { %7051 = vmatpush1.bf16.msra.mxu1 %v10172_v31  ;;  %6966 = vmatprep.subr.bf16.mxu0 %v10177_v34  ;;  %v10256_v31 = vld [vmem:[#allocation11 + $0x9e8] ss:$16 sps:$4 sm:$0xff]   ;;  %v10261_v34 = vld [vmem:[#allocation11 + $0xa04] ss:$16 sps:$4 sm:$0xff]  }
 0x55b   : > { %7052 = vmatprep.subr.bf16.mxu1 %v10180_v39  ;;  %v10264_v39 = vld [vmem:[#allocation11 + $0xa0c] ss:$16 sps:$4 sm:$0xff]  }
 0x55d   : > { %6967 = vmatpush1.bf16.msra.mxu0 %v10175_v44  ;;  %v10259_v44 = vld [vmem:[#allocation11 + $0xa00] ss:$16 sps:$4 sm:$0xff]  }
 0x55e   : > { %7053 = vmatpush1.bf16.msra.mxu1 %v10178_v45  ;;  %6968 = vmatprep.subr.bf16.mxu0 %v10183_v42  ;;  %v10262_v45 = vld [vmem:[#allocation11 + $0xa08] ss:$16 sps:$4 sm:$0xff]   ;;  %v10267_v42 = vld [vmem:[#allocation11 + $0xa24] ss:$16 sps:$4 sm:$0xff]  }
 0x55f   : > { %7054 = vmatprep.subr.bf16.mxu1 %v10186_v46  ;;  %v10270_v46 = vld [vmem:[#allocation11 + $0xa2c] ss:$16 sps:$4 sm:$0xff]  }
 0x561   : > { %6969 = vmatpush1.bf16.msra.mxu0 %v10181_v47  ;;  %v10265_v47 = vld [vmem:[#allocation11 + $0xa20] ss:$16 sps:$4 sm:$0xff]  }
 0x562   : > { %7055 = vmatpush1.bf16.msra.mxu1 %v10184_v51  ;;  %6970 = vmatprep.subr.bf16.mxu0 %v10189_v52  ;;  %v10268_v51 = vld [vmem:[#allocation11 + $0xa28] ss:$16 sps:$4 sm:$0xff]   ;;  %v10273_v52 = vld [vmem:[#allocation11 + $0xa44] ss:$16 sps:$4 sm:$0xff]  }
 0x563   : > { %7056 = vmatprep.subr.bf16.mxu1 %v10192_v53  ;;  %v10276_v53 = vld [vmem:[#allocation11 + $0xa4c] ss:$16 sps:$4 sm:$0xff]  }
 0x565   : > { %6971 = vmatpush1.bf16.msra.mxu0 %v10187_v2  ;;  %v10271_v2 = vld [vmem:[#allocation11 + $0xa40] ss:$16 sps:$4 sm:$0xff]  }
 0x566   : > { %7057 = vmatpush1.bf16.msra.mxu1 %v10190_v55  ;;  %6972 = vmatprep.subr.bf16.mxu0 %v10195_v49  ;;  %v10274_v55 = vld [vmem:[#allocation11 + $0xa48] ss:$16 sps:$4 sm:$0xff]   ;;  %v10279_v49 = vld [vmem:[#allocation11 + $0xa64] ss:$16 sps:$4 sm:$0xff]  }
 0x567   : > { %7058 = vmatprep.subr.bf16.mxu1 %v10198_v57  ;;  %v10277_v57 = vld [vmem:[#allocation11 + $0xa60] ss:$16 sps:$4 sm:$0xff]  }
 0x569   : > { %6973 = vmatpush1.bf16.msra.mxu0 %v10193_v54  ;;  %v10280_v54 = vld [vmem:[#allocation11 + $0xa68] ss:$16 sps:$4 sm:$0xff]  }
 0x56a   : > { %7059 = vmatpush1.bf16.msra.mxu1 %v10196_v58  ;;  %6974 = vmatprep.subr.bf16.mxu0 %v10201_v56  ;;  %v10285_v58 = vld [vmem:[#allocation11 + $0xa84] ss:$16 sps:$4 sm:$0xff]   ;;  %v10288_v56 = vld [vmem:[#allocation11 + $0xa8c] ss:$16 sps:$4 sm:$0xff]  }
 0x56b   : > { %7060 = vmatprep.subr.bf16.mxu1 %v10204_v37  ;;  %v10286_v37 = vld [vmem:[#allocation11 + $0xa88] ss:$16 sps:$4 sm:$0xff]  }
 0x56d   : > { %6975 = vmatpush1.bf16.msra.mxu0 %v10199_v38  ;;  %v10291_v38 = vld [vmem:[#allocation11 + $0xaa4] ss:$16 sps:$4 sm:$0xff]  }
 0x56e   : > { %7061 = vmatpush1.bf16.msra.mxu1 %v10202_v63  ;;  %6976 = vmatprep.subr.bf16.mxu0 %v10207_v60  ;;  %v10294_v63 = vld [vmem:[#allocation11 + $0xaac] ss:$16 sps:$4 sm:$0xff]   ;;  %v10289_v60 = vld [vmem:[#allocation11 + $0xaa0] ss:$16 sps:$4 sm:$0xff]  }
 0x56f   : > { %7062 = vmatprep.subr.bf16.mxu1 %v10210_v61  ;;  %v10292_v61 = vld [vmem:[#allocation11 + $0xaa8] ss:$16 sps:$4 sm:$0xff]  }
 0x571   : > { %6977 = vmatpush1.bf16.msra.mxu0 %v10205_v32  ;;  %v10297_v32 = vld [vmem:[#allocation11 + $0xac4] ss:$16 sps:$4 sm:$0xff]  }
 0x572   : > { %7063 = vmatpush1.bf16.msra.mxu1 %v10208_v33  ;;  %6978 = vmatprep.subr.bf16.mxu0 %v10213_v35 }
 0x573   : > { %7064 = vmatprep.subr.bf16.mxu1 %v10216_v62  ;;  %v10300_v62 = vld [vmem:[#allocation11 + $0xacc] ss:$16 sps:$4 sm:$0xff]  }
 0x575   : > { %6979 = vmatpush1.bf16.msra.mxu0 %v10211_v40 }
 0x576   : > { %7065 = vmatpush1.bf16.msra.mxu1 %v10214_v36  ;;  %6980 = vmatprep.subr.bf16.mxu0 %v10219_v41 }
 0x577   : > { %7066 = vmatprep.subr.bf16.mxu1 %v10222_v5 }
 0x579   : > { %6981 = vmatpush1.bf16.msra.mxu0 %v10217_v6  ;;  %v10295_v6 = vld [vmem:[#allocation11 + $0xac0] ss:$16 sps:$4 sm:$0xff]  }
 0x57a   : > { %7067 = vmatpush1.bf16.msra.mxu1 %v10220_v7  ;;  %6982 = vmatprep.subr.bf16.mxu0 %v10225_v8 }
 0x57b   : > { %7068 = vmatprep.subr.bf16.mxu1 %v10228_v9  ;;  %v10298_v9 = vld [vmem:[#allocation11 + $0xac8] ss:$16 sps:$4 sm:$0xff]  }
 0x57d   : > { %6983 = vmatpush1.bf16.msra.mxu0 %v10223_v10  ;;  %v10303_v10 = vld [vmem:[#allocation11 + $0xae4] ss:$16 sps:$4 sm:$0xff]  }
 0x57e   : > { %7069 = vmatpush1.bf16.msra.mxu1 %v10226_v11  ;;  %6984 = vmatprep.subr.bf16.mxu0 %v10231_v12  ;;  %v10306_v11 = vld [vmem:[#allocation11 + $0xaec] ss:$16 sps:$4 sm:$0xff]   ;;  %v10301_v12 = vld [vmem:[#allocation11 + $0xae0] ss:$16 sps:$4 sm:$0xff]  }
 0x57f   : > { %7070 = vmatprep.subr.bf16.mxu1 %v10234_v13  ;;  %v10304_v13 = vld [vmem:[#allocation11 + $0xae8] ss:$16 sps:$4 sm:$0xff]  }
 0x581   : > { %6985 = vmatpush1.bf16.msra.mxu0 %v10229_v14  ;;  %v10309_v14 = vld [vmem:[#allocation11 + $0xb04] ss:$16 sps:$4 sm:$0xff]  }
 0x582   : > { %7071 = vmatpush1.bf16.msra.mxu1 %v10232_v15  ;;  %6986 = vmatprep.subr.bf16.mxu0 %v10237_v17  ;;  %v10312_v15 = vld [vmem:[#allocation11 + $0xb0c] ss:$16 sps:$4 sm:$0xff]   ;;  %v10307_v17 = vld [vmem:[#allocation11 + $0xb00] ss:$16 sps:$4 sm:$0xff]  }
 0x583   : > { %7072 = vmatprep.subr.bf16.mxu1 %v10240_v22  ;;  %v10310_v22 = vld [vmem:[#allocation11 + $0xb08] ss:$16 sps:$4 sm:$0xff]  }
 0x585   : > { %6987 = vmatpush1.bf16.msra.mxu0 %v10235_v19  ;;  %v10315_v19 = vld [vmem:[#allocation11 + $0xb24] ss:$16 sps:$4 sm:$0xff]  }
 0x586   : > { %7073 = vmatpush1.bf16.msra.mxu1 %v10238_v20  ;;  %6988 = vmatprep.subr.bf16.mxu0 %v10243_v16  ;;  %v10318_v20 = vld [vmem:[#allocation11 + $0xb2c] ss:$16 sps:$4 sm:$0xff]   ;;  %v10313_v16 = vld [vmem:[#allocation11 + $0xb20] ss:$16 sps:$4 sm:$0xff]  }
 0x587   : > { %7074 = vmatprep.subr.bf16.mxu1 %v10246_v21  ;;  %v10316_v21 = vld [vmem:[#allocation11 + $0xb28] ss:$16 sps:$4 sm:$0xff]  }
 0x589   : > { %6989 = vmatpush1.bf16.msra.mxu0 %v10241_v23  ;;  %v10321_v23 = vld [vmem:[#allocation11 + $0xb44] ss:$16 sps:$4 sm:$0xff]  }
 0x58a   : > { %7075 = vmatpush1.bf16.msra.mxu1 %v10244_v24  ;;  %6990 = vmatprep.subr.bf16.mxu0 %v10249_v25  ;;  %v10324_v24 = vld [vmem:[#allocation11 + $0xb4c] ss:$16 sps:$4 sm:$0xff]   ;;  %v10319_v25 = vld [vmem:[#allocation11 + $0xb40] ss:$16 sps:$4 sm:$0xff]  }
 0x58b   : > { %7076 = vmatprep.subr.bf16.mxu1 %v10252_v43  ;;  %v10322_v43 = vld [vmem:[#allocation11 + $0xb48] ss:$16 sps:$4 sm:$0xff]  }
 0x58d   : > { %6991 = vmatpush1.bf16.msra.mxu0 %v10247_v26  ;;  %v10327_v26 = vld [vmem:[#allocation11 + $0xb64] ss:$16 sps:$4 sm:$0xff]  }
 0x58e   : > { %7077 = vmatpush1.bf16.msra.mxu1 %v10250_v27  ;;  %6992 = vmatprep.subr.bf16.mxu0 %v10255_v28  ;;  %v10330_v27 = vld [vmem:[#allocation11 + $0xb6c] ss:$16 sps:$4 sm:$0xff]   ;;  %v10325_v28 = vld [vmem:[#allocation11 + $0xb60] ss:$16 sps:$4 sm:$0xff]  }
 0x58f   : > { %7078 = vmatprep.subr.bf16.mxu1 %v10258_v29  ;;  %v10328_v29 = vld [vmem:[#allocation11 + $0xb68] ss:$16 sps:$4 sm:$0xff]  }
 0x591   : > { %6993 = vmatpush1.bf16.msra.mxu0 %v10253_v30  ;;  %v10333_v30 = vld [vmem:[#allocation11 + $0xb84] ss:$16 sps:$4 sm:$0xff]  }
 0x592   : > { %7079 = vmatpush1.bf16.msra.mxu1 %v10256_v31  ;;  %7005 = vmatprep.subr.bf16.mxu0 %v10261_v34  ;;  %v10336_v31 = vld [vmem:[#allocation11 + $0xb8c] ss:$16 sps:$4 sm:$0xff]   ;;  %v10331_v34 = vld [vmem:[#allocation11 + $0xb80] ss:$16 sps:$4 sm:$0xff]  }
 0x593   : > { %7091 = vmatprep.subr.bf16.mxu1 %v10264_v39  ;;  %v10334_v39 = vld [vmem:[#allocation11 + $0xb88] ss:$16 sps:$4 sm:$0xff]  }
 0x594   : > { %6995 = vmatmul.mubr.bf16.vlgmr.msra.gmra.mrb[28].mxu0 %v11265_v59 }
 0x595   : > { %7081 = vmatmul.mubr.bf16.vlgmr.msra.gmra.mrb[28].mxu1 %v11265_v59  ;;  %7006 = vmatpush1.bf16.msra.mxu0 %v10259_v44  ;;  %v10282_v59 = vld [vmem:[#allocation11 + $0xa6c] ss:$16 sps:$4 sm:$0xff]   ;;  %v10339_v44 = vld [vmem:[#allocation11 + $0xba4] ss:$16 sps:$4 sm:$0xff]  }
 0x596   : > { %7037 = vmatprep.mubr.bf16.mxu0 %v11273_v3  ;;  %7092 = vmatpush1.bf16.msra.mxu1 %v10262_v45  ;;  %v10342_v45 = vld [vmem:[#allocation11 + $0xbac] ss:$16 sps:$4 sm:$0xff]  }
 0x597   : > { %7123 = vmatprep.mubr.bf16.mxu1 %v11273_v3  ;;  %7007 = vmatprep.subr.bf16.mxu0 %v10267_v42  ;;  %v10283_v3 = vld [vmem:[#allocation11 + $0xa80] ss:$16 sps:$4 sm:$0xff]  }
 0x598   : > { %7093 = vmatprep.subr.bf16.mxu1 %v10270_v46  ;;  %v10337_v42 = vld [vmem:[#allocation11 + $0xba0] ss:$16 sps:$4 sm:$0xff]   ;;  %v10340_v46 = vld [vmem:[#allocation11 + $0xba8] ss:$16 sps:$4 sm:$0xff]  }
 0x599   : > { %7008 = vmatpush1.bf16.msra.mxu0 %v10265_v47  ;;  %v10345_v47 = vld [vmem:[#allocation11 + $0xbc4] ss:$16 sps:$4 sm:$0xff]  }
 0x59a   : > { %7094 = vmatpush1.bf16.msra.mxu1 %v10268_v51  ;;  %7009 = vmatprep.subr.bf16.mxu0 %v10273_v52  ;;  %v10348_v51 = vld [vmem:[#allocation11 + $0xbcc] ss:$16 sps:$4 sm:$0xff]   ;;  %v10343_v52 = vld [vmem:[#allocation11 + $0xbc0] ss:$16 sps:$4 sm:$0xff]  }
 0x59b   : > { %7095 = vmatprep.subr.bf16.mxu1 %v10276_v53  ;;  %v10346_v53 = vld [vmem:[#allocation11 + $0xbc8] ss:$16 sps:$4 sm:$0xff]  }
 0x59d   : > { %7010 = vmatpush1.bf16.msra.mxu0 %v10271_v2  ;;  %v10351_v2 = vld [vmem:[#allocation11 + $0xbe4] ss:$16 sps:$4 sm:$0xff]  }
 0x59e   : > { %7096 = vmatpush1.bf16.msra.mxu1 %v10274_v55  ;;  %7011 = vmatprep.subr.bf16.mxu0 %v10279_v49  ;;  %v10354_v55 = vld [vmem:[#allocation11 + $0xbec] ss:$16 sps:$4 sm:$0xff]   ;;  %v10349_v49 = vld [vmem:[#allocation11 + $0xbe0] ss:$16 sps:$4 sm:$0xff]  }
 0x59f   : > { %7097 = vmatprep.subr.bf16.mxu1 %v10282_v59  ;;  %v10352_v59 = vld [vmem:[#allocation11 + $0xbe8] ss:$16 sps:$4 sm:$0xff]  }
 0x5a1   : > { %7012 = vmatpush1.bf16.msra.mxu0 %v10277_v57 }
 0x5a2   : > { %7098 = vmatpush1.bf16.msra.mxu1 %v10280_v54  ;;  %7013 = vmatprep.subr.bf16.mxu0 %v10285_v58 }
 0x5a3   : > { %7099 = vmatprep.subr.bf16.mxu1 %v10288_v56 }
 0x5a5   : > { %7014 = vmatpush1.bf16.msra.mxu0 %v10283_v3 }
 0x5a6   : > { %7100 = vmatpush1.bf16.msra.mxu1 %v10286_v37  ;;  %7015 = vmatprep.subr.bf16.mxu0 %v10291_v38 }
 0x5a7   : > { %v11295_v33 = vpop.f32.mrb[20].mxu0  ;;  %v11297_v35 = vpop.f32.mrb[20].mxu1  ;;  %7101 = vmatprep.subr.bf16.mxu1 %v10294_v63 }
 0x5a8   : > { %v11299_v40 = vpop.f32.mrb[21].mxu0  ;;  %v11301_v36 = vpop.f32.mrb[21].mxu1 }
 0x5a9   : > { %v11303_v41 = vpop.f32.mrb[22].mxu0  ;;  %v11305_v5 = vpop.f32.mrb[22].mxu1  ;;  %7016 = vmatpush1.bf16.msra.mxu0 %v10289_v60 }
 0x5aa   : > { %7102 = vmatpush1.bf16.msra.mxu1 %v10292_v61  ;;  %v11307_v7 = vpop.f32.mrb[23].mxu0  ;;  %v11309_v8 = vpop.f32.mrb[23].mxu1  ;;  %7017 = vmatprep.subr.bf16.mxu0 %v10297_v32 }
 0x5ab   : > { %7103 = vmatprep.subr.bf16.mxu1 %v10300_v62 }
 0x5ad   : > { %7018 = vmatpush1.bf16.msra.mxu0 %v10295_v6 }
 0x5ae   : > { %7104 = vmatpush1.bf16.msra.mxu1 %v10298_v9  ;;  %7019 = vmatprep.subr.bf16.mxu0 %v10303_v10 }
 0x5af   : > { %7105 = vmatprep.subr.bf16.mxu1 %v10306_v11 }
 0x5b1   : > { %7020 = vmatpush1.bf16.msra.mxu0 %v10301_v12 }
 0x5b2   : > { %7106 = vmatpush1.bf16.msra.mxu1 %v10304_v13  ;;  %7021 = vmatprep.subr.bf16.mxu0 %v10309_v14 }
 0x5b3   : > { %7107 = vmatprep.subr.bf16.mxu1 %v10312_v15 }
 0x5b5   : > { %7022 = vmatpush1.bf16.msra.mxu0 %v10307_v17 }
 0x5b6   : > { %7108 = vmatpush1.bf16.msra.mxu1 %v10310_v22  ;;  %7023 = vmatprep.subr.bf16.mxu0 %v10315_v19 }
 0x5b7   : > { %7109 = vmatprep.subr.bf16.mxu1 %v10318_v20 }
 0x5b9   : > { %7024 = vmatpush1.bf16.msra.mxu0 %v10313_v16 }
 0x5ba   : > { %7110 = vmatpush1.bf16.msra.mxu1 %v10316_v21  ;;  %7025 = vmatprep.subr.bf16.mxu0 %v10321_v23  ;;  %v7206_v21 = vld [vmem:[#allocation13] sm:$0xf] }
 0x5bb   : > { %7111 = vmatprep.subr.bf16.mxu1 %v10324_v24 }
 0x5bd   : > { %7026 = vmatpush1.bf16.msra.mxu0 %v10319_v25 }
 0x5be   : > { %7112 = vmatpush1.bf16.msra.mxu1 %v10322_v43  ;;  %7027 = vmatprep.subr.bf16.mxu0 %v10327_v26  ;;  %v7211_v43 = vrot.slane %v7206_v21, %v11182_v48 }
 0x5bf   : > { %7113 = vmatprep.subr.bf16.mxu1 %v10330_v27 }
 0x5c1   : > { %7028 = vmatpush1.bf16.msra.mxu0 %v10325_v28  ;;  %v7215_v28 = vrot.slane %v7206_v21, %v11184_v50 }
 0x5c2   : > { %7114 = vmatpush1.bf16.msra.mxu1 %v10328_v29  ;;  %7029 = vmatprep.subr.bf16.mxu0 %v10333_v30 }
 0x5c3   : > { %7115 = vmatprep.subr.bf16.mxu1 %v10336_v31 }
 0x5c5   : > { %7030 = vmatpush1.bf16.msra.mxu0 %v10331_v34 }
 0x5c6   : > { %7116 = vmatpush1.bf16.msra.mxu1 %v10334_v39  ;;  %7031 = vmatprep.subr.bf16.mxu0 %v10339_v44 }
 0x5c7   : > { %7117 = vmatprep.subr.bf16.mxu1 %v10342_v45 }
 0x5c9   : > { %7032 = vmatpush1.bf16.msra.mxu0 %v10337_v42 }
 0x5ca   : > { %7118 = vmatpush1.bf16.msra.mxu1 %v10340_v46  ;;  %7033 = vmatprep.subr.bf16.mxu0 %v10345_v47 }
 0x5cb   : > { %7119 = vmatprep.subr.bf16.mxu1 %v10348_v51 }
 0x5cd   : > { %7034 = vmatpush1.bf16.msra.mxu0 %v10343_v52 }
 0x5ce   : > { %7120 = vmatpush1.bf16.msra.mxu1 %v10346_v53  ;;  %7035 = vmatprep.subr.bf16.mxu0 %v10351_v2 }
 0x5cf   : > { %7121 = vmatprep.subr.bf16.mxu1 %v10354_v55 }
 0x5d1   : > { %7036 = vmatpush1.bf16.msra.mxu0 %v10349_v49 }
 0x5d2   : > { %7122 = vmatpush1.bf16.msra.mxu1 %v10352_v59 }
 0x5d4   : > { %7038 = vmatmul.mubr.bf16.vlgmr.msra.gmra.mrb[28].mxu0 %v11267_v0 }
 0x5d5   : > { %7124 = vmatmul.mubr.bf16.vlgmr.msra.gmra.mrb[28].mxu1 %v11267_v0  ;;  %7289 = vmatprep.mubr.bf16.mxu0 %v10773_v18 }
 0x5d6   : > { %7330 = vmatprep.mubr.bf16.mxu1 %v10773_v18 }
 0x627   : > { %v6099_v57 = vpop.f32.mrb[24].mxu0 }
 0x628   : > { %v6185_v54 = vpop.f32.mrb[24].mxu1  ;;  %v6101_v58 = vpop.f32.mrb[25].mxu0  ;;  %v7142_v37 = vrot.slane %v6099_v57, 1 }
 0x629   : > { %v6187_v56 = vpop.f32.mrb[25].mxu1  ;;  %v6103_v3 = vpop.f32.mrb[26].mxu0  ;;  %v7148_v61 = vrot.slane %v6185_v54, 1  ;;  %v7145_v32 = vrot.slane %v6101_v58, 1 }
 0x62a   : > { %v7143_v38 = vrot.slane %v6103_v3, 1  ;;  %v6189_v63 = vpop.f32.mrb[26].mxu1  ;;  %v6105_v60 = vpop.f32.mrb[27].mxu0  ;;  %v7151_v10 = vrot.slane %v6187_v56, 1 }
 0x62b   : > { %v7149_v62 = vrot.slane %v6189_v63, 1  ;;  %v7146_v6 = vrot.slane %v6105_v60, 1  ;;  %v6191_v9 = vpop.f32.mrb[27].mxu1  ;;  %v10355_v60 = vld [vmem:[#allocation16 + $0x40] sm:$0xff]  }
 0x62c   : > { %v7144_v0 = vsel %vm4206_vm0, %v7142_v37, %v7143_v38  ;;  %v7166_v11 = vadd.f32 %v7143_v38, %v11303_v41  ;;  %v7152_v18 = vrot.slane %v6191_v9, 1  ;;  %v7236_v9 = vld [vmem:[#allocation14] sm:$0x1] }
 0x62d   : > { %v7162_v12 = vadd.f32 %v7144_v0, %v11295_v33  ;;  %v7150_v13 = vsel %vm4206_vm0, %v7148_v61, %v7149_v62  ;;  %v7168_v14 = vadd.f32 %v7149_v62, %v11305_v5  ;;  %v7147_v15 = vsel %vm4206_vm0, %v7145_v32, %v7146_v6  ;;  %v10359_v0 = vld [vmem:[#allocation16 + $0x48] sm:$0xff]  }
 0x62e   : > { %v7164_v17 = vadd.f32 %v7150_v13, %v11297_v35  ;;  %v7163_v22 = vadd.f32 %v7147_v15, %v11299_v40  ;;  %v7167_v19 = vadd.f32 %v7146_v6, %v11307_v7  ;;  %v7153_v20 = vsel %vm4206_vm0, %v7151_v10, %v7152_v18  ;;  %v10357_v6 = vld [vmem:[#allocation16 + $0xc0] sm:$0xff]   ;;  %v10363_v13 = vld [vmem:[#allocation16 + $0x50] sm:$0xff]  }
 0x62f   : > { %v7165_v16 = vadd.f32 %v7153_v20, %v11301_v36  ;;  %v7169_v41 = vadd.f32 %v7152_v18, %v11309_v8  ;;  %v7219_v35 = vrot.slane %v7206_v21, %v11188_v1  ;;  %v7223_v36 = vrot.slane %v7206_v21, %v11190_v4  ;;  %v10356_v10 = vld [vmem:[#allocation16] sm:$0xff]   ;;  %v10361_v18 = vld [vmem:[#allocation16 + $0xc8] sm:$0xff]   ;;  %v10365_v15 = vld [vmem:[#allocation16 + $0xd0] sm:$0xff]  }
 0x630   : > { %v10369_v20 = vld [vmem:[#allocation16 + $0xd8] sm:$0xff]  }
 0x631   : > { %v10370_v21 = vld [vmem:[#allocation16 + $0x98] sm:$0xff]  }
 0x6a7   : > { %v7039_v33 = vpop.f32.mrb[28].mxu0 }
 0x6a8   : > { %v7125_v23 = vpop.f32.mrb[28].mxu1  ;;  %v7041_v24 = vpop.f32.mrb[29].mxu0  ;;  %v7178_v26 = vrot.slane %v7039_v33, 2  ;;  %v10373_v33 = vld [vmem:[#allocation16 + $0xe0] sm:$0xff]  }
 0x6a9   : > { %v7127_v25 = vpop.f32.mrb[29].mxu1  ;;  %v7043_v5 = vpop.f32.mrb[30].mxu0  ;;  %v7184_v29 = vrot.slane %v7125_v23, 2  ;;  %v7181_v8 = vrot.slane %v7041_v24, 2  ;;  %v10372_v23 = vld [vmem:[#allocation16 + $0x20] sm:$0xff]   ;;  %v10375_v24 = vld [vmem:[#allocation16 + $0x68] sm:$0xff]  }
 0x6aa   : > { %v7179_v40 = vrot.slane %v7043_v5, 2  ;;  %v7129_v27 = vpop.f32.mrb[30].mxu1  ;;  %v7045_v7 = vpop.f32.mrb[31].mxu0  ;;  %v7187_v39 = vrot.slane %v7127_v25, 2  ;;  %v10374_v25 = vld [vmem:[#allocation16 + $0xa0] sm:$0xff]   ;;  %v10377_v5 = vld [vmem:[#allocation16 + $0xe8] sm:$0xff]  }
 0x6ab   : > { %v7185_v30 = vrot.slane %v7129_v27, 2  ;;  %v7182_v31 = vrot.slane %v7045_v7, 2  ;;  %v7131_v34 = vpop.f32.mrb[31].mxu1  ;;  %v10380_v27 = vld [vmem:[#allocation16 + $0x30] sm:$0xff]  }
 0x6ac   : > { %v7180_v44 = vsel %vm4243_vm1, %v7178_v26, %v7179_v40  ;;  %v7202_v45 = vadd.f32 %v7179_v40, %v7166_v11  ;;  %v7188_v48 = vrot.slane %v7131_v34, 2  ;;  %v10358_v11 = vld [vmem:[#allocation16 + $0x80] sm:$0xff]   ;;  %v10378_v26 = vld [vmem:[#allocation16 + $0xa8] sm:$0xff]   ;;  %v10381_v40 = vld [vmem:[#allocation16 + $0xf0] sm:$0xff]  }
 0x6ad   : > { %v7198_v42 = vadd.f32 %v7180_v44, %v7162_v12  ;;  %v7186_v1 = vsel %vm4243_vm1, %v7184_v29, %v7185_v30  ;;  %v7204_v46 = vadd.f32 %v7185_v30, %v7168_v14  ;;  %v7183_v47 = vsel %vm4243_vm1, %v7181_v8, %v7182_v31  ;;  %v10360_v12 = vld [vmem:[#allocation16 + $0x8] sm:$0xff]   ;;  %v10382_v7 = vld [vmem:[#allocation16 + $0xb0] sm:$0xff]   ;;  %v10384_v29 = vld [vmem:[#allocation16 + $0x38] sm:$0xff]  }
 0x6ae   : > { %v7232_v51 = vadd.f32 %v7211_v43, %v7202_v45  ;;  %v7200_v50 = vadd.f32 %v7186_v1, %v7164_v17  ;;  %v7199_v52 = vadd.f32 %v7183_v47, %v7163_v22  ;;  %v7203_v4 = vadd.f32 %v7182_v31, %v7167_v19  ;;  %v10362_v14 = vld [vmem:[#allocation16 + $0x88] sm:$0xff]   ;;  %v10364_v17 = vld [vmem:[#allocation16 + $0x10] sm:$0xff]   ;;  %v10367_v22 = vld [vmem:[#allocation16 + $0x58] sm:$0xff]  }
 0x6af   : > { %v7234_v53 = vadd.f32 %v7219_v35, %v7204_v46  ;;  %v7189_v2 = vsel %vm4243_vm1, %v7187_v39, %v7188_v48  ;;  %v7205_v55 = vadd.f32 %v7188_v48, %v7169_v41  ;;  %v7228_v49 = vadd.f32 %v7211_v43, %v7198_v42  ;;  %v10366_v19 = vld [vmem:[#allocation16 + $0x90] sm:$0xff]   ;;  %v10371_v41 = vld [vmem:[#allocation16 + $0x60] sm:$0xff]   ;;  %v10376_v43 = vld [vmem:[#allocation16 + $0x28] sm:$0xff]  }
 0x6b0   : > { %v7229_v59 = vadd.f32 %v7215_v28, %v7199_v52  ;;  %v7233_v57 = vadd.f32 %v7215_v28, %v7203_v4  ;;  %v7201_v54 = vadd.f32 %v7189_v2, %v7165_v16  ;;  %v7230_v58 = vadd.f32 %v7219_v35, %v7200_v50  ;;  %v10368_v16 = vld [vmem:[#allocation16 + $0x18] sm:$0xff]   ;;  %v10379_v35 = vld [vmem:[#allocation16 + $0x70] sm:$0xff]  }
 0x6b1   : > { %v7235_v56 = vadd.f32 %v7223_v36, %v7205_v55  ;;  %v7237_v3 = vpack.c.bf16 %v7232_v51, %v7228_v49  ;;  %v10383_v28 = vld [vmem:[#allocation16 + $0x78] sm:$0xff]   ;;  %v8759_v55 = vld [vmem:[#allocation17] ss:$0 sm:$0xff] }
 0x6b2   : > { %v7238_v37 = vpack.c.bf16 %v7233_v57, %v7229_v59  ;;  %v7231_v38 = vadd.f32 %v7223_v36, %v7201_v54  ;;  %v7239_v63 = vpack.c.bf16 %v7234_v53, %v7230_v58  ;;  %v10385_v36 = vld [vmem:[#allocation16 + $0xf8] sm:$0xff]  }
 0x6b3   : > { %v7246_v61 = vsel %vm4243_vm1, %v7237_v3, 0  ;;  %v10386_v8 = vld [vmem:[#allocation16 + $0xb8] sm:$0xff]  }
 0x6b4   : > { %v7240_v32 = vpack.c.bf16 %v7235_v56, %v7231_v38  ;;  %8755 = vmatprep.subr.msk.bf16.mxu0 %vm4243_vm1, %v7238_v37  ;;  %v7252_v62 = vsel %vm4243_vm1, %v7239_v63, 0 }
 0x6b5   : > { %7258 = vmatpush1.bf16.msra.mxu0 %v7246_v61 }
 0x6b6   : > { %8757 = vmatprep.subr.msk.bf16.mxu1 %vm4243_vm1, %v7240_v32  ;;  %8796 = vmatprep.subr.bf16.mxu0 %v10355_v60 }
 0x6b7   : > { %7299 = vmatpush1.bf16.msra.mxu1 %v7252_v62 }
 0x6b8   : > { %8756 = vmatmul.mubr.msk.bf16.vlgmr.msra.gmra.mrb[32].mxu0 %vm7241_vm2, %v7236_v9  ;;  %8818 = vmatprep.subr.bf16.mxu1 %v10357_v6 }
 0x6b9   : > { %8797 = vmatpush3.bf16.msra.mxu0 %v10356_v10 }
 0x6ba   : > { %8758 = vmatmul.mubr.msk.bf16.vlgmr.msra.gmra.mrb[32].mxu1 %vm7241_vm2, %v7236_v9  ;;  %8798 = vmatprep.subr.bf16.mxu0 %v10359_v0 }
 0x6bb   : > { %8819 = vmatpush3.bf16.msra.mxu1 %v10358_v11 }
 0x6bc   : > { %8820 = vmatprep.subr.bf16.mxu1 %v10361_v18 }
 0x6bd   : > { %8799 = vmatpush3.bf16.msra.mxu0 %v10360_v12 }
 0x6be   : > { %8800 = vmatprep.subr.bf16.mxu0 %v10363_v13 }
 0x6bf   : > { %8821 = vmatpush3.bf16.msra.mxu1 %v10362_v14 }
 0x6c0   : > { %8822 = vmatprep.subr.bf16.mxu1 %v10365_v15 }
 0x6c1   : > { %8801 = vmatpush3.bf16.msra.mxu0 %v10364_v17 }
 0x6c2   : > { %8802 = vmatprep.subr.bf16.mxu0 %v10367_v22 }
 0x6c3   : > { %8823 = vmatpush3.bf16.msra.mxu1 %v10366_v19 }
 0x6c4   : > { %8824 = vmatprep.subr.bf16.mxu1 %v10369_v20 }
 0x6c5   : > { %8803 = vmatpush3.bf16.msra.mxu0 %v10368_v16 }
 0x6c6   : > { %8804 = vmatprep.subr.bf16.mxu0 %v10371_v41 }
 0x6c7   : > { %8825 = vmatpush3.bf16.msra.mxu1 %v10370_v21 }
 0x6c8   : > { %8826 = vmatprep.subr.bf16.mxu1 %v10373_v33 }
 0x6c9   : > { %8805 = vmatpush3.bf16.msra.mxu0 %v10372_v23 }
 0x6ca   : > { %8806 = vmatprep.subr.bf16.mxu0 %v10375_v24 }
 0x6cb   : > { %8827 = vmatpush3.bf16.msra.mxu1 %v10374_v25 }
 0x6cc   : > { %8828 = vmatprep.subr.bf16.mxu1 %v10377_v5 }
 0x6cd   : > { %8807 = vmatpush3.bf16.msra.mxu0 %v10376_v43 }
 0x6ce   : > { %8808 = vmatprep.subr.bf16.mxu0 %v10379_v35 }
 0x6cf   : > { %8829 = vmatpush3.bf16.msra.mxu1 %v10378_v26 }
 0x6d0   : > { %8830 = vmatprep.subr.bf16.mxu1 %v10381_v40 }
 0x6d1   : > { %8809 = vmatpush3.bf16.msra.mxu0 %v10380_v27 }
 0x6d2   : > { %8810 = vmatprep.subr.bf16.mxu0 %v10383_v28 }
 0x6d3   : > { %8831 = vmatpush3.bf16.msra.mxu1 %v10382_v7 }
 0x6d4   : > { %8832 = vmatprep.subr.bf16.mxu1 %v10385_v36 }
 0x6d5   : > { %8811 = vmatpush3.bf16.msra.mxu0 %v10384_v29 }
 0x6d7   : > { %8833 = vmatpush3.bf16.msra.mxu1 %v10386_v8 }
 0x78b   : > { %v7291_v30 = vpop.f32.mrb[32].mxu0 }
 0x78c   : > { %v7339_v31 = vmul.f32 0.33333334, %v7291_v30  ;;  %v7293_v34 = vpop.f32.mrb[33].mxu0 }
 0x78d   : > { %v7340_v39 = vmul.f32 0.33333334, %v7293_v34  ;;  %v7332_v44 = vpop.f32.mrb[32].mxu1  ;;  %v7295_v45 = vpop.f32.mrb[34].mxu0 }
 0x78e   : > { %v7341_v48 = vmul.f32 0.33333334, %v7332_v44  ;;  %v7334_v42 = vpop.f32.mrb[33].mxu1  ;;  %v7296_v1 = vpop.f32.mrb[35].mxu0  ;;  %v7343_v50 = vpack.c.bf16 %v7339_v31, %v7339_v31 }
 0x78f   : > { %v7344_v46 = vpack.c.bf16 %v7340_v39, %v7340_v39  ;;  %v7342_v47 = vmul.f32 0.33333334, %v7334_v42  ;;  %v7336_v51 = vpop.f32.mrb[34].mxu1 }
 0x790   : > { %v7345_v52 = vpack.c.bf16 %v7341_v48, %v7341_v48  ;;  %v7337_v4 = vpop.f32.mrb[35].mxu1 }
 0x791   : > { %v7346_v53 = vpack.c.bf16 %v7342_v47, %v7342_v47  ;;  %7642 = vmatprep.mubr.bf16.mxu0 %v7344_v46 }
 0x792   : > { %7643 = vmatmul.mubr.bf16.vlgmr.msra.gmra.mrb[36].mxu0 %v7343_v50 }
 0x793   : > { %7682 = vmatprep.mubr.bf16.mxu1 %v7346_v53 }
 0x794   : > { %7683 = vmatmul.mubr.bf16.vlgmr.msra.gmra.mrb[36].mxu1 %v7345_v52 }
 0x865   : > { %v8812_v2 = vpop.f32.mrb[36].mxu0 }
 0x866   : > { %v8813_v49 = vpop.f32.mrb[37].mxu0 }
 0x867   : > { %v8814_v59 = vadd.f32 %v8813_v49, %v8812_v2  ;;  %v8815_v57 = vpop.f32.mrb[38].mxu0  ;;  %v8834_v54 = vpop.f32.mrb[36].mxu1 }
 0x868   : > { %v8816_v58 = vpop.f32.mrb[39].mxu0  ;;  %v8835_v56 = vpop.f32.mrb[37].mxu1 }
 0x869   : > { %v7645_v3 = vadd.f32 %v8814_v59, %v8759_v55  ;;  %v8836_v37 = vadd.f32 %v8835_v56, %v8834_v54  ;;  %v8837_v38 = vpop.f32.mrb[38].mxu1 }
 0x86a   : > { %v8838_v63 = vpop.f32.mrb[39].mxu1 }
 0x86b   : > { %v7685_v60 = vadd.f32 %v8836_v37, %v7645_v3 }
 0x86d   : > { %7690 = vst [vmem:[%s498_s10] sm:$0x3] %v7685_v60 }
 0x86e   : > { %10682 = shalt.err (!%p10679_p0)
}
 0x86f   : > { %s10683_s20 = scalar_lea.hbm %s11344_s12, 32  ;;  %s10687_s26 = scalar_lea.hbm %s11430_s2, 64 }
 0x870   : > { %p10684_p5 = scmp.ne.s32.totalorder %s11344_s12, %s10683_s20  ;;  %p10688_p4 = scmp.lt.u32.totalorder %s11344_s12, %s11430_s2 }
 0x871   : > { %p10689_p12 = scmp.lt.u32.totalorder %s10687_s26, %s10683_s20  ;;  %p10691_p1 = scmp.lt.u32.totalorder %s10683_s20, %s11344_s12 }
 0x872   : > { %p10685_p9 = pnand %p10684_p5, %p11431_p3 }
 0x873   : > { %p10690_p13 = por %p10689_p12, %p10688_p4 }
 0x874   : > { %p10686_p7 = pneg %p10685_p9 }
 0x875   : > { %p10692_p2 = por %p10691_p1, %p10690_p13 }
 0x877   : > { %p10693_p8 = pnand %p10692_p2, %p10686_p7 }
 0x879   : > { %10696 = shalt.err (!%p10693_p8)
}
 0x87a   : > { %8945 = dma.vmem_to_hbm [thread:$0]  (%p11431_p3), %s11346_s30, 32, %s11344_s12, %s7692_s24  }
 0x87b PF: > { %s7717_s28 = sand.u32 1, %s10743_s13   ;;  %p11432_p6 = scmp.ne.s32.totalorder %s11416_s18, 0 }
 0x87c   : > { %p11433_p10 = scmp.ge.s32.totalorder %s10755_s16, 2  ;;  %s7718_s19 = scalar_lea.sflag [#allocation4], %s7717_s28 }
 0x87e   : > { %p8980_p11 = pnand %p11433_p10, %p11432_p6 }
 0x880   : > { %10738 = dma.done.wait (!%p8980_p11), %s7718_s19, 32  }
 0x881   : > { %10740 = vsyncadd (!%p8980_p11), %s7718_s19, 4294967264  ;;  %p28_p0 = scmp.ge.s32.totalorder %s11069_s23, 4   ;;  %s11434_s13 = smov %s10747_s14 }
 0x882   : > { %s11435_s14 = smov %s10751_s15  ;;  %s11436_s15 = smov %s11081_s17 }
 0x883   : > { %s11437_s16 = smov %s11069_s23  ;;  %30 = sbr.rel (!%p28_p0) target bundleno = 14 (0xe), region = 141 }
 0x88a   :  { %7723 = vsyncpa [#allocation3], 1 }
 0x88b   :  { %7725 = vsyncpa [#allocation3 + $0x1], 1 }
 0x88c   :  { %7726 = vsyncpa [#allocation6], 1 }
 0x88d   :  { %7727 = vsyncpa [#allocation9], 1 }
 0x88e   :  { %7728 = vsyncpa [#allocation12], 1 }
 0x88f   :  { %7729 = vsyncpa [#allocation15], 1 }
 0x890   :  { %7730 = vsyncpa [#allocation18], 1 }
 0x891   :  { %7731 = vsyncpa [#allocation4], 1 }
 0x892   :  { %7733 = vsyncpa [#allocation4 + $0x1], 1 }

// kernel: tpu_custom_call.1
= control target key start
LH: loop header
LB: loop body
LE: loop exit
PB: predicated region body
PF: predicated region fallthrough
CT: control target
= control target key end

     0   :  { %s11388_s0 = inlined_call_operand.hbm [shape: bf16[2,32,384], index: 0, kind: input, shape index: {}]   ;;  %s11389_s1 = inlined_call_operand.hbm [shape: bf16[384,512], index: 1, kind: input, shape index: {}]   ;;  %s11390_s2 = inlined_call_operand.hbm [shape: f32[1,512], index: 2, kind: input, shape index: {}]   ;;  %s11391_s3 = inlined_call_operand.hbm [shape: bf16[1536,512], index: 3, kind: input, shape index: {}]   ;;  %s11392_s4 = inlined_call_operand.hbm [shape: f32[1,512], index: 4, kind: input, shape index: {}]   ;;  %s11393_s5 = inlined_call_operand.hbm [shape: bf16[1536,512], index: 5, kind: input, shape index: {}]   ;;  %s11394_s6 = inlined_call_operand.hbm [shape: f32[1,512], index: 6, kind: input, shape index: {}]   ;;  %s11395_s7 = inlined_call_operand.hbm [shape: bf16[2,12], index: 7, kind: input, shape index: {}]   ;;  %s11396_s8 = inlined_call_operand.hbm [shape: bf16[512,128], index: 8, kind: input, shape index: {}]   ;;  %s11397_s9 = inlined_call_operand.hbm [shape: f32[1,128], index: 9, kind: input, shape index: {}]   ;;  %s11398_s10 = inlined_call_operand.hbm [shape: f32[2,2,128], index: 10, kind: output, shape index: {}]  }
   0x1   :  { %11404 = sst [smem:[#allocation28_spill]] %s11389_s1 }
   0x2   :  { %11405 = sst [smem:[#allocation29_spill]] %s11390_s2 }
   0x3   :  { %11406 = sst [smem:[#allocation30_spill]] %s11398_s10 }
   0x4   :  { %15 = vsyncpa [#allocation3], 0 }
   0x5   :  { %17 = vsyncpa [#allocation3 + $0x1], 0 }
   0x6   :  { %18 = vsyncpa [#allocation6], 0 }
   0x7   :  { %19 = vsyncpa [#allocation9], 0 }
   0x8   :  { %20 = vsyncpa [#allocation12], 0 }
   0x9   :  { %21 = vsyncpa [#allocation15], 0 }
   0xa   :  { %22 = vsyncpa [#allocation18], 0 }
   0xb   :  { %23 = vsyncpa [#allocation4], 0 }
   0xc   :  { %25 = vsyncpa [#allocation4 + $0x1], 0  ;;  %s10830_s13 = smov 0   ;;  %s10832_s14 = smov 0  }
   0xd   :  { %s10834_s15 = smov 0   ;;  %s10836_s16 = smov 0  }
   0xe LB: > { %s10757_s17 = smov [#allocation5]   ;;  %s10851_s19 = sadd.s32 4294967295, %s10755_s16   ;;  %s10755_s16 = sphi %s10836_s16, %s11437_s16   ;;  %s10751_s15 = sphi %s10834_s15, %s11436_s15   ;;  %s10747_s14 = sphi %s10832_s14, %s11435_s14   ;;  %s10743_s13 = sphi %s10830_s13, %s11434_s13  }
   0xf   : > { %s289_s18 = sshll.u32 %s10757_s17, 4  ;;  %p7862_p0 = scmp.ge.s32.totalorder %s10755_s16, 1  ;;  %s10856_s18 = int_to_ptr.vmem [resolvable:$true] %s289_s18 }
  0x10   : > { %p11401_p1 = scmp.eq.s32.totalorder %s10851_s19, 0  ;;  %p277_p2 = scmp.lt.s32.totalorder %s10755_s16, 3 }
  0x11   : > { %s10758_s21 = smov [#allocation8]   ;;  %s10759_s24 = smov [#allocation11]  }
  0x12   : > { %p10858_p3 = pnand %p7862_p0, %p277_p2  ;;  %s313_s22 = sshll.u32 %s10758_s21, 4  ;;  %s10871_s22 = int_to_ptr.vmem [resolvable:$true] %s313_s22 }
  0x13   : > { %s337_s25 = sshll.u32 %s10759_s24, 4  ;;  %s11410_s1 = sld [smem:[#allocation28_spill]]  ;;  %s10873_s25 = int_to_ptr.vmem [resolvable:$true] %s337_s25 }
  0x14   : > { %s11407_s20 = scalar_select %p10858_p3, 1, 0 }
  0x15   : > { %p8947_p5 = pneg %p10858_p3 }
  0x16   : > { %11408 = sst [smem:[#allocation27_spill]] %s11407_s20 }
  0x17   : > { %p10867_p6 = pnand %p8947_p5, %p11401_p1 }
  0x19   : > { %s10387_s28 = scalar_lea.hbm %s11410_s1, 12288  ;;  %p10883_p8 = pneg %p10867_p6 }
  0x1a   : > { %p10388_p7 = scmp.ne.s32.totalorder %s11410_s1, %s10387_s28  ;;  %p10394_p11 = scmp.lt.u32.totalorder %s10387_s28, %s11410_s1 }
  0x1c   : > { %p10390_p9 = pnand %p10883_p8, %p10388_p7 }
  0x1e   : > { %p10391_p10 = pneg %p10390_p9 }
  0x20   : > { %p10396_p12 = pnand %p10394_p11, %p10391_p10 }
  0x22   : > { %10399 = shalt.err (!%p10396_p12)
}
  0x23   : > { %s10400_s21 = scalar_lea.vmem %s10856_s18, 12288  ;;  %p10408_p5 = scmp.lt.s32.totalorder %s10856_s18, %s10856_s18 }
  0x24   : > { %p10401_p13 = scmp.ne.s32.totalorder %s10856_s18, %s10400_s21  ;;  %p10409_p4 = scmp.lt.s32.totalorder %s10400_s21, %s10400_s21 }
  0x26   : > { %p10403_p0 = pnand %p10401_p13, %p10883_p8  ;;  %p10410_p7 = por %p10409_p4, %p10408_p5 }
  0x28   : > { %p10404_p2 = pneg %p10403_p0 }
  0x2a   : > { %p10411_p9 = pnand %p10410_p7, %p10404_p2 }
  0x2c   : > { %10414 = shalt.err (!%p10411_p9)
}
  0x2d   : > { %s10760_s24 = smov 256   ;;  %s10761_s26 = smov 16  }
  0x2e   : > { %8950 = dma.hbm_to_vmem [thread:$0]  (!%p10867_p6), %s11410_s1, 12288, %s10856_s18, [#allocation6], %s10760_s24, %s10760_s24, %s10761_s26  }
  0x2f   : > { %s10415_s12 = scalar_lea.hbm %s11391_s3, 49152 }
  0x30   : > { %p10416_p4 = scmp.ne.s32.totalorder %s11391_s3, %s10415_s12  ;;  %p10422_p12 = scmp.lt.u32.totalorder %s10415_s12, %s11391_s3 }
  0x32   : > { %p10418_p10 = pnand %p10416_p4, %p10883_p8 }
  0x34   : > { %p10419_p11 = pneg %p10418_p10 }
  0x36   : > { %p10424_p13 = pnand %p10422_p12, %p10419_p11 }
  0x38   : > { %10427 = shalt.err (!%p10424_p13)
}
  0x39   : > { %s10428_s18 = scalar_lea.vmem %s10871_s22, 49152  ;;  %p10436_p7 = scmp.lt.s32.totalorder %s10871_s22, %s10871_s22 }
  0x3a   : > { %p10429_p0 = scmp.ne.s32.totalorder %s10871_s22, %s10428_s18  ;;  %p10437_p9 = scmp.lt.s32.totalorder %s10428_s18, %s10428_s18 }
  0x3c   : > { %p10431_p2 = pnand %p10429_p0, %p10883_p8  ;;  %p10438_p4 = por %p10437_p9, %p10436_p7 }
  0x3e   : > { %p10432_p5 = pneg %p10431_p2 }
  0x40   : > { %p10439_p10 = pnand %p10438_p4, %p10432_p5 }
  0x42   : > { %10442 = shalt.err (!%p10439_p10)
}
  0x43   : > { %8956 = dma.hbm_to_vmem [thread:$0]  (!%p10867_p6), %s11391_s3, 49152, %s10871_s22, [#allocation9], %s10760_s24, %s10760_s24, %s10761_s26  }
  0x44   : > { %s10443_s29 = scalar_lea.hbm %s11393_s5, 49152 }
  0x45   : > { %p10444_p11 = scmp.ne.s32.totalorder %s11393_s5, %s10443_s29  ;;  %p10450_p0 = scmp.lt.u32.totalorder %s10443_s29, %s11393_s5 }
  0x47   : > { %p10446_p12 = pnand %p10444_p11, %p10883_p8 }
  0x49   : > { %p10447_p13 = pneg %p10446_p12 }
  0x4b   : > { %p10452_p2 = pnand %p10450_p0, %p10447_p13 }
  0x4d   : > { %10455 = shalt.err (!%p10452_p2)
}
  0x4e   : > { %s10456_s22 = scalar_lea.vmem %s10873_s25, 49152  ;;  %p10464_p4 = scmp.lt.s32.totalorder %s10873_s25, %s10873_s25 }
  0x4f   : > { %p10457_p5 = scmp.ne.s32.totalorder %s10873_s25, %s10456_s22  ;;  %p10465_p10 = scmp.lt.s32.totalorder %s10456_s22, %s10456_s22 }
  0x51   : > { %p10459_p7 = pnand %p10457_p5, %p10883_p8  ;;  %p10466_p11 = por %p10465_p10, %p10464_p4 }
  0x53   : > { %p10460_p9 = pneg %p10459_p7 }
  0x55   : > { %p10467_p12 = pnand %p10466_p11, %p10460_p9 }
  0x57   : > { %10470 = shalt.err (!%p10467_p12)
}
  0x58   : > { %8962 = dma.hbm_to_vmem [thread:$0]  (!%p10867_p6), %s11393_s5, 49152, %s10873_s25, [#allocation12], %s10760_s24, %s10760_s24, %s10761_s26  }
  0x59   : > { %s10762_s20 = smov [#allocation14]   ;;  %s10763_s28 = smov [#allocation7]  }
  0x5a   : > { %s362_s27 = sshll.u32 %s10762_s20, 4  ;;  %s303_s29 = sshll.u32 %s10763_s28, 4  ;;  %s363_s27 = int_to_ptr.vmem [resolvable:$true] %s362_s27  ;;  %s304_s29 = int_to_ptr.vmem [resolvable:$true] %s303_s29 }
  0x5b   : > { %s10471_s17 = scalar_lea.hbm %s11395_s7, 16 }
  0x5c   : > { %p10472_p13 = scmp.ne.s32.totalorder %s11395_s7, %s10471_s17  ;;  %p10478_p5 = scmp.lt.u32.totalorder %s10471_s17, %s11395_s7 }
  0x5e   : > { %p10474_p0 = pnand %p10472_p13, %p10883_p8 }
  0x60   : > { %p10475_p2 = pneg %p10474_p0 }
  0x62   : > { %p10480_p7 = pnand %p10478_p5, %p10475_p2 }
  0x64   : > { %10483 = shalt.err (!%p10480_p7)
}
  0x65   : > { %s10484_s25 = scalar_lea.vmem %s363_s27, 16  ;;  %s10491_s24 = scalar_lea.vmem %s363_s27, 32 }
  0x66   : > { %p10485_p9 = scmp.ne.s32.totalorder %s363_s27, %s10484_s25  ;;  %p10492_p11 = scmp.lt.s32.totalorder %s363_s27, %s363_s27 }
  0x67   : > { %p10493_p12 = scmp.lt.s32.totalorder %s10491_s24, %s10484_s25 }
  0x68   : > { %p10487_p4 = pnand %p10485_p9, %p10883_p8 }
  0x69   : > { %p10494_p1 = por %p10493_p12, %p10492_p11 }
  0x6a   : > { %p10488_p10 = pneg %p10487_p4 }
  0x6c   : > { %p10495_p3 = pnand %p10494_p1, %p10488_p10 }
  0x6e   : > { %10498 = shalt.err (!%p10495_p3)
}
  0x6f   : > { %8968 = dma.hbm_to_vmem [thread:$0]  (!%p10867_p6), %s11395_s7, 16, %s363_s27, [#allocation15]  }
  0x70   : > { %s11412_s2 = sld [smem:[#allocation29_spill]] }
  0x76   : > { %s10499_s28 = scalar_lea.hbm %s11412_s2, 64 }
  0x77   : > { %p10500_p13 = scmp.ne.s32.totalorder %s11412_s2, %s10499_s28  ;;  %p10506_p3 = scmp.lt.u32.totalorder %s10499_s28, %s11412_s2 }
  0x79   : > { %p10502_p0 = pnand %p10500_p13, %p10883_p8 }
  0x7b   : > { %p10503_p1 = pneg %p10502_p0 }
  0x7d   : > { %p10508_p2 = pnand %p10506_p3, %p10503_p1 }
  0x7f   : > { %10511 = shalt.err (!%p10508_p2)
}
  0x80   : > { %s10512_s22 = scalar_lea.vmem %s304_s29, 64  ;;  %p10520_p4 = scmp.lt.s32.totalorder %s304_s29, %s304_s29 }
  0x81   : > { %p10513_p5 = scmp.ne.s32.totalorder %s304_s29, %s10512_s22  ;;  %p10521_p10 = scmp.lt.s32.totalorder %s10512_s22, %s10512_s22 }
  0x83   : > { %p10515_p7 = pnand %p10513_p5, %p10883_p8  ;;  %p10522_p11 = por %p10521_p10, %p10520_p4 }
  0x85   : > { %p10516_p9 = pneg %p10515_p7 }
  0x87   : > { %p10523_p12 = pnand %p10522_p11, %p10516_p9 }
  0x89   : > { %10526 = shalt.err (!%p10523_p12)
}
  0x8a   : > { %8953 = dma.hbm_to_vmem [thread:$0]  (!%p10867_p6), %s11412_s2, 64, %s304_s29, [#allocation6]  }
  0x8b   : > { %s10764_s25 = smov [#allocation10]   ;;  %s10765_s26 = smov [#allocation13]  }
  0x8c   : > { %s327_s24 = sshll.u32 %s10764_s25, 4  ;;  %s351_s10 = sshll.u32 %s10765_s26, 4  ;;  %s328_s24 = int_to_ptr.vmem [resolvable:$true] %s327_s24  ;;  %s352_s10 = int_to_ptr.vmem [resolvable:$true] %s351_s10 }
  0x8d   : > { %s10527_s28 = scalar_lea.hbm %s11392_s4, 64 }
  0x8e   : > { %p10528_p13 = scmp.ne.s32.totalorder %s11392_s4, %s10527_s28  ;;  %p10534_p3 = scmp.lt.u32.totalorder %s10527_s28, %s11392_s4 }
  0x90   : > { %p10530_p0 = pnand %p10528_p13, %p10883_p8 }
  0x92   : > { %p10531_p1 = pneg %p10530_p0 }
  0x94   : > { %p10536_p2 = pnand %p10534_p3, %p10531_p1 }
  0x96   : > { %10539 = shalt.err (!%p10536_p2)
}
  0x97   : > { %s10540_s29 = scalar_lea.vmem %s328_s24, 64  ;;  %p10548_p4 = scmp.lt.s32.totalorder %s328_s24, %s328_s24 }
  0x98   : > { %p10541_p5 = scmp.ne.s32.totalorder %s328_s24, %s10540_s29  ;;  %p10549_p10 = scmp.lt.s32.totalorder %s10540_s29, %s10540_s29 }
  0x9a   : > { %p10543_p7 = pnand %p10541_p5, %p10883_p8  ;;  %p10550_p11 = por %p10549_p10, %p10548_p4 }
  0x9c   : > { %p10544_p9 = pneg %p10543_p7 }
  0x9e   : > { %p10551_p12 = pnand %p10550_p11, %p10544_p9 }
  0xa0   : > { %10554 = shalt.err (!%p10551_p12)
}
  0xa1   : > { %8959 = dma.hbm_to_vmem [thread:$0]  (!%p10867_p6), %s11392_s4, 64, %s328_s24, [#allocation9]  }
  0xa2   : > { %s10555_s26 = scalar_lea.hbm %s11394_s6, 64 }
  0xa3   : > { %p10556_p13 = scmp.ne.s32.totalorder %s11394_s6, %s10555_s26  ;;  %p10562_p3 = scmp.lt.u32.totalorder %s10555_s26, %s11394_s6 }
  0xa5   : > { %p10558_p0 = pnand %p10556_p13, %p10883_p8 }
  0xa7   : > { %p10559_p1 = pneg %p10558_p0 }
  0xa9   : > { %p10564_p2 = pnand %p10562_p3, %p10559_p1 }
  0xab   : > { %10567 = shalt.err (!%p10564_p2)
}
  0xac   : > { %s10568_s12 = scalar_lea.vmem %s352_s10, 64  ;;  %p10576_p4 = scmp.lt.s32.totalorder %s352_s10, %s352_s10 }
  0xad   : > { %p10569_p5 = scmp.ne.s32.totalorder %s352_s10, %s10568_s12  ;;  %p10577_p10 = scmp.lt.s32.totalorder %s10568_s12, %s10568_s12 }
  0xaf   : > { %p10571_p7 = pnand %p10569_p5, %p10883_p8  ;;  %p10578_p11 = por %p10577_p10, %p10576_p4 }
  0xb1   : > { %p10572_p9 = pneg %p10571_p7 }
  0xb3   : > { %p10579_p12 = pnand %p10578_p11, %p10572_p9 }
  0xb5   : > { %10582 = shalt.err (!%p10579_p12)
}
  0xb6   : > { %8965 = dma.hbm_to_vmem [thread:$0]  (!%p10867_p6), %s11394_s6, 64, %s352_s10, [#allocation12]  }
  0xb7   : > { %s10766_s21 = smov [#allocation16]   ;;  %s10583_s18 = scalar_lea.hbm %s11396_s8, 4096 }
  0xb8   : > { %s372_s29 = sshll.u32 %s10766_s21, 4  ;;  %p10584_p13 = scmp.ne.s32.totalorder %s11396_s8, %s10583_s18  ;;  %s373_s29 = int_to_ptr.vmem [resolvable:$true] %s372_s29 }
  0xb9   : > { %p10590_p3 = scmp.lt.u32.totalorder %s10583_s18, %s11396_s8 }
  0xba   : > { %p10586_p0 = pnand %p10584_p13, %p10883_p8 }
  0xbc   : > { %p10587_p1 = pneg %p10586_p0 }
  0xbe   : > { %p10592_p2 = pnand %p10590_p3, %p10587_p1 }
  0xc0   : > { %10595 = shalt.err (!%p10592_p2)
}
  0xc1   : > { %s10596_s10 = scalar_lea.vmem %s373_s29, 4096  ;;  %p10604_p4 = scmp.lt.s32.totalorder %s373_s29, %s373_s29 }
  0xc2   : > { %p10597_p5 = scmp.ne.s32.totalorder %s373_s29, %s10596_s10  ;;  %p10605_p10 = scmp.lt.s32.totalorder %s10596_s10, %s10596_s10 }
  0xc4   : > { %p10599_p7 = pnand %p10597_p5, %p10883_p8  ;;  %p10606_p11 = por %p10605_p10, %p10604_p4 }
  0xc6   : > { %p10600_p9 = pneg %p10599_p7 }
  0xc8   : > { %p10607_p12 = pnand %p10606_p11, %p10600_p9 }
  0xca   : > { %10610 = shalt.err (!%p10607_p12)
}
  0xcb   : > { %s10767_s28 = smov 64   ;;  %s10768_s30 = smov 4  }
  0xcc   : > { %8971 = dma.hbm_to_vmem [thread:$0]  (!%p10867_p6), %s11396_s8, 4096, %s373_s29, [#allocation15], %s10767_s28, %s10767_s28, %s10768_s30  }
  0xcd   : > { %s10769_s17 = smov [#allocation17]   ;;  %s10611_s18 = scalar_lea.hbm %s11397_s9, 16 }
  0xce   : > { %s386_s21 = sshll.u32 %s10769_s17, 4  ;;  %p10612_p13 = scmp.ne.s32.totalorder %s11397_s9, %s10611_s18  ;;  %s387_s21 = int_to_ptr.vmem [resolvable:$true] %s386_s21 }
  0xcf   : > { %p10618_p3 = scmp.lt.u32.totalorder %s10611_s18, %s11397_s9 }
  0xd0   : > { %p10614_p0 = pnand %p10612_p13, %p10883_p8 }
  0xd2   : > { %p10615_p1 = pneg %p10614_p0 }
  0xd4   : > { %p10620_p2 = pnand %p10618_p3, %p10615_p1 }
  0xd6   : > { %10623 = shalt.err (!%p10620_p2)
}
  0xd7   : > { %s10624_s29 = scalar_lea.vmem %s387_s21, 16  ;;  %s10631_s10 = scalar_lea.vmem %s387_s21, 32 }
  0xd8   : > { %p10625_p5 = scmp.ne.s32.totalorder %s387_s21, %s10624_s29  ;;  %p10632_p4 = scmp.lt.s32.totalorder %s387_s21, %s387_s21 }
  0xd9   : > { %p10633_p10 = scmp.lt.s32.totalorder %s10631_s10, %s10624_s29 }
  0xda   : > { %p10627_p7 = pnand %p10625_p5, %p10883_p8 }
  0xdb   : > { %p10634_p11 = por %p10633_p10, %p10632_p4 }
  0xdc   : > { %p10628_p9 = pneg %p10627_p7 }
  0xde   : > { %p10635_p12 = pnand %p10634_p11, %p10628_p9 }
  0xe0   : > { %10638 = shalt.err (!%p10635_p12)
}
  0xe1   : > { %8974 = dma.hbm_to_vmem [thread:$0]  (!%p10867_p6), %s11397_s9, 16, %s387_s21, [#allocation18]  }
  0xe2   : > { %s7861_s11 = sadd.s32 4294967294, %s10755_s16   ;;  %s11069_s23 = sadd.s32 1, %s10755_s16  }
  0xe3   : > { %s38_s12 = sadd.s32 1, %s10751_s15  ;;  %s35_s24 = ssub.s32 %s10755_s16, %s11069_s23 }
  0xe4   : > { %p45_p8 = scmp.ne.s32.totalorder %s10751_s15, %s10747_s14  ;;  %p36_p13 = scmp.eq.s32.totalorder %s35_s24, 0 }
  0xe5   : > { %p46_p0 = scmp.eq.s32.totalorder %s10755_s16, 0  ;;  %p51_p1 = scmp.ne.s32.totalorder %s10747_s14, %s10743_s13 }
  0xe6   : > { %p264_p3 = scmp.eq.s32.totalorder %s10851_s19, 1  ;;  %p11413_p5 = scmp.eq.s32.totalorder %s10851_s19, 0 }
  0xe7   : > { %s11081_s17 = scalar_select %p36_p13, %s10751_s15, %s38_s12  }
  0xe8   : > { %p47_p2 = por %p46_p0, %p45_p8  ;;  %p11085_p7 = por %p11413_p5, %p51_p1 }
  0xe9   : > { %p11089_p6 = por %p264_p3, %p45_p8  ;;  %p270_p9 = scmp.eq.s32.totalorder %s7861_s11, 1 }
  0xea   : > { %p8992_p4 = scmp.lt.s32.totalorder %s10755_s16, 2  ;;  %s397_s27 = sand.u32 1, %s10751_s15  }
  0xeb   : > { %s11415_s21 = scalar_select %p11089_p6, 1, 0 }
  0xec   : > { %p11095_p10 = por %p270_p9, %p51_p1  ;;  %s8904_s25 = smul.u32 48, %s397_s27 }
  0xed   : > { %p11099_p11 = pnand %p8992_p4, %p47_p2  ;;  %s8905_s1 = smul.u32 768, %s10755_s16 }
  0xee   : > { %s11416_s18 = scalar_select %p11095_p10, 1, 0 }
  0xef   : > { %s11107_s10 = scalar_lea.hbm %s11388_s0, %s8905_s1  ;;  %s401_s28 = scalar_lea.vmem [#allocation2], %s8904_s25 }
  0xf0   : > { %s408_s30 = sshll.u32 %s401_s28, 4  ;;  %s11111_s11 = scalar_lea.sflag [#allocation3], %s397_s27  ;;  %s11109_s30 = int_to_ptr.vmem [resolvable:$true] %s408_s30 }
  0xf1   : > { %s10639_s12 = scalar_lea.hbm %s11107_s10, 768  ;;  %p10641_p8 = pneg %p11099_p11 }
  0xf2   : > { %p10640_p12 = scmp.ne.s32.totalorder %s11107_s10, %s10639_s12  ;;  %s10644_s20 = scalar_lea.hbm %s11388_s0, 1536 }
  0xf3   : > { %p10645_p1 = scmp.lt.u32.totalorder %s11107_s10, %s11388_s0  ;;  %p10646_p3 = scmp.lt.u32.totalorder %s10644_s20, %s10639_s12 }
  0xf4   : > { %p10642_p13 = pnand %p10641_p8, %p10640_p12  ;;  %p10648_p5 = scmp.lt.u32.totalorder %s10639_s12, %s11107_s10 }
  0xf5   : > { %p10647_p2 = por %p10646_p3, %p10645_p1 }
  0xf6   : > { %p10643_p0 = pneg %p10642_p13 }
  0xf7   : > { %p10649_p9 = por %p10648_p5, %p10647_p2 }
  0xf9   : > { %p10650_p4 = pnand %p10649_p9, %p10643_p0 }
  0xfb   : > { %10653 = shalt.err (!%p10650_p4)
}
  0xfc   : > { %s10654_s27 = scalar_lea.vmem %s11109_s30, 768  ;;  %s10770_s25 = smov [#allocation2]  }
  0xfd   : > { %p10655_p12 = scmp.ne.s32.totalorder %s11109_s30, %s10654_s27  ;;  %s10659_s28 = sshll.u32 %s10770_s25, 4  ;;  %s10660_s28 = int_to_ptr.vmem [resolvable:$false] %s10659_s28 }
  0xfe   : > { %s10661_s2 = scalar_lea.vmem %s10660_s28, 1536  ;;  %p10662_p6 = scmp.lt.s32.totalorder %s11109_s30, %s10660_s28 }
  0xff   : > { %p10657_p13 = pnand %p10655_p12, %p10641_p8  ;;  %p10663_p1 = scmp.lt.s32.totalorder %s10661_s2, %s10654_s27 }
 0x101   : > { %p10658_p10 = pneg %p10657_p13  ;;  %p10664_p3 = por %p10663_p1, %p10662_p6 }
 0x103   : > { %p10665_p2 = pnand %p10664_p3, %p10658_p10 }
 0x105   : > { %10668 = shalt.err (!%p10665_p2)
}
 0x106   : > { %s10771_s12 = smov 192   ;;  %s10772_s24 = smov 12  }
 0x107   : > { %8978 = dma.hbm_to_vmem [thread:$0]  (!%p11099_p11), %s11107_s10, 768, %s11109_s30, %s11111_s11, %s10771_s12, %s10771_s12, %s10772_s24  }
 0x108   : > { %s11418_s1 = sld [smem:[#allocation27_spill]] }
 0x10e   : > { %p11419_p8 = scmp.ne.s32.totalorder %s11418_s1, 0 }
 0x10f   : > { %s11142_s20 = sand.u32 (!%p11419_p8), 1, %s10747_s14  }
 0x110   : > { %420 = sbr.rel (%p11419_p8) target bundleno = 2171 (0x87b), region = 60  ;;  %s423_s27 = scalar_lea.sflag (!%p11419_p8), [#allocation3], %s11142_s20 }
 0x111   : > { %s8906_s29 = smul.u32 (!%p11419_p8), 48, %s11142_s20 }
 0x113   : > { %s11146_s25 = scalar_lea.vmem (!%p11419_p8), [#allocation2], %s8906_s29 }
 0x117   : > { %10714 = dma.done.wait (%p11085_p7), %s423_s27, 768  }
 0x118   : > { %10716 = vsyncadd (%p11085_p7), %s423_s27, 4294966528  ;;  %p11420_p6 = scmp.eq.s32.totalorder %s10851_s19, 0 }
 0x11a   : > { %10718 = dma.done.wait (%p11420_p6), [#allocation6], 12352   ;;  %p11421_p10 = pmov %p11420_p6 }
 0x11b   : > { %p11422_p11 = pmov %p11420_p6 }
 0x11c   : > { %10720 = vsyncadd (%p11421_p10), [#allocation6], 4294954944 }
 0x11d   : > { %10722 = dma.done.wait (%p11422_p11), [#allocation9], 49216   ;;  %p11423_p0 = pmov %p11420_p6 }
 0x11f   : > { %10724 = vsyncadd (%p11423_p0), [#allocation9], 4294918080  ;;  %p11424_p5 = pmov %p11423_p0 }
 0x120   : > { %p11425_p9 = pmov %p11423_p0 }
 0x121   : > { %10726 = dma.done.wait (%p11424_p5), [#allocation12], 49216  }
 0x122   : > { %10728 = vsyncadd (%p11425_p9), [#allocation12], 4294918080  ;;  %p11426_p7 = pmov %p11423_p0 }
 0x123   : > { %p11427_p4 = pmov %p11423_p0 }
 0x124   : > { %10730 = dma.done.wait (%p11426_p7), [#allocation15], 4112  }
 0x125   : > { %10732 = vsyncadd (%p11427_p4), [#allocation15], 4294963184  ;;  %p11428_p12 = pmov %p11423_p0 }
 0x126   : > { %p11429_p13 = pmov %p11423_p0 }
 0x127   : > { %10734 = dma.done.wait (%p11428_p12), [#allocation18], 16  }
 0x128   : > { %10736 = vsyncadd (%p11429_p13), [#allocation18], 4294967280  ;;  %v9051_v0 = vld [vmem:[#allocation5 + $0x4] ss:$16 sps:$4 sm:$0xff]   ;;  %v9053_v1 = vld [vmem:[#allocation5] ss:$16 sps:$4 sm:$0xff]  }
 0x129   : > { %1116 = vmatprep.subr.bf16.mxu0 %v9051_v0  ;;  %v9054_v2 = vld [vmem:[#allocation5 + $0x24] ss:$16 sps:$4 sm:$0xff]   ;;  %v9056_v3 = vld [vmem:[#allocation5 + $0x20] ss:$16 sps:$4 sm:$0xff]   ;;  %v9069_v7 = vld [vmem:[#allocation5 + $0xc] ss:$16 sps:$4 sm:$0xff]  }
 0x12a   : > { %1117 = vmatpush1.bf16.msra.mxu0 %v9053_v1  ;;  %v9057_v4 = vld [vmem:[#allocation5 + $0x44] ss:$16 sps:$4 sm:$0xff]   ;;  %v9059_v5 = vld [vmem:[#allocation5 + $0x40] ss:$16 sps:$4 sm:$0xff]   ;;  %v9071_v8 = vld [vmem:[#allocation5 + $0x8] ss:$16 sps:$4 sm:$0xff]   ;;  %1222 = vmatprep.subr.bf16.mxu1 %v9069_v7 }
 0x12b   : > { %1118 = vmatprep.subr.bf16.mxu0 %v9054_v2  ;;  %v9060_v6 = vld [vmem:[#allocation5 + $0x64] ss:$16 sps:$4 sm:$0xff]   ;;  %v9062_v9 = vld [vmem:[#allocation5 + $0x60] ss:$16 sps:$4 sm:$0xff]   ;;  %1223 = vmatpush1.bf16.msra.mxu1 %v9071_v8  ;;  %v9075_v10 = vld [vmem:[#allocation5 + $0x2c] ss:$16 sps:$4 sm:$0xff]  }
 0x12c   : > { %v9077_v11 = vld [vmem:[#allocation5 + $0x28] ss:$16 sps:$4 sm:$0xff]   ;;  %v9063_v12 = vld [vmem:[#allocation5 + $0x84] ss:$16 sps:$4 sm:$0xff]   ;;  %1224 = vmatprep.subr.bf16.mxu1 %v9075_v10  ;;  %v9065_v13 = vld [vmem:[#allocation5 + $0x80] ss:$16 sps:$4 sm:$0xff]  }
 0x12d   : > { %v9081_v14 = vld [vmem:[#allocation5 + $0x4c] ss:$16 sps:$4 sm:$0xff]   ;;  %v9066_v15 = vld [vmem:[#allocation5 + $0xa4] ss:$16 sps:$4 sm:$0xff]   ;;  %v9083_v16 = vld [vmem:[#allocation5 + $0x48] ss:$16 sps:$4 sm:$0xff]  }
 0x12e   : > { %1119 = vmatpush1.bf16.msra.mxu0 %v9056_v3  ;;  %v9087_v17 = vld [vmem:[#allocation5 + $0x6c] ss:$16 sps:$4 sm:$0xff]   ;;  %v9068_v18 = vld [vmem:[#allocation5 + $0xa0] ss:$16 sps:$4 sm:$0xff]   ;;  %v9072_v19 = vld [vmem:[#allocation5 + $0xc4] ss:$16 sps:$4 sm:$0xff]  }
 0x12f   : > { %1120 = vmatprep.subr.bf16.mxu0 %v9057_v4  ;;  %1225 = vmatpush1.bf16.msra.mxu1 %v9077_v11  ;;  %v9089_v20 = vld [vmem:[#allocation5 + $0x68] ss:$16 sps:$4 sm:$0xff]   ;;  %v9093_v21 = vld [vmem:[#allocation5 + $0x8c] ss:$16 sps:$4 sm:$0xff]   ;;  %v9074_v22 = vld [vmem:[#allocation5 + $0xc0] ss:$16 sps:$4 sm:$0xff]  }
 0x130   : > { %1226 = vmatprep.subr.bf16.mxu1 %v9081_v14  ;;  %v9078_v23 = vld [vmem:[#allocation5 + $0xe4] ss:$16 sps:$4 sm:$0xff]   ;;  %v9095_v24 = vld [vmem:[#allocation5 + $0x88] ss:$16 sps:$4 sm:$0xff]   ;;  %v9099_v25 = vld [vmem:[#allocation5 + $0xac] ss:$16 sps:$4 sm:$0xff]  }
 0x131   : > { %v9080_v26 = vld [vmem:[#allocation5 + $0xe0] ss:$16 sps:$4 sm:$0xff]   ;;  %v9084_v27 = vld [vmem:[#allocation5 + $0x104] ss:$16 sps:$4 sm:$0xff]   ;;  %v9101_v28 = vld [vmem:[#allocation5 + $0xa8] ss:$16 sps:$4 sm:$0xff]  }
 0x132   : > { %1121 = vmatpush1.bf16.msra.mxu0 %v9059_v5  ;;  %v9105_v29 = vld [vmem:[#allocation5 + $0xcc] ss:$16 sps:$4 sm:$0xff]   ;;  %v9086_v30 = vld [vmem:[#allocation5 + $0x100] ss:$16 sps:$4 sm:$0xff]   ;;  %v9090_v31 = vld [vmem:[#allocation5 + $0x124] ss:$16 sps:$4 sm:$0xff]  }
 0x133   : > { %1122 = vmatprep.subr.bf16.mxu0 %v9060_v6  ;;  %1227 = vmatpush1.bf16.msra.mxu1 %v9083_v16  ;;  %v9107_v32 = vld [vmem:[#allocation5 + $0xc8] ss:$16 sps:$4 sm:$0xff]   ;;  %v9111_v33 = vld [vmem:[#allocation5 + $0xec] ss:$16 sps:$4 sm:$0xff]   ;;  %v9092_v34 = vld [vmem:[#allocation5 + $0x120] ss:$16 sps:$4 sm:$0xff]  }
 0x134   : > { %1228 = vmatprep.subr.bf16.mxu1 %v9087_v17  ;;  %v9096_v35 = vld [vmem:[#allocation5 + $0x144] ss:$16 sps:$4 sm:$0xff]   ;;  %v9113_v36 = vld [vmem:[#allocation5 + $0xe8] ss:$16 sps:$4 sm:$0xff]   ;;  %v9117_v37 = vld [vmem:[#allocation5 + $0x10c] ss:$16 sps:$4 sm:$0xff]  }
 0x135   : > { %v9134_v38 = vld [vmem:[%s11146_s25 + $0x4] ss:$12 sps:$4 sm:$0xff]   ;;  %v9119_v41 = vld [vmem:[#allocation5 + $0x108] ss:$16 sps:$4 sm:$0xff]   ;;  %v9123_v42 = vld [vmem:[#allocation5 + $0x12c] ss:$16 sps:$4 sm:$0xff]  }
 0x136   : > { %1123 = vmatpush1.bf16.msra.mxu0 %v9062_v9  ;;  %v9098_v39 = vld [vmem:[#allocation5 + $0x140] ss:$16 sps:$4 sm:$0xff]   ;;  %v9102_v40 = vld [vmem:[#allocation5 + $0x164] ss:$16 sps:$4 sm:$0xff]   ;;  %1148 = vmatprep.mubr.bf16.mxu0 %v9134_v38  ;;  %v9125_v45 = vld [vmem:[#allocation5 + $0x128] ss:$16 sps:$4 sm:$0xff]  }
 0x137   : > { %1124 = vmatprep.subr.bf16.mxu0 %v9063_v12  ;;  %1229 = vmatpush1.bf16.msra.mxu1 %v9089_v20  ;;  %v9104_v43 = vld [vmem:[#allocation5 + $0x160] ss:$16 sps:$4 sm:$0xff]   ;;  %v9108_v44 = vld [vmem:[#allocation5 + $0x184] ss:$16 sps:$4 sm:$0xff]   ;;  %v9129_v46 = vld [vmem:[#allocation5 + $0x14c] ss:$16 sps:$4 sm:$0xff]  }
 0x138   : > { %1230 = vmatprep.subr.bf16.mxu1 %v9093_v21  ;;  %1254 = vmatprep.mubr.bf16.mxu1 %v9134_v38  ;;  %v9110_v47 = vld [vmem:[#allocation5 + $0x180] ss:$16 sps:$4 sm:$0xff]   ;;  %v9114_v48 = vld [vmem:[#allocation5 + $0x1a4] ss:$16 sps:$4 sm:$0xff]   ;;  %v9131_v49 = vld [vmem:[#allocation5 + $0x148] ss:$16 sps:$4 sm:$0xff]  }
 0x139   : > { %v9138_v50 = vld [vmem:[#allocation5 + $0x16c] ss:$16 sps:$4 sm:$0xff]   ;;  %v9116_v51 = vld [vmem:[#allocation5 + $0x1a0] ss:$16 sps:$4 sm:$0xff]   ;;  %v9120_v52 = vld [vmem:[#allocation5 + $0x1c4] ss:$16 sps:$4 sm:$0xff]  }
 0x13a   : > { %1125 = vmatpush1.bf16.msra.mxu0 %v9065_v13  ;;  %v9140_v53 = vld [vmem:[#allocation5 + $0x168] ss:$16 sps:$4 sm:$0xff]   ;;  %v9144_v54 = vld [vmem:[#allocation5 + $0x18c] ss:$16 sps:$4 sm:$0xff]   ;;  %v9122_v55 = vld [vmem:[#allocation5 + $0x1c0] ss:$16 sps:$4 sm:$0xff]  }
 0x13b   : > { %1126 = vmatprep.subr.bf16.mxu0 %v9066_v15  ;;  %1231 = vmatpush1.bf16.msra.mxu1 %v9095_v24  ;;  %v9126_v56 = vld [vmem:[#allocation5 + $0x1e4] ss:$16 sps:$4 sm:$0xff]   ;;  %v9146_v57 = vld [vmem:[#allocation5 + $0x188] ss:$16 sps:$4 sm:$0xff]   ;;  %v9150_v58 = vld [vmem:[#allocation5 + $0x1ac] ss:$16 sps:$4 sm:$0xff]  }
 0x13c   : > { %1232 = vmatprep.subr.bf16.mxu1 %v9099_v25  ;;  %v9128_v59 = vld [vmem:[#allocation5 + $0x1e0] ss:$16 sps:$4 sm:$0xff]   ;;  %v9137_v60 = vld [vmem:[#allocation5 + $0x204] ss:$16 sps:$4 sm:$0xff]   ;;  %v9152_v61 = vld [vmem:[#allocation5 + $0x1a8] ss:$16 sps:$4 sm:$0xff]  }
 0x13d   : > { %v9156_v62 = vld [vmem:[#allocation5 + $0x1cc] ss:$16 sps:$4 sm:$0xff]   ;;  %v9135_v0 = vld [vmem:[#allocation5 + $0x200] ss:$16 sps:$4 sm:$0xff]   ;;  %v9143_v1 = vld [vmem:[#allocation5 + $0x224] ss:$16 sps:$4 sm:$0xff]  }
 0x13e   : > { %1127 = vmatpush1.bf16.msra.mxu0 %v9068_v18  ;;  %v9132_v63 = vld [vmem:[%s11146_s25] ss:$12 sps:$4 sm:$0xff]   ;;  %v9158_v2 = vld [vmem:[#allocation5 + $0x1c8] ss:$16 sps:$4 sm:$0xff]   ;;  %v9149_v7 = vld [vmem:[#allocation5 + $0x244] ss:$16 sps:$4 sm:$0xff]  }
 0x13f   : > { %1128 = vmatprep.subr.bf16.mxu0 %v9072_v19  ;;  %1233 = vmatpush1.bf16.msra.mxu1 %v9101_v28  ;;  %v9162_v3 = vld [vmem:[#allocation5 + $0x1ec] ss:$16 sps:$4 sm:$0xff]   ;;  %v9141_v5 = vld [vmem:[#allocation5 + $0x220] ss:$16 sps:$4 sm:$0xff]   ;;  %v9164_v6 = vld [vmem:[#allocation5 + $0x1e8] ss:$16 sps:$4 sm:$0xff]  }
 0x140   : > { %1234 = vmatprep.subr.bf16.mxu1 %v9105_v29  ;;  %v9171_v4 = vld [vmem:[%s11146_s25 + $0x1c] ss:$12 sps:$4 sm:$0xff]   ;;  %v9147_v9 = vld [vmem:[#allocation5 + $0x240] ss:$16 sps:$4 sm:$0xff]   ;;  %v9173_v10 = vld [vmem:[%s11146_s25 + $0x18] ss:$12 sps:$4 sm:$0xff]  }
 0x141   : > { %v9170_v8 = vld [vmem:[#allocation5 + $0x20c] ss:$16 sps:$4 sm:$0xff]   ;;  %v9168_v11 = vld [vmem:[#allocation5 + $0x208] ss:$16 sps:$4 sm:$0xff]   ;;  %v9155_v12 = vld [vmem:[#allocation5 + $0x264] ss:$16 sps:$4 sm:$0xff]  }
 0x142   : > { %1129 = vmatpush1.bf16.msra.mxu0 %v9074_v22  ;;  %v9179_v13 = vld [vmem:[#allocation5 + $0x22c] ss:$16 sps:$4 sm:$0xff]   ;;  %v9153_v14 = vld [vmem:[#allocation5 + $0x260] ss:$16 sps:$4 sm:$0xff]   ;;  %v9177_v15 = vld [vmem:[#allocation5 + $0x228] ss:$16 sps:$4 sm:$0xff]  }
 0x143   : > { %1130 = vmatprep.subr.bf16.mxu0 %v9078_v23  ;;  %1235 = vmatpush1.bf16.msra.mxu1 %v9107_v32  ;;  %v9161_v16 = vld [vmem:[#allocation5 + $0x284] ss:$16 sps:$4 sm:$0xff]   ;;  %v9185_v17 = vld [vmem:[#allocation5 + $0x24c] ss:$16 sps:$4 sm:$0xff]   ;;  %v10773_v18 = vmov 0   ;;  %vm4206_vm0 = vcmask 1046528  }
 0x144   : > { %1236 = vmatprep.subr.bf16.mxu1 %v9111_v33  ;;  %v9159_v19 = vld [vmem:[#allocation5 + $0x280] ss:$16 sps:$4 sm:$0xff]   ;;  %v9183_v20 = vld [vmem:[#allocation5 + $0x248] ss:$16 sps:$4 sm:$0xff]   ;;  %v9167_v21 = vld [vmem:[#allocation5 + $0x2a4] ss:$16 sps:$4 sm:$0xff]  }
 0x145   : > { %v9189_v22 = vld [vmem:[#allocation5 + $0x26c] ss:$16 sps:$4 sm:$0xff]   ;;  %v9165_v23 = vld [vmem:[#allocation5 + $0x2a0] ss:$16 sps:$4 sm:$0xff]   ;;  %v9187_v24 = vld [vmem:[#allocation5 + $0x268] ss:$16 sps:$4 sm:$0xff]  }
 0x146   : > { %1131 = vmatpush1.bf16.msra.mxu0 %v9080_v26  ;;  %v9176_v25 = vld [vmem:[#allocation5 + $0x2c4] ss:$16 sps:$4 sm:$0xff]   ;;  %v9192_v26 = vld [vmem:[#allocation5 + $0x28c] ss:$16 sps:$4 sm:$0xff]   ;;  %v9190_v28 = vld [vmem:[#allocation5 + $0x288] ss:$16 sps:$4 sm:$0xff]  }
 0x147   : > { %1132 = vmatprep.subr.bf16.mxu0 %v9084_v27  ;;  %1237 = vmatpush1.bf16.msra.mxu1 %v9113_v36  ;;  %v9174_v27 = vld [vmem:[#allocation5 + $0x2c0] ss:$16 sps:$4 sm:$0xff]   ;;  %v9182_v29 = vld [vmem:[#allocation5 + $0x2e4] ss:$16 sps:$4 sm:$0xff]   ;;  %v9194_v32 = vld [vmem:[#allocation5 + $0x2a8] ss:$16 sps:$4 sm:$0xff]  }
 0x148   : > { %1238 = vmatprep.subr.bf16.mxu1 %v9117_v37  ;;  %v9199_v33 = vld [vmem:[#allocation5 + $0x2cc] ss:$16 sps:$4 sm:$0xff]   ;;  %v9197_v36 = vld [vmem:[#allocation5 + $0x2c8] ss:$16 sps:$4 sm:$0xff]   ;;  %v9203_v38 = vld [vmem:[#allocation8] ss:$16 sps:$4 sm:$0xff]  }
 0x149   : > { %v9202_v37 = vld [vmem:[#allocation5 + $0x2ec] ss:$16 sps:$4 sm:$0xff]   ;;  %vm4243_vm1 = vcmask 1045504   ;;  %vm7241_vm2 = vcmask 97280   ;;  %s7884_s22 = sshll.u32 %s11142_s20, 1  ;;  %s8793_s26 = sshll.u32 %s10851_s19, 5 }
 0x14a   : > { %1133 = vmatpush1.bf16.msra.mxu0 %v9086_v30  ;;  %v9196_v30 = vld [vmem:[#allocation5 + $0x2ac] ss:$16 sps:$4 sm:$0xff]   ;;  %s498_s10 = scalar_lea.vmem [#allocation19], %s7884_s22  ;;  %s11430_s2 = sld [smem:[#allocation30_spill]] }
 0x14b   : > { %1134 = vmatprep.subr.bf16.mxu0 %v9090_v31  ;;  %1239 = vmatpush1.bf16.msra.mxu1 %v9119_v41  ;;  %v9180_v31 = vld [vmem:[#allocation5 + $0x2e0] ss:$16 sps:$4 sm:$0xff]   ;;  %s7705_s30 = sshll.u32 %s498_s10, 4  ;;  %s7692_s24 = scalar_lea.sflag [#allocation4], %s11142_s20  ;;  %s11346_s30 = int_to_ptr.vmem [resolvable:$true] %s7705_s30 }
 0x14c   : > { %1240 = vmatprep.subr.bf16.mxu1 %v9123_v42  ;;  %v9208_v41 = vld [vmem:[#allocation8 + $0xc] ss:$16 sps:$4 sm:$0xff]   ;;  %v9209_v42 = vld [vmem:[#allocation8 + $0x20] ss:$16 sps:$4 sm:$0xff]   ;;  %s10669_s19 = scalar_lea.vmem %s11346_s30, 32  ;;  %p11431_p3 = scmp.ne.s32.totalorder %s11415_s21, 0 }
 0x14d   : > { %p10670_p1 = scmp.ne.s32.totalorder %s11346_s30, %s10669_s19  ;;  %s10774_s1 = smov [#allocation19]  }
 0x14e   : > { %1135 = vmatpush1.bf16.msra.mxu0 %v9092_v34  ;;  %v9205_v34 = vld [vmem:[#allocation8 + $0x4] ss:$16 sps:$4 sm:$0xff]   ;;  %s10673_s29 = sshll.u32 %s10774_s1, 4  ;;  %s10674_s29 = int_to_ptr.vmem [resolvable:$false] %s10673_s29 }
 0x14f   : > { %1136 = vmatprep.subr.bf16.mxu0 %v9096_v35  ;;  %1241 = vmatpush1.bf16.msra.mxu1 %v9125_v45  ;;  %v9186_v35 = vld [vmem:[%s11146_s25 + $0x8] ss:$12 sps:$4 sm:$0xff]   ;;  %v9206_v45 = vld [vmem:[#allocation8 + $0x8] ss:$16 sps:$4 sm:$0xff]   ;;  %p10671_p2 = pnand %p10670_p1, %p11431_p3  ;;  %s10675_s27 = scalar_lea.vmem %s10674_s29, 64 }
 0x150   : > { %1242 = vmatprep.subr.bf16.mxu1 %v9129_v46  ;;  %v9214_v46 = vld [vmem:[#allocation8 + $0x2c] ss:$16 sps:$4 sm:$0xff]   ;;  %s11344_s12 = scalar_lea.hbm %s11430_s2, %s8793_s26  ;;  %p10676_p6 = scmp.lt.s32.totalorder %s11346_s30, %s10674_s29 }
 0x151   : > { %p10672_p8 = pneg %p10671_p2  ;;  %p10677_p10 = scmp.lt.s32.totalorder %s10675_s27, %s10669_s19 }
 0x152   : > { %1137 = vmatpush1.bf16.msra.mxu0 %v9098_v39  ;;  %v9200_v39 = vld [vmem:[#allocation5 + $0x2e8] ss:$16 sps:$4 sm:$0xff]  }
 0x153   : > { %1138 = vmatprep.subr.bf16.mxu0 %v9102_v40  ;;  %1243 = vmatpush1.bf16.msra.mxu1 %v9131_v49  ;;  %v9211_v40 = vld [vmem:[#allocation8 + $0x24] ss:$16 sps:$4 sm:$0xff]   ;;  %v9212_v49 = vld [vmem:[#allocation8 + $0x28] ss:$16 sps:$4 sm:$0xff]   ;;  %p10678_p11 = por %p10677_p10, %p10676_p6 }
 0x154   : > { %1244 = vmatprep.subr.bf16.mxu1 %v9138_v50  ;;  %v9220_v50 = vld [vmem:[#allocation8 + $0x4c] ss:$16 sps:$4 sm:$0xff]  }
 0x155   : > { %p10679_p0 = pnand %p10678_p11, %p10672_p8 }
 0x156   : > { %1139 = vmatpush1.bf16.msra.mxu0 %v9104_v43  ;;  %v9217_v43 = vld [vmem:[#allocation8 + $0x44] ss:$16 sps:$4 sm:$0xff]  }
 0x157   : > { %1140 = vmatprep.subr.bf16.mxu0 %v9108_v44  ;;  %1245 = vmatpush1.bf16.msra.mxu1 %v9140_v53  ;;  %v9193_v44 = vld [vmem:[%s11146_s25 + $0x20] ss:$12 sps:$4 sm:$0xff]  }
 0x158   : > { %1246 = vmatprep.subr.bf16.mxu1 %v9144_v54  ;;  %v9218_v53 = vld [vmem:[#allocation8 + $0x48] ss:$16 sps:$4 sm:$0xff]   ;;  %v9226_v54 = vld [vmem:[#allocation8 + $0x6c] ss:$16 sps:$4 sm:$0xff]  }
 0x15a   : > { %1141 = vmatpush1.bf16.msra.mxu0 %v9110_v47  ;;  %v9215_v47 = vld [vmem:[#allocation8 + $0x40] ss:$16 sps:$4 sm:$0xff]  }
 0x15b   : > { %1142 = vmatprep.subr.bf16.mxu0 %v9114_v48  ;;  %1247 = vmatpush1.bf16.msra.mxu1 %v9146_v57  ;;  %v9223_v48 = vld [vmem:[#allocation8 + $0x64] ss:$16 sps:$4 sm:$0xff]   ;;  %v9224_v57 = vld [vmem:[#allocation8 + $0x68] ss:$16 sps:$4 sm:$0xff]  }
 0x15c   : > { %1248 = vmatprep.subr.bf16.mxu1 %v9150_v58  ;;  %v9232_v58 = vld [vmem:[#allocation8 + $0x8c] ss:$16 sps:$4 sm:$0xff]  }
 0x15e   : > { %1143 = vmatpush1.bf16.msra.mxu0 %v9116_v51  ;;  %v9221_v51 = vld [vmem:[#allocation8 + $0x60] ss:$16 sps:$4 sm:$0xff]  }
 0x15f   : > { %1144 = vmatprep.subr.bf16.mxu0 %v9120_v52  ;;  %1249 = vmatpush1.bf16.msra.mxu1 %v9152_v61  ;;  %v9229_v52 = vld [vmem:[#allocation8 + $0x84] ss:$16 sps:$4 sm:$0xff]   ;;  %v9230_v61 = vld [vmem:[#allocation8 + $0x88] ss:$16 sps:$4 sm:$0xff]  }
 0x160   : > { %1250 = vmatprep.subr.bf16.mxu1 %v9156_v62  ;;  %v9238_v62 = vld [vmem:[#allocation8 + $0xac] ss:$16 sps:$4 sm:$0xff]  }
 0x162   : > { %1145 = vmatpush1.bf16.msra.mxu0 %v9122_v55  ;;  %v9227_v55 = vld [vmem:[#allocation8 + $0x80] ss:$16 sps:$4 sm:$0xff]  }
 0x163   : > { %1146 = vmatprep.subr.bf16.mxu0 %v9126_v56  ;;  %1251 = vmatpush1.bf16.msra.mxu1 %v9158_v2  ;;  %v9235_v56 = vld [vmem:[#allocation8 + $0xa4] ss:$16 sps:$4 sm:$0xff]   ;;  %v9244_v2 = vld [vmem:[#allocation8 + $0xcc] ss:$16 sps:$4 sm:$0xff]  }
 0x164   : > { %1252 = vmatprep.subr.bf16.mxu1 %v9162_v3  ;;  %v9245_v3 = vld [vmem:[#allocation8 + $0xe0] ss:$16 sps:$4 sm:$0xff]  }
 0x166   : > { %1147 = vmatpush1.bf16.msra.mxu0 %v9128_v59  ;;  %v9233_v59 = vld [vmem:[#allocation8 + $0xa0] ss:$16 sps:$4 sm:$0xff]  }
 0x167   : > { %1169 = vmatprep.subr.bf16.mxu0 %v9137_v60  ;;  %1253 = vmatpush1.bf16.msra.mxu1 %v9164_v6  ;;  %v9241_v60 = vld [vmem:[#allocation8 + $0xc4] ss:$16 sps:$4 sm:$0xff]   ;;  %v9250_v6 = vld [vmem:[#allocation8 + $0xec] ss:$16 sps:$4 sm:$0xff]  }
 0x168   : > { %1275 = vmatprep.subr.bf16.mxu1 %v9170_v8  ;;  %v9259_v8 = vld [vmem:[#allocation8 + $0x124] ss:$16 sps:$4 sm:$0xff]  }
 0x169   : > { %1149 = vmatmul.mubr.bf16.vlgmr.msra.gmra.mrb[0].mxu0 %v9132_v63 }
 0x16a   : > { %1170 = vmatpush1.bf16.msra.mxu0 %v9135_v0  ;;  %1158 = vmatprep.mubr.bf16.mxu0 %v9171_v4  ;;  %v9247_v0 = vld [vmem:[#allocation8 + $0xe4] ss:$16 sps:$4 sm:$0xff]  }
 0x16b   : > { %1171 = vmatprep.subr.bf16.mxu0 %v9143_v1  ;;  %1255 = vmatmul.mubr.bf16.vlgmr.msra.gmra.mrb[0].mxu1 %v9132_v63  ;;  %v9239_v63 = vld [vmem:[#allocation8 + $0xc0] ss:$16 sps:$4 sm:$0xff]   ;;  %v9236_v1 = vld [vmem:[#allocation8 + $0xa8] ss:$16 sps:$4 sm:$0xff]  }
 0x16c   : > { %1276 = vmatpush1.bf16.msra.mxu1 %v9168_v11  ;;  %1264 = vmatprep.mubr.bf16.mxu1 %v9171_v4  ;;  %v9253_v4 = vld [vmem:[#allocation8 + $0x104] ss:$16 sps:$4 sm:$0xff]   ;;  %v9257_v11 = vld [vmem:[#allocation8 + $0x120] ss:$16 sps:$4 sm:$0xff]  }
 0x16d   : > { %1277 = vmatprep.subr.bf16.mxu1 %v9179_v13  ;;  %v9254_v13 = vld [vmem:[#allocation8 + $0x108] ss:$16 sps:$4 sm:$0xff]  }
 0x16e   : > { %1172 = vmatpush1.bf16.msra.mxu0 %v9141_v5  ;;  %v9242_v5 = vld [vmem:[#allocation8 + $0xc8] ss:$16 sps:$4 sm:$0xff]  }
 0x16f   : > { %1173 = vmatprep.subr.bf16.mxu0 %v9149_v7  ;;  %v9251_v7 = vld [vmem:[#allocation8 + $0x100] ss:$16 sps:$4 sm:$0xff]  }
 0x170   : > { %1278 = vmatpush1.bf16.msra.mxu1 %v9177_v15  ;;  %v9263_v15 = vld [vmem:[#allocation8 + $0x140] ss:$16 sps:$4 sm:$0xff]  }
 0x171   : > { %1159 = vmatmul.mubr.bf16.gmra.mrb[4].mxu0 %v9173_v10  ;;  %1279 = vmatprep.subr.bf16.mxu1 %v9185_v17  ;;  %v9268_v17 = vld [vmem:[#allocation8 + $0x14c] ss:$16 sps:$4 sm:$0xff]  }
 0x172   : > { %1174 = vmatpush1.bf16.msra.mxu0 %v9147_v9  ;;  %1201 = vmatprep.mubr.bf16.mxu0 %v10773_v18  ;;  %v9248_v9 = vld [vmem:[#allocation8 + $0xe8] ss:$16 sps:$4 sm:$0xff]  }
 0x173   : > { %1175 = vmatprep.subr.bf16.mxu0 %v9155_v12  ;;  %1265 = vmatmul.mubr.bf16.gmra.mrb[4].mxu1 %v9173_v10  ;;  %v9256_v10 = vld [vmem:[#allocation8 + $0x10c] ss:$16 sps:$4 sm:$0xff]   ;;  %v9265_v12 = vld [vmem:[#allocation8 + $0x144] ss:$16 sps:$4 sm:$0xff]  }
 0x174   : > { %1280 = vmatpush1.bf16.msra.mxu1 %v9183_v20  ;;  %1307 = vmatprep.mubr.bf16.mxu1 %v10773_v18  ;;  %v9271_v20 = vld [vmem:[#allocation8 + $0x164] ss:$16 sps:$4 sm:$0xff]  }
 0x175   : > { %1281 = vmatprep.subr.bf16.mxu1 %v9189_v22  ;;  %v9269_v22 = vld [vmem:[#allocation8 + $0x160] ss:$16 sps:$4 sm:$0xff]  }
 0x176   : > { %1176 = vmatpush1.bf16.msra.mxu0 %v9153_v14  ;;  %v9262_v14 = vld [vmem:[#allocation8 + $0x12c] ss:$16 sps:$4 sm:$0xff]  }
 0x177   : > { %1177 = vmatprep.subr.bf16.mxu0 %v9161_v16  ;;  %v9260_v16 = vld [vmem:[#allocation8 + $0x128] ss:$16 sps:$4 sm:$0xff]  }
 0x178   : > { %1282 = vmatpush1.bf16.msra.mxu1 %v9187_v24  ;;  %v9277_v24 = vld [vmem:[#allocation8 + $0x184] ss:$16 sps:$4 sm:$0xff]  }
 0x179   : > { %1283 = vmatprep.subr.bf16.mxu1 %v9192_v26  ;;  %v9275_v26 = vld [vmem:[#allocation8 + $0x180] ss:$16 sps:$4 sm:$0xff]  }
 0x17a   : > { %1178 = vmatpush1.bf16.msra.mxu0 %v9159_v19  ;;  %v9266_v19 = vld [vmem:[#allocation8 + $0x148] ss:$16 sps:$4 sm:$0xff]  }
 0x17b   : > { %1179 = vmatprep.subr.bf16.mxu0 %v9167_v21  ;;  %v9274_v21 = vld [vmem:[#allocation8 + $0x16c] ss:$16 sps:$4 sm:$0xff]  }
 0x17c   : > { %1284 = vmatpush1.bf16.msra.mxu1 %v9190_v28  ;;  %v9283_v28 = vld [vmem:[#allocation8 + $0x1a4] ss:$16 sps:$4 sm:$0xff]  }
 0x17d   : > { %1285 = vmatprep.subr.bf16.mxu1 %v9196_v30  ;;  %v9281_v30 = vld [vmem:[#allocation8 + $0x1a0] ss:$16 sps:$4 sm:$0xff]  }
 0x17e   : > { %1180 = vmatpush1.bf16.msra.mxu0 %v9165_v23  ;;  %v9272_v23 = vld [vmem:[#allocation8 + $0x168] ss:$16 sps:$4 sm:$0xff]  }
 0x17f   : > { %1181 = vmatprep.subr.bf16.mxu0 %v9176_v25  ;;  %v9280_v25 = vld [vmem:[#allocation8 + $0x18c] ss:$16 sps:$4 sm:$0xff]  }
 0x180   : > { %1286 = vmatpush1.bf16.msra.mxu1 %v9194_v32  ;;  %v9289_v32 = vld [vmem:[#allocation8 + $0x1c4] ss:$16 sps:$4 sm:$0xff]  }
 0x181   : > { %1287 = vmatprep.subr.bf16.mxu1 %v9199_v33  ;;  %v9292_v33 = vld [vmem:[#allocation8 + $0x1cc] ss:$16 sps:$4 sm:$0xff]  }
 0x182   : > { %1182 = vmatpush1.bf16.msra.mxu0 %v9174_v27  ;;  %v9278_v27 = vld [vmem:[#allocation8 + $0x188] ss:$16 sps:$4 sm:$0xff]  }
 0x183   : > { %1183 = vmatprep.subr.bf16.mxu0 %v9182_v29  ;;  %v9286_v29 = vld [vmem:[#allocation8 + $0x1ac] ss:$16 sps:$4 sm:$0xff]  }
 0x184   : > { %1288 = vmatpush1.bf16.msra.mxu1 %v9197_v36  ;;  %v9295_v36 = vld [vmem:[#allocation8 + $0x1e4] ss:$16 sps:$4 sm:$0xff]  }
 0x185   : > { %1289 = vmatprep.subr.bf16.mxu1 %v9202_v37  ;;  %v9298_v37 = vld [vmem:[#allocation8 + $0x1ec] ss:$16 sps:$4 sm:$0xff]  }
 0x186   : > { %1184 = vmatpush1.bf16.msra.mxu0 %v9180_v31  ;;  %v9284_v31 = vld [vmem:[#allocation8 + $0x1a8] ss:$16 sps:$4 sm:$0xff]  }
 0x187   : > { %2146 = vmatprep.subr.bf16.mxu0 %v9205_v34  ;;  %v9287_v34 = vld [vmem:[#allocation8 + $0x1c0] ss:$16 sps:$4 sm:$0xff]  }
 0x188   : > { %1290 = vmatpush1.bf16.msra.mxu1 %v9200_v39  ;;  %v9296_v39 = vld [vmem:[#allocation8 + $0x1e8] ss:$16 sps:$4 sm:$0xff]  }
 0x189   : > { %1202 = vmatmul.mubr.bf16.vlgmr.msra.gmra.mrb[0].mxu0 %v9186_v35  ;;  %2232 = vmatprep.subr.bf16.mxu1 %v9208_v41  ;;  %v9304_v41 = vld [vmem:[#allocation8 + $0x20c] ss:$16 sps:$4 sm:$0xff]  }
 0x18a   : > { %1211 = vmatprep.mubr.bf16.mxu0 %v10773_v18  ;;  %2147 = vmatpush1.bf16.msra.mxu0 %v9203_v38  ;;  %v9293_v38 = vld [vmem:[#allocation8 + $0x1e0] ss:$16 sps:$4 sm:$0xff]  }
 0x18b   : > { %2148 = vmatprep.subr.bf16.mxu0 %v9211_v40  ;;  %1308 = vmatmul.mubr.bf16.vlgmr.msra.gmra.mrb[0].mxu1 %v9186_v35  ;;  %v9290_v35 = vld [vmem:[#allocation8 + $0x1c8] ss:$16 sps:$4 sm:$0xff]   ;;  %v9301_v40 = vld [vmem:[#allocation8 + $0x204] ss:$16 sps:$4 sm:$0xff]  }
 0x18c   : > { %1317 = vmatprep.mubr.bf16.mxu1 %v10773_v18  ;;  %2233 = vmatpush1.bf16.msra.mxu1 %v9206_v45 }
 0x18d   : > { %2234 = vmatprep.subr.bf16.mxu1 %v9214_v46 }
 0x18e   : > { %2149 = vmatpush1.bf16.msra.mxu0 %v9209_v42  ;;  %v1338_v42 = vlaneseq }
 0x18f   : > { %2150 = vmatprep.subr.bf16.mxu0 %v9217_v43 }
 0x190   : > { %2235 = vmatpush1.bf16.msra.mxu1 %v9212_v49  ;;  %v1339_v43 = vshrl.u32 %v1338_v42, 7  ;;  %v1336_v49 = vld [vmem:[#allocation7] sm:$0xf] }
 0x191   : > { %1212 = vmatmul.mubr.bf16.gmra.mrb[4].mxu0 %v9193_v44  ;;  %2236 = vmatprep.subr.bf16.mxu1 %v9220_v50 }
 0x192   : > { %2151 = vmatpush1.bf16.msra.mxu0 %v9215_v47  ;;  %v11184_v50 = vsub.s32 1, %v1339_v43 }
 0x193   : > { %2152 = vmatprep.subr.bf16.mxu0 %v9223_v48  ;;  %1318 = vmatmul.mubr.bf16.gmra.mrb[4].mxu1 %v9193_v44  ;;  %v11182_v48 = vsub.s32 0, %v1339_v43 }
 0x194   : > { %2237 = vmatpush1.bf16.msra.mxu1 %v9218_v53  ;;  %v1345_v53 = vrot.slane %v1336_v49, %v11184_v50 }
 0x195   : > { %2238 = vmatprep.subr.bf16.mxu1 %v9226_v54 }
 0x196   : > { %2153 = vmatpush1.bf16.msra.mxu0 %v9221_v51  ;;  %v1341_v51 = vrot.slane %v1336_v49, %v11182_v48 }
 0x197   : > { %2154 = vmatprep.subr.bf16.mxu0 %v9229_v52 }
 0x198   : > { %2239 = vmatpush1.bf16.msra.mxu1 %v9224_v57 }
 0x199   : > { %2240 = vmatprep.subr.bf16.mxu1 %v9232_v58 }
 0x19a   : > { %2155 = vmatpush1.bf16.msra.mxu0 %v9227_v55 }
 0x19b   : > { %2156 = vmatprep.subr.bf16.mxu0 %v9235_v56 }
 0x19c   : > { %2241 = vmatpush1.bf16.msra.mxu1 %v9230_v61 }
 0x19d   : > { %2242 = vmatprep.subr.bf16.mxu1 %v9238_v62 }
 0x19e   : > { %2157 = vmatpush1.bf16.msra.mxu0 %v9233_v59 }
 0x19f   : > { %2158 = vmatprep.subr.bf16.mxu0 %v9241_v60 }
 0x1a0   : > { %2243 = vmatpush1.bf16.msra.mxu1 %v9236_v1  ;;  %v11188_v1 = vsub.s32 2, %v1339_v43 }
 0x1a1   : > { %2244 = vmatprep.subr.bf16.mxu1 %v9244_v2 }
 0x1a2   : > { %2159 = vmatpush1.bf16.msra.mxu0 %v9239_v63 }
 0x1a3   : > { %2160 = vmatprep.subr.bf16.mxu0 %v9247_v0 }
 0x1a4   : > { %2245 = vmatpush1.bf16.msra.mxu1 %v9242_v5 }
 0x1a5   : > { %2246 = vmatprep.subr.bf16.mxu1 %v9250_v6 }
 0x1a6   : > { %2161 = vmatpush1.bf16.msra.mxu0 %v9245_v3 }
 0x1a7   : > { %2162 = vmatprep.subr.bf16.mxu0 %v9253_v4  ;;  %v11190_v4 = vsub.s32 3, %v1339_v43 }
 0x1a8   : > { %2247 = vmatpush1.bf16.msra.mxu1 %v9248_v9  ;;  %v1349_v9 = vrot.slane %v1336_v49, %v11188_v1 }
 0x1a9   : > { %2248 = vmatprep.subr.bf16.mxu1 %v9256_v10 }
 0x1aa   : > { %2163 = vmatpush1.bf16.msra.mxu0 %v9251_v7 }
 0x1ab   : > { %2164 = vmatprep.subr.bf16.mxu0 %v9259_v8 }
 0x1ac   : > { %2249 = vmatpush1.bf16.msra.mxu1 %v9254_v13  ;;  %v9302_v13 = vld [vmem:[#allocation8 + $0x208] ss:$16 sps:$4 sm:$0xff]  }
 0x1ad   : > { %2250 = vmatprep.subr.bf16.mxu1 %v9262_v14 }
 0x1ae   : > { %2165 = vmatpush1.bf16.msra.mxu0 %v9257_v11 }
 0x1af   : > { %2166 = vmatprep.subr.bf16.mxu0 %v9265_v12  ;;  %v9299_v12 = vld [vmem:[#allocation8 + $0x200] ss:$16 sps:$4 sm:$0xff]  }
 0x1b0   : > { %2251 = vmatpush1.bf16.msra.mxu1 %v9260_v16 }
 0x1b1   : > { %2252 = vmatprep.subr.bf16.mxu1 %v9268_v17  ;;  %v9307_v17 = vld [vmem:[#allocation8 + $0x224] ss:$16 sps:$4 sm:$0xff]  }
 0x1b2   : > { %2167 = vmatpush1.bf16.msra.mxu0 %v9263_v15  ;;  %v1353_v15 = vrot.slane %v1336_v49, %v11190_v4  ;;  %v9325_v49 = vld [vmem:[#allocation8 + $0x284] ss:$16 sps:$4 sm:$0xff]  }
 0x1b3   : > { %2168 = vmatprep.subr.bf16.mxu0 %v9271_v20 }
 0x1b4   : > { %2253 = vmatpush1.bf16.msra.mxu1 %v9266_v19  ;;  %v9310_v19 = vld [vmem:[#allocation8 + $0x22c] ss:$16 sps:$4 sm:$0xff]  }
 0x1b5   : > { %2254 = vmatprep.subr.bf16.mxu1 %v9274_v21 }
 0x1b6   : > { %2169 = vmatpush1.bf16.msra.mxu0 %v9269_v22 }
 0x1b7   : > { %2170 = vmatprep.subr.bf16.mxu0 %v9277_v24 }
 0x1b8   : > { %2255 = vmatpush1.bf16.msra.mxu1 %v9272_v23 }
 0x1b9   : > { %2256 = vmatprep.subr.bf16.mxu1 %v9280_v25 }
 0x1ba   : > { %2171 = vmatpush1.bf16.msra.mxu0 %v9275_v26 }
 0x1bb   : > { %2172 = vmatprep.subr.bf16.mxu0 %v9283_v28  ;;  %v9305_v28 = vld [vmem:[#allocation8 + $0x220] ss:$16 sps:$4 sm:$0xff]  }
 0x1bc   : > { %2257 = vmatpush1.bf16.msra.mxu1 %v9278_v27 }
 0x1bd   : > { %2258 = vmatprep.subr.bf16.mxu1 %v9286_v29  ;;  %v9308_v29 = vld [vmem:[#allocation8 + $0x228] ss:$16 sps:$4 sm:$0xff]  }
 0x1be   : > { %2173 = vmatpush1.bf16.msra.mxu0 %v9281_v30 }
 0x1bf   : > { %2174 = vmatprep.subr.bf16.mxu0 %v9289_v32  ;;  %v9313_v32 = vld [vmem:[#allocation8 + $0x244] ss:$16 sps:$4 sm:$0xff]  }
 0x1c0   : > { %2259 = vmatpush1.bf16.msra.mxu1 %v9284_v31 }
 0x1c1   : > { %2260 = vmatprep.subr.bf16.mxu1 %v9292_v33  ;;  %v9316_v33 = vld [vmem:[#allocation8 + $0x24c] ss:$16 sps:$4 sm:$0xff]  }
 0x1c2   : > { %2175 = vmatpush1.bf16.msra.mxu0 %v9287_v34 }
 0x1c3   : > { %2176 = vmatprep.subr.bf16.mxu0 %v9295_v36 }
 0x1c4   : > { %2261 = vmatpush1.bf16.msra.mxu1 %v9290_v35 }
 0x1c5   : > { %2262 = vmatprep.subr.bf16.mxu1 %v9298_v37 }
 0x1c6   : > { %2177 = vmatpush1.bf16.msra.mxu0 %v9293_v38 }
 0x1c7   : > { %2189 = vmatprep.subr.bf16.mxu0 %v9301_v40  ;;  %v9311_v40 = vld [vmem:[#allocation8 + $0x240] ss:$16 sps:$4 sm:$0xff]  }
 0x1c8   : > { %2263 = vmatpush1.bf16.msra.mxu1 %v9296_v39 }
 0x1c9   : > { %2275 = vmatprep.subr.bf16.mxu1 %v9304_v41  ;;  %v9314_v41 = vld [vmem:[#allocation8 + $0x248] ss:$16 sps:$4 sm:$0xff]  }
 0x25c   : > { %v1203_v44 = vpop.f32.mrb[0].mxu0 }
 0x25d   : > { %v1205_v45 = vpop.f32.mrb[1].mxu0 }
 0x25e   : > { %v1207_v46 = vpop.f32.mrb[2].mxu0  ;;  %v1309_v54 = vpop.f32.mrb[0].mxu1 }
 0x25f   : > { %v1209_v47 = vpop.f32.mrb[3].mxu0  ;;  %v1311_v57 = vpop.f32.mrb[1].mxu1 }
 0x260   : > { %v1313_v60 = vpop.f32.mrb[2].mxu1 }
 0x261   : > { %v1315_v0 = vpop.f32.mrb[3].mxu1 }
 0x264   : > { %v1213_v52 = vpop.f32.mrb[4].mxu0 }
 0x265   : > { %v1328_v55 = vmax.f32 %v1203_v44, %v1213_v52  ;;  %v1215_v56 = vpop.f32.mrb[5].mxu0  ;;  %v9319_v44 = vld [vmem:[#allocation8 + $0x264] ss:$16 sps:$4 sm:$0xff]   ;;  %v9323_v52 = vld [vmem:[#allocation8 + $0x280] ss:$16 sps:$4 sm:$0xff]  }
 0x266   : > { %v1329_v58 = vmax.f32 %v1205_v45, %v1215_v56  ;;  %v1217_v59 = vpop.f32.mrb[6].mxu0  ;;  %v1319_v14 = vpop.f32.mrb[4].mxu1  ;;  %v9322_v45 = vld [vmem:[#allocation8 + $0x26c] ss:$16 sps:$4 sm:$0xff]   ;;  %v9329_v56 = vld [vmem:[#allocation8 + $0x2a0] ss:$16 sps:$4 sm:$0xff]  }
 0x267   : > { %v1358_v61 = vadd.f32 %v1341_v51, %v1328_v55  ;;  %v1332_v62 = vmax.f32 %v1207_v46, %v1217_v59  ;;  %v1219_v63 = vpop.f32.mrb[7].mxu0  ;;  %v1330_v20 = vmax.f32 %v1309_v54, %v1319_v14  ;;  %v1321_v21 = vpop.f32.mrb[5].mxu1  ;;  %v9317_v46 = vld [vmem:[#allocation8 + $0x260] ss:$16 sps:$4 sm:$0xff]   ;;  %v9331_v54 = vld [vmem:[#allocation8 + $0x2a4] ss:$16 sps:$4 sm:$0xff]  }
 0x268   : > { %v1359_v2 = vadd.f32 %v1345_v53, %v1329_v58  ;;  %v1333_v3 = vmax.f32 %v1209_v47, %v1219_v63  ;;  %v1331_v23 = vmax.f32 %v1311_v57, %v1321_v21  ;;  %v1323_v24 = vpop.f32.mrb[6].mxu1  ;;  %v9320_v47 = vld [vmem:[#allocation8 + $0x268] ss:$16 sps:$4 sm:$0xff]   ;;  %v9334_v55 = vld [vmem:[#allocation8 + $0x2ac] ss:$16 sps:$4 sm:$0xff]  }
 0x269   : > { %v1362_v5 = vadd.f32 %v1341_v51, %v1332_v62  ;;  %v1366_v7 = vmax.f32 %v1358_v61, 0.0  ;;  %v1360_v25 = vadd.f32 %v1349_v9, %v1330_v20  ;;  %v1334_v26 = vmax.f32 %v1313_v60, %v1323_v24  ;;  %v1325_v27 = vpop.f32.mrb[7].mxu1  ;;  %v9328_v51 = vld [vmem:[#allocation8 + $0x28c] ss:$16 sps:$4 sm:$0xff]   ;;  %v9332_v57 = vld [vmem:[#allocation8 + $0x2a8] ss:$16 sps:$4 sm:$0xff]  }
 0x26a   : > { %v1363_v6 = vadd.f32 %v1345_v53, %v1333_v3  ;;  %v1367_v10 = vmax.f32 %v1359_v2, 0.0  ;;  %v1361_v30 = vadd.f32 %v1353_v15, %v1331_v23  ;;  %v1335_v31 = vmax.f32 %v1315_v0, %v1325_v27  ;;  %v9326_v53 = vld [vmem:[#allocation8 + $0x288] ss:$16 sps:$4 sm:$0xff]   ;;  %v9337_v58 = vld [vmem:[#allocation8 + $0x2c4] ss:$16 sps:$4 sm:$0xff]  }
 0x26b   : > { %v1370_v8 = vmax.f32 %v1362_v5, 0.0  ;;  %v1368_v34 = vmax.f32 %v1360_v25, 0.0  ;;  %v1364_v35 = vadd.f32 %v1349_v9, %v1334_v26  ;;  %v9340_v59 = vld [vmem:[#allocation8 + $0x2cc] ss:$16 sps:$4 sm:$0xff]   ;;  %v9335_v60 = vld [vmem:[#allocation8 + $0x2c0] ss:$16 sps:$4 sm:$0xff]  }
 0x26c   : > { %v1371_v11 = vmax.f32 %v1363_v6, 0.0  ;;  %v1369_v36 = vmax.f32 %v1361_v30, 0.0  ;;  %v1365_v37 = vadd.f32 %v1353_v15, %v1335_v31  ;;  %v9338_v61 = vld [vmem:[#allocation8 + $0x2c8] ss:$16 sps:$4 sm:$0xff]   ;;  %v9343_v62 = vld [vmem:[#allocation8 + $0x2e4] ss:$16 sps:$4 sm:$0xff]  }
 0x26d   : > { %v11194_v16 = vpack.c.bf16 %v1370_v8, %v1366_v7  ;;  %v1372_v38 = vmax.f32 %v1364_v35, 0.0  ;;  %v9346_v63 = vld [vmem:[#allocation8 + $0x2ec] ss:$16 sps:$4 sm:$0xff]   ;;  %v9341_v0 = vld [vmem:[#allocation8 + $0x2e0] ss:$16 sps:$4 sm:$0xff]  }
 0x26e   : > { %v11196_v22 = vpack.c.bf16 %v1371_v11, %v1367_v10  ;;  %v1373_v39 = vmax.f32 %v1365_v37, 0.0  ;;  %v9344_v2 = vld [vmem:[#allocation8 + $0x2e8] ss:$16 sps:$4 sm:$0xff]   ;;  %v9349_v3 = vld [vmem:[#allocation8 + $0x304] ss:$16 sps:$4 sm:$0xff]  }
 0x26f   : > { %v11202_v42 = vpack.c.bf16 %v1372_v38, %v1368_v34  ;;  %v9352_v5 = vld [vmem:[#allocation8 + $0x30c] ss:$16 sps:$4 sm:$0xff]   ;;  %v9347_v6 = vld [vmem:[#allocation8 + $0x300] ss:$16 sps:$4 sm:$0xff]   ;;  %v9350_v7 = vld [vmem:[#allocation8 + $0x308] ss:$16 sps:$4 sm:$0xff]  }
 0x270   : > { %2178 = vmatprep.mubr.bf16.mxu0 %v11196_v22  ;;  %2264 = vmatprep.mubr.bf16.mxu1 %v11196_v22  ;;  %v11204_v43 = vpack.c.bf16 %v1373_v39, %v1369_v36  ;;  %v9355_v8 = vld [vmem:[#allocation8 + $0x324] ss:$16 sps:$4 sm:$0xff]   ;;  %v9358_v9 = vld [vmem:[#allocation8 + $0x32c] ss:$16 sps:$4 sm:$0xff]   ;;  %v9353_v10 = vld [vmem:[#allocation8 + $0x320] ss:$16 sps:$4 sm:$0xff]  }
 0x271   : > { %2179 = vmatmul.mubr.bf16.vlgmr.msra.gmra.mrb[8].mxu0 %v11194_v16  ;;  %2265 = vmatmul.mubr.bf16.vlgmr.msra.gmra.mrb[8].mxu1 %v11194_v16  ;;  %v9356_v11 = vld [vmem:[#allocation8 + $0x328] ss:$16 sps:$4 sm:$0xff]   ;;  %v9359_v14 = vld [vmem:[#allocation8 + $0x340] ss:$16 sps:$4 sm:$0xff]   ;;  %v9373_v23 = vld [vmem:[#allocation8 + $0x384] ss:$16 sps:$4 sm:$0xff]  }
 0x272   : > { %2190 = vmatpush1.bf16.msra.mxu0 %v9299_v12  ;;  %2276 = vmatpush1.bf16.msra.mxu1 %v9302_v13  ;;  %v9361_v12 = vld [vmem:[#allocation8 + $0x344] ss:$16 sps:$4 sm:$0xff]   ;;  %v9364_v13 = vld [vmem:[#allocation8 + $0x34c] ss:$16 sps:$4 sm:$0xff]   ;;  %v9362_v15 = vld [vmem:[#allocation8 + $0x348] ss:$16 sps:$4 sm:$0xff]  }
 0x273   : > { %2191 = vmatprep.subr.bf16.mxu0 %v9307_v17  ;;  %2277 = vmatprep.subr.bf16.mxu1 %v9310_v19  ;;  %v9367_v17 = vld [vmem:[#allocation8 + $0x364] ss:$16 sps:$4 sm:$0xff]   ;;  %v9370_v19 = vld [vmem:[#allocation8 + $0x36c] ss:$16 sps:$4 sm:$0xff]   ;;  %v9365_v20 = vld [vmem:[#allocation8 + $0x360] ss:$16 sps:$4 sm:$0xff]  }
 0x274   : > { %2221 = vmatprep.mubr.bf16.mxu0 %v11204_v43  ;;  %2307 = vmatprep.mubr.bf16.mxu1 %v11204_v43  ;;  %v9368_v21 = vld [vmem:[#allocation8 + $0x368] ss:$16 sps:$4 sm:$0xff]   ;;  %v9376_v24 = vld [vmem:[#allocation8 + $0x38c] ss:$16 sps:$4 sm:$0xff]   ;;  %v9371_v25 = vld [vmem:[#allocation8 + $0x380] ss:$16 sps:$4 sm:$0xff]  }
 0x275   : > { %v9374_v26 = vld [vmem:[#allocation8 + $0x388] ss:$16 sps:$4 sm:$0xff]   ;;  %v9379_v27 = vld [vmem:[#allocation8 + $0x3a4] ss:$16 sps:$4 sm:$0xff]   ;;  %v9394_v36 = vld [vmem:[#allocation8 + $0x3ec] ss:$16 sps:$4 sm:$0xff]  }
 0x276   : > { %2192 = vmatpush1.bf16.msra.mxu0 %v9305_v28  ;;  %2278 = vmatpush1.bf16.msra.mxu1 %v9308_v29  ;;  %v9382_v28 = vld [vmem:[#allocation8 + $0x3ac] ss:$16 sps:$4 sm:$0xff]   ;;  %v9377_v29 = vld [vmem:[#allocation8 + $0x3a0] ss:$16 sps:$4 sm:$0xff]   ;;  %v9380_v30 = vld [vmem:[#allocation8 + $0x3a8] ss:$16 sps:$4 sm:$0xff]  }
 0x277   : > { %2193 = vmatprep.subr.bf16.mxu0 %v9313_v32  ;;  %2279 = vmatprep.subr.bf16.mxu1 %v9316_v33  ;;  %v9385_v31 = vld [vmem:[#allocation8 + $0x3c4] ss:$16 sps:$4 sm:$0xff]   ;;  %v9388_v32 = vld [vmem:[#allocation8 + $0x3cc] ss:$16 sps:$4 sm:$0xff]   ;;  %v9383_v33 = vld [vmem:[#allocation8 + $0x3c0] ss:$16 sps:$4 sm:$0xff]  }
 0x278   : > { %v9386_v34 = vld [vmem:[#allocation8 + $0x3c8] ss:$16 sps:$4 sm:$0xff]   ;;  %v9391_v35 = vld [vmem:[#allocation8 + $0x3e4] ss:$16 sps:$4 sm:$0xff]   ;;  %v9389_v37 = vld [vmem:[#allocation8 + $0x3e0] ss:$16 sps:$4 sm:$0xff]  }
 0x279   : > { %v9392_v38 = vld [vmem:[#allocation8 + $0x3e8] ss:$16 sps:$4 sm:$0xff]   ;;  %v9397_v39 = vld [vmem:[#allocation8 + $0x404] ss:$16 sps:$4 sm:$0xff]  }
 0x27a   : > { %2194 = vmatpush1.bf16.msra.mxu0 %v9311_v40  ;;  %2280 = vmatpush1.bf16.msra.mxu1 %v9314_v41  ;;  %v9400_v40 = vld [vmem:[#allocation8 + $0x40c] ss:$16 sps:$4 sm:$0xff]   ;;  %v9395_v41 = vld [vmem:[#allocation8 + $0x400] ss:$16 sps:$4 sm:$0xff]  }
 0x27b   : > { %2195 = vmatprep.subr.bf16.mxu0 %v9319_v44  ;;  %2281 = vmatprep.subr.bf16.mxu1 %v9322_v45  ;;  %v9398_v44 = vld [vmem:[#allocation8 + $0x408] ss:$16 sps:$4 sm:$0xff]   ;;  %v9403_v45 = vld [vmem:[#allocation8 + $0x424] ss:$16 sps:$4 sm:$0xff]  }
 0x27e   : > { %2196 = vmatpush1.bf16.msra.mxu0 %v9317_v46  ;;  %2282 = vmatpush1.bf16.msra.mxu1 %v9320_v47  ;;  %v9406_v46 = vld [vmem:[#allocation8 + $0x42c] ss:$16 sps:$4 sm:$0xff]   ;;  %v9401_v47 = vld [vmem:[#allocation8 + $0x420] ss:$16 sps:$4 sm:$0xff]  }
 0x27f   : > { %2197 = vmatprep.subr.bf16.mxu0 %v9325_v49  ;;  %2283 = vmatprep.subr.bf16.mxu1 %v9328_v51  ;;  %v9404_v49 = vld [vmem:[#allocation8 + $0x428] ss:$16 sps:$4 sm:$0xff]   ;;  %v9409_v51 = vld [vmem:[#allocation8 + $0x444] ss:$16 sps:$4 sm:$0xff]  }
 0x282   : > { %2198 = vmatpush1.bf16.msra.mxu0 %v9323_v52  ;;  %2284 = vmatpush1.bf16.msra.mxu1 %v9326_v53  ;;  %v9412_v52 = vld [vmem:[#allocation8 + $0x44c] ss:$16 sps:$4 sm:$0xff]   ;;  %v9407_v53 = vld [vmem:[#allocation8 + $0x440] ss:$16 sps:$4 sm:$0xff]  }
 0x283   : > { %2199 = vmatprep.subr.bf16.mxu0 %v9331_v54  ;;  %2285 = vmatprep.subr.bf16.mxu1 %v9334_v55  ;;  %v9410_v54 = vld [vmem:[#allocation8 + $0x448] ss:$16 sps:$4 sm:$0xff]   ;;  %v9415_v55 = vld [vmem:[#allocation8 + $0x464] ss:$16 sps:$4 sm:$0xff]  }
 0x286   : > { %2200 = vmatpush1.bf16.msra.mxu0 %v9329_v56  ;;  %2286 = vmatpush1.bf16.msra.mxu1 %v9332_v57  ;;  %v9413_v56 = vld [vmem:[#allocation8 + $0x460] ss:$16 sps:$4 sm:$0xff]   ;;  %v9418_v57 = vld [vmem:[#allocation8 + $0x46c] ss:$16 sps:$4 sm:$0xff]  }
 0x287   : > { %2201 = vmatprep.subr.bf16.mxu0 %v9337_v58  ;;  %2287 = vmatprep.subr.bf16.mxu1 %v9340_v59  ;;  %v9416_v58 = vld [vmem:[#allocation8 + $0x468] ss:$16 sps:$4 sm:$0xff]   ;;  %v9421_v59 = vld [vmem:[#allocation8 + $0x484] ss:$16 sps:$4 sm:$0xff]  }
 0x28a   : > { %2202 = vmatpush1.bf16.msra.mxu0 %v9335_v60  ;;  %2288 = vmatpush1.bf16.msra.mxu1 %v9338_v61  ;;  %v9419_v60 = vld [vmem:[#allocation8 + $0x480] ss:$16 sps:$4 sm:$0xff]   ;;  %v9424_v61 = vld [vmem:[#allocation8 + $0x48c] ss:$16 sps:$4 sm:$0xff]  }
 0x28b   : > { %2203 = vmatprep.subr.bf16.mxu0 %v9343_v62  ;;  %2289 = vmatprep.subr.bf16.mxu1 %v9346_v63  ;;  %v9422_v62 = vld [vmem:[#allocation8 + $0x488] ss:$16 sps:$4 sm:$0xff]   ;;  %v9427_v63 = vld [vmem:[#allocation8 + $0x4a4] ss:$16 sps:$4 sm:$0xff]  }
 0x28e   : > { %2204 = vmatpush1.bf16.msra.mxu0 %v9341_v0  ;;  %2290 = vmatpush1.bf16.msra.mxu1 %v9344_v2  ;;  %v9425_v0 = vld [vmem:[#allocation8 + $0x4a0] ss:$16 sps:$4 sm:$0xff]   ;;  %v9430_v2 = vld [vmem:[#allocation8 + $0x4ac] ss:$16 sps:$4 sm:$0xff]  }
 0x28f   : > { %2205 = vmatprep.subr.bf16.mxu0 %v9349_v3  ;;  %2291 = vmatprep.subr.bf16.mxu1 %v9352_v5  ;;  %v9428_v3 = vld [vmem:[#allocation8 + $0x4a8] ss:$16 sps:$4 sm:$0xff]   ;;  %v9433_v5 = vld [vmem:[#allocation8 + $0x4c4] ss:$16 sps:$4 sm:$0xff]  }
 0x292   : > { %2206 = vmatpush1.bf16.msra.mxu0 %v9347_v6  ;;  %2292 = vmatpush1.bf16.msra.mxu1 %v9350_v7  ;;  %v9431_v6 = vld [vmem:[#allocation8 + $0x4c0] ss:$16 sps:$4 sm:$0xff]   ;;  %v9436_v7 = vld [vmem:[#allocation8 + $0x4cc] ss:$16 sps:$4 sm:$0xff]  }
 0x293   : > { %2207 = vmatprep.subr.bf16.mxu0 %v9355_v8  ;;  %2293 = vmatprep.subr.bf16.mxu1 %v9358_v9  ;;  %v9434_v8 = vld [vmem:[#allocation8 + $0x4c8] ss:$16 sps:$4 sm:$0xff]   ;;  %v9439_v9 = vld [vmem:[#allocation8 + $0x4e4] ss:$16 sps:$4 sm:$0xff]  }
 0x296   : > { %2208 = vmatpush1.bf16.msra.mxu0 %v9353_v10  ;;  %2294 = vmatpush1.bf16.msra.mxu1 %v9356_v11  ;;  %v9437_v10 = vld [vmem:[#allocation8 + $0x4e0] ss:$16 sps:$4 sm:$0xff]   ;;  %v9442_v11 = vld [vmem:[#allocation8 + $0x4ec] ss:$16 sps:$4 sm:$0xff]  }
 0x297   : > { %2209 = vmatprep.subr.bf16.mxu0 %v9361_v12  ;;  %2295 = vmatprep.subr.bf16.mxu1 %v9364_v13  ;;  %v9440_v12 = vld [vmem:[#allocation8 + $0x4e8] ss:$16 sps:$4 sm:$0xff]   ;;  %v9445_v13 = vld [vmem:[#allocation8 + $0x504] ss:$16 sps:$4 sm:$0xff]  }
 0x29a   : > { %2210 = vmatpush1.bf16.msra.mxu0 %v9359_v14  ;;  %2296 = vmatpush1.bf16.msra.mxu1 %v9362_v15  ;;  %v9443_v14 = vld [vmem:[#allocation8 + $0x500] ss:$16 sps:$4 sm:$0xff]   ;;  %v9448_v15 = vld [vmem:[#allocation8 + $0x50c] ss:$16 sps:$4 sm:$0xff]  }
 0x29b   : > { %2211 = vmatprep.subr.bf16.mxu0 %v9367_v17  ;;  %2297 = vmatprep.subr.bf16.mxu1 %v9370_v19  ;;  %v9446_v17 = vld [vmem:[#allocation8 + $0x508] ss:$16 sps:$4 sm:$0xff]   ;;  %v9451_v19 = vld [vmem:[#allocation8 + $0x524] ss:$16 sps:$4 sm:$0xff]  }
 0x29e   : > { %2212 = vmatpush1.bf16.msra.mxu0 %v9365_v20  ;;  %2298 = vmatpush1.bf16.msra.mxu1 %v9368_v21  ;;  %v9449_v20 = vld [vmem:[#allocation8 + $0x520] ss:$16 sps:$4 sm:$0xff]   ;;  %v9454_v21 = vld [vmem:[#allocation8 + $0x52c] ss:$16 sps:$4 sm:$0xff]  }
 0x29f   : > { %2213 = vmatprep.subr.bf16.mxu0 %v9373_v23  ;;  %2299 = vmatprep.subr.bf16.mxu1 %v9376_v24  ;;  %v9452_v23 = vld [vmem:[#allocation8 + $0x528] ss:$16 sps:$4 sm:$0xff]   ;;  %v9457_v24 = vld [vmem:[#allocation8 + $0x544] ss:$16 sps:$4 sm:$0xff]  }
 0x2a2   : > { %2214 = vmatpush1.bf16.msra.mxu0 %v9371_v25  ;;  %2300 = vmatpush1.bf16.msra.mxu1 %v9374_v26  ;;  %v9455_v25 = vld [vmem:[#allocation8 + $0x540] ss:$16 sps:$4 sm:$0xff]   ;;  %v9460_v26 = vld [vmem:[#allocation8 + $0x54c] ss:$16 sps:$4 sm:$0xff]  }
 0x2a3   : > { %2215 = vmatprep.subr.bf16.mxu0 %v9379_v27  ;;  %2301 = vmatprep.subr.bf16.mxu1 %v9382_v28  ;;  %v9458_v27 = vld [vmem:[#allocation8 + $0x548] ss:$16 sps:$4 sm:$0xff]   ;;  %v9463_v28 = vld [vmem:[#allocation8 + $0x564] ss:$16 sps:$4 sm:$0xff]  }
 0x2a6   : > { %2216 = vmatpush1.bf16.msra.mxu0 %v9377_v29  ;;  %2302 = vmatpush1.bf16.msra.mxu1 %v9380_v30  ;;  %v9461_v29 = vld [vmem:[#allocation8 + $0x560] ss:$16 sps:$4 sm:$0xff]   ;;  %v9466_v30 = vld [vmem:[#allocation8 + $0x56c] ss:$16 sps:$4 sm:$0xff]  }
 0x2a7   : > { %2217 = vmatprep.subr.bf16.mxu0 %v9385_v31  ;;  %2303 = vmatprep.subr.bf16.mxu1 %v9388_v32  ;;  %v9464_v31 = vld [vmem:[#allocation8 + $0x568] ss:$16 sps:$4 sm:$0xff]   ;;  %v9469_v32 = vld [vmem:[#allocation8 + $0x584] ss:$16 sps:$4 sm:$0xff]  }
 0x2aa   : > { %2218 = vmatpush1.bf16.msra.mxu0 %v9383_v33  ;;  %2304 = vmatpush1.bf16.msra.mxu1 %v9386_v34  ;;  %v9467_v33 = vld [vmem:[#allocation8 + $0x580] ss:$16 sps:$4 sm:$0xff]   ;;  %v9472_v34 = vld [vmem:[#allocation8 + $0x58c] ss:$16 sps:$4 sm:$0xff]  }
 0x2ab   : > { %2219 = vmatprep.subr.bf16.mxu0 %v9391_v35  ;;  %2305 = vmatprep.subr.bf16.mxu1 %v9394_v36  ;;  %v9470_v35 = vld [vmem:[#allocation8 + $0x588] ss:$16 sps:$4 sm:$0xff]   ;;  %v9475_v36 = vld [vmem:[#allocation8 + $0x5a4] ss:$16 sps:$4 sm:$0xff]  }
 0x2ae   : > { %2220 = vmatpush1.bf16.msra.mxu0 %v9389_v37  ;;  %2306 = vmatpush1.bf16.msra.mxu1 %v9392_v38  ;;  %v9473_v37 = vld [vmem:[#allocation8 + $0x5a0] ss:$16 sps:$4 sm:$0xff]   ;;  %v9478_v38 = vld [vmem:[#allocation8 + $0x5ac] ss:$16 sps:$4 sm:$0xff]  }
 0x2af   : > { %3086 = vmatprep.subr.bf16.mxu0 %v9397_v39  ;;  %3172 = vmatprep.subr.bf16.mxu1 %v9400_v40  ;;  %v9476_v39 = vld [vmem:[#allocation8 + $0x5a8] ss:$16 sps:$4 sm:$0xff]   ;;  %v9481_v40 = vld [vmem:[#allocation8 + $0x5c4] ss:$16 sps:$4 sm:$0xff]  }
 0x2b1   : > { %2222 = vmatmul.mubr.bf16.vlgmr.msra.gmra.mrb[8].mxu0 %v11202_v42  ;;  %2308 = vmatmul.mubr.bf16.vlgmr.msra.gmra.mrb[8].mxu1 %v11202_v42 }
 0x2b2   : > { %3087 = vmatpush1.bf16.msra.mxu0 %v9395_v41  ;;  %3118 = vmatprep.mubr.bf16.mxu0 %v11196_v22  ;;  %v9479_v41 = vld [vmem:[#allocation8 + $0x5c0] ss:$16 sps:$4 sm:$0xff]  }
 0x2b3   : > { %3173 = vmatpush1.bf16.msra.mxu1 %v9398_v44  ;;  %3204 = vmatprep.mubr.bf16.mxu1 %v11196_v22  ;;  %v9484_v44 = vld [vmem:[#allocation8 + $0x5cc] ss:$16 sps:$4 sm:$0xff]  }
 0x2b4   : > { %3088 = vmatprep.subr.bf16.mxu0 %v9403_v45  ;;  %3174 = vmatprep.subr.bf16.mxu1 %v9406_v46  ;;  %v9482_v45 = vld [vmem:[#allocation8 + $0x5c8] ss:$16 sps:$4 sm:$0xff]   ;;  %v9487_v46 = vld [vmem:[#allocation8 + $0x5e4] ss:$16 sps:$4 sm:$0xff]  }
 0x2b6   : > { %3089 = vmatpush1.bf16.msra.mxu0 %v9401_v47  ;;  %v9485_v47 = vld [vmem:[#allocation8 + $0x5e0] ss:$16 sps:$4 sm:$0xff]  }
 0x2b7   : > { %3175 = vmatpush1.bf16.msra.mxu1 %v9404_v49  ;;  %3090 = vmatprep.subr.bf16.mxu0 %v9409_v51  ;;  %v9490_v49 = vld [vmem:[#allocation8 + $0x5ec] ss:$16 sps:$4 sm:$0xff]   ;;  %v9488_v51 = vld [vmem:[#allocation8 + $0x5e8] ss:$16 sps:$4 sm:$0xff]  }
 0x2b8   : > { %3176 = vmatprep.subr.bf16.mxu1 %v9412_v52  ;;  %v9493_v52 = vld [vmem:[#allocation8 + $0x604] ss:$16 sps:$4 sm:$0xff]  }
 0x2ba   : > { %3091 = vmatpush1.bf16.msra.mxu0 %v9407_v53  ;;  %v9496_v53 = vld [vmem:[#allocation8 + $0x60c] ss:$16 sps:$4 sm:$0xff]  }
 0x2bb   : > { %3177 = vmatpush1.bf16.msra.mxu1 %v9410_v54  ;;  %3092 = vmatprep.subr.bf16.mxu0 %v9415_v55  ;;  %v9491_v54 = vld [vmem:[#allocation8 + $0x600] ss:$16 sps:$4 sm:$0xff]   ;;  %v9494_v55 = vld [vmem:[#allocation8 + $0x608] ss:$16 sps:$4 sm:$0xff]  }
 0x2bc   : > { %3178 = vmatprep.subr.bf16.mxu1 %v9418_v57  ;;  %v9502_v57 = vld [vmem:[#allocation8 + $0x62c] ss:$16 sps:$4 sm:$0xff]  }
 0x2be   : > { %3093 = vmatpush1.bf16.msra.mxu0 %v9413_v56  ;;  %v9499_v56 = vld [vmem:[#allocation8 + $0x624] ss:$16 sps:$4 sm:$0xff]  }
 0x2bf   : > { %3179 = vmatpush1.bf16.msra.mxu1 %v9416_v58  ;;  %3094 = vmatprep.subr.bf16.mxu0 %v9421_v59  ;;  %v9497_v58 = vld [vmem:[#allocation8 + $0x620] ss:$16 sps:$4 sm:$0xff]   ;;  %v9500_v59 = vld [vmem:[#allocation8 + $0x628] ss:$16 sps:$4 sm:$0xff]  }
 0x2c0   : > { %3180 = vmatprep.subr.bf16.mxu1 %v9424_v61  ;;  %v9508_v61 = vld [vmem:[#allocation8 + $0x64c] ss:$16 sps:$4 sm:$0xff]  }
 0x2c2   : > { %3095 = vmatpush1.bf16.msra.mxu0 %v9419_v60  ;;  %v9505_v60 = vld [vmem:[#allocation8 + $0x644] ss:$16 sps:$4 sm:$0xff]  }
 0x2c3   : > { %3181 = vmatpush1.bf16.msra.mxu1 %v9422_v62  ;;  %3096 = vmatprep.subr.bf16.mxu0 %v9427_v63  ;;  %v9503_v62 = vld [vmem:[#allocation8 + $0x640] ss:$16 sps:$4 sm:$0xff]   ;;  %v9506_v63 = vld [vmem:[#allocation8 + $0x648] ss:$16 sps:$4 sm:$0xff]  }
 0x2c4   : > { %3182 = vmatprep.subr.bf16.mxu1 %v9430_v2  ;;  %v9514_v2 = vld [vmem:[#allocation8 + $0x66c] ss:$16 sps:$4 sm:$0xff]  }
 0x2c6   : > { %3097 = vmatpush1.bf16.msra.mxu0 %v9425_v0  ;;  %v9511_v0 = vld [vmem:[#allocation8 + $0x664] ss:$16 sps:$4 sm:$0xff]  }
 0x2c7   : > { %3183 = vmatpush1.bf16.msra.mxu1 %v9428_v3  ;;  %3098 = vmatprep.subr.bf16.mxu0 %v9433_v5  ;;  %v9509_v3 = vld [vmem:[#allocation8 + $0x660] ss:$16 sps:$4 sm:$0xff]   ;;  %v9512_v5 = vld [vmem:[#allocation8 + $0x668] ss:$16 sps:$4 sm:$0xff]  }
 0x2c8   : > { %3184 = vmatprep.subr.bf16.mxu1 %v9436_v7  ;;  %v9520_v7 = vld [vmem:[#allocation8 + $0x68c] ss:$16 sps:$4 sm:$0xff]  }
 0x2ca   : > { %3099 = vmatpush1.bf16.msra.mxu0 %v9431_v6  ;;  %v9517_v6 = vld [vmem:[#allocation8 + $0x684] ss:$16 sps:$4 sm:$0xff]  }
 0x2cb   : > { %3185 = vmatpush1.bf16.msra.mxu1 %v9434_v8  ;;  %3100 = vmatprep.subr.bf16.mxu0 %v9439_v9  ;;  %v9515_v8 = vld [vmem:[#allocation8 + $0x680] ss:$16 sps:$4 sm:$0xff]   ;;  %v9518_v9 = vld [vmem:[#allocation8 + $0x688] ss:$16 sps:$4 sm:$0xff]  }
 0x2cc   : > { %3186 = vmatprep.subr.bf16.mxu1 %v9442_v11  ;;  %v9526_v11 = vld [vmem:[#allocation8 + $0x6ac] ss:$16 sps:$4 sm:$0xff]  }
 0x2ce   : > { %3101 = vmatpush1.bf16.msra.mxu0 %v9437_v10  ;;  %v9523_v10 = vld [vmem:[#allocation8 + $0x6a4] ss:$16 sps:$4 sm:$0xff]  }
 0x2cf   : > { %3187 = vmatpush1.bf16.msra.mxu1 %v9440_v12  ;;  %3102 = vmatprep.subr.bf16.mxu0 %v9445_v13  ;;  %v9521_v12 = vld [vmem:[#allocation8 + $0x6a0] ss:$16 sps:$4 sm:$0xff]   ;;  %v9524_v13 = vld [vmem:[#allocation8 + $0x6a8] ss:$16 sps:$4 sm:$0xff]  }
 0x2d0   : > { %3188 = vmatprep.subr.bf16.mxu1 %v9448_v15  ;;  %v9532_v15 = vld [vmem:[#allocation8 + $0x6cc] ss:$16 sps:$4 sm:$0xff]  }
 0x2d2   : > { %3103 = vmatpush1.bf16.msra.mxu0 %v9443_v14  ;;  %v9529_v14 = vld [vmem:[#allocation8 + $0x6c4] ss:$16 sps:$4 sm:$0xff]  }
 0x2d3   : > { %3189 = vmatpush1.bf16.msra.mxu1 %v9446_v17  ;;  %3104 = vmatprep.subr.bf16.mxu0 %v9451_v19  ;;  %v9527_v17 = vld [vmem:[#allocation8 + $0x6c0] ss:$16 sps:$4 sm:$0xff]   ;;  %v9530_v19 = vld [vmem:[#allocation8 + $0x6c8] ss:$16 sps:$4 sm:$0xff]  }
 0x2d4   : > { %3190 = vmatprep.subr.bf16.mxu1 %v9454_v21  ;;  %v9538_v21 = vld [vmem:[#allocation8 + $0x6ec] ss:$16 sps:$4 sm:$0xff]  }
 0x2d6   : > { %3105 = vmatpush1.bf16.msra.mxu0 %v9449_v20  ;;  %v9535_v20 = vld [vmem:[#allocation8 + $0x6e4] ss:$16 sps:$4 sm:$0xff]  }
 0x2d7   : > { %3191 = vmatpush1.bf16.msra.mxu1 %v9452_v23  ;;  %3106 = vmatprep.subr.bf16.mxu0 %v9457_v24  ;;  %v9533_v23 = vld [vmem:[#allocation8 + $0x6e0] ss:$16 sps:$4 sm:$0xff]   ;;  %v9536_v24 = vld [vmem:[#allocation8 + $0x6e8] ss:$16 sps:$4 sm:$0xff]  }
 0x2d8   : > { %3192 = vmatprep.subr.bf16.mxu1 %v9460_v26  ;;  %v9544_v26 = vld [vmem:[#allocation8 + $0x70c] ss:$16 sps:$4 sm:$0xff]  }
 0x2da   : > { %3107 = vmatpush1.bf16.msra.mxu0 %v9455_v25  ;;  %v9541_v25 = vld [vmem:[#allocation8 + $0x704] ss:$16 sps:$4 sm:$0xff]  }
 0x2db   : > { %3193 = vmatpush1.bf16.msra.mxu1 %v9458_v27  ;;  %3108 = vmatprep.subr.bf16.mxu0 %v9463_v28  ;;  %v9539_v27 = vld [vmem:[#allocation8 + $0x700] ss:$16 sps:$4 sm:$0xff]   ;;  %v9542_v28 = vld [vmem:[#allocation8 + $0x708] ss:$16 sps:$4 sm:$0xff]  }
 0x2dc   : > { %3194 = vmatprep.subr.bf16.mxu1 %v9466_v30  ;;  %v9550_v30 = vld [vmem:[#allocation8 + $0x72c] ss:$16 sps:$4 sm:$0xff]  }
 0x2de   : > { %3109 = vmatpush1.bf16.msra.mxu0 %v9461_v29  ;;  %v9547_v29 = vld [vmem:[#allocation8 + $0x724] ss:$16 sps:$4 sm:$0xff]  }
 0x2df   : > { %3195 = vmatpush1.bf16.msra.mxu1 %v9464_v31  ;;  %3110 = vmatprep.subr.bf16.mxu0 %v9469_v32  ;;  %v9545_v31 = vld [vmem:[#allocation8 + $0x720] ss:$16 sps:$4 sm:$0xff]   ;;  %v9548_v32 = vld [vmem:[#allocation8 + $0x728] ss:$16 sps:$4 sm:$0xff]  }
 0x2e0   : > { %3196 = vmatprep.subr.bf16.mxu1 %v9472_v34  ;;  %v9556_v34 = vld [vmem:[#allocation8 + $0x74c] ss:$16 sps:$4 sm:$0xff]  }
 0x2e2   : > { %3111 = vmatpush1.bf16.msra.mxu0 %v9467_v33  ;;  %v9553_v33 = vld [vmem:[#allocation8 + $0x744] ss:$16 sps:$4 sm:$0xff]  }
 0x2e3   : > { %3197 = vmatpush1.bf16.msra.mxu1 %v9470_v35  ;;  %3112 = vmatprep.subr.bf16.mxu0 %v9475_v36  ;;  %v9551_v35 = vld [vmem:[#allocation8 + $0x740] ss:$16 sps:$4 sm:$0xff]   ;;  %v9554_v36 = vld [vmem:[#allocation8 + $0x748] ss:$16 sps:$4 sm:$0xff]  }
 0x2e4   : > { %3198 = vmatprep.subr.bf16.mxu1 %v9478_v38  ;;  %v9562_v38 = vld [vmem:[#allocation8 + $0x76c] ss:$16 sps:$4 sm:$0xff]  }
 0x2e6   : > { %3113 = vmatpush1.bf16.msra.mxu0 %v9473_v37  ;;  %v9559_v37 = vld [vmem:[#allocation8 + $0x764] ss:$16 sps:$4 sm:$0xff]  }
 0x2e7   : > { %3199 = vmatpush1.bf16.msra.mxu1 %v9476_v39  ;;  %3114 = vmatprep.subr.bf16.mxu0 %v9481_v40  ;;  %v9557_v39 = vld [vmem:[#allocation8 + $0x760] ss:$16 sps:$4 sm:$0xff]   ;;  %v9560_v40 = vld [vmem:[#allocation8 + $0x768] ss:$16 sps:$4 sm:$0xff]  }
 0x2e8   : > { %3200 = vmatprep.subr.bf16.mxu1 %v9484_v44  ;;  %v9568_v44 = vld [vmem:[#allocation8 + $0x78c] ss:$16 sps:$4 sm:$0xff]  }
 0x2ea   : > { %3115 = vmatpush1.bf16.msra.mxu0 %v9479_v41  ;;  %v9565_v41 = vld [vmem:[#allocation8 + $0x784] ss:$16 sps:$4 sm:$0xff]  }
 0x2eb   : > { %3201 = vmatpush1.bf16.msra.mxu1 %v9482_v45  ;;  %3116 = vmatprep.subr.bf16.mxu0 %v9487_v46  ;;  %v9563_v45 = vld [vmem:[#allocation8 + $0x780] ss:$16 sps:$4 sm:$0xff]   ;;  %v9566_v46 = vld [vmem:[#allocation8 + $0x788] ss:$16 sps:$4 sm:$0xff]  }
 0x2ec   : > { %3202 = vmatprep.subr.bf16.mxu1 %v9490_v49  ;;  %v9574_v49 = vld [vmem:[#allocation8 + $0x7ac] ss:$16 sps:$4 sm:$0xff]  }
 0x2ee   : > { %3117 = vmatpush1.bf16.msra.mxu0 %v9485_v47  ;;  %v9571_v47 = vld [vmem:[#allocation8 + $0x7a4] ss:$16 sps:$4 sm:$0xff]  }
 0x2ef   : > { %3203 = vmatpush1.bf16.msra.mxu1 %v9488_v51  ;;  %3129 = vmatprep.subr.bf16.mxu0 %v9493_v52  ;;  %v9569_v51 = vld [vmem:[#allocation8 + $0x7a0] ss:$16 sps:$4 sm:$0xff]   ;;  %v9572_v52 = vld [vmem:[#allocation8 + $0x7a8] ss:$16 sps:$4 sm:$0xff]  }
 0x2f0   : > { %3215 = vmatprep.subr.bf16.mxu1 %v9496_v53  ;;  %v9577_v53 = vld [vmem:[#allocation8 + $0x7c4] ss:$16 sps:$4 sm:$0xff]  }
 0x2f1   : > { %3119 = vmatmul.mubr.bf16.vlgmr.msra.gmra.mrb[12].mxu0 %v11194_v16 }
 0x2f2   : > { %3205 = vmatmul.mubr.bf16.vlgmr.msra.gmra.mrb[12].mxu1 %v11194_v16  ;;  %3130 = vmatpush1.bf16.msra.mxu0 %v9491_v54  ;;  %v9580_v54 = vld [vmem:[#allocation8 + $0x7cc] ss:$16 sps:$4 sm:$0xff]  }
 0x2f3   : > { %3161 = vmatprep.mubr.bf16.mxu0 %v11204_v43  ;;  %3216 = vmatpush1.bf16.msra.mxu1 %v9494_v55  ;;  %v9575_v55 = vld [vmem:[#allocation8 + $0x7c0] ss:$16 sps:$4 sm:$0xff]  }
 0x2f4   : > { %3247 = vmatprep.mubr.bf16.mxu1 %v11204_v43  ;;  %3131 = vmatprep.subr.bf16.mxu0 %v9499_v56  ;;  %v9578_v56 = vld [vmem:[#allocation8 + $0x7c8] ss:$16 sps:$4 sm:$0xff]  }
 0x2f5   : > { %3217 = vmatprep.subr.bf16.mxu1 %v9502_v57  ;;  %v9583_v57 = vld [vmem:[#allocation8 + $0x7e4] ss:$16 sps:$4 sm:$0xff]  }
 0x2f6   : > { %3132 = vmatpush1.bf16.msra.mxu0 %v9497_v58  ;;  %v9586_v58 = vld [vmem:[#allocation8 + $0x7ec] ss:$16 sps:$4 sm:$0xff]  }
 0x2f7   : > { %3218 = vmatpush1.bf16.msra.mxu1 %v9500_v59  ;;  %3133 = vmatprep.subr.bf16.mxu0 %v9505_v60  ;;  %v9581_v59 = vld [vmem:[#allocation8 + $0x7e0] ss:$16 sps:$4 sm:$0xff]   ;;  %v9584_v60 = vld [vmem:[#allocation8 + $0x7e8] ss:$16 sps:$4 sm:$0xff]  }
 0x2f8   : > { %3219 = vmatprep.subr.bf16.mxu1 %v9508_v61  ;;  %v9589_v61 = vld [vmem:[#allocation8 + $0x804] ss:$16 sps:$4 sm:$0xff]  }
 0x2fa   : > { %3134 = vmatpush1.bf16.msra.mxu0 %v9503_v62  ;;  %v9592_v62 = vld [vmem:[#allocation8 + $0x80c] ss:$16 sps:$4 sm:$0xff]  }
 0x2fb   : > { %3220 = vmatpush1.bf16.msra.mxu1 %v9506_v63  ;;  %3135 = vmatprep.subr.bf16.mxu0 %v9511_v0  ;;  %v9587_v63 = vld [vmem:[#allocation8 + $0x800] ss:$16 sps:$4 sm:$0xff]   ;;  %v9590_v0 = vld [vmem:[#allocation8 + $0x808] ss:$16 sps:$4 sm:$0xff]  }
 0x2fc   : > { %3221 = vmatprep.subr.bf16.mxu1 %v9514_v2  ;;  %v9595_v2 = vld [vmem:[#allocation8 + $0x824] ss:$16 sps:$4 sm:$0xff]  }
 0x2fe   : > { %3136 = vmatpush1.bf16.msra.mxu0 %v9509_v3  ;;  %v9598_v3 = vld [vmem:[#allocation8 + $0x82c] ss:$16 sps:$4 sm:$0xff]  }
 0x2ff   : > { %3222 = vmatpush1.bf16.msra.mxu1 %v9512_v5  ;;  %3137 = vmatprep.subr.bf16.mxu0 %v9517_v6  ;;  %v9593_v5 = vld [vmem:[#allocation8 + $0x820] ss:$16 sps:$4 sm:$0xff]   ;;  %v9596_v6 = vld [vmem:[#allocation8 + $0x828] ss:$16 sps:$4 sm:$0xff]  }
 0x300   : > { %3223 = vmatprep.subr.bf16.mxu1 %v9520_v7  ;;  %v9601_v7 = vld [vmem:[#allocation8 + $0x844] ss:$16 sps:$4 sm:$0xff]  }
 0x302   : > { %3138 = vmatpush1.bf16.msra.mxu0 %v9515_v8  ;;  %v9604_v8 = vld [vmem:[#allocation8 + $0x84c] ss:$16 sps:$4 sm:$0xff]  }
 0x303   : > { %3224 = vmatpush1.bf16.msra.mxu1 %v9518_v9  ;;  %3139 = vmatprep.subr.bf16.mxu0 %v9523_v10  ;;  %v9599_v9 = vld [vmem:[#allocation8 + $0x840] ss:$16 sps:$4 sm:$0xff]   ;;  %v9602_v10 = vld [vmem:[#allocation8 + $0x848] ss:$16 sps:$4 sm:$0xff]  }
 0x304   : > { %3225 = vmatprep.subr.bf16.mxu1 %v9526_v11  ;;  %v9607_v11 = vld [vmem:[#allocation8 + $0x864] ss:$16 sps:$4 sm:$0xff]  }
 0x306   : > { %3140 = vmatpush1.bf16.msra.mxu0 %v9521_v12  ;;  %v9610_v12 = vld [vmem:[#allocation8 + $0x86c] ss:$16 sps:$4 sm:$0xff]  }
 0x307   : > { %3226 = vmatpush1.bf16.msra.mxu1 %v9524_v13  ;;  %3141 = vmatprep.subr.bf16.mxu0 %v9529_v14  ;;  %v9605_v13 = vld [vmem:[#allocation8 + $0x860] ss:$16 sps:$4 sm:$0xff]   ;;  %v9608_v14 = vld [vmem:[#allocation8 + $0x868] ss:$16 sps:$4 sm:$0xff]  }
 0x308   : > { %3227 = vmatprep.subr.bf16.mxu1 %v9532_v15  ;;  %v9613_v15 = vld [vmem:[#allocation8 + $0x884] ss:$16 sps:$4 sm:$0xff]  }
 0x30a   : > { %3142 = vmatpush1.bf16.msra.mxu0 %v9527_v17  ;;  %v9616_v17 = vld [vmem:[#allocation8 + $0x88c] ss:$16 sps:$4 sm:$0xff]  }
 0x30b   : > { %3228 = vmatpush1.bf16.msra.mxu1 %v9530_v19  ;;  %3143 = vmatprep.subr.bf16.mxu0 %v9535_v20  ;;  %v9614_v19 = vld [vmem:[#allocation8 + $0x888] ss:$16 sps:$4 sm:$0xff]   ;;  %v9619_v20 = vld [vmem:[#allocation8 + $0x8a4] ss:$16 sps:$4 sm:$0xff]  }
 0x30c   : > { %3229 = vmatprep.subr.bf16.mxu1 %v9538_v21  ;;  %v9622_v21 = vld [vmem:[#allocation8 + $0x8ac] ss:$16 sps:$4 sm:$0xff]  }
 0x30e   : > { %3144 = vmatpush1.bf16.msra.mxu0 %v9533_v23  ;;  %v9617_v23 = vld [vmem:[#allocation8 + $0x8a0] ss:$16 sps:$4 sm:$0xff]  }
 0x30f   : > { %3230 = vmatpush1.bf16.msra.mxu1 %v9536_v24  ;;  %3145 = vmatprep.subr.bf16.mxu0 %v9541_v25  ;;  %v9620_v24 = vld [vmem:[#allocation8 + $0x8a8] ss:$16 sps:$4 sm:$0xff]   ;;  %v9625_v25 = vld [vmem:[#allocation8 + $0x8c4] ss:$16 sps:$4 sm:$0xff]  }
 0x310   : > { %3231 = vmatprep.subr.bf16.mxu1 %v9544_v26  ;;  %v9628_v26 = vld [vmem:[#allocation8 + $0x8cc] ss:$16 sps:$4 sm:$0xff]  }
 0x312   : > { %3146 = vmatpush1.bf16.msra.mxu0 %v9539_v27  ;;  %v9623_v27 = vld [vmem:[#allocation8 + $0x8c0] ss:$16 sps:$4 sm:$0xff]  }
 0x313   : > { %3232 = vmatpush1.bf16.msra.mxu1 %v9542_v28  ;;  %3147 = vmatprep.subr.bf16.mxu0 %v9547_v29  ;;  %v9626_v28 = vld [vmem:[#allocation8 + $0x8c8] ss:$16 sps:$4 sm:$0xff]   ;;  %v9631_v29 = vld [vmem:[#allocation8 + $0x8e4] ss:$16 sps:$4 sm:$0xff]  }
 0x314   : > { %3233 = vmatprep.subr.bf16.mxu1 %v9550_v30  ;;  %v9634_v30 = vld [vmem:[#allocation8 + $0x8ec] ss:$16 sps:$4 sm:$0xff]  }
 0x316   : > { %3148 = vmatpush1.bf16.msra.mxu0 %v9545_v31  ;;  %v9629_v31 = vld [vmem:[#allocation8 + $0x8e0] ss:$16 sps:$4 sm:$0xff]  }
 0x317   : > { %3234 = vmatpush1.bf16.msra.mxu1 %v9548_v32  ;;  %3149 = vmatprep.subr.bf16.mxu0 %v9553_v33  ;;  %v9632_v32 = vld [vmem:[#allocation8 + $0x8e8] ss:$16 sps:$4 sm:$0xff]   ;;  %v9637_v33 = vld [vmem:[#allocation8 + $0x904] ss:$16 sps:$4 sm:$0xff]  }
 0x318   : > { %3235 = vmatprep.subr.bf16.mxu1 %v9556_v34  ;;  %v9640_v34 = vld [vmem:[#allocation8 + $0x90c] ss:$16 sps:$4 sm:$0xff]  }
 0x31a   : > { %3150 = vmatpush1.bf16.msra.mxu0 %v9551_v35  ;;  %v9635_v35 = vld [vmem:[#allocation8 + $0x900] ss:$16 sps:$4 sm:$0xff]  }
 0x31b   : > { %3236 = vmatpush1.bf16.msra.mxu1 %v9554_v36  ;;  %3151 = vmatprep.subr.bf16.mxu0 %v9559_v37  ;;  %v9638_v36 = vld [vmem:[#allocation8 + $0x908] ss:$16 sps:$4 sm:$0xff]   ;;  %v9643_v37 = vld [vmem:[#allocation8 + $0x924] ss:$16 sps:$4 sm:$0xff]  }
 0x31c   : > { %3237 = vmatprep.subr.bf16.mxu1 %v9562_v38  ;;  %v9646_v38 = vld [vmem:[#allocation8 + $0x92c] ss:$16 sps:$4 sm:$0xff]  }
 0x31e   : > { %3152 = vmatpush1.bf16.msra.mxu0 %v9557_v39  ;;  %v9641_v39 = vld [vmem:[#allocation8 + $0x920] ss:$16 sps:$4 sm:$0xff]  }
 0x31f   : > { %3238 = vmatpush1.bf16.msra.mxu1 %v9560_v40  ;;  %3153 = vmatprep.subr.bf16.mxu0 %v9565_v41  ;;  %v9644_v40 = vld [vmem:[#allocation8 + $0x928] ss:$16 sps:$4 sm:$0xff]   ;;  %v9649_v41 = vld [vmem:[#allocation8 + $0x944] ss:$16 sps:$4 sm:$0xff]  }
 0x320   : > { %3239 = vmatprep.subr.bf16.mxu1 %v9568_v44  ;;  %v9652_v44 = vld [vmem:[#allocation8 + $0x94c] ss:$16 sps:$4 sm:$0xff]  }
 0x322   : > { %3154 = vmatpush1.bf16.msra.mxu0 %v9563_v45  ;;  %v9647_v45 = vld [vmem:[#allocation8 + $0x940] ss:$16 sps:$4 sm:$0xff]  }
 0x323   : > { %3240 = vmatpush1.bf16.msra.mxu1 %v9566_v46  ;;  %3155 = vmatprep.subr.bf16.mxu0 %v9571_v47  ;;  %v9650_v46 = vld [vmem:[#allocation8 + $0x948] ss:$16 sps:$4 sm:$0xff]   ;;  %v9655_v47 = vld [vmem:[#allocation8 + $0x964] ss:$16 sps:$4 sm:$0xff]  }
 0x324   : > { %3241 = vmatprep.subr.bf16.mxu1 %v9574_v49  ;;  %v9658_v49 = vld [vmem:[#allocation8 + $0x96c] ss:$16 sps:$4 sm:$0xff]  }
 0x326   : > { %3156 = vmatpush1.bf16.msra.mxu0 %v9569_v51  ;;  %v9653_v51 = vld [vmem:[#allocation8 + $0x960] ss:$16 sps:$4 sm:$0xff]  }
 0x327   : > { %3242 = vmatpush1.bf16.msra.mxu1 %v9572_v52  ;;  %3157 = vmatprep.subr.bf16.mxu0 %v9577_v53  ;;  %v9656_v52 = vld [vmem:[#allocation8 + $0x968] ss:$16 sps:$4 sm:$0xff]   ;;  %v9661_v53 = vld [vmem:[#allocation8 + $0x984] ss:$16 sps:$4 sm:$0xff]  }
 0x328   : > { %3243 = vmatprep.subr.bf16.mxu1 %v9580_v54  ;;  %v9664_v54 = vld [vmem:[#allocation8 + $0x98c] ss:$16 sps:$4 sm:$0xff]  }
 0x32a   : > { %3158 = vmatpush1.bf16.msra.mxu0 %v9575_v55  ;;  %v9659_v55 = vld [vmem:[#allocation8 + $0x980] ss:$16 sps:$4 sm:$0xff]  }
 0x32b   : > { %3244 = vmatpush1.bf16.msra.mxu1 %v9578_v56  ;;  %3159 = vmatprep.subr.bf16.mxu0 %v9583_v57  ;;  %v9662_v56 = vld [vmem:[#allocation8 + $0x988] ss:$16 sps:$4 sm:$0xff]   ;;  %v9667_v57 = vld [vmem:[#allocation8 + $0x9a4] ss:$16 sps:$4 sm:$0xff]  }
 0x32c   : > { %3245 = vmatprep.subr.bf16.mxu1 %v9586_v58  ;;  %v9670_v58 = vld [vmem:[#allocation8 + $0x9ac] ss:$16 sps:$4 sm:$0xff]  }
 0x32e   : > { %3160 = vmatpush1.bf16.msra.mxu0 %v9581_v59  ;;  %v9665_v59 = vld [vmem:[#allocation8 + $0x9a0] ss:$16 sps:$4 sm:$0xff]  }
 0x32f   : > { %3246 = vmatpush1.bf16.msra.mxu1 %v9584_v60  ;;  %4026 = vmatprep.subr.bf16.mxu0 %v9589_v61  ;;  %v9668_v60 = vld [vmem:[#allocation8 + $0x9a8] ss:$16 sps:$4 sm:$0xff]   ;;  %v9673_v61 = vld [vmem:[#allocation8 + $0x9c4] ss:$16 sps:$4 sm:$0xff]  }
 0x330   : > { %4112 = vmatprep.subr.bf16.mxu1 %v9592_v62  ;;  %v9676_v62 = vld [vmem:[#allocation8 + $0x9cc] ss:$16 sps:$4 sm:$0xff]  }
 0x331   : > { %3162 = vmatmul.mubr.bf16.vlgmr.msra.gmra.mrb[12].mxu0 %v11202_v42 }
 0x332   : > { %3248 = vmatmul.mubr.bf16.vlgmr.msra.gmra.mrb[12].mxu1 %v11202_v42  ;;  %4027 = vmatpush1.bf16.msra.mxu0 %v9587_v63  ;;  %v9671_v63 = vld [vmem:[#allocation8 + $0x9c0] ss:$16 sps:$4 sm:$0xff]  }
 0x333   : > { %4058 = vmatprep.mubr.bf16.mxu0 %v11196_v22  ;;  %4113 = vmatpush1.bf16.msra.mxu1 %v9590_v0  ;;  %v9674_v0 = vld [vmem:[#allocation8 + $0x9c8] ss:$16 sps:$4 sm:$0xff]  }
 0x334   : > { %4144 = vmatprep.mubr.bf16.mxu1 %v11196_v22  ;;  %4028 = vmatprep.subr.bf16.mxu0 %v9595_v2  ;;  %v9611_v22 = vld [vmem:[#allocation8 + $0x880] ss:$16 sps:$4 sm:$0xff]   ;;  %v9679_v2 = vld [vmem:[#allocation8 + $0x9e4] ss:$16 sps:$4 sm:$0xff]  }
 0x335   : > { %4114 = vmatprep.subr.bf16.mxu1 %v9598_v3  ;;  %v9682_v3 = vld [vmem:[#allocation8 + $0x9ec] ss:$16 sps:$4 sm:$0xff]  }
 0x336   : > { %4029 = vmatpush1.bf16.msra.mxu0 %v9593_v5  ;;  %v9677_v5 = vld [vmem:[#allocation8 + $0x9e0] ss:$16 sps:$4 sm:$0xff]  }
 0x337   : > { %4115 = vmatpush1.bf16.msra.mxu1 %v9596_v6  ;;  %4030 = vmatprep.subr.bf16.mxu0 %v9601_v7  ;;  %v9680_v6 = vld [vmem:[#allocation8 + $0x9e8] ss:$16 sps:$4 sm:$0xff]   ;;  %v9685_v7 = vld [vmem:[#allocation8 + $0xa04] ss:$16 sps:$4 sm:$0xff]  }
 0x338   : > { %4116 = vmatprep.subr.bf16.mxu1 %v9604_v8  ;;  %v9688_v8 = vld [vmem:[#allocation8 + $0xa0c] ss:$16 sps:$4 sm:$0xff]  }
 0x33a   : > { %4031 = vmatpush1.bf16.msra.mxu0 %v9599_v9  ;;  %v9683_v9 = vld [vmem:[#allocation8 + $0xa00] ss:$16 sps:$4 sm:$0xff]  }
 0x33b   : > { %4117 = vmatpush1.bf16.msra.mxu1 %v9602_v10  ;;  %4032 = vmatprep.subr.bf16.mxu0 %v9607_v11  ;;  %v9686_v10 = vld [vmem:[#allocation8 + $0xa08] ss:$16 sps:$4 sm:$0xff]   ;;  %v9691_v11 = vld [vmem:[#allocation8 + $0xa24] ss:$16 sps:$4 sm:$0xff]  }
 0x33c   : > { %4118 = vmatprep.subr.bf16.mxu1 %v9610_v12  ;;  %v9694_v12 = vld [vmem:[#allocation8 + $0xa2c] ss:$16 sps:$4 sm:$0xff]  }
 0x33e   : > { %4033 = vmatpush1.bf16.msra.mxu0 %v9605_v13  ;;  %v9689_v13 = vld [vmem:[#allocation8 + $0xa20] ss:$16 sps:$4 sm:$0xff]  }
 0x33f   : > { %4119 = vmatpush1.bf16.msra.mxu1 %v9608_v14  ;;  %4034 = vmatprep.subr.bf16.mxu0 %v9613_v15  ;;  %v9692_v14 = vld [vmem:[#allocation8 + $0xa28] ss:$16 sps:$4 sm:$0xff]   ;;  %v9697_v15 = vld [vmem:[#allocation8 + $0xa44] ss:$16 sps:$4 sm:$0xff]  }
 0x340   : > { %4120 = vmatprep.subr.bf16.mxu1 %v9616_v17  ;;  %v9700_v17 = vld [vmem:[#allocation8 + $0xa4c] ss:$16 sps:$4 sm:$0xff]  }
 0x342   : > { %4035 = vmatpush1.bf16.msra.mxu0 %v9611_v22  ;;  %v9695_v22 = vld [vmem:[#allocation8 + $0xa40] ss:$16 sps:$4 sm:$0xff]  }
 0x343   : > { %4121 = vmatpush1.bf16.msra.mxu1 %v9614_v19  ;;  %4036 = vmatprep.subr.bf16.mxu0 %v9619_v20  ;;  %v9698_v19 = vld [vmem:[#allocation8 + $0xa48] ss:$16 sps:$4 sm:$0xff]   ;;  %v9703_v20 = vld [vmem:[#allocation8 + $0xa64] ss:$16 sps:$4 sm:$0xff]  }
 0x344   : > { %4122 = vmatprep.subr.bf16.mxu1 %v9622_v21  ;;  %v9701_v21 = vld [vmem:[#allocation8 + $0xa60] ss:$16 sps:$4 sm:$0xff]  }
 0x346   : > { %4037 = vmatpush1.bf16.msra.mxu0 %v9617_v23  ;;  %v9704_v23 = vld [vmem:[#allocation8 + $0xa68] ss:$16 sps:$4 sm:$0xff]  }
 0x347   : > { %4123 = vmatpush1.bf16.msra.mxu1 %v9620_v24  ;;  %4038 = vmatprep.subr.bf16.mxu0 %v9625_v25  ;;  %v9709_v24 = vld [vmem:[#allocation8 + $0xa84] ss:$16 sps:$4 sm:$0xff]   ;;  %v9712_v25 = vld [vmem:[#allocation8 + $0xa8c] ss:$16 sps:$4 sm:$0xff]  }
 0x348   : > { %4124 = vmatprep.subr.bf16.mxu1 %v9628_v26  ;;  %v9710_v26 = vld [vmem:[#allocation8 + $0xa88] ss:$16 sps:$4 sm:$0xff]  }
 0x34a   : > { %4039 = vmatpush1.bf16.msra.mxu0 %v9623_v27  ;;  %v9715_v27 = vld [vmem:[#allocation8 + $0xaa4] ss:$16 sps:$4 sm:$0xff]  }
 0x34b   : > { %4125 = vmatpush1.bf16.msra.mxu1 %v9626_v28  ;;  %4040 = vmatprep.subr.bf16.mxu0 %v9631_v29  ;;  %v9718_v28 = vld [vmem:[#allocation8 + $0xaac] ss:$16 sps:$4 sm:$0xff]   ;;  %v9713_v29 = vld [vmem:[#allocation8 + $0xaa0] ss:$16 sps:$4 sm:$0xff]  }
 0x34c   : > { %4126 = vmatprep.subr.bf16.mxu1 %v9634_v30  ;;  %v9716_v30 = vld [vmem:[#allocation8 + $0xaa8] ss:$16 sps:$4 sm:$0xff]  }
 0x34e   : > { %4041 = vmatpush1.bf16.msra.mxu0 %v9629_v31  ;;  %v9721_v31 = vld [vmem:[#allocation8 + $0xac4] ss:$16 sps:$4 sm:$0xff]  }
 0x34f   : > { %4127 = vmatpush1.bf16.msra.mxu1 %v9632_v32  ;;  %4042 = vmatprep.subr.bf16.mxu0 %v9637_v33 }
 0x350   : > { %4128 = vmatprep.subr.bf16.mxu1 %v9640_v34  ;;  %v9724_v34 = vld [vmem:[#allocation8 + $0xacc] ss:$16 sps:$4 sm:$0xff]  }
 0x352   : > { %4043 = vmatpush1.bf16.msra.mxu0 %v9635_v35 }
 0x353   : > { %4129 = vmatpush1.bf16.msra.mxu1 %v9638_v36  ;;  %4044 = vmatprep.subr.bf16.mxu0 %v9643_v37 }
 0x354   : > { %4130 = vmatprep.subr.bf16.mxu1 %v9646_v38 }
 0x356   : > { %4045 = vmatpush1.bf16.msra.mxu0 %v9641_v39  ;;  %v9719_v39 = vld [vmem:[#allocation8 + $0xac0] ss:$16 sps:$4 sm:$0xff]  }
 0x357   : > { %4131 = vmatpush1.bf16.msra.mxu1 %v9644_v40  ;;  %4046 = vmatprep.subr.bf16.mxu0 %v9649_v41 }
 0x358   : > { %4132 = vmatprep.subr.bf16.mxu1 %v9652_v44  ;;  %v9722_v44 = vld [vmem:[#allocation8 + $0xac8] ss:$16 sps:$4 sm:$0xff]  }
 0x35a   : > { %4047 = vmatpush1.bf16.msra.mxu0 %v9647_v45  ;;  %v9727_v45 = vld [vmem:[#allocation8 + $0xae4] ss:$16 sps:$4 sm:$0xff]  }
 0x35b   : > { %4133 = vmatpush1.bf16.msra.mxu1 %v9650_v46  ;;  %4048 = vmatprep.subr.bf16.mxu0 %v9655_v47  ;;  %v9730_v46 = vld [vmem:[#allocation8 + $0xaec] ss:$16 sps:$4 sm:$0xff]   ;;  %v9725_v47 = vld [vmem:[#allocation8 + $0xae0] ss:$16 sps:$4 sm:$0xff]  }
 0x35c   : > { %4134 = vmatprep.subr.bf16.mxu1 %v9658_v49  ;;  %v9728_v49 = vld [vmem:[#allocation8 + $0xae8] ss:$16 sps:$4 sm:$0xff]  }
 0x35e   : > { %4049 = vmatpush1.bf16.msra.mxu0 %v9653_v51  ;;  %v9733_v51 = vld [vmem:[#allocation8 + $0xb04] ss:$16 sps:$4 sm:$0xff]  }
 0x35f   : > { %4135 = vmatpush1.bf16.msra.mxu1 %v9656_v52  ;;  %4050 = vmatprep.subr.bf16.mxu0 %v9661_v53  ;;  %v9736_v52 = vld [vmem:[#allocation8 + $0xb0c] ss:$16 sps:$4 sm:$0xff]   ;;  %v9731_v53 = vld [vmem:[#allocation8 + $0xb00] ss:$16 sps:$4 sm:$0xff]  }
 0x360   : > { %4136 = vmatprep.subr.bf16.mxu1 %v9664_v54  ;;  %v9734_v54 = vld [vmem:[#allocation8 + $0xb08] ss:$16 sps:$4 sm:$0xff]  }
 0x362   : > { %4051 = vmatpush1.bf16.msra.mxu0 %v9659_v55  ;;  %v9739_v55 = vld [vmem:[#allocation8 + $0xb24] ss:$16 sps:$4 sm:$0xff]  }
 0x363   : > { %4137 = vmatpush1.bf16.msra.mxu1 %v9662_v56  ;;  %4052 = vmatprep.subr.bf16.mxu0 %v9667_v57  ;;  %v9742_v56 = vld [vmem:[#allocation8 + $0xb2c] ss:$16 sps:$4 sm:$0xff]   ;;  %v9737_v57 = vld [vmem:[#allocation8 + $0xb20] ss:$16 sps:$4 sm:$0xff]  }
 0x364   : > { %4138 = vmatprep.subr.bf16.mxu1 %v9670_v58  ;;  %v9740_v58 = vld [vmem:[#allocation8 + $0xb28] ss:$16 sps:$4 sm:$0xff]  }
 0x366   : > { %4053 = vmatpush1.bf16.msra.mxu0 %v9665_v59  ;;  %v9745_v59 = vld [vmem:[#allocation8 + $0xb44] ss:$16 sps:$4 sm:$0xff]  }
 0x367   : > { %4139 = vmatpush1.bf16.msra.mxu1 %v9668_v60  ;;  %4054 = vmatprep.subr.bf16.mxu0 %v9673_v61  ;;  %v9748_v60 = vld [vmem:[#allocation8 + $0xb4c] ss:$16 sps:$4 sm:$0xff]   ;;  %v9743_v61 = vld [vmem:[#allocation8 + $0xb40] ss:$16 sps:$4 sm:$0xff]  }
 0x368   : > { %4140 = vmatprep.subr.bf16.mxu1 %v9676_v62  ;;  %v9746_v62 = vld [vmem:[#allocation8 + $0xb48] ss:$16 sps:$4 sm:$0xff]  }
 0x36a   : > { %4055 = vmatpush1.bf16.msra.mxu0 %v9671_v63  ;;  %v9751_v63 = vld [vmem:[#allocation8 + $0xb64] ss:$16 sps:$4 sm:$0xff]  }
 0x36b   : > { %4141 = vmatpush1.bf16.msra.mxu1 %v9674_v0  ;;  %4056 = vmatprep.subr.bf16.mxu0 %v9679_v2  ;;  %v9754_v0 = vld [vmem:[#allocation8 + $0xb6c] ss:$16 sps:$4 sm:$0xff]   ;;  %v9749_v2 = vld [vmem:[#allocation8 + $0xb60] ss:$16 sps:$4 sm:$0xff]  }
 0x36c   : > { %4142 = vmatprep.subr.bf16.mxu1 %v9682_v3  ;;  %v9752_v3 = vld [vmem:[#allocation8 + $0xb68] ss:$16 sps:$4 sm:$0xff]  }
 0x36e   : > { %4057 = vmatpush1.bf16.msra.mxu0 %v9677_v5  ;;  %v9757_v5 = vld [vmem:[#allocation8 + $0xb84] ss:$16 sps:$4 sm:$0xff]  }
 0x36f   : > { %4143 = vmatpush1.bf16.msra.mxu1 %v9680_v6  ;;  %4069 = vmatprep.subr.bf16.mxu0 %v9685_v7  ;;  %v9760_v6 = vld [vmem:[#allocation8 + $0xb8c] ss:$16 sps:$4 sm:$0xff]   ;;  %v9755_v7 = vld [vmem:[#allocation8 + $0xb80] ss:$16 sps:$4 sm:$0xff]  }
 0x370   : > { %4155 = vmatprep.subr.bf16.mxu1 %v9688_v8  ;;  %v9758_v8 = vld [vmem:[#allocation8 + $0xb88] ss:$16 sps:$4 sm:$0xff]  }
 0x371   : > { %4059 = vmatmul.mubr.bf16.vlgmr.msra.gmra.mrb[16].mxu0 %v11194_v16 }
 0x372   : > { %4145 = vmatmul.mubr.bf16.vlgmr.msra.gmra.mrb[16].mxu1 %v11194_v16  ;;  %4070 = vmatpush1.bf16.msra.mxu0 %v9683_v9  ;;  %v9706_v16 = vld [vmem:[#allocation8 + $0xa6c] ss:$16 sps:$4 sm:$0xff]   ;;  %v9763_v9 = vld [vmem:[#allocation8 + $0xba4] ss:$16 sps:$4 sm:$0xff]  }
 0x373   : > { %4101 = vmatprep.mubr.bf16.mxu0 %v11204_v43  ;;  %4156 = vmatpush1.bf16.msra.mxu1 %v9686_v10  ;;  %v9766_v10 = vld [vmem:[#allocation8 + $0xbac] ss:$16 sps:$4 sm:$0xff]  }
 0x374   : > { %4187 = vmatprep.mubr.bf16.mxu1 %v11204_v43  ;;  %4071 = vmatprep.subr.bf16.mxu0 %v9691_v11  ;;  %v9707_v43 = vld [vmem:[#allocation8 + $0xa80] ss:$16 sps:$4 sm:$0xff]  }
 0x375   : > { %4157 = vmatprep.subr.bf16.mxu1 %v9694_v12  ;;  %v9761_v11 = vld [vmem:[#allocation8 + $0xba0] ss:$16 sps:$4 sm:$0xff]   ;;  %v9764_v12 = vld [vmem:[#allocation8 + $0xba8] ss:$16 sps:$4 sm:$0xff]  }
 0x376   : > { %4072 = vmatpush1.bf16.msra.mxu0 %v9689_v13  ;;  %v9769_v13 = vld [vmem:[#allocation8 + $0xbc4] ss:$16 sps:$4 sm:$0xff]  }
 0x377   : > { %4158 = vmatpush1.bf16.msra.mxu1 %v9692_v14  ;;  %4073 = vmatprep.subr.bf16.mxu0 %v9697_v15  ;;  %v9772_v14 = vld [vmem:[#allocation8 + $0xbcc] ss:$16 sps:$4 sm:$0xff]   ;;  %v9767_v15 = vld [vmem:[#allocation8 + $0xbc0] ss:$16 sps:$4 sm:$0xff]  }
 0x378   : > { %4159 = vmatprep.subr.bf16.mxu1 %v9700_v17  ;;  %v9770_v17 = vld [vmem:[#allocation8 + $0xbc8] ss:$16 sps:$4 sm:$0xff]  }
 0x37a   : > { %4074 = vmatpush1.bf16.msra.mxu0 %v9695_v22  ;;  %v9775_v22 = vld [vmem:[#allocation8 + $0xbe4] ss:$16 sps:$4 sm:$0xff]  }
 0x37b   : > { %4160 = vmatpush1.bf16.msra.mxu1 %v9698_v19  ;;  %4075 = vmatprep.subr.bf16.mxu0 %v9703_v20  ;;  %v9778_v19 = vld [vmem:[#allocation8 + $0xbec] ss:$16 sps:$4 sm:$0xff]   ;;  %v9773_v20 = vld [vmem:[#allocation8 + $0xbe0] ss:$16 sps:$4 sm:$0xff]  }
 0x37c   : > { %4161 = vmatprep.subr.bf16.mxu1 %v9706_v16  ;;  %v9776_v16 = vld [vmem:[#allocation8 + $0xbe8] ss:$16 sps:$4 sm:$0xff]  }
 0x37e   : > { %4076 = vmatpush1.bf16.msra.mxu0 %v9701_v21  ;;  %v9781_v21 = vld [vmem:[#allocation11 + $0x4] ss:$16 sps:$4 sm:$0xff]  }
 0x37f   : > { %4162 = vmatpush1.bf16.msra.mxu1 %v9704_v23  ;;  %4077 = vmatprep.subr.bf16.mxu0 %v9709_v24  ;;  %v9784_v23 = vld [vmem:[#allocation11 + $0xc] ss:$16 sps:$4 sm:$0xff]   ;;  %v9779_v24 = vld [vmem:[#allocation11] ss:$16 sps:$4 sm:$0xff]  }
 0x380   : > { %4163 = vmatprep.subr.bf16.mxu1 %v9712_v25  ;;  %v9782_v25 = vld [vmem:[#allocation11 + $0x8] ss:$16 sps:$4 sm:$0xff]  }
 0x382   : > { %4078 = vmatpush1.bf16.msra.mxu0 %v9707_v43  ;;  %v9787_v43 = vld [vmem:[#allocation11 + $0x24] ss:$16 sps:$4 sm:$0xff]  }
 0x383   : > { %4164 = vmatpush1.bf16.msra.mxu1 %v9710_v26  ;;  %4079 = vmatprep.subr.bf16.mxu0 %v9715_v27  ;;  %v9790_v26 = vld [vmem:[#allocation11 + $0x2c] ss:$16 sps:$4 sm:$0xff]   ;;  %v9785_v27 = vld [vmem:[#allocation11 + $0x20] ss:$16 sps:$4 sm:$0xff]  }
 0x384   : > { %v11224_v32 = vpop.f32.mrb[8].mxu0  ;;  %v11226_v33 = vpop.f32.mrb[8].mxu1  ;;  %4165 = vmatprep.subr.bf16.mxu1 %v9718_v28  ;;  %v9788_v28 = vld [vmem:[#allocation11 + $0x28] ss:$16 sps:$4 sm:$0xff]  }
 0x385   : > { %v11228_v35 = vpop.f32.mrb[9].mxu0  ;;  %v11230_v36 = vpop.f32.mrb[9].mxu1 }
 0x386   : > { %v11232_v37 = vpop.f32.mrb[10].mxu0  ;;  %v11234_v38 = vpop.f32.mrb[10].mxu1  ;;  %4080 = vmatpush1.bf16.msra.mxu0 %v9713_v29  ;;  %v9793_v29 = vld [vmem:[#allocation11 + $0x44] ss:$16 sps:$4 sm:$0xff]  }
 0x387   : > { %4166 = vmatpush1.bf16.msra.mxu1 %v9716_v30  ;;  %v11236_v40 = vpop.f32.mrb[11].mxu0  ;;  %v11238_v41 = vpop.f32.mrb[11].mxu1  ;;  %4081 = vmatprep.subr.bf16.mxu0 %v9721_v31  ;;  %v9796_v30 = vld [vmem:[#allocation11 + $0x4c] ss:$16 sps:$4 sm:$0xff]   ;;  %v9791_v31 = vld [vmem:[#allocation11 + $0x40] ss:$16 sps:$4 sm:$0xff]  }
 0x388   : > { %4167 = vmatprep.subr.bf16.mxu1 %v9724_v34  ;;  %v9794_v34 = vld [vmem:[#allocation11 + $0x48] ss:$16 sps:$4 sm:$0xff]  }
 0x38a   : > { %4082 = vmatpush1.bf16.msra.mxu0 %v9719_v39  ;;  %v9799_v39 = vld [vmem:[#allocation11 + $0x64] ss:$16 sps:$4 sm:$0xff]  }
 0x38b   : > { %4168 = vmatpush1.bf16.msra.mxu1 %v9722_v44  ;;  %4083 = vmatprep.subr.bf16.mxu0 %v9727_v45  ;;  %v9802_v44 = vld [vmem:[#allocation11 + $0x6c] ss:$16 sps:$4 sm:$0xff]   ;;  %v9797_v45 = vld [vmem:[#allocation11 + $0x60] ss:$16 sps:$4 sm:$0xff]  }
 0x38c   : > { %4169 = vmatprep.subr.bf16.mxu1 %v9730_v46  ;;  %v9805_v46 = vld [vmem:[#allocation11 + $0x84] ss:$16 sps:$4 sm:$0xff]  }
 0x38e   : > { %4084 = vmatpush1.bf16.msra.mxu0 %v9725_v47  ;;  %v9808_v47 = vld [vmem:[#allocation11 + $0x8c] ss:$16 sps:$4 sm:$0xff]  }
 0x38f   : > { %4170 = vmatpush1.bf16.msra.mxu1 %v9728_v49  ;;  %4085 = vmatprep.subr.bf16.mxu0 %v9733_v51  ;;  %v9803_v49 = vld [vmem:[#allocation11 + $0x80] ss:$16 sps:$4 sm:$0xff]   ;;  %v9806_v51 = vld [vmem:[#allocation11 + $0x88] ss:$16 sps:$4 sm:$0xff]  }
 0x390   : > { %4171 = vmatprep.subr.bf16.mxu1 %v9736_v52  ;;  %v9811_v52 = vld [vmem:[#allocation11 + $0xa4] ss:$16 sps:$4 sm:$0xff]  }
 0x392   : > { %4086 = vmatpush1.bf16.msra.mxu0 %v9731_v53  ;;  %v9814_v53 = vld [vmem:[#allocation11 + $0xac] ss:$16 sps:$4 sm:$0xff]  }
 0x393   : > { %4172 = vmatpush1.bf16.msra.mxu1 %v9734_v54  ;;  %4087 = vmatprep.subr.bf16.mxu0 %v9739_v55  ;;  %v9809_v54 = vld [vmem:[#allocation11 + $0xa0] ss:$16 sps:$4 sm:$0xff]   ;;  %v9812_v55 = vld [vmem:[#allocation11 + $0xa8] ss:$16 sps:$4 sm:$0xff]  }
 0x394   : > { %4173 = vmatprep.subr.bf16.mxu1 %v9742_v56  ;;  %v9817_v56 = vld [vmem:[#allocation11 + $0xc4] ss:$16 sps:$4 sm:$0xff]  }
 0x396   : > { %4088 = vmatpush1.bf16.msra.mxu0 %v9737_v57  ;;  %v9820_v57 = vld [vmem:[#allocation11 + $0xcc] ss:$16 sps:$4 sm:$0xff]  }
 0x397   : > { %4174 = vmatpush1.bf16.msra.mxu1 %v9740_v58  ;;  %4089 = vmatprep.subr.bf16.mxu0 %v9745_v59  ;;  %v9815_v58 = vld [vmem:[#allocation11 + $0xc0] ss:$16 sps:$4 sm:$0xff]   ;;  %v9818_v59 = vld [vmem:[#allocation11 + $0xc8] ss:$16 sps:$4 sm:$0xff]  }
 0x398   : > { %4175 = vmatprep.subr.bf16.mxu1 %v9748_v60  ;;  %v9823_v60 = vld [vmem:[#allocation11 + $0xe4] ss:$16 sps:$4 sm:$0xff]  }
 0x39a   : > { %4090 = vmatpush1.bf16.msra.mxu0 %v9743_v61  ;;  %v9826_v61 = vld [vmem:[#allocation11 + $0xec] ss:$16 sps:$4 sm:$0xff]  }
 0x39b   : > { %4176 = vmatpush1.bf16.msra.mxu1 %v9746_v62  ;;  %4091 = vmatprep.subr.bf16.mxu0 %v9751_v63  ;;  %v9821_v62 = vld [vmem:[#allocation11 + $0xe0] ss:$16 sps:$4 sm:$0xff]   ;;  %v9824_v63 = vld [vmem:[#allocation11 + $0xe8] ss:$16 sps:$4 sm:$0xff]  }
 0x39c   : > { %4177 = vmatprep.subr.bf16.mxu1 %v9754_v0  ;;  %v9829_v0 = vld [vmem:[#allocation11 + $0x104] ss:$16 sps:$4 sm:$0xff]  }
 0x39e   : > { %4092 = vmatpush1.bf16.msra.mxu0 %v9749_v2  ;;  %v9832_v2 = vld [vmem:[#allocation11 + $0x10c] ss:$16 sps:$4 sm:$0xff]  }
 0x39f   : > { %4178 = vmatpush1.bf16.msra.mxu1 %v9752_v3  ;;  %4093 = vmatprep.subr.bf16.mxu0 %v9757_v5  ;;  %v9827_v3 = vld [vmem:[#allocation11 + $0x100] ss:$16 sps:$4 sm:$0xff]   ;;  %v9830_v5 = vld [vmem:[#allocation11 + $0x108] ss:$16 sps:$4 sm:$0xff]  }
 0x3a0   : > { %4179 = vmatprep.subr.bf16.mxu1 %v9760_v6  ;;  %v9835_v6 = vld [vmem:[#allocation11 + $0x124] ss:$16 sps:$4 sm:$0xff]  }
 0x3a2   : > { %4094 = vmatpush1.bf16.msra.mxu0 %v9755_v7  ;;  %v9838_v7 = vld [vmem:[#allocation11 + $0x12c] ss:$16 sps:$4 sm:$0xff]  }
 0x3a3   : > { %4180 = vmatpush1.bf16.msra.mxu1 %v9758_v8  ;;  %4095 = vmatprep.subr.bf16.mxu0 %v9763_v9  ;;  %v9833_v8 = vld [vmem:[#allocation11 + $0x120] ss:$16 sps:$4 sm:$0xff]   ;;  %v9836_v9 = vld [vmem:[#allocation11 + $0x128] ss:$16 sps:$4 sm:$0xff]  }
 0x3a4   : > { %4181 = vmatprep.subr.bf16.mxu1 %v9766_v10  ;;  %v9841_v10 = vld [vmem:[#allocation11 + $0x144] ss:$16 sps:$4 sm:$0xff]  }
 0x3a6   : > { %4096 = vmatpush1.bf16.msra.mxu0 %v9761_v11  ;;  %v9844_v11 = vld [vmem:[#allocation11 + $0x14c] ss:$16 sps:$4 sm:$0xff]  }
 0x3a7   : > { %4182 = vmatpush1.bf16.msra.mxu1 %v9764_v12  ;;  %4097 = vmatprep.subr.bf16.mxu0 %v9769_v13  ;;  %v9839_v12 = vld [vmem:[#allocation11 + $0x140] ss:$16 sps:$4 sm:$0xff]   ;;  %v9842_v13 = vld [vmem:[#allocation11 + $0x148] ss:$16 sps:$4 sm:$0xff]  }
 0x3a8   : > { %4183 = vmatprep.subr.bf16.mxu1 %v9772_v14  ;;  %v9847_v14 = vld [vmem:[#allocation11 + $0x164] ss:$16 sps:$4 sm:$0xff]  }
 0x3aa   : > { %4098 = vmatpush1.bf16.msra.mxu0 %v9767_v15  ;;  %v9850_v15 = vld [vmem:[#allocation11 + $0x16c] ss:$16 sps:$4 sm:$0xff]  }
 0x3ab   : > { %4184 = vmatpush1.bf16.msra.mxu1 %v9770_v17  ;;  %4099 = vmatprep.subr.bf16.mxu0 %v9775_v22  ;;  %v9845_v17 = vld [vmem:[#allocation11 + $0x160] ss:$16 sps:$4 sm:$0xff]   ;;  %v9848_v22 = vld [vmem:[#allocation11 + $0x168] ss:$16 sps:$4 sm:$0xff]  }
 0x3ac   : > { %4185 = vmatprep.subr.bf16.mxu1 %v9778_v19  ;;  %v9853_v19 = vld [vmem:[#allocation11 + $0x184] ss:$16 sps:$4 sm:$0xff]  }
 0x3ae   : > { %4100 = vmatpush1.bf16.msra.mxu0 %v9773_v20  ;;  %v9856_v20 = vld [vmem:[#allocation11 + $0x18c] ss:$16 sps:$4 sm:$0xff]  }
 0x3af   : > { %4186 = vmatpush1.bf16.msra.mxu1 %v9776_v16  ;;  %5082 = vmatprep.subr.bf16.mxu0 %v9781_v21  ;;  %v9851_v16 = vld [vmem:[#allocation11 + $0x180] ss:$16 sps:$4 sm:$0xff]   ;;  %v9854_v21 = vld [vmem:[#allocation11 + $0x188] ss:$16 sps:$4 sm:$0xff]  }
 0x3b0   : > { %5168 = vmatprep.subr.bf16.mxu1 %v9784_v23 }
 0x3b1   : > { %4102 = vmatmul.mubr.bf16.vlgmr.msra.gmra.mrb[16].mxu0 %v11202_v42 }
 0x3b2   : > { %4188 = vmatmul.mubr.bf16.vlgmr.msra.gmra.mrb[16].mxu1 %v11202_v42  ;;  %5083 = vmatpush1.bf16.msra.mxu0 %v9779_v24  ;;  %v9800_v42 = vld [vmem:[#allocation11 + $0x68] ss:$16 sps:$4 sm:$0xff]  }
 0x3b3   : > { %5169 = vmatpush1.bf16.msra.mxu1 %v9782_v25  ;;  %5084 = vmatprep.subr.bf16.mxu0 %v9787_v43 }
 0x3b4   : > { %5170 = vmatprep.subr.bf16.mxu1 %v9790_v26 }
 0x3b6   : > { %5085 = vmatpush1.bf16.msra.mxu0 %v9785_v27 }
 0x3b7   : > { %5171 = vmatpush1.bf16.msra.mxu1 %v9788_v28  ;;  %5086 = vmatprep.subr.bf16.mxu0 %v9793_v29 }
 0x3b8   : > { %5172 = vmatprep.subr.bf16.mxu1 %v9796_v30 }
 0x3ba   : > { %5087 = vmatpush1.bf16.msra.mxu0 %v9791_v31 }
 0x3bb   : > { %5173 = vmatpush1.bf16.msra.mxu1 %v9794_v34  ;;  %5088 = vmatprep.subr.bf16.mxu0 %v9799_v39 }
 0x3bc   : > { %5174 = vmatprep.subr.bf16.mxu1 %v9802_v44 }
 0x3be   : > { %5089 = vmatpush1.bf16.msra.mxu0 %v9797_v45 }
 0x3bf   : > { %5175 = vmatpush1.bf16.msra.mxu1 %v9800_v42  ;;  %5090 = vmatprep.subr.bf16.mxu0 %v9805_v46  ;;  %v9859_v42 = vld [vmem:[#allocation11 + $0x1a4] ss:$16 sps:$4 sm:$0xff]  }
 0x3c0   : > { %5176 = vmatprep.subr.bf16.mxu1 %v9808_v47 }
 0x3c2   : > { %5091 = vmatpush1.bf16.msra.mxu0 %v9803_v49 }
 0x3c3   : > { %5177 = vmatpush1.bf16.msra.mxu1 %v9806_v51  ;;  %5092 = vmatprep.subr.bf16.mxu0 %v9811_v52  ;;  %v9857_v52 = vld [vmem:[#allocation11 + $0x1a0] ss:$16 sps:$4 sm:$0xff]  }
 0x3c4   : > { %5178 = vmatprep.subr.bf16.mxu1 %v9814_v53  ;;  %v9860_v53 = vld [vmem:[#allocation11 + $0x1a8] ss:$16 sps:$4 sm:$0xff]  }
 0x3c6   : > { %5093 = vmatpush1.bf16.msra.mxu0 %v9809_v54 }
 0x3c7   : > { %5179 = vmatpush1.bf16.msra.mxu1 %v9812_v55  ;;  %5094 = vmatprep.subr.bf16.mxu0 %v9817_v56 }
 0x3c8   : > { %5180 = vmatprep.subr.bf16.mxu1 %v9820_v57 }
 0x3ca   : > { %5095 = vmatpush1.bf16.msra.mxu0 %v9815_v58  ;;  %v9862_v58 = vld [vmem:[#allocation11 + $0x1ac] ss:$16 sps:$4 sm:$0xff]  }
 0x3cb   : > { %5181 = vmatpush1.bf16.msra.mxu1 %v9818_v59  ;;  %5096 = vmatprep.subr.bf16.mxu0 %v9823_v60 }
 0x3cc   : > { %5182 = vmatprep.subr.bf16.mxu1 %v9826_v61 }
 0x3ce   : > { %5097 = vmatpush1.bf16.msra.mxu0 %v9821_v62 }
 0x3cf   : > { %5183 = vmatpush1.bf16.msra.mxu1 %v9824_v63  ;;  %5098 = vmatprep.subr.bf16.mxu0 %v9829_v0  ;;  %v9868_v63 = vld [vmem:[#allocation11 + $0x1cc] ss:$16 sps:$4 sm:$0xff]   ;;  %v9863_v0 = vld [vmem:[#allocation11 + $0x1c0] ss:$16 sps:$4 sm:$0xff]  }
 0x3d0   : > { %5184 = vmatprep.subr.bf16.mxu1 %v9832_v2  ;;  %v9866_v2 = vld [vmem:[#allocation11 + $0x1c8] ss:$16 sps:$4 sm:$0xff]  }
 0x3d2   : > { %5099 = vmatpush1.bf16.msra.mxu0 %v9827_v3  ;;  %v9872_v3 = vld [vmem:[#allocation11 + $0x1e8] ss:$16 sps:$4 sm:$0xff]  }
 0x3d3   : > { %5185 = vmatpush1.bf16.msra.mxu1 %v9830_v5  ;;  %5100 = vmatprep.subr.bf16.mxu0 %v9835_v6  ;;  %v4272_v5 = vld [vmem:[#allocation10] sm:$0xf] }
 0x3d4   : > { %5186 = vmatprep.subr.bf16.mxu1 %v9838_v7 }
 0x3d6   : > { %5101 = vmatpush1.bf16.msra.mxu0 %v9833_v8 }
 0x3d7   : > { %5187 = vmatpush1.bf16.msra.mxu1 %v9836_v9  ;;  %5102 = vmatprep.subr.bf16.mxu0 %v9841_v10 }
 0x3d8   : > { %5188 = vmatprep.subr.bf16.mxu1 %v9844_v11  ;;  %v4277_v11 = vrot.slane %v4272_v5, %v11182_v48 }
 0x3da   : > { %5103 = vmatpush1.bf16.msra.mxu0 %v9839_v12  ;;  %v4285_v12 = vrot.slane %v4272_v5, %v11188_v1 }
 0x3db   : > { %5189 = vmatpush1.bf16.msra.mxu1 %v9842_v13  ;;  %5104 = vmatprep.subr.bf16.mxu0 %v9847_v14 }
 0x3dc   : > { %5190 = vmatprep.subr.bf16.mxu1 %v9850_v15 }
 0x3de   : > { %5105 = vmatpush1.bf16.msra.mxu0 %v9845_v17 }
 0x3df   : > { %5191 = vmatpush1.bf16.msra.mxu1 %v9848_v22  ;;  %5106 = vmatprep.subr.bf16.mxu0 %v9853_v19  ;;  %v4281_v22 = vrot.slane %v4272_v5, %v11184_v50  ;;  %v4289_v19 = vrot.slane %v4272_v5, %v11190_v4  ;;  %v9889_v5 = vld [vmem:[#allocation11 + $0x244] ss:$16 sps:$4 sm:$0xff]  }
 0x3e0   : > { %5192 = vmatprep.subr.bf16.mxu1 %v9856_v20 }
 0x3e2   : > { %5107 = vmatpush1.bf16.msra.mxu0 %v9851_v16 }
 0x3e3   : > { %5193 = vmatpush1.bf16.msra.mxu1 %v9854_v21  ;;  %5108 = vmatprep.subr.bf16.mxu0 %v9859_v42 }
 0x3e4   : > { %5194 = vmatprep.subr.bf16.mxu1 %v9862_v58 }
 0x3e6   : > { %5109 = vmatpush1.bf16.msra.mxu0 %v9857_v52 }
 0x3e7   : > { %5195 = vmatpush1.bf16.msra.mxu1 %v9860_v53 }
 0x3e8   : > { %5196 = vmatprep.subr.bf16.mxu1 %v9868_v63 }
 0x3eb   : > { %5197 = vmatpush1.bf16.msra.mxu1 %v9866_v2 }
 0x404   : > { %v3163_v23 = vpop.f32.mrb[12].mxu0 }
 0x405   : > { %v3249_v24 = vpop.f32.mrb[12].mxu1  ;;  %v3165_v25 = vpop.f32.mrb[13].mxu0  ;;  %v4207_v27 = vrot.slane %v3163_v23, 1 }
 0x406   : > { %v3251_v43 = vpop.f32.mrb[13].mxu1  ;;  %v3167_v26 = vpop.f32.mrb[14].mxu0  ;;  %v4213_v28 = vrot.slane %v3249_v24, 1  ;;  %v4210_v34 = vrot.slane %v3165_v25, 1 }
 0x407   : > { %v4208_v29 = vrot.slane %v3167_v26, 1  ;;  %v3253_v30 = vpop.f32.mrb[14].mxu1  ;;  %v3169_v31 = vpop.f32.mrb[15].mxu0  ;;  %v4216_v46 = vrot.slane %v3251_v43, 1 }
 0x408   : > { %v4214_v39 = vrot.slane %v3253_v30, 1  ;;  %v4211_v44 = vrot.slane %v3169_v31, 1  ;;  %v3255_v45 = vpop.f32.mrb[15].mxu1 }
 0x409   : > { %v4209_v47 = vsel %vm4206_vm0, %v4207_v27, %v4208_v29  ;;  %v4231_v49 = vadd.f32 %v4208_v29, %v11232_v37  ;;  %v4217_v51 = vrot.slane %v3255_v45, 1 }
 0x40a   : > { %v4227_v54 = vadd.f32 %v4209_v47, %v11224_v32  ;;  %v4215_v55 = vsel %vm4206_vm0, %v4213_v28, %v4214_v39  ;;  %v4233_v56 = vadd.f32 %v4214_v39, %v11234_v38  ;;  %v4212_v57 = vsel %vm4206_vm0, %v4210_v34, %v4211_v44  ;;  %v9865_v38 = vld [vmem:[#allocation11 + $0x1c4] ss:$16 sps:$4 sm:$0xff]  }
 0x40b   : > { %v4229_v59 = vadd.f32 %v4215_v55, %v11226_v33  ;;  %v4228_v60 = vadd.f32 %v4212_v57, %v11228_v35  ;;  %v4232_v61 = vadd.f32 %v4211_v44, %v11236_v40  ;;  %v4218_v37 = vsel %vm4206_vm0, %v4216_v46, %v4217_v51  ;;  %5110 = vmatprep.subr.bf16.mxu0 %v9865_v38  ;;  %v9871_v33 = vld [vmem:[#allocation11 + $0x1e4] ss:$16 sps:$4 sm:$0xff]   ;;  %v9874_v35 = vld [vmem:[#allocation11 + $0x1ec] ss:$16 sps:$4 sm:$0xff]   ;;  %v9869_v40 = vld [vmem:[#allocation11 + $0x1e0] ss:$16 sps:$4 sm:$0xff]  }
 0x40c   : > { %v11253_v62 = vadd.f32 %v4218_v37, %v11230_v36  ;;  %v4234_v32 = vadd.f32 %v4217_v51, %v11238_v41  ;;  %5111 = vmatpush1.bf16.msra.mxu0 %v9863_v0  ;;  %5198 = vmatprep.subr.bf16.mxu1 %v9874_v35  ;;  %v9877_v36 = vld [vmem:[#allocation11 + $0x204] ss:$16 sps:$4 sm:$0xff]   ;;  %v9880_v41 = vld [vmem:[#allocation11 + $0x20c] ss:$16 sps:$4 sm:$0xff]  }
 0x40d   : > { %5112 = vmatprep.subr.bf16.mxu0 %v9871_v33  ;;  %5199 = vmatpush1.bf16.msra.mxu1 %v9872_v3  ;;  %v9878_v33 = vld [vmem:[#allocation11 + $0x208] ss:$16 sps:$4 sm:$0xff]  }
 0x40e   : > { %5211 = vmatprep.subr.bf16.mxu1 %v9880_v41  ;;  %v9884_v41 = vld [vmem:[#allocation11 + $0x228] ss:$16 sps:$4 sm:$0xff]  }
 0x410   : > { %5113 = vmatpush1.bf16.msra.mxu0 %v9869_v40  ;;  %v9886_v40 = vld [vmem:[#allocation11 + $0x22c] ss:$16 sps:$4 sm:$0xff]  }
 0x411   : > { %5125 = vmatprep.subr.bf16.mxu0 %v9877_v36  ;;  %v9881_v36 = vld [vmem:[#allocation11 + $0x220] ss:$16 sps:$4 sm:$0xff]  }
 0x484   : > { %v4103_v6 = vpop.f32.mrb[16].mxu0 }
 0x485   : > { %v4189_v7 = vpop.f32.mrb[16].mxu1  ;;  %v4105_v8 = vpop.f32.mrb[17].mxu0  ;;  %v4244_v13 = vrot.slane %v4103_v6, 2  ;;  %v9892_v6 = vld [vmem:[#allocation11 + $0x24c] ss:$16 sps:$4 sm:$0xff]  }
 0x486   : > { %v4191_v9 = vpop.f32.mrb[17].mxu1  ;;  %v4107_v10 = vpop.f32.mrb[18].mxu0  ;;  %v4250_v20 = vrot.slane %v4189_v7, 2  ;;  %v4247_v16 = vrot.slane %v4105_v8, 2  ;;  %v9887_v7 = vld [vmem:[#allocation11 + $0x240] ss:$16 sps:$4 sm:$0xff]  }
 0x487   : > { %v4245_v14 = vrot.slane %v4107_v10, 2  ;;  %v4193_v15 = vpop.f32.mrb[18].mxu1  ;;  %v4109_v17 = vpop.f32.mrb[19].mxu0  ;;  %v4253_v25 = vrot.slane %v4191_v9, 2  ;;  %v9890_v8 = vld [vmem:[#allocation11 + $0x248] ss:$16 sps:$4 sm:$0xff]  }
 0x488   : > { %v4251_v21 = vrot.slane %v4193_v15, 2  ;;  %v4248_v23 = vrot.slane %v4109_v17, 2  ;;  %v4195_v24 = vpop.f32.mrb[19].mxu1  ;;  %v9895_v9 = vld [vmem:[#allocation11 + $0x264] ss:$16 sps:$4 sm:$0xff]  }
 0x489   : > { %v4246_v43 = vsel %vm4243_vm1, %v4244_v13, %v4245_v14  ;;  %v4268_v26 = vadd.f32 %v4245_v14, %v4231_v49  ;;  %v4254_v27 = vrot.slane %v4195_v24, 2  ;;  %v9898_v10 = vld [vmem:[#allocation11 + $0x26c] ss:$16 sps:$4 sm:$0xff]   ;;  %v9901_v13 = vld [vmem:[#allocation11 + $0x284] ss:$16 sps:$4 sm:$0xff]  }
 0x48a   : > { %v4264_v28 = vadd.f32 %v4246_v43, %v4227_v54  ;;  %v4252_v29 = vsel %vm4243_vm1, %v4250_v20, %v4251_v21  ;;  %v4270_v30 = vadd.f32 %v4251_v21, %v4233_v56  ;;  %v4249_v31 = vsel %vm4243_vm1, %v4247_v16, %v4248_v23  ;;  %v9904_v14 = vld [vmem:[#allocation11 + $0x28c] ss:$16 sps:$4 sm:$0xff]   ;;  %v9899_v15 = vld [vmem:[#allocation11 + $0x280] ss:$16 sps:$4 sm:$0xff]   ;;  %v9902_v17 = vld [vmem:[#allocation11 + $0x288] ss:$16 sps:$4 sm:$0xff]  }
 0x48b   : > { %v4298_v34 = vadd.f32 %v4277_v11, %v4268_v26  ;;  %v4266_v39 = vadd.f32 %v4252_v29, %v4229_v59  ;;  %v4265_v44 = vadd.f32 %v4249_v31, %v4228_v60  ;;  %v4269_v45 = vadd.f32 %v4248_v23, %v4232_v61  ;;  %v9905_v20 = vld [vmem:[#allocation11 + $0x2a0] ss:$16 sps:$4 sm:$0xff]   ;;  %v9908_v16 = vld [vmem:[#allocation11 + $0x2a8] ss:$16 sps:$4 sm:$0xff]   ;;  %v9913_v21 = vld [vmem:[#allocation11 + $0x2c4] ss:$16 sps:$4 sm:$0xff]  }
 0x48c   : > { %v4294_v42 = vadd.f32 %v4277_v11, %v4264_v28  ;;  %v4300_v46 = vadd.f32 %v4285_v12, %v4270_v30  ;;  %v4255_v47 = vsel %vm4243_vm1, %v4253_v25, %v4254_v27  ;;  %v4271_v51 = vadd.f32 %v4254_v27, %v4234_v32  ;;  %v9875_v32 = vld [vmem:[#allocation11 + $0x200] ss:$16 sps:$4 sm:$0xff]   ;;  %v9916_v23 = vld [vmem:[#allocation11 + $0x2cc] ss:$16 sps:$4 sm:$0xff]   ;;  %v9914_v25 = vld [vmem:[#allocation11 + $0x2c8] ss:$16 sps:$4 sm:$0xff]  }
 0x48d   : > { %v4306_v52 = vmax.f32 %v4298_v34, 0.0  ;;  %v4296_v53 = vadd.f32 %v4285_v12, %v4266_v39  ;;  %v4295_v55 = vadd.f32 %v4281_v22, %v4265_v44  ;;  %v4299_v49 = vadd.f32 %v4281_v22, %v4269_v45  ;;  %v9893_v11 = vld [vmem:[#allocation11 + $0x260] ss:$16 sps:$4 sm:$0xff]   ;;  %v9896_v12 = vld [vmem:[#allocation11 + $0x268] ss:$16 sps:$4 sm:$0xff]  }
 0x48e   : > { %v4302_v57 = vmax.f32 %v4294_v42, 0.0  ;;  %v4308_v54 = vmax.f32 %v4300_v46, 0.0  ;;  %v4267_v58 = vadd.f32 %v4255_v47, %v11253_v62  ;;  %v4301_v56 = vadd.f32 %v4289_v19, %v4271_v51  ;;  %v9883_v62 = vld [vmem:[#allocation11 + $0x224] ss:$16 sps:$4 sm:$0xff]   ;;  %v9911_v24 = vld [vmem:[#allocation11 + $0x2c0] ss:$16 sps:$4 sm:$0xff]  }
 0x48f   : > { %v4304_v37 = vmax.f32 %v4296_v53, 0.0  ;;  %v4303_v38 = vmax.f32 %v4295_v55, 0.0  ;;  %v4307_v63 = vmax.f32 %v4299_v49, 0.0  ;;  %v9907_v22 = vld [vmem:[#allocation11 + $0x2a4] ss:$16 sps:$4 sm:$0xff]  }
 0x490   : > { %v11265_v59 = vpack.c.bf16 %v4306_v52, %v4302_v57  ;;  %v4297_v60 = vadd.f32 %v4289_v19, %v4267_v58  ;;  %v4309_v61 = vmax.f32 %v4301_v56, 0.0  ;;  %v9910_v19 = vld [vmem:[#allocation11 + $0x2ac] ss:$16 sps:$4 sm:$0xff]   ;;  %v9919_v43 = vld [vmem:[#allocation11 + $0x2e4] ss:$16 sps:$4 sm:$0xff]  }
 0x491   : > { %v11267_v0 = vpack.c.bf16 %v4308_v54, %v4304_v37  ;;  %v11269_v2 = vpack.c.bf16 %v4307_v63, %v4303_v38  ;;  %v9922_v26 = vld [vmem:[#allocation11 + $0x2ec] ss:$16 sps:$4 sm:$0xff]   ;;  %v9917_v27 = vld [vmem:[#allocation11 + $0x2e0] ss:$16 sps:$4 sm:$0xff]   ;;  %v9920_v28 = vld [vmem:[#allocation11 + $0x2e8] ss:$16 sps:$4 sm:$0xff]  }
 0x492   : > { %v4305_v35 = vmax.f32 %v4297_v60, 0.0  ;;  %v9925_v29 = vld [vmem:[#allocation11 + $0x304] ss:$16 sps:$4 sm:$0xff]   ;;  %v9928_v30 = vld [vmem:[#allocation11 + $0x30c] ss:$16 sps:$4 sm:$0xff]  }
 0x493   : > { %5114 = vmatprep.mubr.bf16.mxu0 %v11269_v2  ;;  %5200 = vmatprep.mubr.bf16.mxu1 %v11269_v2  ;;  %v9923_v31 = vld [vmem:[#allocation11 + $0x300] ss:$16 sps:$4 sm:$0xff]   ;;  %v9926_v34 = vld [vmem:[#allocation11 + $0x308] ss:$16 sps:$4 sm:$0xff]   ;;  %v9931_v39 = vld [vmem:[#allocation11 + $0x324] ss:$16 sps:$4 sm:$0xff]  }
 0x494   : > { %v11273_v3 = vpack.c.bf16 %v4309_v61, %v4305_v35  ;;  %5115 = vmatmul.mubr.bf16.vlgmr.msra.gmra.mrb[20].mxu0 %v11265_v59  ;;  %5201 = vmatmul.mubr.bf16.vlgmr.msra.gmra.mrb[20].mxu1 %v11265_v59  ;;  %v9934_v44 = vld [vmem:[#allocation11 + $0x32c] ss:$16 sps:$4 sm:$0xff]   ;;  %v9929_v45 = vld [vmem:[#allocation11 + $0x320] ss:$16 sps:$4 sm:$0xff]   ;;  %v9932_v42 = vld [vmem:[#allocation11 + $0x328] ss:$16 sps:$4 sm:$0xff]  }
 0x495   : > { %5126 = vmatpush1.bf16.msra.mxu0 %v9875_v32  ;;  %5212 = vmatpush1.bf16.msra.mxu1 %v9878_v33  ;;  %v9937_v46 = vld [vmem:[#allocation11 + $0x344] ss:$16 sps:$4 sm:$0xff]   ;;  %v9940_v47 = vld [vmem:[#allocation11 + $0x34c] ss:$16 sps:$4 sm:$0xff]   ;;  %v9935_v51 = vld [vmem:[#allocation11 + $0x340] ss:$16 sps:$4 sm:$0xff]  }
 0x496   : > { %5157 = vmatprep.mubr.bf16.mxu0 %v11273_v3  ;;  %5243 = vmatprep.mubr.bf16.mxu1 %v11273_v3  ;;  %v9938_v52 = vld [vmem:[#allocation11 + $0x348] ss:$16 sps:$4 sm:$0xff]   ;;  %v9943_v53 = vld [vmem:[#allocation11 + $0x364] ss:$16 sps:$4 sm:$0xff]   ;;  %v9946_v55 = vld [vmem:[#allocation11 + $0x36c] ss:$16 sps:$4 sm:$0xff]  }
 0x497   : > { %5127 = vmatprep.subr.bf16.mxu0 %v9883_v62  ;;  %5213 = vmatprep.subr.bf16.mxu1 %v9886_v40  ;;  %v9941_v49 = vld [vmem:[#allocation11 + $0x360] ss:$16 sps:$4 sm:$0xff]   ;;  %v9944_v57 = vld [vmem:[#allocation11 + $0x368] ss:$16 sps:$4 sm:$0xff]   ;;  %v9949_v54 = vld [vmem:[#allocation11 + $0x384] ss:$16 sps:$4 sm:$0xff]  }
 0x498   : > { %v9952_v58 = vld [vmem:[#allocation11 + $0x38c] ss:$16 sps:$4 sm:$0xff]   ;;  %v9947_v56 = vld [vmem:[#allocation11 + $0x380] ss:$16 sps:$4 sm:$0xff]   ;;  %v9950_v37 = vld [vmem:[#allocation11 + $0x388] ss:$16 sps:$4 sm:$0xff]  }
 0x499   : > { %5128 = vmatpush1.bf16.msra.mxu0 %v9881_v36  ;;  %5214 = vmatpush1.bf16.msra.mxu1 %v9884_v41  ;;  %v9955_v38 = vld [vmem:[#allocation11 + $0x3a4] ss:$16 sps:$4 sm:$0xff]   ;;  %v9958_v63 = vld [vmem:[#allocation11 + $0x3ac] ss:$16 sps:$4 sm:$0xff]   ;;  %v9953_v60 = vld [vmem:[#allocation11 + $0x3a0] ss:$16 sps:$4 sm:$0xff]  }
 0x49a   : > { %5129 = vmatprep.subr.bf16.mxu0 %v9889_v5  ;;  %5215 = vmatprep.subr.bf16.mxu1 %v9892_v6  ;;  %v9956_v61 = vld [vmem:[#allocation11 + $0x3a8] ss:$16 sps:$4 sm:$0xff]   ;;  %v9961_v32 = vld [vmem:[#allocation11 + $0x3c4] ss:$16 sps:$4 sm:$0xff]   ;;  %v9964_v33 = vld [vmem:[#allocation11 + $0x3cc] ss:$16 sps:$4 sm:$0xff]  }
 0x49b   : > { %v9959_v35 = vld [vmem:[#allocation11 + $0x3c0] ss:$16 sps:$4 sm:$0xff]   ;;  %v9962_v62 = vld [vmem:[#allocation11 + $0x3c8] ss:$16 sps:$4 sm:$0xff]   ;;  %v9967_v40 = vld [vmem:[#allocation11 + $0x3e4] ss:$16 sps:$4 sm:$0xff]  }
 0x49c   : > { %v9970_v36 = vld [vmem:[#allocation11 + $0x3ec] ss:$16 sps:$4 sm:$0xff]   ;;  %v9965_v41 = vld [vmem:[#allocation11 + $0x3e0] ss:$16 sps:$4 sm:$0xff]   ;;  %v9968_v5 = vld [vmem:[#allocation11 + $0x3e8] ss:$16 sps:$4 sm:$0xff]  }
 0x49d   : > { %5130 = vmatpush1.bf16.msra.mxu0 %v9887_v7  ;;  %5216 = vmatpush1.bf16.msra.mxu1 %v9890_v8  ;;  %v9973_v6 = vld [vmem:[#allocation11 + $0x404] ss:$16 sps:$4 sm:$0xff]   ;;  %v9976_v7 = vld [vmem:[#allocation11 + $0x40c] ss:$16 sps:$4 sm:$0xff]   ;;  %v9971_v8 = vld [vmem:[#allocation11 + $0x400] ss:$16 sps:$4 sm:$0xff]  }
 0x49e   : > { %5131 = vmatprep.subr.bf16.mxu0 %v9895_v9  ;;  %5217 = vmatprep.subr.bf16.mxu1 %v9898_v10  ;;  %v9974_v9 = vld [vmem:[#allocation11 + $0x408] ss:$16 sps:$4 sm:$0xff]   ;;  %v9979_v10 = vld [vmem:[#allocation11 + $0x424] ss:$16 sps:$4 sm:$0xff]  }
 0x4a1   : > { %5132 = vmatpush1.bf16.msra.mxu0 %v9893_v11  ;;  %5218 = vmatpush1.bf16.msra.mxu1 %v9896_v12  ;;  %v9982_v11 = vld [vmem:[#allocation11 + $0x42c] ss:$16 sps:$4 sm:$0xff]   ;;  %v9977_v12 = vld [vmem:[#allocation11 + $0x420] ss:$16 sps:$4 sm:$0xff]  }
 0x4a2   : > { %5133 = vmatprep.subr.bf16.mxu0 %v9901_v13  ;;  %5219 = vmatprep.subr.bf16.mxu1 %v9904_v14  ;;  %v9980_v13 = vld [vmem:[#allocation11 + $0x428] ss:$16 sps:$4 sm:$0xff]   ;;  %v9985_v14 = vld [vmem:[#allocation11 + $0x444] ss:$16 sps:$4 sm:$0xff]  }
 0x4a5   : > { %5134 = vmatpush1.bf16.msra.mxu0 %v9899_v15  ;;  %5220 = vmatpush1.bf16.msra.mxu1 %v9902_v17  ;;  %v9988_v15 = vld [vmem:[#allocation11 + $0x44c] ss:$16 sps:$4 sm:$0xff]   ;;  %v9983_v17 = vld [vmem:[#allocation11 + $0x440] ss:$16 sps:$4 sm:$0xff]  }
 0x4a6   : > { %5135 = vmatprep.subr.bf16.mxu0 %v9907_v22  ;;  %5221 = vmatprep.subr.bf16.mxu1 %v9910_v19  ;;  %v9986_v22 = vld [vmem:[#allocation11 + $0x448] ss:$16 sps:$4 sm:$0xff]   ;;  %v9991_v19 = vld [vmem:[#allocation11 + $0x464] ss:$16 sps:$4 sm:$0xff]  }
 0x4a9   : > { %5136 = vmatpush1.bf16.msra.mxu0 %v9905_v20  ;;  %5222 = vmatpush1.bf16.msra.mxu1 %v9908_v16  ;;  %v9994_v20 = vld [vmem:[#allocation11 + $0x46c] ss:$16 sps:$4 sm:$0xff]   ;;  %v9989_v16 = vld [vmem:[#allocation11 + $0x460] ss:$16 sps:$4 sm:$0xff]  }
 0x4aa   : > { %5137 = vmatprep.subr.bf16.mxu0 %v9913_v21  ;;  %5223 = vmatprep.subr.bf16.mxu1 %v9916_v23  ;;  %v9992_v21 = vld [vmem:[#allocation11 + $0x468] ss:$16 sps:$4 sm:$0xff]   ;;  %v9997_v23 = vld [vmem:[#allocation11 + $0x484] ss:$16 sps:$4 sm:$0xff]  }
 0x4ad   : > { %5138 = vmatpush1.bf16.msra.mxu0 %v9911_v24  ;;  %5224 = vmatpush1.bf16.msra.mxu1 %v9914_v25  ;;  %v10000_v24 = vld [vmem:[#allocation11 + $0x48c] ss:$16 sps:$4 sm:$0xff]   ;;  %v9995_v25 = vld [vmem:[#allocation11 + $0x480] ss:$16 sps:$4 sm:$0xff]  }
 0x4ae   : > { %5139 = vmatprep.subr.bf16.mxu0 %v9919_v43  ;;  %5225 = vmatprep.subr.bf16.mxu1 %v9922_v26  ;;  %v9998_v43 = vld [vmem:[#allocation11 + $0x488] ss:$16 sps:$4 sm:$0xff]   ;;  %v10003_v26 = vld [vmem:[#allocation11 + $0x4a4] ss:$16 sps:$4 sm:$0xff]  }
 0x4b1   : > { %5140 = vmatpush1.bf16.msra.mxu0 %v9917_v27  ;;  %5226 = vmatpush1.bf16.msra.mxu1 %v9920_v28  ;;  %v10006_v27 = vld [vmem:[#allocation11 + $0x4ac] ss:$16 sps:$4 sm:$0xff]   ;;  %v10001_v28 = vld [vmem:[#allocation11 + $0x4a0] ss:$16 sps:$4 sm:$0xff]  }
 0x4b2   : > { %5141 = vmatprep.subr.bf16.mxu0 %v9925_v29  ;;  %5227 = vmatprep.subr.bf16.mxu1 %v9928_v30  ;;  %v10004_v29 = vld [vmem:[#allocation11 + $0x4a8] ss:$16 sps:$4 sm:$0xff]   ;;  %v10009_v30 = vld [vmem:[#allocation11 + $0x4c4] ss:$16 sps:$4 sm:$0xff]  }
 0x4b5   : > { %5142 = vmatpush1.bf16.msra.mxu0 %v9923_v31  ;;  %5228 = vmatpush1.bf16.msra.mxu1 %v9926_v34  ;;  %v10012_v31 = vld [vmem:[#allocation11 + $0x4cc] ss:$16 sps:$4 sm:$0xff]   ;;  %v10007_v34 = vld [vmem:[#allocation11 + $0x4c0] ss:$16 sps:$4 sm:$0xff]  }
 0x4b6   : > { %5143 = vmatprep.subr.bf16.mxu0 %v9931_v39  ;;  %5229 = vmatprep.subr.bf16.mxu1 %v9934_v44  ;;  %v10010_v39 = vld [vmem:[#allocation11 + $0x4c8] ss:$16 sps:$4 sm:$0xff]   ;;  %v10015_v44 = vld [vmem:[#allocation11 + $0x4e4] ss:$16 sps:$4 sm:$0xff]  }
 0x4b9   : > { %5144 = vmatpush1.bf16.msra.mxu0 %v9929_v45  ;;  %5230 = vmatpush1.bf16.msra.mxu1 %v9932_v42  ;;  %v10018_v45 = vld [vmem:[#allocation11 + $0x4ec] ss:$16 sps:$4 sm:$0xff]   ;;  %v10013_v42 = vld [vmem:[#allocation11 + $0x4e0] ss:$16 sps:$4 sm:$0xff]  }
 0x4ba   : > { %5145 = vmatprep.subr.bf16.mxu0 %v9937_v46  ;;  %5231 = vmatprep.subr.bf16.mxu1 %v9940_v47  ;;  %v10016_v46 = vld [vmem:[#allocation11 + $0x4e8] ss:$16 sps:$4 sm:$0xff]   ;;  %v10021_v47 = vld [vmem:[#allocation11 + $0x504] ss:$16 sps:$4 sm:$0xff]  }
 0x4bd   : > { %5146 = vmatpush1.bf16.msra.mxu0 %v9935_v51  ;;  %5232 = vmatpush1.bf16.msra.mxu1 %v9938_v52  ;;  %v10024_v51 = vld [vmem:[#allocation11 + $0x50c] ss:$16 sps:$4 sm:$0xff]   ;;  %v10019_v52 = vld [vmem:[#allocation11 + $0x500] ss:$16 sps:$4 sm:$0xff]  }
 0x4be   : > { %5147 = vmatprep.subr.bf16.mxu0 %v9943_v53  ;;  %5233 = vmatprep.subr.bf16.mxu1 %v9946_v55  ;;  %v10022_v53 = vld [vmem:[#allocation11 + $0x508] ss:$16 sps:$4 sm:$0xff]   ;;  %v10027_v55 = vld [vmem:[#allocation11 + $0x524] ss:$16 sps:$4 sm:$0xff]  }
 0x4c1   : > { %5148 = vmatpush1.bf16.msra.mxu0 %v9941_v49  ;;  %5234 = vmatpush1.bf16.msra.mxu1 %v9944_v57  ;;  %v10030_v49 = vld [vmem:[#allocation11 + $0x52c] ss:$16 sps:$4 sm:$0xff]   ;;  %v10025_v57 = vld [vmem:[#allocation11 + $0x520] ss:$16 sps:$4 sm:$0xff]  }
 0x4c2   : > { %5149 = vmatprep.subr.bf16.mxu0 %v9949_v54  ;;  %5235 = vmatprep.subr.bf16.mxu1 %v9952_v58  ;;  %v10028_v54 = vld [vmem:[#allocation11 + $0x528] ss:$16 sps:$4 sm:$0xff]   ;;  %v10033_v58 = vld [vmem:[#allocation11 + $0x544] ss:$16 sps:$4 sm:$0xff]  }
 0x4c5   : > { %5150 = vmatpush1.bf16.msra.mxu0 %v9947_v56  ;;  %5236 = vmatpush1.bf16.msra.mxu1 %v9950_v37  ;;  %v10036_v56 = vld [vmem:[#allocation11 + $0x54c] ss:$16 sps:$4 sm:$0xff]   ;;  %v10031_v37 = vld [vmem:[#allocation11 + $0x540] ss:$16 sps:$4 sm:$0xff]  }
 0x4c6   : > { %5151 = vmatprep.subr.bf16.mxu0 %v9955_v38  ;;  %5237 = vmatprep.subr.bf16.mxu1 %v9958_v63  ;;  %v10034_v38 = vld [vmem:[#allocation11 + $0x548] ss:$16 sps:$4 sm:$0xff]   ;;  %v10039_v63 = vld [vmem:[#allocation11 + $0x564] ss:$16 sps:$4 sm:$0xff]  }
 0x4c9   : > { %5152 = vmatpush1.bf16.msra.mxu0 %v9953_v60  ;;  %5238 = vmatpush1.bf16.msra.mxu1 %v9956_v61  ;;  %v10042_v60 = vld [vmem:[#allocation11 + $0x56c] ss:$16 sps:$4 sm:$0xff]   ;;  %v10037_v61 = vld [vmem:[#allocation11 + $0x560] ss:$16 sps:$4 sm:$0xff]  }
 0x4ca   : > { %5153 = vmatprep.subr.bf16.mxu0 %v9961_v32  ;;  %5239 = vmatprep.subr.bf16.mxu1 %v9964_v33  ;;  %v10040_v32 = vld [vmem:[#allocation11 + $0x568] ss:$16 sps:$4 sm:$0xff]   ;;  %v10045_v33 = vld [vmem:[#allocation11 + $0x584] ss:$16 sps:$4 sm:$0xff]  }
 0x4cd   : > { %5154 = vmatpush1.bf16.msra.mxu0 %v9959_v35  ;;  %5240 = vmatpush1.bf16.msra.mxu1 %v9962_v62  ;;  %v10048_v35 = vld [vmem:[#allocation11 + $0x58c] ss:$16 sps:$4 sm:$0xff]   ;;  %v10043_v62 = vld [vmem:[#allocation11 + $0x580] ss:$16 sps:$4 sm:$0xff]  }
 0x4ce   : > { %5155 = vmatprep.subr.bf16.mxu0 %v9967_v40  ;;  %5241 = vmatprep.subr.bf16.mxu1 %v9970_v36  ;;  %v10046_v40 = vld [vmem:[#allocation11 + $0x588] ss:$16 sps:$4 sm:$0xff]   ;;  %v10051_v36 = vld [vmem:[#allocation11 + $0x5a4] ss:$16 sps:$4 sm:$0xff]  }
 0x4d1   : > { %5156 = vmatpush1.bf16.msra.mxu0 %v9965_v41  ;;  %5242 = vmatpush1.bf16.msra.mxu1 %v9968_v5  ;;  %v10054_v41 = vld [vmem:[#allocation11 + $0x5ac] ss:$16 sps:$4 sm:$0xff]   ;;  %v10049_v5 = vld [vmem:[#allocation11 + $0x5a0] ss:$16 sps:$4 sm:$0xff]  }
 0x4d2   : > { %6022 = vmatprep.subr.bf16.mxu0 %v9973_v6  ;;  %6108 = vmatprep.subr.bf16.mxu1 %v9976_v7  ;;  %v10052_v6 = vld [vmem:[#allocation11 + $0x5a8] ss:$16 sps:$4 sm:$0xff]   ;;  %v10057_v7 = vld [vmem:[#allocation11 + $0x5c4] ss:$16 sps:$4 sm:$0xff]  }
 0x4d4   : > { %5158 = vmatmul.mubr.bf16.vlgmr.msra.gmra.mrb[20].mxu0 %v11267_v0  ;;  %5244 = vmatmul.mubr.bf16.vlgmr.msra.gmra.mrb[20].mxu1 %v11267_v0 }
 0x4d5   : > { %6023 = vmatpush1.bf16.msra.mxu0 %v9971_v8  ;;  %6054 = vmatprep.mubr.bf16.mxu0 %v11269_v2  ;;  %v10060_v8 = vld [vmem:[#allocation11 + $0x5cc] ss:$16 sps:$4 sm:$0xff]  }
 0x4d6   : > { %6109 = vmatpush1.bf16.msra.mxu1 %v9974_v9  ;;  %6140 = vmatprep.mubr.bf16.mxu1 %v11269_v2  ;;  %v10055_v9 = vld [vmem:[#allocation11 + $0x5c0] ss:$16 sps:$4 sm:$0xff]  }
 0x4d7   : > { %6024 = vmatprep.subr.bf16.mxu0 %v9979_v10  ;;  %6110 = vmatprep.subr.bf16.mxu1 %v9982_v11  ;;  %v10058_v10 = vld [vmem:[#allocation11 + $0x5c8] ss:$16 sps:$4 sm:$0xff]   ;;  %v10063_v11 = vld [vmem:[#allocation11 + $0x5e4] ss:$16 sps:$4 sm:$0xff]  }
 0x4d9   : > { %6025 = vmatpush1.bf16.msra.mxu0 %v9977_v12  ;;  %v10066_v12 = vld [vmem:[#allocation11 + $0x5ec] ss:$16 sps:$4 sm:$0xff]  }
 0x4da   : > { %6111 = vmatpush1.bf16.msra.mxu1 %v9980_v13  ;;  %6026 = vmatprep.subr.bf16.mxu0 %v9985_v14  ;;  %v10061_v13 = vld [vmem:[#allocation11 + $0x5e0] ss:$16 sps:$4 sm:$0xff]   ;;  %v10064_v14 = vld [vmem:[#allocation11 + $0x5e8] ss:$16 sps:$4 sm:$0xff]  }
 0x4db   : > { %6112 = vmatprep.subr.bf16.mxu1 %v9988_v15  ;;  %v10069_v15 = vld [vmem:[#allocation11 + $0x604] ss:$16 sps:$4 sm:$0xff]  }
 0x4dd   : > { %6027 = vmatpush1.bf16.msra.mxu0 %v9983_v17  ;;  %v10072_v17 = vld [vmem:[#allocation11 + $0x60c] ss:$16 sps:$4 sm:$0xff]  }
 0x4de   : > { %6113 = vmatpush1.bf16.msra.mxu1 %v9986_v22  ;;  %6028 = vmatprep.subr.bf16.mxu0 %v9991_v19  ;;  %v10067_v22 = vld [vmem:[#allocation11 + $0x600] ss:$16 sps:$4 sm:$0xff]   ;;  %v10070_v19 = vld [vmem:[#allocation11 + $0x608] ss:$16 sps:$4 sm:$0xff]  }
 0x4df   : > { %6114 = vmatprep.subr.bf16.mxu1 %v9994_v20  ;;  %v10075_v20 = vld [vmem:[#allocation11 + $0x624] ss:$16 sps:$4 sm:$0xff]  }
 0x4e1   : > { %6029 = vmatpush1.bf16.msra.mxu0 %v9989_v16  ;;  %v10078_v16 = vld [vmem:[#allocation11 + $0x62c] ss:$16 sps:$4 sm:$0xff]  }
 0x4e2   : > { %6115 = vmatpush1.bf16.msra.mxu1 %v9992_v21  ;;  %6030 = vmatprep.subr.bf16.mxu0 %v9997_v23  ;;  %v10073_v21 = vld [vmem:[#allocation11 + $0x620] ss:$16 sps:$4 sm:$0xff]   ;;  %v10076_v23 = vld [vmem:[#allocation11 + $0x628] ss:$16 sps:$4 sm:$0xff]  }
 0x4e3   : > { %6116 = vmatprep.subr.bf16.mxu1 %v10000_v24  ;;  %v10081_v24 = vld [vmem:[#allocation11 + $0x644] ss:$16 sps:$4 sm:$0xff]  }
 0x4e5   : > { %6031 = vmatpush1.bf16.msra.mxu0 %v9995_v25  ;;  %v10084_v25 = vld [vmem:[#allocation11 + $0x64c] ss:$16 sps:$4 sm:$0xff]  }
 0x4e6   : > { %6117 = vmatpush1.bf16.msra.mxu1 %v9998_v43  ;;  %6032 = vmatprep.subr.bf16.mxu0 %v10003_v26  ;;  %v10079_v43 = vld [vmem:[#allocation11 + $0x640] ss:$16 sps:$4 sm:$0xff]   ;;  %v10082_v26 = vld [vmem:[#allocation11 + $0x648] ss:$16 sps:$4 sm:$0xff]  }
 0x4e7   : > { %6118 = vmatprep.subr.bf16.mxu1 %v10006_v27  ;;  %v10087_v27 = vld [vmem:[#allocation11 + $0x664] ss:$16 sps:$4 sm:$0xff]  }
 0x4e9   : > { %6033 = vmatpush1.bf16.msra.mxu0 %v10001_v28  ;;  %v10090_v28 = vld [vmem:[#allocation11 + $0x66c] ss:$16 sps:$4 sm:$0xff]  }
 0x4ea   : > { %6119 = vmatpush1.bf16.msra.mxu1 %v10004_v29  ;;  %6034 = vmatprep.subr.bf16.mxu0 %v10009_v30  ;;  %v10085_v29 = vld [vmem:[#allocation11 + $0x660] ss:$16 sps:$4 sm:$0xff]   ;;  %v10088_v30 = vld [vmem:[#allocation11 + $0x668] ss:$16 sps:$4 sm:$0xff]  }
 0x4eb   : > { %6120 = vmatprep.subr.bf16.mxu1 %v10012_v31  ;;  %v10093_v31 = vld [vmem:[#allocation11 + $0x684] ss:$16 sps:$4 sm:$0xff]  }
 0x4ed   : > { %6035 = vmatpush1.bf16.msra.mxu0 %v10007_v34  ;;  %v10096_v34 = vld [vmem:[#allocation11 + $0x68c] ss:$16 sps:$4 sm:$0xff]  }
 0x4ee   : > { %6121 = vmatpush1.bf16.msra.mxu1 %v10010_v39  ;;  %6036 = vmatprep.subr.bf16.mxu0 %v10015_v44  ;;  %v10091_v39 = vld [vmem:[#allocation11 + $0x680] ss:$16 sps:$4 sm:$0xff]   ;;  %v10094_v44 = vld [vmem:[#allocation11 + $0x688] ss:$16 sps:$4 sm:$0xff]  }
 0x4ef   : > { %6122 = vmatprep.subr.bf16.mxu1 %v10018_v45  ;;  %v10099_v45 = vld [vmem:[#allocation11 + $0x6a4] ss:$16 sps:$4 sm:$0xff]  }
 0x4f1   : > { %6037 = vmatpush1.bf16.msra.mxu0 %v10013_v42  ;;  %v10102_v42 = vld [vmem:[#allocation11 + $0x6ac] ss:$16 sps:$4 sm:$0xff]  }
 0x4f2   : > { %6123 = vmatpush1.bf16.msra.mxu1 %v10016_v46  ;;  %6038 = vmatprep.subr.bf16.mxu0 %v10021_v47  ;;  %v10097_v46 = vld [vmem:[#allocation11 + $0x6a0] ss:$16 sps:$4 sm:$0xff]   ;;  %v10100_v47 = vld [vmem:[#allocation11 + $0x6a8] ss:$16 sps:$4 sm:$0xff]  }
 0x4f3   : > { %6124 = vmatprep.subr.bf16.mxu1 %v10024_v51  ;;  %v10105_v51 = vld [vmem:[#allocation11 + $0x6c4] ss:$16 sps:$4 sm:$0xff]  }
 0x4f5   : > { %6039 = vmatpush1.bf16.msra.mxu0 %v10019_v52  ;;  %v10108_v52 = vld [vmem:[#allocation11 + $0x6cc] ss:$16 sps:$4 sm:$0xff]  }
 0x4f6   : > { %6125 = vmatpush1.bf16.msra.mxu1 %v10022_v53  ;;  %6040 = vmatprep.subr.bf16.mxu0 %v10027_v55  ;;  %v10103_v53 = vld [vmem:[#allocation11 + $0x6c0] ss:$16 sps:$4 sm:$0xff]   ;;  %v10106_v55 = vld [vmem:[#allocation11 + $0x6c8] ss:$16 sps:$4 sm:$0xff]  }
 0x4f7   : > { %6126 = vmatprep.subr.bf16.mxu1 %v10030_v49  ;;  %v10111_v49 = vld [vmem:[#allocation11 + $0x6e4] ss:$16 sps:$4 sm:$0xff]  }
 0x4f9   : > { %6041 = vmatpush1.bf16.msra.mxu0 %v10025_v57  ;;  %v10114_v57 = vld [vmem:[#allocation11 + $0x6ec] ss:$16 sps:$4 sm:$0xff]  }
 0x4fa   : > { %6127 = vmatpush1.bf16.msra.mxu1 %v10028_v54  ;;  %6042 = vmatprep.subr.bf16.mxu0 %v10033_v58  ;;  %v10109_v54 = vld [vmem:[#allocation11 + $0x6e0] ss:$16 sps:$4 sm:$0xff]   ;;  %v10112_v58 = vld [vmem:[#allocation11 + $0x6e8] ss:$16 sps:$4 sm:$0xff]  }
 0x4fb   : > { %6128 = vmatprep.subr.bf16.mxu1 %v10036_v56  ;;  %v10117_v56 = vld [vmem:[#allocation11 + $0x704] ss:$16 sps:$4 sm:$0xff]  }
 0x4fd   : > { %6043 = vmatpush1.bf16.msra.mxu0 %v10031_v37  ;;  %v10120_v37 = vld [vmem:[#allocation11 + $0x70c] ss:$16 sps:$4 sm:$0xff]  }
 0x4fe   : > { %6129 = vmatpush1.bf16.msra.mxu1 %v10034_v38  ;;  %6044 = vmatprep.subr.bf16.mxu0 %v10039_v63  ;;  %v10115_v38 = vld [vmem:[#allocation11 + $0x700] ss:$16 sps:$4 sm:$0xff]   ;;  %v10118_v63 = vld [vmem:[#allocation11 + $0x708] ss:$16 sps:$4 sm:$0xff]  }
 0x4ff   : > { %6130 = vmatprep.subr.bf16.mxu1 %v10042_v60  ;;  %v10123_v60 = vld [vmem:[#allocation11 + $0x724] ss:$16 sps:$4 sm:$0xff]  }
 0x501   : > { %6045 = vmatpush1.bf16.msra.mxu0 %v10037_v61  ;;  %v10126_v61 = vld [vmem:[#allocation11 + $0x72c] ss:$16 sps:$4 sm:$0xff]  }
 0x502   : > { %6131 = vmatpush1.bf16.msra.mxu1 %v10040_v32  ;;  %6046 = vmatprep.subr.bf16.mxu0 %v10045_v33  ;;  %v10121_v32 = vld [vmem:[#allocation11 + $0x720] ss:$16 sps:$4 sm:$0xff]   ;;  %v10124_v33 = vld [vmem:[#allocation11 + $0x728] ss:$16 sps:$4 sm:$0xff]  }
 0x503   : > { %6132 = vmatprep.subr.bf16.mxu1 %v10048_v35  ;;  %v10129_v35 = vld [vmem:[#allocation11 + $0x744] ss:$16 sps:$4 sm:$0xff]  }
 0x505   : > { %6047 = vmatpush1.bf16.msra.mxu0 %v10043_v62  ;;  %v10132_v62 = vld [vmem:[#allocation11 + $0x74c] ss:$16 sps:$4 sm:$0xff]  }
 0x506   : > { %6133 = vmatpush1.bf16.msra.mxu1 %v10046_v40  ;;  %6048 = vmatprep.subr.bf16.mxu0 %v10051_v36  ;;  %v10127_v40 = vld [vmem:[#allocation11 + $0x740] ss:$16 sps:$4 sm:$0xff]   ;;  %v10130_v36 = vld [vmem:[#allocation11 + $0x748] ss:$16 sps:$4 sm:$0xff]  }
 0x507   : > { %6134 = vmatprep.subr.bf16.mxu1 %v10054_v41  ;;  %v10135_v41 = vld [vmem:[#allocation11 + $0x764] ss:$16 sps:$4 sm:$0xff]  }
 0x509   : > { %6049 = vmatpush1.bf16.msra.mxu0 %v10049_v5  ;;  %v10138_v5 = vld [vmem:[#allocation11 + $0x76c] ss:$16 sps:$4 sm:$0xff]  }
 0x50a   : > { %6135 = vmatpush1.bf16.msra.mxu1 %v10052_v6  ;;  %6050 = vmatprep.subr.bf16.mxu0 %v10057_v7  ;;  %v10133_v6 = vld [vmem:[#allocation11 + $0x760] ss:$16 sps:$4 sm:$0xff]   ;;  %v10136_v7 = vld [vmem:[#allocation11 + $0x768] ss:$16 sps:$4 sm:$0xff]  }
 0x50b   : > { %6136 = vmatprep.subr.bf16.mxu1 %v10060_v8  ;;  %v10141_v8 = vld [vmem:[#allocation11 + $0x784] ss:$16 sps:$4 sm:$0xff]  }
 0x50d   : > { %6051 = vmatpush1.bf16.msra.mxu0 %v10055_v9  ;;  %v10144_v9 = vld [vmem:[#allocation11 + $0x78c] ss:$16 sps:$4 sm:$0xff]  }
 0x50e   : > { %6137 = vmatpush1.bf16.msra.mxu1 %v10058_v10  ;;  %6052 = vmatprep.subr.bf16.mxu0 %v10063_v11  ;;  %v10139_v10 = vld [vmem:[#allocation11 + $0x780] ss:$16 sps:$4 sm:$0xff]   ;;  %v10142_v11 = vld [vmem:[#allocation11 + $0x788] ss:$16 sps:$4 sm:$0xff]  }
 0x50f   : > { %6138 = vmatprep.subr.bf16.mxu1 %v10066_v12  ;;  %v10147_v12 = vld [vmem:[#allocation11 + $0x7a4] ss:$16 sps:$4 sm:$0xff]  }
 0x511   : > { %6053 = vmatpush1.bf16.msra.mxu0 %v10061_v13  ;;  %v10150_v13 = vld [vmem:[#allocation11 + $0x7ac] ss:$16 sps:$4 sm:$0xff]  }
 0x512   : > { %6139 = vmatpush1.bf16.msra.mxu1 %v10064_v14  ;;  %6065 = vmatprep.subr.bf16.mxu0 %v10069_v15  ;;  %v10145_v14 = vld [vmem:[#allocation11 + $0x7a0] ss:$16 sps:$4 sm:$0xff]   ;;  %v10148_v15 = vld [vmem:[#allocation11 + $0x7a8] ss:$16 sps:$4 sm:$0xff]  }
 0x513   : > { %6151 = vmatprep.subr.bf16.mxu1 %v10072_v17  ;;  %v10153_v17 = vld [vmem:[#allocation11 + $0x7c4] ss:$16 sps:$4 sm:$0xff]  }
 0x514   : > { %6055 = vmatmul.mubr.bf16.vlgmr.msra.gmra.mrb[24].mxu0 %v11265_v59 }
 0x515   : > { %6141 = vmatmul.mubr.bf16.vlgmr.msra.gmra.mrb[24].mxu1 %v11265_v59  ;;  %6066 = vmatpush1.bf16.msra.mxu0 %v10067_v22  ;;  %v10156_v22 = vld [vmem:[#allocation11 + $0x7cc] ss:$16 sps:$4 sm:$0xff]  }
 0x516   : > { %6097 = vmatprep.mubr.bf16.mxu0 %v11273_v3  ;;  %6152 = vmatpush1.bf16.msra.mxu1 %v10070_v19  ;;  %v10151_v19 = vld [vmem:[#allocation11 + $0x7c0] ss:$16 sps:$4 sm:$0xff]  }
 0x517   : > { %6183 = vmatprep.mubr.bf16.mxu1 %v11273_v3  ;;  %6067 = vmatprep.subr.bf16.mxu0 %v10075_v20  ;;  %v10154_v20 = vld [vmem:[#allocation11 + $0x7c8] ss:$16 sps:$4 sm:$0xff]  }
 0x518   : > { %6153 = vmatprep.subr.bf16.mxu1 %v10078_v16  ;;  %v10159_v16 = vld [vmem:[#allocation11 + $0x7e4] ss:$16 sps:$4 sm:$0xff]  }
 0x519   : > { %6068 = vmatpush1.bf16.msra.mxu0 %v10073_v21  ;;  %v10162_v21 = vld [vmem:[#allocation11 + $0x7ec] ss:$16 sps:$4 sm:$0xff]  }
 0x51a   : > { %6154 = vmatpush1.bf16.msra.mxu1 %v10076_v23  ;;  %6069 = vmatprep.subr.bf16.mxu0 %v10081_v24  ;;  %v10157_v23 = vld [vmem:[#allocation11 + $0x7e0] ss:$16 sps:$4 sm:$0xff]   ;;  %v10160_v24 = vld [vmem:[#allocation11 + $0x7e8] ss:$16 sps:$4 sm:$0xff]  }
 0x51b   : > { %6155 = vmatprep.subr.bf16.mxu1 %v10084_v25  ;;  %v10165_v25 = vld [vmem:[#allocation11 + $0x804] ss:$16 sps:$4 sm:$0xff]  }
 0x51d   : > { %6070 = vmatpush1.bf16.msra.mxu0 %v10079_v43  ;;  %v10168_v43 = vld [vmem:[#allocation11 + $0x80c] ss:$16 sps:$4 sm:$0xff]  }
 0x51e   : > { %6156 = vmatpush1.bf16.msra.mxu1 %v10082_v26  ;;  %6071 = vmatprep.subr.bf16.mxu0 %v10087_v27  ;;  %v10163_v26 = vld [vmem:[#allocation11 + $0x800] ss:$16 sps:$4 sm:$0xff]   ;;  %v10166_v27 = vld [vmem:[#allocation11 + $0x808] ss:$16 sps:$4 sm:$0xff]  }
 0x51f   : > { %6157 = vmatprep.subr.bf16.mxu1 %v10090_v28  ;;  %v10171_v28 = vld [vmem:[#allocation11 + $0x824] ss:$16 sps:$4 sm:$0xff]  }
 0x521   : > { %6072 = vmatpush1.bf16.msra.mxu0 %v10085_v29  ;;  %v10174_v29 = vld [vmem:[#allocation11 + $0x82c] ss:$16 sps:$4 sm:$0xff]  }
 0x522   : > { %6158 = vmatpush1.bf16.msra.mxu1 %v10088_v30  ;;  %6073 = vmatprep.subr.bf16.mxu0 %v10093_v31  ;;  %v10169_v30 = vld [vmem:[#allocation11 + $0x820] ss:$16 sps:$4 sm:$0xff]   ;;  %v10172_v31 = vld [vmem:[#allocation11 + $0x828] ss:$16 sps:$4 sm:$0xff]  }
 0x523   : > { %6159 = vmatprep.subr.bf16.mxu1 %v10096_v34  ;;  %v10177_v34 = vld [vmem:[#allocation11 + $0x844] ss:$16 sps:$4 sm:$0xff]  }
 0x525   : > { %6074 = vmatpush1.bf16.msra.mxu0 %v10091_v39  ;;  %v10180_v39 = vld [vmem:[#allocation11 + $0x84c] ss:$16 sps:$4 sm:$0xff]  }
 0x526   : > { %6160 = vmatpush1.bf16.msra.mxu1 %v10094_v44  ;;  %6075 = vmatprep.subr.bf16.mxu0 %v10099_v45  ;;  %v10175_v44 = vld [vmem:[#allocation11 + $0x840] ss:$16 sps:$4 sm:$0xff]   ;;  %v10178_v45 = vld [vmem:[#allocation11 + $0x848] ss:$16 sps:$4 sm:$0xff]  }
 0x527   : > { %6161 = vmatprep.subr.bf16.mxu1 %v10102_v42  ;;  %v10183_v42 = vld [vmem:[#allocation11 + $0x864] ss:$16 sps:$4 sm:$0xff]  }
 0x529   : > { %6076 = vmatpush1.bf16.msra.mxu0 %v10097_v46  ;;  %v10186_v46 = vld [vmem:[#allocation11 + $0x86c] ss:$16 sps:$4 sm:$0xff]  }
 0x52a   : > { %6162 = vmatpush1.bf16.msra.mxu1 %v10100_v47  ;;  %6077 = vmatprep.subr.bf16.mxu0 %v10105_v51  ;;  %v10181_v47 = vld [vmem:[#allocation11 + $0x860] ss:$16 sps:$4 sm:$0xff]   ;;  %v10184_v51 = vld [vmem:[#allocation11 + $0x868] ss:$16 sps:$4 sm:$0xff]  }
 0x52b   : > { %6163 = vmatprep.subr.bf16.mxu1 %v10108_v52  ;;  %v10189_v52 = vld [vmem:[#allocation11 + $0x884] ss:$16 sps:$4 sm:$0xff]  }
 0x52d   : > { %6078 = vmatpush1.bf16.msra.mxu0 %v10103_v53  ;;  %v10192_v53 = vld [vmem:[#allocation11 + $0x88c] ss:$16 sps:$4 sm:$0xff]  }
 0x52e   : > { %6164 = vmatpush1.bf16.msra.mxu1 %v10106_v55  ;;  %6079 = vmatprep.subr.bf16.mxu0 %v10111_v49  ;;  %v10190_v55 = vld [vmem:[#allocation11 + $0x888] ss:$16 sps:$4 sm:$0xff]   ;;  %v10195_v49 = vld [vmem:[#allocation11 + $0x8a4] ss:$16 sps:$4 sm:$0xff]  }
 0x52f   : > { %6165 = vmatprep.subr.bf16.mxu1 %v10114_v57  ;;  %v10198_v57 = vld [vmem:[#allocation11 + $0x8ac] ss:$16 sps:$4 sm:$0xff]  }
 0x531   : > { %6080 = vmatpush1.bf16.msra.mxu0 %v10109_v54  ;;  %v10193_v54 = vld [vmem:[#allocation11 + $0x8a0] ss:$16 sps:$4 sm:$0xff]  }
 0x532   : > { %6166 = vmatpush1.bf16.msra.mxu1 %v10112_v58  ;;  %6081 = vmatprep.subr.bf16.mxu0 %v10117_v56  ;;  %v10196_v58 = vld [vmem:[#allocation11 + $0x8a8] ss:$16 sps:$4 sm:$0xff]   ;;  %v10201_v56 = vld [vmem:[#allocation11 + $0x8c4] ss:$16 sps:$4 sm:$0xff]  }
 0x533   : > { %6167 = vmatprep.subr.bf16.mxu1 %v10120_v37  ;;  %v10204_v37 = vld [vmem:[#allocation11 + $0x8cc] ss:$16 sps:$4 sm:$0xff]  }
 0x535   : > { %6082 = vmatpush1.bf16.msra.mxu0 %v10115_v38  ;;  %v10199_v38 = vld [vmem:[#allocation11 + $0x8c0] ss:$16 sps:$4 sm:$0xff]  }
 0x536   : > { %6168 = vmatpush1.bf16.msra.mxu1 %v10118_v63  ;;  %6083 = vmatprep.subr.bf16.mxu0 %v10123_v60  ;;  %v10202_v63 = vld [vmem:[#allocation11 + $0x8c8] ss:$16 sps:$4 sm:$0xff]   ;;  %v10207_v60 = vld [vmem:[#allocation11 + $0x8e4] ss:$16 sps:$4 sm:$0xff]  }
 0x537   : > { %6169 = vmatprep.subr.bf16.mxu1 %v10126_v61  ;;  %v10210_v61 = vld [vmem:[#allocation11 + $0x8ec] ss:$16 sps:$4 sm:$0xff]  }
 0x539   : > { %6084 = vmatpush1.bf16.msra.mxu0 %v10121_v32  ;;  %v10205_v32 = vld [vmem:[#allocation11 + $0x8e0] ss:$16 sps:$4 sm:$0xff]  }
 0x53a   : > { %6170 = vmatpush1.bf16.msra.mxu1 %v10124_v33  ;;  %6085 = vmatprep.subr.bf16.mxu0 %v10129_v35  ;;  %v10208_v33 = vld [vmem:[#allocation11 + $0x8e8] ss:$16 sps:$4 sm:$0xff]   ;;  %v10213_v35 = vld [vmem:[#allocation11 + $0x904] ss:$16 sps:$4 sm:$0xff]  }
 0x53b   : > { %6171 = vmatprep.subr.bf16.mxu1 %v10132_v62  ;;  %v10216_v62 = vld [vmem:[#allocation11 + $0x90c] ss:$16 sps:$4 sm:$0xff]  }
 0x53d   : > { %6086 = vmatpush1.bf16.msra.mxu0 %v10127_v40  ;;  %v10211_v40 = vld [vmem:[#allocation11 + $0x900] ss:$16 sps:$4 sm:$0xff]  }
 0x53e   : > { %6172 = vmatpush1.bf16.msra.mxu1 %v10130_v36  ;;  %6087 = vmatprep.subr.bf16.mxu0 %v10135_v41  ;;  %v10214_v36 = vld [vmem:[#allocation11 + $0x908] ss:$16 sps:$4 sm:$0xff]   ;;  %v10219_v41 = vld [vmem:[#allocation11 + $0x924] ss:$16 sps:$4 sm:$0xff]  }
 0x53f   : > { %6173 = vmatprep.subr.bf16.mxu1 %v10138_v5  ;;  %v10222_v5 = vld [vmem:[#allocation11 + $0x92c] ss:$16 sps:$4 sm:$0xff]  }
 0x541   : > { %6088 = vmatpush1.bf16.msra.mxu0 %v10133_v6  ;;  %v10217_v6 = vld [vmem:[#allocation11 + $0x920] ss:$16 sps:$4 sm:$0xff]  }
 0x542   : > { %6174 = vmatpush1.bf16.msra.mxu1 %v10136_v7  ;;  %6089 = vmatprep.subr.bf16.mxu0 %v10141_v8  ;;  %v10220_v7 = vld [vmem:[#allocation11 + $0x928] ss:$16 sps:$4 sm:$0xff]   ;;  %v10225_v8 = vld [vmem:[#allocation11 + $0x944] ss:$16 sps:$4 sm:$0xff]  }
 0x543   : > { %6175 = vmatprep.subr.bf16.mxu1 %v10144_v9  ;;  %v10228_v9 = vld [vmem:[#allocation11 + $0x94c] ss:$16 sps:$4 sm:$0xff]  }
 0x545   : > { %6090 = vmatpush1.bf16.msra.mxu0 %v10139_v10  ;;  %v10223_v10 = vld [vmem:[#allocation11 + $0x940] ss:$16 sps:$4 sm:$0xff]  }
 0x546   : > { %6176 = vmatpush1.bf16.msra.mxu1 %v10142_v11  ;;  %6091 = vmatprep.subr.bf16.mxu0 %v10147_v12  ;;  %v10226_v11 = vld [vmem:[#allocation11 + $0x948] ss:$16 sps:$4 sm:$0xff]   ;;  %v10231_v12 = vld [vmem:[#allocation11 + $0x964] ss:$16 sps:$4 sm:$0xff]  }
 0x547   : > { %6177 = vmatprep.subr.bf16.mxu1 %v10150_v13  ;;  %v10234_v13 = vld [vmem:[#allocation11 + $0x96c] ss:$16 sps:$4 sm:$0xff]  }
 0x549   : > { %6092 = vmatpush1.bf16.msra.mxu0 %v10145_v14  ;;  %v10229_v14 = vld [vmem:[#allocation11 + $0x960] ss:$16 sps:$4 sm:$0xff]  }
 0x54a   : > { %6178 = vmatpush1.bf16.msra.mxu1 %v10148_v15  ;;  %6093 = vmatprep.subr.bf16.mxu0 %v10153_v17  ;;  %v10232_v15 = vld [vmem:[#allocation11 + $0x968] ss:$16 sps:$4 sm:$0xff]   ;;  %v10237_v17 = vld [vmem:[#allocation11 + $0x984] ss:$16 sps:$4 sm:$0xff]  }
 0x54b   : > { %6179 = vmatprep.subr.bf16.mxu1 %v10156_v22  ;;  %v10240_v22 = vld [vmem:[#allocation11 + $0x98c] ss:$16 sps:$4 sm:$0xff]  }
 0x54d   : > { %6094 = vmatpush1.bf16.msra.mxu0 %v10151_v19  ;;  %v10235_v19 = vld [vmem:[#allocation11 + $0x980] ss:$16 sps:$4 sm:$0xff]  }
 0x54e   : > { %6180 = vmatpush1.bf16.msra.mxu1 %v10154_v20  ;;  %6095 = vmatprep.subr.bf16.mxu0 %v10159_v16  ;;  %v10238_v20 = vld [vmem:[#allocation11 + $0x988] ss:$16 sps:$4 sm:$0xff]   ;;  %v10243_v16 = vld [vmem:[#allocation11 + $0x9a4] ss:$16 sps:$4 sm:$0xff]  }
 0x54f   : > { %6181 = vmatprep.subr.bf16.mxu1 %v10162_v21  ;;  %v10246_v21 = vld [vmem:[#allocation11 + $0x9ac] ss:$16 sps:$4 sm:$0xff]  }
 0x551   : > { %6096 = vmatpush1.bf16.msra.mxu0 %v10157_v23  ;;  %v10241_v23 = vld [vmem:[#allocation11 + $0x9a0] ss:$16 sps:$4 sm:$0xff]  }
 0x552   : > { %6182 = vmatpush1.bf16.msra.mxu1 %v10160_v24  ;;  %6962 = vmatprep.subr.bf16.mxu0 %v10165_v25  ;;  %v10244_v24 = vld [vmem:[#allocation11 + $0x9a8] ss:$16 sps:$4 sm:$0xff]   ;;  %v10249_v25 = vld [vmem:[#allocation11 + $0x9c4] ss:$16 sps:$4 sm:$0xff]  }
 0x553   : > { %7048 = vmatprep.subr.bf16.mxu1 %v10168_v43  ;;  %v10252_v43 = vld [vmem:[#allocation11 + $0x9cc] ss:$16 sps:$4 sm:$0xff]  }
 0x554   : > { %6098 = vmatmul.mubr.bf16.vlgmr.msra.gmra.mrb[24].mxu0 %v11267_v0 }
 0x555   : > { %6184 = vmatmul.mubr.bf16.vlgmr.msra.gmra.mrb[24].mxu1 %v11267_v0  ;;  %6963 = vmatpush1.bf16.msra.mxu0 %v10163_v26  ;;  %v10247_v26 = vld [vmem:[#allocation11 + $0x9c0] ss:$16 sps:$4 sm:$0xff]  }
 0x556   : > { %6994 = vmatprep.mubr.bf16.mxu0 %v11269_v2  ;;  %7049 = vmatpush1.bf16.msra.mxu1 %v10166_v27  ;;  %v10250_v27 = vld [vmem:[#allocation11 + $0x9c8] ss:$16 sps:$4 sm:$0xff]  }
 0x557   : > { %7080 = vmatprep.mubr.bf16.mxu1 %v11269_v2  ;;  %6964 = vmatprep.subr.bf16.mxu0 %v10171_v28  ;;  %v10187_v2 = vld [vmem:[#allocation11 + $0x880] ss:$16 sps:$4 sm:$0xff]   ;;  %v10255_v28 = vld [vmem:[#allocation11 + $0x9e4] ss:$16 sps:$4 sm:$0xff]  }
 0x558   : > { %7050 = vmatprep.subr.bf16.mxu1 %v10174_v29  ;;  %v10258_v29 = vld [vmem:[#allocation11 + $0x9ec] ss:$16 sps:$4 sm:$0xff]  }
 0x559   : > { %6965 = vmatpush1.bf16.msra.mxu0 %v10169_v30  ;;  %v10253_v30 = vld [vmem:[#allocation11 + $0x9e0] ss:$16 sps:$4 sm:$0xff]  }
 0x55a   : > { %7051 = vmatpush1.bf16.msra.mxu1 %v10172_v31  ;;  %6966 = vmatprep.subr.bf16.mxu0 %v10177_v34  ;;  %v10256_v31 = vld [vmem:[#allocation11 + $0x9e8] ss:$16 sps:$4 sm:$0xff]   ;;  %v10261_v34 = vld [vmem:[#allocation11 + $0xa04] ss:$16 sps:$4 sm:$0xff]  }
 0x55b   : > { %7052 = vmatprep.subr.bf16.mxu1 %v10180_v39  ;;  %v10264_v39 = vld [vmem:[#allocation11 + $0xa0c] ss:$16 sps:$4 sm:$0xff]  }
 0x55d   : > { %6967 = vmatpush1.bf16.msra.mxu0 %v10175_v44  ;;  %v10259_v44 = vld [vmem:[#allocation11 + $0xa00] ss:$16 sps:$4 sm:$0xff]  }
 0x55e   : > { %7053 = vmatpush1.bf16.msra.mxu1 %v10178_v45  ;;  %6968 = vmatprep.subr.bf16.mxu0 %v10183_v42  ;;  %v10262_v45 = vld [vmem:[#allocation11 + $0xa08] ss:$16 sps:$4 sm:$0xff]   ;;  %v10267_v42 = vld [vmem:[#allocation11 + $0xa24] ss:$16 sps:$4 sm:$0xff]  }
 0x55f   : > { %7054 = vmatprep.subr.bf16.mxu1 %v10186_v46  ;;  %v10270_v46 = vld [vmem:[#allocation11 + $0xa2c] ss:$16 sps:$4 sm:$0xff]  }
 0x561   : > { %6969 = vmatpush1.bf16.msra.mxu0 %v10181_v47  ;;  %v10265_v47 = vld [vmem:[#allocation11 + $0xa20] ss:$16 sps:$4 sm:$0xff]  }
 0x562   : > { %7055 = vmatpush1.bf16.msra.mxu1 %v10184_v51  ;;  %6970 = vmatprep.subr.bf16.mxu0 %v10189_v52  ;;  %v10268_v51 = vld [vmem:[#allocation11 + $0xa28] ss:$16 sps:$4 sm:$0xff]   ;;  %v10273_v52 = vld [vmem:[#allocation11 + $0xa44] ss:$16 sps:$4 sm:$0xff]  }
 0x563   : > { %7056 = vmatprep.subr.bf16.mxu1 %v10192_v53  ;;  %v10276_v53 = vld [vmem:[#allocation11 + $0xa4c] ss:$16 sps:$4 sm:$0xff]  }
 0x565   : > { %6971 = vmatpush1.bf16.msra.mxu0 %v10187_v2  ;;  %v10271_v2 = vld [vmem:[#allocation11 + $0xa40] ss:$16 sps:$4 sm:$0xff]  }
 0x566   : > { %7057 = vmatpush1.bf16.msra.mxu1 %v10190_v55  ;;  %6972 = vmatprep.subr.bf16.mxu0 %v10195_v49  ;;  %v10274_v55 = vld [vmem:[#allocation11 + $0xa48] ss:$16 sps:$4 sm:$0xff]   ;;  %v10279_v49 = vld [vmem:[#allocation11 + $0xa64] ss:$16 sps:$4 sm:$0xff]  }
 0x567   : > { %7058 = vmatprep.subr.bf16.mxu1 %v10198_v57  ;;  %v10277_v57 = vld [vmem:[#allocation11 + $0xa60] ss:$16 sps:$4 sm:$0xff]  }
 0x569   : > { %6973 = vmatpush1.bf16.msra.mxu0 %v10193_v54  ;;  %v10280_v54 = vld [vmem:[#allocation11 + $0xa68] ss:$16 sps:$4 sm:$0xff]  }
 0x56a   : > { %7059 = vmatpush1.bf16.msra.mxu1 %v10196_v58  ;;  %6974 = vmatprep.subr.bf16.mxu0 %v10201_v56  ;;  %v10285_v58 = vld [vmem:[#allocation11 + $0xa84] ss:$16 sps:$4 sm:$0xff]   ;;  %v10288_v56 = vld [vmem:[#allocation11 + $0xa8c] ss:$16 sps:$4 sm:$0xff]  }
 0x56b   : > { %7060 = vmatprep.subr.bf16.mxu1 %v10204_v37  ;;  %v10286_v37 = vld [vmem:[#allocation11 + $0xa88] ss:$16 sps:$4 sm:$0xff]  }
 0x56d   : > { %6975 = vmatpush1.bf16.msra.mxu0 %v10199_v38  ;;  %v10291_v38 = vld [vmem:[#allocation11 + $0xaa4] ss:$16 sps:$4 sm:$0xff]  }
 0x56e   : > { %7061 = vmatpush1.bf16.msra.mxu1 %v10202_v63  ;;  %6976 = vmatprep.subr.bf16.mxu0 %v10207_v60  ;;  %v10294_v63 = vld [vmem:[#allocation11 + $0xaac] ss:$16 sps:$4 sm:$0xff]   ;;  %v10289_v60 = vld [vmem:[#allocation11 + $0xaa0] ss:$16 sps:$4 sm:$0xff]  }
 0x56f   : > { %7062 = vmatprep.subr.bf16.mxu1 %v10210_v61  ;;  %v10292_v61 = vld [vmem:[#allocation11 + $0xaa8] ss:$16 sps:$4 sm:$0xff]  }
 0x571   : > { %6977 = vmatpush1.bf16.msra.mxu0 %v10205_v32  ;;  %v10297_v32 = vld [vmem:[#allocation11 + $0xac4] ss:$16 sps:$4 sm:$0xff]  }
 0x572   : > { %7063 = vmatpush1.bf16.msra.mxu1 %v10208_v33  ;;  %6978 = vmatprep.subr.bf16.mxu0 %v10213_v35 }
 0x573   : > { %7064 = vmatprep.subr.bf16.mxu1 %v10216_v62  ;;  %v10300_v62 = vld [vmem:[#allocation11 + $0xacc] ss:$16 sps:$4 sm:$0xff]  }
 0x575   : > { %6979 = vmatpush1.bf16.msra.mxu0 %v10211_v40 }
 0x576   : > { %7065 = vmatpush1.bf16.msra.mxu1 %v10214_v36  ;;  %6980 = vmatprep.subr.bf16.mxu0 %v10219_v41 }
 0x577   : > { %7066 = vmatprep.subr.bf16.mxu1 %v10222_v5 }
 0x579   : > { %6981 = vmatpush1.bf16.msra.mxu0 %v10217_v6  ;;  %v10295_v6 = vld [vmem:[#allocation11 + $0xac0] ss:$16 sps:$4 sm:$0xff]  }
 0x57a   : > { %7067 = vmatpush1.bf16.msra.mxu1 %v10220_v7  ;;  %6982 = vmatprep.subr.bf16.mxu0 %v10225_v8 }
 0x57b   : > { %7068 = vmatprep.subr.bf16.mxu1 %v10228_v9  ;;  %v10298_v9 = vld [vmem:[#allocation11 + $0xac8] ss:$16 sps:$4 sm:$0xff]  }
 0x57d   : > { %6983 = vmatpush1.bf16.msra.mxu0 %v10223_v10  ;;  %v10303_v10 = vld [vmem:[#allocation11 + $0xae4] ss:$16 sps:$4 sm:$0xff]  }
 0x57e   : > { %7069 = vmatpush1.bf16.msra.mxu1 %v10226_v11  ;;  %6984 = vmatprep.subr.bf16.mxu0 %v10231_v12  ;;  %v10306_v11 = vld [vmem:[#allocation11 + $0xaec] ss:$16 sps:$4 sm:$0xff]   ;;  %v10301_v12 = vld [vmem:[#allocation11 + $0xae0] ss:$16 sps:$4 sm:$0xff]  }
 0x57f   : > { %7070 = vmatprep.subr.bf16.mxu1 %v10234_v13  ;;  %v10304_v13 = vld [vmem:[#allocation11 + $0xae8] ss:$16 sps:$4 sm:$0xff]  }
 0x581   : > { %6985 = vmatpush1.bf16.msra.mxu0 %v10229_v14  ;;  %v10309_v14 = vld [vmem:[#allocation11 + $0xb04] ss:$16 sps:$4 sm:$0xff]  }
 0x582   : > { %7071 = vmatpush1.bf16.msra.mxu1 %v10232_v15  ;;  %6986 = vmatprep.subr.bf16.mxu0 %v10237_v17  ;;  %v10312_v15 = vld [vmem:[#allocation11 + $0xb0c] ss:$16 sps:$4 sm:$0xff]   ;;  %v10307_v17 = vld [vmem:[#allocation11 + $0xb00] ss:$16 sps:$4 sm:$0xff]  }
 0x583   : > { %7072 = vmatprep.subr.bf16.mxu1 %v10240_v22  ;;  %v10310_v22 = vld [vmem:[#allocation11 + $0xb08] ss:$16 sps:$4 sm:$0xff]  }
 0x585   : > { %6987 = vmatpush1.bf16.msra.mxu0 %v10235_v19  ;;  %v10315_v19 = vld [vmem:[#allocation11 + $0xb24] ss:$16 sps:$4 sm:$0xff]  }
 0x586   : > { %7073 = vmatpush1.bf16.msra.mxu1 %v10238_v20  ;;  %6988 = vmatprep.subr.bf16.mxu0 %v10243_v16  ;;  %v10318_v20 = vld [vmem:[#allocation11 + $0xb2c] ss:$16 sps:$4 sm:$0xff]   ;;  %v10313_v16 = vld [vmem:[#allocation11 + $0xb20] ss:$16 sps:$4 sm:$0xff]  }
 0x587   : > { %7074 = vmatprep.subr.bf16.mxu1 %v10246_v21  ;;  %v10316_v21 = vld [vmem:[#allocation11 + $0xb28] ss:$16 sps:$4 sm:$0xff]  }
 0x589   : > { %6989 = vmatpush1.bf16.msra.mxu0 %v10241_v23  ;;  %v10321_v23 = vld [vmem:[#allocation11 + $0xb44] ss:$16 sps:$4 sm:$0xff]  }
 0x58a   : > { %7075 = vmatpush1.bf16.msra.mxu1 %v10244_v24  ;;  %6990 = vmatprep.subr.bf16.mxu0 %v10249_v25  ;;  %v10324_v24 = vld [vmem:[#allocation11 + $0xb4c] ss:$16 sps:$4 sm:$0xff]   ;;  %v10319_v25 = vld [vmem:[#allocation11 + $0xb40] ss:$16 sps:$4 sm:$0xff]  }
 0x58b   : > { %7076 = vmatprep.subr.bf16.mxu1 %v10252_v43  ;;  %v10322_v43 = vld [vmem:[#allocation11 + $0xb48] ss:$16 sps:$4 sm:$0xff]  }
 0x58d   : > { %6991 = vmatpush1.bf16.msra.mxu0 %v10247_v26  ;;  %v10327_v26 = vld [vmem:[#allocation11 + $0xb64] ss:$16 sps:$4 sm:$0xff]  }
 0x58e   : > { %7077 = vmatpush1.bf16.msra.mxu1 %v10250_v27  ;;  %6992 = vmatprep.subr.bf16.mxu0 %v10255_v28  ;;  %v10330_v27 = vld [vmem:[#allocation11 + $0xb6c] ss:$16 sps:$4 sm:$0xff]   ;;  %v10325_v28 = vld [vmem:[#allocation11 + $0xb60] ss:$16 sps:$4 sm:$0xff]  }
 0x58f   : > { %7078 = vmatprep.subr.bf16.mxu1 %v10258_v29  ;;  %v10328_v29 = vld [vmem:[#allocation11 + $0xb68] ss:$16 sps:$4 sm:$0xff]  }
 0x591   : > { %6993 = vmatpush1.bf16.msra.mxu0 %v10253_v30  ;;  %v10333_v30 = vld [vmem:[#allocation11 + $0xb84] ss:$16 sps:$4 sm:$0xff]  }
 0x592   : > { %7079 = vmatpush1.bf16.msra.mxu1 %v10256_v31  ;;  %7005 = vmatprep.subr.bf16.mxu0 %v10261_v34  ;;  %v10336_v31 = vld [vmem:[#allocation11 + $0xb8c] ss:$16 sps:$4 sm:$0xff]   ;;  %v10331_v34 = vld [vmem:[#allocation11 + $0xb80] ss:$16 sps:$4 sm:$0xff]  }
 0x593   : > { %7091 = vmatprep.subr.bf16.mxu1 %v10264_v39  ;;  %v10334_v39 = vld [vmem:[#allocation11 + $0xb88] ss:$16 sps:$4 sm:$0xff]  }
 0x594   : > { %6995 = vmatmul.mubr.bf16.vlgmr.msra.gmra.mrb[28].mxu0 %v11265_v59 }
 0x595   : > { %7081 = vmatmul.mubr.bf16.vlgmr.msra.gmra.mrb[28].mxu1 %v11265_v59  ;;  %7006 = vmatpush1.bf16.msra.mxu0 %v10259_v44  ;;  %v10282_v59 = vld [vmem:[#allocation11 + $0xa6c] ss:$16 sps:$4 sm:$0xff]   ;;  %v10339_v44 = vld [vmem:[#allocation11 + $0xba4] ss:$16 sps:$4 sm:$0xff]  }
 0x596   : > { %7037 = vmatprep.mubr.bf16.mxu0 %v11273_v3  ;;  %7092 = vmatpush1.bf16.msra.mxu1 %v10262_v45  ;;  %v10342_v45 = vld [vmem:[#allocation11 + $0xbac] ss:$16 sps:$4 sm:$0xff]  }
 0x597   : > { %7123 = vmatprep.mubr.bf16.mxu1 %v11273_v3  ;;  %7007 = vmatprep.subr.bf16.mxu0 %v10267_v42  ;;  %v10283_v3 = vld [vmem:[#allocation11 + $0xa80] ss:$16 sps:$4 sm:$0xff]  }
 0x598   : > { %7093 = vmatprep.subr.bf16.mxu1 %v10270_v46  ;;  %v10337_v42 = vld [vmem:[#allocation11 + $0xba0] ss:$16 sps:$4 sm:$0xff]   ;;  %v10340_v46 = vld [vmem:[#allocation11 + $0xba8] ss:$16 sps:$4 sm:$0xff]  }
 0x599   : > { %7008 = vmatpush1.bf16.msra.mxu0 %v10265_v47  ;;  %v10345_v47 = vld [vmem:[#allocation11 + $0xbc4] ss:$16 sps:$4 sm:$0xff]  }
 0x59a   : > { %7094 = vmatpush1.bf16.msra.mxu1 %v10268_v51  ;;  %7009 = vmatprep.subr.bf16.mxu0 %v10273_v52  ;;  %v10348_v51 = vld [vmem:[#allocation11 + $0xbcc] ss:$16 sps:$4 sm:$0xff]   ;;  %v10343_v52 = vld [vmem:[#allocation11 + $0xbc0] ss:$16 sps:$4 sm:$0xff]  }
 0x59b   : > { %7095 = vmatprep.subr.bf16.mxu1 %v10276_v53  ;;  %v10346_v53 = vld [vmem:[#allocation11 + $0xbc8] ss:$16 sps:$4 sm:$0xff]  }
 0x59d   : > { %7010 = vmatpush1.bf16.msra.mxu0 %v10271_v2  ;;  %v10351_v2 = vld [vmem:[#allocation11 + $0xbe4] ss:$16 sps:$4 sm:$0xff]  }
 0x59e   : > { %7096 = vmatpush1.bf16.msra.mxu1 %v10274_v55  ;;  %7011 = vmatprep.subr.bf16.mxu0 %v10279_v49  ;;  %v10354_v55 = vld [vmem:[#allocation11 + $0xbec] ss:$16 sps:$4 sm:$0xff]   ;;  %v10349_v49 = vld [vmem:[#allocation11 + $0xbe0] ss:$16 sps:$4 sm:$0xff]  }
 0x59f   : > { %7097 = vmatprep.subr.bf16.mxu1 %v10282_v59  ;;  %v10352_v59 = vld [vmem:[#allocation11 + $0xbe8] ss:$16 sps:$4 sm:$0xff]  }
 0x5a1   : > { %7012 = vmatpush1.bf16.msra.mxu0 %v10277_v57 }
 0x5a2   : > { %7098 = vmatpush1.bf16.msra.mxu1 %v10280_v54  ;;  %7013 = vmatprep.subr.bf16.mxu0 %v10285_v58 }
 0x5a3   : > { %7099 = vmatprep.subr.bf16.mxu1 %v10288_v56 }
 0x5a5   : > { %7014 = vmatpush1.bf16.msra.mxu0 %v10283_v3 }
 0x5a6   : > { %7100 = vmatpush1.bf16.msra.mxu1 %v10286_v37  ;;  %7015 = vmatprep.subr.bf16.mxu0 %v10291_v38 }
 0x5a7   : > { %v11295_v33 = vpop.f32.mrb[20].mxu0  ;;  %v11297_v35 = vpop.f32.mrb[20].mxu1  ;;  %7101 = vmatprep.subr.bf16.mxu1 %v10294_v63 }
 0x5a8   : > { %v11299_v40 = vpop.f32.mrb[21].mxu0  ;;  %v11301_v36 = vpop.f32.mrb[21].mxu1 }
 0x5a9   : > { %v11303_v41 = vpop.f32.mrb[22].mxu0  ;;  %v11305_v5 = vpop.f32.mrb[22].mxu1  ;;  %7016 = vmatpush1.bf16.msra.mxu0 %v10289_v60 }
 0x5aa   : > { %7102 = vmatpush1.bf16.msra.mxu1 %v10292_v61  ;;  %v11307_v7 = vpop.f32.mrb[23].mxu0  ;;  %v11309_v8 = vpop.f32.mrb[23].mxu1  ;;  %7017 = vmatprep.subr.bf16.mxu0 %v10297_v32 }
 0x5ab   : > { %7103 = vmatprep.subr.bf16.mxu1 %v10300_v62 }
 0x5ad   : > { %7018 = vmatpush1.bf16.msra.mxu0 %v10295_v6 }
 0x5ae   : > { %7104 = vmatpush1.bf16.msra.mxu1 %v10298_v9  ;;  %7019 = vmatprep.subr.bf16.mxu0 %v10303_v10 }
 0x5af   : > { %7105 = vmatprep.subr.bf16.mxu1 %v10306_v11 }
 0x5b1   : > { %7020 = vmatpush1.bf16.msra.mxu0 %v10301_v12 }
 0x5b2   : > { %7106 = vmatpush1.bf16.msra.mxu1 %v10304_v13  ;;  %7021 = vmatprep.subr.bf16.mxu0 %v10309_v14 }
 0x5b3   : > { %7107 = vmatprep.subr.bf16.mxu1 %v10312_v15 }
 0x5b5   : > { %7022 = vmatpush1.bf16.msra.mxu0 %v10307_v17 }
 0x5b6   : > { %7108 = vmatpush1.bf16.msra.mxu1 %v10310_v22  ;;  %7023 = vmatprep.subr.bf16.mxu0 %v10315_v19 }
 0x5b7   : > { %7109 = vmatprep.subr.bf16.mxu1 %v10318_v20 }
 0x5b9   : > { %7024 = vmatpush1.bf16.msra.mxu0 %v10313_v16 }
 0x5ba   : > { %7110 = vmatpush1.bf16.msra.mxu1 %v10316_v21  ;;  %7025 = vmatprep.subr.bf16.mxu0 %v10321_v23  ;;  %v7206_v21 = vld [vmem:[#allocation13] sm:$0xf] }
 0x5bb   : > { %7111 = vmatprep.subr.bf16.mxu1 %v10324_v24 }
 0x5bd   : > { %7026 = vmatpush1.bf16.msra.mxu0 %v10319_v25 }
 0x5be   : > { %7112 = vmatpush1.bf16.msra.mxu1 %v10322_v43  ;;  %7027 = vmatprep.subr.bf16.mxu0 %v10327_v26  ;;  %v7211_v43 = vrot.slane %v7206_v21, %v11182_v48 }
 0x5bf   : > { %7113 = vmatprep.subr.bf16.mxu1 %v10330_v27 }
 0x5c1   : > { %7028 = vmatpush1.bf16.msra.mxu0 %v10325_v28  ;;  %v7215_v28 = vrot.slane %v7206_v21, %v11184_v50 }
 0x5c2   : > { %7114 = vmatpush1.bf16.msra.mxu1 %v10328_v29  ;;  %7029 = vmatprep.subr.bf16.mxu0 %v10333_v30 }
 0x5c3   : > { %7115 = vmatprep.subr.bf16.mxu1 %v10336_v31 }
 0x5c5   : > { %7030 = vmatpush1.bf16.msra.mxu0 %v10331_v34 }
 0x5c6   : > { %7116 = vmatpush1.bf16.msra.mxu1 %v10334_v39  ;;  %7031 = vmatprep.subr.bf16.mxu0 %v10339_v44 }
 0x5c7   : > { %7117 = vmatprep.subr.bf16.mxu1 %v10342_v45 }
 0x5c9   : > { %7032 = vmatpush1.bf16.msra.mxu0 %v10337_v42 }
 0x5ca   : > { %7118 = vmatpush1.bf16.msra.mxu1 %v10340_v46  ;;  %7033 = vmatprep.subr.bf16.mxu0 %v10345_v47 }
 0x5cb   : > { %7119 = vmatprep.subr.bf16.mxu1 %v10348_v51 }
 0x5cd   : > { %7034 = vmatpush1.bf16.msra.mxu0 %v10343_v52 }
 0x5ce   : > { %7120 = vmatpush1.bf16.msra.mxu1 %v10346_v53  ;;  %7035 = vmatprep.subr.bf16.mxu0 %v10351_v2 }
 0x5cf   : > { %7121 = vmatprep.subr.bf16.mxu1 %v10354_v55 }
 0x5d1   : > { %7036 = vmatpush1.bf16.msra.mxu0 %v10349_v49 }
 0x5d2   : > { %7122 = vmatpush1.bf16.msra.mxu1 %v10352_v59 }
 0x5d4   : > { %7038 = vmatmul.mubr.bf16.vlgmr.msra.gmra.mrb[28].mxu0 %v11267_v0 }
 0x5d5   : > { %7124 = vmatmul.mubr.bf16.vlgmr.msra.gmra.mrb[28].mxu1 %v11267_v0  ;;  %7289 = vmatprep.mubr.bf16.mxu0 %v10773_v18 }
 0x5d6   : > { %7330 = vmatprep.mubr.bf16.mxu1 %v10773_v18 }
 0x627   : > { %v6099_v57 = vpop.f32.mrb[24].mxu0 }
 0x628   : > { %v6185_v54 = vpop.f32.mrb[24].mxu1  ;;  %v6101_v58 = vpop.f32.mrb[25].mxu0  ;;  %v7142_v37 = vrot.slane %v6099_v57, 1 }
 0x629   : > { %v6187_v56 = vpop.f32.mrb[25].mxu1  ;;  %v6103_v3 = vpop.f32.mrb[26].mxu0  ;;  %v7148_v61 = vrot.slane %v6185_v54, 1  ;;  %v7145_v32 = vrot.slane %v6101_v58, 1 }
 0x62a   : > { %v7143_v38 = vrot.slane %v6103_v3, 1  ;;  %v6189_v63 = vpop.f32.mrb[26].mxu1  ;;  %v6105_v60 = vpop.f32.mrb[27].mxu0  ;;  %v7151_v10 = vrot.slane %v6187_v56, 1 }
 0x62b   : > { %v7149_v62 = vrot.slane %v6189_v63, 1  ;;  %v7146_v6 = vrot.slane %v6105_v60, 1  ;;  %v6191_v9 = vpop.f32.mrb[27].mxu1  ;;  %v10355_v60 = vld [vmem:[#allocation16 + $0x40] sm:$0xff]  }
 0x62c   : > { %v7144_v0 = vsel %vm4206_vm0, %v7142_v37, %v7143_v38  ;;  %v7166_v11 = vadd.f32 %v7143_v38, %v11303_v41  ;;  %v7152_v18 = vrot.slane %v6191_v9, 1  ;;  %v7236_v9 = vld [vmem:[#allocation14] sm:$0x1] }
 0x62d   : > { %v7162_v12 = vadd.f32 %v7144_v0, %v11295_v33  ;;  %v7150_v13 = vsel %vm4206_vm0, %v7148_v61, %v7149_v62  ;;  %v7168_v14 = vadd.f32 %v7149_v62, %v11305_v5  ;;  %v7147_v15 = vsel %vm4206_vm0, %v7145_v32, %v7146_v6  ;;  %v10359_v0 = vld [vmem:[#allocation16 + $0x48] sm:$0xff]  }
 0x62e   : > { %v7164_v17 = vadd.f32 %v7150_v13, %v11297_v35  ;;  %v7163_v22 = vadd.f32 %v7147_v15, %v11299_v40  ;;  %v7167_v19 = vadd.f32 %v7146_v6, %v11307_v7  ;;  %v7153_v20 = vsel %vm4206_vm0, %v7151_v10, %v7152_v18  ;;  %v10357_v6 = vld [vmem:[#allocation16 + $0xc0] sm:$0xff]   ;;  %v10363_v13 = vld [vmem:[#allocation16 + $0x50] sm:$0xff]  }
 0x62f   : > { %v7165_v16 = vadd.f32 %v7153_v20, %v11301_v36  ;;  %v7169_v41 = vadd.f32 %v7152_v18, %v11309_v8  ;;  %v7219_v35 = vrot.slane %v7206_v21, %v11188_v1  ;;  %v7223_v36 = vrot.slane %v7206_v21, %v11190_v4  ;;  %v10356_v10 = vld [vmem:[#allocation16] sm:$0xff]   ;;  %v10361_v18 = vld [vmem:[#allocation16 + $0xc8] sm:$0xff]   ;;  %v10365_v15 = vld [vmem:[#allocation16 + $0xd0] sm:$0xff]  }
 0x630   : > { %v10369_v20 = vld [vmem:[#allocation16 + $0xd8] sm:$0xff]  }
 0x631   : > { %v10370_v21 = vld [vmem:[#allocation16 + $0x98] sm:$0xff]  }
 0x6a7   : > { %v7039_v33 = vpop.f32.mrb[28].mxu0 }
 0x6a8   : > { %v7125_v23 = vpop.f32.mrb[28].mxu1  ;;  %v7041_v24 = vpop.f32.mrb[29].mxu0  ;;  %v7178_v26 = vrot.slane %v7039_v33, 2  ;;  %v10373_v33 = vld [vmem:[#allocation16 + $0xe0] sm:$0xff]  }
 0x6a9   : > { %v7127_v25 = vpop.f32.mrb[29].mxu1  ;;  %v7043_v5 = vpop.f32.mrb[30].mxu0  ;;  %v7184_v29 = vrot.slane %v7125_v23, 2  ;;  %v7181_v8 = vrot.slane %v7041_v24, 2  ;;  %v10372_v23 = vld [vmem:[#allocation16 + $0x20] sm:$0xff]   ;;  %v10375_v24 = vld [vmem:[#allocation16 + $0x68] sm:$0xff]  }
 0x6aa   : > { %v7179_v40 = vrot.slane %v7043_v5, 2  ;;  %v7129_v27 = vpop.f32.mrb[30].mxu1  ;;  %v7045_v7 = vpop.f32.mrb[31].mxu0  ;;  %v7187_v39 = vrot.slane %v7127_v25, 2  ;;  %v10374_v25 = vld [vmem:[#allocation16 + $0xa0] sm:$0xff]   ;;  %v10377_v5 = vld [vmem:[#allocation16 + $0xe8] sm:$0xff]  }
 0x6ab   : > { %v7185_v30 = vrot.slane %v7129_v27, 2  ;;  %v7182_v31 = vrot.slane %v7045_v7, 2  ;;  %v7131_v34 = vpop.f32.mrb[31].mxu1  ;;  %v10380_v27 = vld [vmem:[#allocation16 + $0x30] sm:$0xff]  }
 0x6ac   : > { %v7180_v44 = vsel %vm4243_vm1, %v7178_v26, %v7179_v40  ;;  %v7202_v45 = vadd.f32 %v7179_v40, %v7166_v11  ;;  %v7188_v48 = vrot.slane %v7131_v34, 2  ;;  %v10358_v11 = vld [vmem:[#allocation16 + $0x80] sm:$0xff]   ;;  %v10378_v26 = vld [vmem:[#allocation16 + $0xa8] sm:$0xff]   ;;  %v10381_v40 = vld [vmem:[#allocation16 + $0xf0] sm:$0xff]  }
 0x6ad   : > { %v7198_v42 = vadd.f32 %v7180_v44, %v7162_v12  ;;  %v7186_v1 = vsel %vm4243_vm1, %v7184_v29, %v7185_v30  ;;  %v7204_v46 = vadd.f32 %v7185_v30, %v7168_v14  ;;  %v7183_v47 = vsel %vm4243_vm1, %v7181_v8, %v7182_v31  ;;  %v10360_v12 = vld [vmem:[#allocation16 + $0x8] sm:$0xff]   ;;  %v10382_v7 = vld [vmem:[#allocation16 + $0xb0] sm:$0xff]   ;;  %v10384_v29 = vld [vmem:[#allocation16 + $0x38] sm:$0xff]  }
 0x6ae   : > { %v7232_v51 = vadd.f32 %v7211_v43, %v7202_v45  ;;  %v7200_v50 = vadd.f32 %v7186_v1, %v7164_v17  ;;  %v7199_v52 = vadd.f32 %v7183_v47, %v7163_v22  ;;  %v7203_v4 = vadd.f32 %v7182_v31, %v7167_v19  ;;  %v10362_v14 = vld [vmem:[#allocation16 + $0x88] sm:$0xff]   ;;  %v10364_v17 = vld [vmem:[#allocation16 + $0x10] sm:$0xff]   ;;  %v10367_v22 = vld [vmem:[#allocation16 + $0x58] sm:$0xff]  }
 0x6af   : > { %v7234_v53 = vadd.f32 %v7219_v35, %v7204_v46  ;;  %v7189_v2 = vsel %vm4243_vm1, %v7187_v39, %v7188_v48  ;;  %v7205_v55 = vadd.f32 %v7188_v48, %v7169_v41  ;;  %v7228_v49 = vadd.f32 %v7211_v43, %v7198_v42  ;;  %v10366_v19 = vld [vmem:[#allocation16 + $0x90] sm:$0xff]   ;;  %v10371_v41 = vld [vmem:[#allocation16 + $0x60] sm:$0xff]   ;;  %v10376_v43 = vld [vmem:[#allocation16 + $0x28] sm:$0xff]  }
 0x6b0   : > { %v7229_v59 = vadd.f32 %v7215_v28, %v7199_v52  ;;  %v7233_v57 = vadd.f32 %v7215_v28, %v7203_v4  ;;  %v7201_v54 = vadd.f32 %v7189_v2, %v7165_v16  ;;  %v7230_v58 = vadd.f32 %v7219_v35, %v7200_v50  ;;  %v10368_v16 = vld [vmem:[#allocation16 + $0x18] sm:$0xff]   ;;  %v10379_v35 = vld [vmem:[#allocation16 + $0x70] sm:$0xff]  }
 0x6b1   : > { %v7235_v56 = vadd.f32 %v7223_v36, %v7205_v55  ;;  %v7237_v3 = vpack.c.bf16 %v7232_v51, %v7228_v49  ;;  %v10383_v28 = vld [vmem:[#allocation16 + $0x78] sm:$0xff]   ;;  %v8759_v55 = vld [vmem:[#allocation17] ss:$0 sm:$0xff] }
 0x6b2   : > { %v7238_v37 = vpack.c.bf16 %v7233_v57, %v7229_v59  ;;  %v7231_v38 = vadd.f32 %v7223_v36, %v7201_v54  ;;  %v7239_v63 = vpack.c.bf16 %v7234_v53, %v7230_v58  ;;  %v10385_v36 = vld [vmem:[#allocation16 + $0xf8] sm:$0xff]  }
 0x6b3   : > { %v7246_v61 = vsel %vm4243_vm1, %v7237_v3, 0  ;;  %v10386_v8 = vld [vmem:[#allocation16 + $0xb8] sm:$0xff]  }
 0x6b4   : > { %v7240_v32 = vpack.c.bf16 %v7235_v56, %v7231_v38  ;;  %8755 = vmatprep.subr.msk.bf16.mxu0 %vm4243_vm1, %v7238_v37  ;;  %v7252_v62 = vsel %vm4243_vm1, %v7239_v63, 0 }
 0x6b5   : > { %7258 = vmatpush1.bf16.msra.mxu0 %v7246_v61 }
 0x6b6   : > { %8757 = vmatprep.subr.msk.bf16.mxu1 %vm4243_vm1, %v7240_v32  ;;  %8796 = vmatprep.subr.bf16.mxu0 %v10355_v60 }
 0x6b7   : > { %7299 = vmatpush1.bf16.msra.mxu1 %v7252_v62 }
 0x6b8   : > { %8756 = vmatmul.mubr.msk.bf16.vlgmr.msra.gmra.mrb[32].mxu0 %vm7241_vm2, %v7236_v9  ;;  %8818 = vmatprep.subr.bf16.mxu1 %v10357_v6 }
 0x6b9   : > { %8797 = vmatpush3.bf16.msra.mxu0 %v10356_v10 }
 0x6ba   : > { %8758 = vmatmul.mubr.msk.bf16.vlgmr.msra.gmra.mrb[32].mxu1 %vm7241_vm2, %v7236_v9  ;;  %8798 = vmatprep.subr.bf16.mxu0 %v10359_v0 }
 0x6bb   : > { %8819 = vmatpush3.bf16.msra.mxu1 %v10358_v11 }
 0x6bc   : > { %8820 = vmatprep.subr.bf16.mxu1 %v10361_v18 }
 0x6bd   : > { %8799 = vmatpush3.bf16.msra.mxu0 %v10360_v12 }
 0x6be   : > { %8800 = vmatprep.subr.bf16.mxu0 %v10363_v13 }
 0x6bf   : > { %8821 = vmatpush3.bf16.msra.mxu1 %v10362_v14 }
 0x6c0   : > { %8822 = vmatprep.subr.bf16.mxu1 %v10365_v15 }
 0x6c1   : > { %8801 = vmatpush3.bf16.msra.mxu0 %v10364_v17 }
 0x6c2   : > { %8802 = vmatprep.subr.bf16.mxu0 %v10367_v22 }
 0x6c3   : > { %8823 = vmatpush3.bf16.msra.mxu1 %v10366_v19 }
 0x6c4   : > { %8824 = vmatprep.subr.bf16.mxu1 %v10369_v20 }
 0x6c5   : > { %8803 = vmatpush3.bf16.msra.mxu0 %v10368_v16 }
 0x6c6   : > { %8804 = vmatprep.subr.bf16.mxu0 %v10371_v41 }
 0x6c7   : > { %8825 = vmatpush3.bf16.msra.mxu1 %v10370_v21 }
 0x6c8   : > { %8826 = vmatprep.subr.bf16.mxu1 %v10373_v33 }
 0x6c9   : > { %8805 = vmatpush3.bf16.msra.mxu0 %v10372_v23 }
 0x6ca   : > { %8806 = vmatprep.subr.bf16.mxu0 %v10375_v24 }
 0x6cb   : > { %8827 = vmatpush3.bf16.msra.mxu1 %v10374_v25 }
 0x6cc   : > { %8828 = vmatprep.subr.bf16.mxu1 %v10377_v5 }
 0x6cd   : > { %8807 = vmatpush3.bf16.msra.mxu0 %v10376_v43 }
 0x6ce   : > { %8808 = vmatprep.subr.bf16.mxu0 %v10379_v35 }
 0x6cf   : > { %8829 = vmatpush3.bf16.msra.mxu1 %v10378_v26 }
 0x6d0   : > { %8830 = vmatprep.subr.bf16.mxu1 %v10381_v40 }
 0x6d1   : > { %8809 = vmatpush3.bf16.msra.mxu0 %v10380_v27 }
 0x6d2   : > { %8810 = vmatprep.subr.bf16.mxu0 %v10383_v28 }
 0x6d3   : > { %8831 = vmatpush3.bf16.msra.mxu1 %v10382_v7 }
 0x6d4   : > { %8832 = vmatprep.subr.bf16.mxu1 %v10385_v36 }
 0x6d5   : > { %8811 = vmatpush3.bf16.msra.mxu0 %v10384_v29 }
 0x6d7   : > { %8833 = vmatpush3.bf16.msra.mxu1 %v10386_v8 }
 0x78b   : > { %v7291_v30 = vpop.f32.mrb[32].mxu0 }
 0x78c   : > { %v7339_v31 = vmul.f32 0.33333334, %v7291_v30  ;;  %v7293_v34 = vpop.f32.mrb[33].mxu0 }
 0x78d   : > { %v7340_v39 = vmul.f32 0.33333334, %v7293_v34  ;;  %v7332_v44 = vpop.f32.mrb[32].mxu1  ;;  %v7295_v45 = vpop.f32.mrb[34].mxu0 }
 0x78e   : > { %v7341_v48 = vmul.f32 0.33333334, %v7332_v44  ;;  %v7334_v42 = vpop.f32.mrb[33].mxu1  ;;  %v7296_v1 = vpop.f32.mrb[35].mxu0  ;;  %v7343_v50 = vpack.c.bf16 %v7339_v31, %v7339_v31 }
 0x78f   : > { %v7344_v46 = vpack.c.bf16 %v7340_v39, %v7340_v39  ;;  %v7342_v47 = vmul.f32 0.33333334, %v7334_v42  ;;  %v7336_v51 = vpop.f32.mrb[34].mxu1 }
 0x790   : > { %v7345_v52 = vpack.c.bf16 %v7341_v48, %v7341_v48  ;;  %v7337_v4 = vpop.f32.mrb[35].mxu1 }
 0x791   : > { %v7346_v53 = vpack.c.bf16 %v7342_v47, %v7342_v47  ;;  %7642 = vmatprep.mubr.bf16.mxu0 %v7344_v46 }
 0x792   : > { %7643 = vmatmul.mubr.bf16.vlgmr.msra.gmra.mrb[36].mxu0 %v7343_v50 }
 0x793   : > { %7682 = vmatprep.mubr.bf16.mxu1 %v7346_v53 }
 0x794   : > { %7683 = vmatmul.mubr.bf16.vlgmr.msra.gmra.mrb[36].mxu1 %v7345_v52 }
 0x865   : > { %v8812_v2 = vpop.f32.mrb[36].mxu0 }
 0x866   : > { %v8813_v49 = vpop.f32.mrb[37].mxu0 }
 0x867   : > { %v8814_v59 = vadd.f32 %v8813_v49, %v8812_v2  ;;  %v8815_v57 = vpop.f32.mrb[38].mxu0  ;;  %v8834_v54 = vpop.f32.mrb[36].mxu1 }
 0x868   : > { %v8816_v58 = vpop.f32.mrb[39].mxu0  ;;  %v8835_v56 = vpop.f32.mrb[37].mxu1 }
 0x869   : > { %v7645_v3 = vadd.f32 %v8814_v59, %v8759_v55  ;;  %v8836_v37 = vadd.f32 %v8835_v56, %v8834_v54  ;;  %v8837_v38 = vpop.f32.mrb[38].mxu1 }
 0x86a   : > { %v8838_v63 = vpop.f32.mrb[39].mxu1 }
 0x86b   : > { %v7685_v60 = vadd.f32 %v8836_v37, %v7645_v3 }
 0x86d   : > { %7690 = vst [vmem:[%s498_s10] sm:$0x3] %v7685_v60 }
 0x86e   : > { %10682 = shalt.err (!%p10679_p0)
}
 0x86f   : > { %s10683_s20 = scalar_lea.hbm %s11344_s12, 32  ;;  %s10687_s26 = scalar_lea.hbm %s11430_s2, 64 }
 0x870   : > { %p10684_p5 = scmp.ne.s32.totalorder %s11344_s12, %s10683_s20  ;;  %p10688_p4 = scmp.lt.u32.totalorder %s11344_s12, %s11430_s2 }
 0x871   : > { %p10689_p12 = scmp.lt.u32.totalorder %s10687_s26, %s10683_s20  ;;  %p10691_p1 = scmp.lt.u32.totalorder %s10683_s20, %s11344_s12 }
 0x872   : > { %p10685_p9 = pnand %p10684_p5, %p11431_p3 }
 0x873   : > { %p10690_p13 = por %p10689_p12, %p10688_p4 }
 0x874   : > { %p10686_p7 = pneg %p10685_p9 }
 0x875   : > { %p10692_p2 = por %p10691_p1, %p10690_p13 }
 0x877   : > { %p10693_p8 = pnand %p10692_p2, %p10686_p7 }
 0x879   : > { %10696 = shalt.err (!%p10693_p8)
}
 0x87a   : > { %8945 = dma.vmem_to_hbm [thread:$0]  (%p11431_p3), %s11346_s30, 32, %s11344_s12, %s7692_s24  }
 0x87b PF: > { %s7717_s28 = sand.u32 1, %s10743_s13   ;;  %p11432_p6 = scmp.ne.s32.totalorder %s11416_s18, 0 }
 0x87c   : > { %p11433_p10 = scmp.ge.s32.totalorder %s10755_s16, 2  ;;  %s7718_s19 = scalar_lea.sflag [#allocation4], %s7717_s28 }
 0x87e   : > { %p8980_p11 = pnand %p11433_p10, %p11432_p6 }
 0x880   : > { %10738 = dma.done.wait (!%p8980_p11), %s7718_s19, 32  }
 0x881   : > { %10740 = vsyncadd (!%p8980_p11), %s7718_s19, 4294967264  ;;  %p28_p0 = scmp.ge.s32.totalorder %s11069_s23, 4   ;;  %s11434_s13 = smov %s10747_s14 }
 0x882   : > { %s11435_s14 = smov %s10751_s15  ;;  %s11436_s15 = smov %s11081_s17 }
 0x883   : > { %s11437_s16 = smov %s11069_s23  ;;  %30 = sbr.rel (!%p28_p0) target bundleno = 14 (0xe), region = 141 }
 0x88a   :  { %7723 = vsyncpa [#allocation3], 1 }
 0x88b   :  { %7725 = vsyncpa [#allocation3 + $0x1], 1 }
 0x88c   :  { %7726 = vsyncpa [#allocation6], 1 }
 0x88d   :  { %7727 = vsyncpa [#allocation9], 1 }
 0x88e   :  { %7728 = vsyncpa [#allocation12], 1 }
 0x88f   :  { %7729 = vsyncpa [#allocation15], 1 }
 0x890   :  { %7730 = vsyncpa [#allocation18], 1 }
 0x891   :  { %7731 = vsyncpa [#allocation4], 1 }
 0x892   :  { %7733 = vsyncpa [#allocation4 + $0x1], 1 }

</bundles_post_ra>
